<compile_context>
chip_gen: v5e
topology: v5e:2x2
jax: 0.10.0
libtpu: 0.0.40
codegen_flags: <defaults>
</compile_context>

<pallas_src>
import numpy as np
import jax
import jax.numpy as jnp
from jax.experimental import pallas as pl
from jax.experimental.pallas import tpu as pltpu


POOL = 4        # AdaptiveAvgPool2d target (4, 4)
CONV_OUT = 128  # aux head 1x1 conv output channels


# ---------------------------------------------------------------------------
# Fused kernel: pool -> 1x1 conv + folded BN + ReLU -> FC1 + ReLU -> FC2
# ---------------------------------------------------------------------------
def aux_fused_kernel(x_ref, pt_ref, wc_ref, shift_ref,
                     wfc1_ref, b1_ref, wfc2_ref, b2_ref, o_ref):
    # x_ref    : (N, HW, C)     bf16  NHWC-flattened input (C on lanes)
    # pt_ref   : (16, HW)       bf16  adaptive-avg-pool matrix (transposed)
    # wc_ref   : (C, 128)       bf16  1x1 conv weight with BN scale folded in
    # shift_ref: (1, 128)       f32   folded conv-bias + BN shift
    # wfc1_ref : (2048, 1024)   bf16  fc1 weight, rows pre-permuted to p*128+c
    # b1_ref   : (1, 1024)      f32
    # wfc2_ref : (1024, NCpad)  bf16  fc2 weight, columns padded to 128 lanes
    # b2_ref   : (1, NCpad)     f32
    # o_ref    : (N, NCpad)     f32
    n, hw, c = x_ref.shape

    # AdaptiveAvgPool2d((4,4)) as a batched matmul: (N,16,HW) @ (N,HW,C) -> (N,16,C).
    ptb = jnp.broadcast_to(pt_ref[...], (n,) + pt_ref.shape)
    pooled = jnp.einsum("nph,nhc->npc", ptb, x_ref[...],
                        preferred_element_type=jnp.float32)
    pooled = pooled.reshape(n * POOL * POOL, c).astype(jnp.bfloat16)

    # 1x1 conv (C -> 128) with BN scale pre-folded, then shift + ReLU.
    conv = jnp.dot(pooled, wc_ref[...], preferred_element_type=jnp.float32)
    act = jnp.maximum(conv + shift_ref[...], 0.0)                 # (N*16, 128)

    # Flatten: (N*16,128) -> (N,2048) with feature index p*128+c (the w_fc1 rows
    # were permuted offline so this matches PyTorch's c*16+p flatten order).
    flat = act.reshape(n, POOL * POOL * CONV_OUT).astype(jnp.bfloat16)

    # Linear(2048,1024) + ReLU.  Dropout(0.7) is identity at inference.
    h = jnp.dot(flat, wfc1_ref[...], preferred_element_type=jnp.float32) + b1_ref[...]
    h = jnp.maximum(h, 0.0).astype(jnp.bfloat16)

    # Linear(1024, num_classes), padded to 128 lanes for unmasked stores.
    y = jnp.dot(h, wfc2_ref[...], preferred_element_type=jnp.float32) + b2_ref[...]
    o_ref[...] = y


# ---------------------------------------------------------------------------
# Helpers
# ---------------------------------------------------------------------------
def adaptive_pool_matrix(H, W, out_h=POOL, out_w=POOL):
    """(H*W, out_h*out_w) matrix reproducing AdaptiveAvgPool2d((out_h, out_w))."""
    P = np.zeros((H * W, out_h * out_w), np.float32)
    for i in range(out_h):
        h0, h1 = (i * H) // out_h, -((-(i + 1) * H) // out_h)
        for j in range(out_w):
            w0, w1 = (j * W) // out_w, -((-(j + 1) * W) // out_w)
            cnt = (h1 - h0) * (w1 - w0)
            for h in range(h0, h1):
                for w in range(w0, w1):
                    P[h * W + w, i * out_w + j] = 1.0 / cnt
    return P


def prepare_params(tp, H, W, eps=1e-5):
    """Fold BN, permute / pad / cast weights into the layout the kernel expects."""
    g = tp["gamma"] / jnp.sqrt(tp["running_var"] + eps)            # (128,)
    wc = (tp["w_conv"] * g[:, None]).T                             # (C,128) scale folded
    shift = ((tp["b_conv"] - tp["running_mean"]) * g + tp["beta"])[None, :]  # (1,128)

    # Permute fc1 rows: PyTorch flatten index c*16+p  ->  kernel index p*128+c.
    w_fc1_perm = (tp["w_fc1"].reshape(CONV_OUT, POOL * POOL, -1)
                  .transpose(1, 0, 2)
                  .reshape(POOL * POOL * CONV_OUT, -1))

    nc = tp["w_fc2"].shape[1]
    nc_pad = ((nc + 127) // 128) * 128
    w_fc2_pad = jnp.zeros((tp["w_fc2"].shape[0], nc_pad), jnp.float32).at[:, :nc].set(tp["w_fc2"])
    b_fc2_pad = jnp.zeros((1, nc_pad), jnp.float32).at[0, :nc].set(tp["b_fc2"])

    PT = jnp.asarray(adaptive_pool_matrix(H, W).T)                 # (16, HW)

    return dict(
        PT=PT.astype(jnp.bfloat16),
        wc=wc.astype(jnp.bfloat16),
        shift=shift.astype(jnp.float32),
        w_fc1=w_fc1_perm.astype(jnp.bfloat16),
        b_fc1=tp["b_fc1"][None, :].astype(jnp.float32),
        w_fc2=w_fc2_pad.astype(jnp.bfloat16),
        b_fc2=b_fc2_pad.astype(jnp.float32),
        num_classes=nc,
    )


def inception_aux_forward(x, kp):
    N, C, H, W = x.shape
    HW = H * W
    # NHWC flatten so channels sit on the lane axis; bf16 feed to the MXU.
    x_t = jnp.transpose(x, (0, 2, 3, 1)).reshape(N, HW, C).astype(jnp.bfloat16)
    nc_pad = kp["w_fc2"].shape[1]

    out_pad = pl.pallas_call(
        aux_fused_kernel,
        out_shape=jax.ShapeDtypeStruct((N, nc_pad), jnp.float32),
        compiler_params=pltpu.CompilerParams(vmem_limit_bytes=32 * 1024 * 1024),
    )(x_t, kp["PT"], kp["wc"], kp["shift"],
      kp["w_fc1"], kp["b_fc1"], kp["w_fc2"], kp["b_fc2"])

    return out_pad[:, :kp["num_classes"]]


def reference(x, tp, eps=1e-5):
    """Plain-JAX f32 reference mirroring the PyTorch forward (eval mode)."""
    N, C, H, W = x.shape
    P = jnp.asarray(adaptive_pool_matrix(H, W))                          # (HW,16)
    xp = (x.reshape(N, C, H * W) @ P).reshape(N, C, POOL, POOL)
    conv = jnp.einsum("oc,ncij->noij", tp["w_conv"], xp) + tp["b_conv"][None, :, None, None]
    g = tp["gamma"] / jnp.sqrt(tp["running_var"] + eps)
    bn = (conv - tp["running_mean"][None, :, None, None]) * g[None, :, None, None] \
        + tp["beta"][None, :, None, None]
    a = jnp.maximum(bn, 0.0)
    flat = a.reshape(N, CONV_OUT * POOL * POOL)                          # (c,h,w) order
    h = jnp.maximum(flat @ tp["w_fc1"] + tp["b_fc1"], 0.0)
    return h @ tp["w_fc2"] + tp["b_fc2"]


if __name__ == "__main__":
    key = jax.random.PRNGKey(0)
    N, C, H, W = 2, 64, 8, 8
    num_classes = 10
    ks = jax.random.split(key, 9)

    x = jax.random.normal(ks[0], (N, C, H, W), jnp.float32)

    # Original (PyTorch-style, f32) parameters; weights stored as (in, out).
    torch_params = dict(
        w_conv=jax.random.normal(ks[1], (CONV_OUT, C), jnp.float32) * 0.05,
        b_conv=jax.random.normal(ks[2], (CONV_OUT,), jnp.float32) * 0.05,
        gamma=1.0 + 0.01 * jnp.arange(CONV_OUT, dtype=jnp.float32),
        beta=0.01 * jnp.arange(CONV_OUT, dtype=jnp.float32),
        running_mean=jax.random.normal(ks[3], (CONV_OUT,), jnp.float32) * 0.05,
        running_var=1.0 + 0.1 * jnp.abs(jax.random.normal(ks[4], (CONV_OUT,), jnp.float32)),
        w_fc1=jax.random.normal(ks[5], (CONV_OUT * POOL * POOL, 1024), jnp.float32) * 0.02,
        b_fc1=jax.random.normal(ks[6], (1024,), jnp.float32) * 0.02,
        w_fc2=jax.random.normal(ks[7], (1024, num_classes), jnp.float32) * 0.02,
        b_fc2=jax.random.normal(ks[8], (num_classes,), jnp.float32) * 0.02,
    )

    kp = prepare_params(torch_params, H, W)

    out = jax.block_until_ready(inception_aux_forward(x, kp))
    ref = jax.block_until_ready(reference(x, torch_params))

    # Kernel uses bf16 weights/activations with f32 accumulation; compare against
    # the full-f32 reference with a correspondingly loosened tolerance.
    np.testing.assert_allclose(np.asarray(out), np.asarray(ref), rtol=3e-2, atol=3e-2)
    assert out.shape == (N, num_classes)
    print("KERNEL_OK")
</pallas_src>

<mosaic_0001>
module attributes {stable_mosaic.version = 11 : i64} {
  func.func @aux_fused_kernel(%arg0: memref<2x64x64xbf16, #tpu.memory_space<vmem>>, %arg1: memref<16x64xbf16, #tpu.memory_space<vmem>>, %arg2: memref<64x128xbf16, #tpu.memory_space<vmem>>, %arg3: memref<1x128xf32, #tpu.memory_space<vmem>>, %arg4: memref<2048x1024xbf16, #tpu.memory_space<vmem>>, %arg5: memref<1x1024xf32, #tpu.memory_space<vmem>>, %arg6: memref<1024x128xbf16, #tpu.memory_space<vmem>>, %arg7: memref<1x128xf32, #tpu.memory_space<vmem>>, %arg8: memref<2x128xf32, #tpu.memory_space<vmem>>) attributes {dimension_semantics = [], scalar_prefetch = 0 : i64, scratch_operands = 0 : i64, tpu.core_type = #tpu.core_type<tc>} {
    %c0 = arith.constant 0 : index
    %c0_0 = arith.constant 0 : index
    %0 = vector.load %arg1[%c0, %c0_0] : memref<16x64xbf16, #tpu.memory_space<vmem>>, vector<16x64xbf16>
    %1 = vector.shape_cast %0 : vector<16x64xbf16> to vector<1x16x64xbf16>
    %2 = vector.broadcast %1 : vector<1x16x64xbf16> to vector<2x16x64xbf16>
    %c0_1 = arith.constant 0 : index
    %c0_2 = arith.constant 0 : index
    %c0_3 = arith.constant 0 : index
    %3 = vector.load %arg0[%c0_1, %c0_2, %c0_3] : memref<2x64x64xbf16, #tpu.memory_space<vmem>>, vector<2x64x64xbf16>
    "tpu.trace_start"() <{level = 10 : i32, message = "nph,nhc->npc"}> : () -> ()
    %cst = arith.constant dense<0.000000e+00> : vector<2x16x64xf32>
    %4 = tpu.matmul %2, %3, %cst {dimension_numbers = #tpu.dot_dimension_numbers<[2], [1], [1], [2], [0, 0, 0, 1, 1, 2], [0], [0]>} : vector<2x16x64xbf16>, vector<2x64x64xbf16>, vector<2x16x64xf32> -> vector<2x16x64xf32>
    "tpu.trace_stop"() : () -> ()
    %5 = vector.shape_cast %4 : vector<2x16x64xf32> to vector<32x64xf32>
    %6 = arith.truncf %5 : vector<32x64xf32> to vector<32x64xbf16>
    %c0_4 = arith.constant 0 : index
    %c0_5 = arith.constant 0 : index
    %7 = vector.load %arg2[%c0_4, %c0_5] : memref<64x128xbf16, #tpu.memory_space<vmem>>, vector<64x128xbf16>
    %cst_6 = arith.constant dense<0.000000e+00> : vector<32x128xf32>
    %8 = tpu.matmul %6, %7, %cst_6 {dimension_numbers = #tpu.dot_dimension_numbers<[1], [0], [0], [1], [0, 0, 1, 1], [], []>} : vector<32x64xbf16>, vector<64x128xbf16>, vector<32x128xf32> -> vector<32x128xf32>
    %c0_7 = arith.constant 0 : index
    %c0_8 = arith.constant 0 : index
    %9 = vector.load %arg3[%c0_7, %c0_8] : memref<1x128xf32, #tpu.memory_space<vmem>>, vector<1x128xf32>
    %10 = vector.broadcast %9 : vector<1x128xf32> to vector<32x128xf32>
    %11 = arith.addf %8, %10 : vector<32x128xf32>
    %cst_9 = arith.constant 0.000000e+00 : f32
    %12 = vector.broadcast %cst_9 : f32 to vector<32x128xf32>
    %13 = arith.maximumf %11, %12 : vector<32x128xf32>
    %14 = vector.shape_cast %13 : vector<32x128xf32> to vector<2x2048xf32>
    %15 = arith.truncf %14 : vector<2x2048xf32> to vector<2x2048xbf16>
    %c0_10 = arith.constant 0 : index
    %c0_11 = arith.constant 0 : index
    %16 = vector.load %arg4[%c0_10, %c0_11] : memref<2048x1024xbf16, #tpu.memory_space<vmem>>, vector<2048x1024xbf16>
    %cst_12 = arith.constant dense<0.000000e+00> : vector<2x1024xf32>
    %17 = tpu.matmul %15, %16, %cst_12 {dimension_numbers = #tpu.dot_dimension_numbers<[1], [0], [0], [1], [0, 0, 1, 1], [], []>} : vector<2x2048xbf16>, vector<2048x1024xbf16>, vector<2x1024xf32> -> vector<2x1024xf32>
    %c0_13 = arith.constant 0 : index
    %c0_14 = arith.constant 0 : index
    %18 = vector.load %arg5[%c0_13, %c0_14] : memref<1x1024xf32, #tpu.memory_space<vmem>>, vector<1x1024xf32>
    %19 = vector.broadcast %18 : vector<1x1024xf32> to vector<2x1024xf32>
    %20 = arith.addf %17, %19 : vector<2x1024xf32>
    %cst_15 = arith.constant 0.000000e+00 : f32
    %21 = vector.broadcast %cst_15 : f32 to vector<2x1024xf32>
    %22 = arith.maximumf %20, %21 : vector<2x1024xf32>
    %23 = arith.truncf %22 : vector<2x1024xf32> to vector<2x1024xbf16>
    %c0_16 = arith.constant 0 : index
    %c0_17 = arith.constant 0 : index
    %24 = vector.load %arg6[%c0_16, %c0_17] : memref<1024x128xbf16, #tpu.memory_space<vmem>>, vector<1024x128xbf16>
    %cst_18 = arith.constant dense<0.000000e+00> : vector<2x128xf32>
    %25 = tpu.matmul %23, %24, %cst_18 {dimension_numbers = #tpu.dot_dimension_numbers<[1], [0], [0], [1], [0, 0, 1, 1], [], []>} : vector<2x1024xbf16>, vector<1024x128xbf16>, vector<2x128xf32> -> vector<2x128xf32>
    %c0_19 = arith.constant 0 : index
    %c0_20 = arith.constant 0 : index
    %26 = vector.load %arg7[%c0_19, %c0_20] : memref<1x128xf32, #tpu.memory_space<vmem>>, vector<1x128xf32>
    %27 = vector.broadcast %26 : vector<1x128xf32> to vector<2x128xf32>
    %28 = arith.addf %25, %27 : vector<2x128xf32>
    %c0_21 = arith.constant 0 : index
    %c0_22 = arith.constant 0 : index
    %29 = vector.load %arg8[%c0_21, %c0_22] : memref<2x128xf32, #tpu.memory_space<vmem>>, vector<2x128xf32>
    tpu.vector_store %arg8[%c0_21, %c0_22], %28 {strides = array<i32>} : memref<2x128xf32, #tpu.memory_space<vmem>>, vector<2x128xf32>,
    return
  }
}

</mosaic_0001>

<bundles_post_ra>
// kernel: tpu_custom_call.1
= control target key start
LH: loop header
LB: loop body
LE: loop exit
PB: predicated region body
PF: predicated region fallthrough
CT: control target
= control target key end

     0   :  { %13 = vsyncpa [#allocation3], 0  ;;  %s14993_s0 = inlined_call_operand.hbm [shape: bf16[2,64,64], index: 0, kind: input, shape index: {}]   ;;  %s14994_s1 = inlined_call_operand.hbm [shape: bf16[16,64], index: 1, kind: input, shape index: {}]   ;;  %s14995_s2 = inlined_call_operand.hbm [shape: bf16[64,128], index: 2, kind: input, shape index: {}]   ;;  %s14996_s3 = inlined_call_operand.hbm [shape: f32[1,128], index: 3, kind: input, shape index: {}]   ;;  %s14997_s4 = inlined_call_operand.hbm [shape: bf16[2048,1024], index: 4, kind: input, shape index: {}]   ;;  %s14998_s5 = inlined_call_operand.hbm [shape: f32[1,1024], index: 5, kind: input, shape index: {}]   ;;  %s14999_s6 = inlined_call_operand.hbm [shape: bf16[1024,128], index: 6, kind: input, shape index: {}]   ;;  %s15000_s7 = inlined_call_operand.hbm [shape: f32[1,128], index: 7, kind: input, shape index: {}]   ;;  %s15001_s8 = inlined_call_operand.hbm [shape: f32[2,128], index: 8, kind: output, shape index: {}]  }
   0x1   :  { %14 = vsyncpa [#allocation6], 0 }
   0x2   :  { %15 = vsyncpa [#allocation9], 0 }
   0x3   :  { %16 = vsyncpa [#allocation12], 0 }
   0x4   :  { %17 = vsyncpa [#allocation15], 0 }
   0x5   :  { %18 = vsyncpa [#allocation4], 0  ;;  %s36_s29 = sshll.u32 %s14994_s1, 4  ;;  %s14618_s30 = smov [#allocation5]   ;;  %s37_s29 = int_to_ptr.hbm [resolvable:$true] %s36_s29 }
   0x6   :  { %s38_s9 = sshll.u32 %s14618_s30, 4  ;;  %s63_s12 = sshll.u32 %s14996_s3, 4  ;;  %s39_s9 = int_to_ptr.vmem [resolvable:$true] %s38_s9  ;;  %s64_s12 = int_to_ptr.hbm [resolvable:$true] %s63_s12 }
   0x7   :  { %s14619_s13 = smov 64   ;;  %s14620_s14 = smov 4  }
   0x8   :  { %44 = dma.hbm_to_vmem [thread:$0]  %s37_s29, 128, %s39_s9, [#allocation6], %s14619_s13, %s14619_s13, %s14620_s14  }
   0x9   :  { %s14621_s15 = smov [#allocation8]   ;;  %s87_s1 = sshll.u32 %s14998_s5, 4  ;;  %s88_s1 = int_to_ptr.hbm [resolvable:$true] %s87_s1 }
   0xa   :  { %s65_s16 = sshll.u32 %s14621_s15, 4  ;;  %s23_s3 = sshll.u32 %s14993_s0, 4  ;;  %s66_s16 = int_to_ptr.vmem [resolvable:$true] %s65_s16  ;;  %s24_s3 = int_to_ptr.hbm [resolvable:$true] %s23_s3 }
   0xb   :  { %68 = dma.hbm_to_vmem [thread:$0]  %s64_s12, 16, %s66_s16, [#allocation9]  }
   0xc   :  { %s14622_s21 = smov [#allocation11]   ;;  %s14623_s23 = smov [#allocation2]  }
   0xd   :  { %s89_s22 = sshll.u32 %s14622_s21, 4  ;;  %s25_s24 = sshll.u32 %s14623_s23, 4  ;;  %s90_s22 = int_to_ptr.vmem [resolvable:$true] %s89_s22  ;;  %s26_s24 = int_to_ptr.vmem [resolvable:$true] %s25_s24 }
   0xe   :  { %92 = dma.hbm_to_vmem [thread:$0]  %s88_s1, 128, %s90_s22, [#allocation12]  }
   0xf   :  { %s49_s27 = sshll.u32 %s14995_s2, 4  ;;  %s73_s0 = sshll.u32 %s14997_s4, 4  ;;  %s50_s27 = int_to_ptr.hbm [resolvable:$true] %s49_s27  ;;  %s74_s0 = int_to_ptr.hbm [resolvable:$true] %s73_s0 }
  0x10   :  { %31 = dma.hbm_to_vmem [thread:$0]  %s24_s3, 1024, %s26_s24, [#allocation3], %s14619_s13, %s14619_s13, %s14620_s14  }
  0x11   :  { %s14624_s29 = smov [#allocation7]   ;;  %s14625_s9 = smov [#allocation10]  }
  0x12   :  { %s51_s30 = sshll.u32 %s14624_s29, 4  ;;  %s75_s2 = sshll.u32 %s14625_s9, 4  ;;  %s52_s30 = int_to_ptr.vmem [resolvable:$true] %s51_s30  ;;  %s76_s2 = int_to_ptr.vmem [resolvable:$true] %s75_s2 }
  0x13   :  { %57 = dma.hbm_to_vmem [thread:$0]  %s50_s27, 512, %s52_s30, [#allocation6], %s14619_s13, %s14619_s13, %s14620_s14  }
  0x14   :  { %s14626_s10 = smov 512   ;;  %s14627_s11 = smov 32  }
  0x15   :  { %81 = dma.hbm_to_vmem [thread:$0]  %s74_s0, 131072, %s76_s2, [#allocation9], %s14626_s10, %s14626_s10, %s14627_s11  }
  0x16   :  { %s97_s16 = sshll.u32 %s14999_s6, 4  ;;  %s14628_s4 = smov [#allocation13]   ;;  %s98_s16 = int_to_ptr.hbm [resolvable:$true] %s97_s16 }
  0x17   :  { %s99_s17 = sshll.u32 %s14628_s4, 4  ;;  %s111_s19 = sshll.u32 %s15000_s7, 4  ;;  %s100_s17 = int_to_ptr.vmem [resolvable:$true] %s99_s17  ;;  %s112_s19 = int_to_ptr.hbm [resolvable:$true] %s111_s19 }
  0x18   :  { %105 = dma.hbm_to_vmem [thread:$0]  %s98_s16, 8192, %s100_s17, [#allocation12], %s14619_s13, %s14619_s13, %s14620_s14  }
  0x19   :  { %s14629_s20 = smov [#allocation14]  }
  0x1a   :  { %s113_s3 = sshll.u32 %s14629_s20, 4  ;;  %s114_s3 = int_to_ptr.vmem [resolvable:$true] %s113_s3 }
  0x1b   :  { %116 = dma.hbm_to_vmem [thread:$0]  %s112_s19, 16, %s114_s3, [#allocation15]  }
  0x1c   :  { %14606 = dma.done.wait [#allocation3], 1024  }
  0x1d   :  { %14607 = vsyncadd [#allocation3], 4294966272 }
  0x1e   :  { %14608 = dma.done.wait [#allocation6], 640  }
  0x1f   :  { %14609 = vsyncadd [#allocation6], 4294966656 }
  0x20   :  { %14610 = dma.done.wait [#allocation9], 131088  }
  0x21   :  { %14611 = vsyncadd [#allocation9], 4294836208 }
  0x22   :  { %14612 = dma.done.wait [#allocation12], 8320  }
  0x23   :  { %14613 = vsyncadd [#allocation12], 4294958976 }
  0x24   :  { %14614 = dma.done.wait [#allocation15], 16  }
  0x25   :  { %14615 = vsyncadd [#allocation15], 4294967280  ;;  %v13273_v0 = vld [vmem:[#allocation2 + $0x18] sm:$0xff]  ;;  %v13272_v2 = vld [vmem:[#allocation2 + $0x10] sm:$0xff]  ;;  %vm197_vm0 = vcmask 523264   ;;  %s14630_s6 = smov [#allocation16]  }
  0x26   :  { %v13277_v1 = vld [vmem:[#allocation2 + $0x38] sm:$0xff]  ;;  %205 = vmatpush.bf16.msra.mxu0 %v13273_v0  ;;  %v13276_v3 = vld [vmem:[#allocation2 + $0x30] sm:$0xff]  ;;  %v13281_v4 = vld [vmem:[#allocation7 + $0x18] sm:$0xff]  ;;  %s8845_s7 = sshll.u32 %s14630_s6, 4  ;;  %s8847_s21 = sshll.u32 %s15001_s8, 4  ;;  %s8846_s7 = int_to_ptr.vmem [resolvable:$true] %s8845_s7  ;;  %s8848_s21 = int_to_ptr.hbm [resolvable:$true] %s8847_s21 }
  0x27   :  { %243 = vmatpush.bf16.msra.mxu1 %v13277_v1  ;;  %301 = vmatpush.bf16.msra.mxu2 %v13281_v4  ;;  %v13271_v5 = vld [vmem:[#allocation2 + $0x8] sm:$0xff]  ;;  %v13270_v7 = vld [vmem:[#allocation2] sm:$0xff]  ;;  %v13280_v10 = vld [vmem:[#allocation7 + $0x10] sm:$0xff] }
  0x28   :  { %v13275_v6 = vld [vmem:[#allocation2 + $0x28] sm:$0xff]  ;;  %v13274_v8 = vld [vmem:[#allocation2 + $0x20] sm:$0xff]  ;;  %v13279_v11 = vld [vmem:[#allocation7 + $0x8] sm:$0xff] }
  0x29   :  { %v13269_v9 = vld [vmem:[#allocation5] sm:$0xff]  ;;  %v13278_v12 = vld [vmem:[#allocation7] sm:$0xff] }
  0x2a   :  { %206 = vmatpush.bf16.msra.mxu0 %v13272_v2  ;;  %v9143_v13 = vld [vmem:[#allocation10 + $0x1c0] sm:$0xf] }
  0x2b   :  { %244 = vmatpush.bf16.msra.mxu1 %v13276_v3  ;;  %302 = vmatpush.bf16.msra.mxu2 %v13280_v10  ;;  %v13342_v14 = vld [vmem:[#allocation10 + $0x1dc] sm:$0xf0] }
  0x2c   :  { %v9399_v15 = vld [vmem:[#allocation10 + $0x3c0] sm:$0xf]  ;;  %v9144_v16 = vor.u32 %v13342_v14, %v9143_v13 }
  0x2d   :  { %v13406_v17 = vld [vmem:[#allocation10 + $0x3dc] sm:$0xf0] }
  0x2e   :  { %207 = vmatpush.bf16.msra.mxu0 %v13271_v5  ;;  %v9655_v18 = vld [vmem:[#allocation10 + $0x5c0] sm:$0xf]  ;;  %v9400_v20 = vor.u32 %v13406_v17, %v9399_v15  ;;  %6539 = vmatpush.bf16.msra.mxu3 %v9144_v16 }
  0x2f   :  { %245 = vmatpush.bf16.msra.mxu1 %v13275_v6  ;;  %303 = vmatpush.bf16.msra.mxu2 %v13279_v11  ;;  %v13470_v19 = vld [vmem:[#allocation10 + $0x5dc] sm:$0xf0] }
  0x30   :  { %v9656_v21 = vor.u32 %v13470_v19, %v9655_v18  ;;  %v9911_v22 = vld [vmem:[#allocation10 + $0x7c0] sm:$0xf] }
  0x31   :  { %v13534_v23 = vld [vmem:[#allocation10 + $0x7dc] sm:$0xf0] }
  0x32   :  { %208 = vmatpush.bf16.msra.mxu0 %v13270_v7  ;;  %v9111_v24 = vld [vmem:[#allocation10 + $0x180] sm:$0xf]  ;;  %v9912_v25 = vor.u32 %v13534_v23, %v9911_v22 }
  0x33   :  { %246 = vmatpush.bf16.msra.mxu1 %v13274_v8  ;;  %304 = vmatpush.bf16.msra.mxu2 %v13278_v12  ;;  %v13334_v26 = vld [vmem:[#allocation10 + $0x19c] sm:$0xf0] }
  0x34   :  { %v9367_v27 = vld [vmem:[#allocation10 + $0x380] sm:$0xf]  ;;  %v9112_v29 = vor.u32 %v13334_v26, %v9111_v24 }
  0x35   :  { %8881 = vmatmul.msk.bf16.vlgmr.msra.gmra.mxu0 %vm197_vm0, %v13269_v9  ;;  %v13398_v28 = vld [vmem:[#allocation10 + $0x39c] sm:$0xf0] }
  0x36   :  { %8898 = vmatmul.msk.bf16.vlgmr.msra.gmra.mxu1 %vm197_vm0, %v13269_v9  ;;  %6552 = vmatpush.bf16.msrb.mxu0 %v9400_v20  ;;  %v9368_v30 = vor.u32 %v13398_v28, %v9367_v27  ;;  %v9623_v31 = vld [vmem:[#allocation10 + $0x580] sm:$0xf] }
  0x37   :  { %6565 = vmatpush.bf16.msrb.mxu1 %v9656_v21  ;;  %v13462_v32 = vld [vmem:[#allocation10 + $0x59c] sm:$0xf0]  ;;  %6578 = vmatpush.bf16.msrb.mxu2 %v9912_v25 }
  0x38   :  { %v9879_v33 = vld [vmem:[#allocation10 + $0x780] sm:$0xf]  ;;  %v9624_v35 = vor.u32 %v13462_v32, %v9623_v31  ;;  %6540 = vmatpush.bf16.msra.mxu3 %v9112_v29 }
  0x39   :  { %v13526_v36 = vld [vmem:[#allocation10 + $0x79c] sm:$0xf0] }
  0x3a   :  { %v9079_v37 = vld [vmem:[#allocation10 + $0x140] sm:$0xf]  ;;  %v9880_v39 = vor.u32 %v13526_v36, %v9879_v33  ;;  %6553 = vmatpush.bf16.msrb.mxu0 %v9368_v30 }
  0x3b   :  { %v13326_v38 = vld [vmem:[#allocation10 + $0x15c] sm:$0xf0]  ;;  %6566 = vmatpush.bf16.msrb.mxu1 %v9624_v35 }
  0x3c   :  { %v9335_v40 = vld [vmem:[#allocation10 + $0x340] sm:$0xf]  ;;  %v9080_v43 = vor.u32 %v13326_v38, %v9079_v37  ;;  %6579 = vmatpush.bf16.msrb.mxu2 %v9880_v39 }
  0x3d   :  { %v13390_v41 = vld [vmem:[#allocation10 + $0x35c] sm:$0xf0] }
  0x3e   :  { %v9591_v42 = vld [vmem:[#allocation10 + $0x540] sm:$0xf]  ;;  %v9336_v47 = vor.u32 %v13390_v41, %v9335_v40  ;;  %6541 = vmatpush.bf16.msra.mxu3 %v9080_v43 }
  0x3f   :  { %v13454_v44 = vld [vmem:[#allocation10 + $0x55c] sm:$0xf0] }
  0x40   :  { %v9847_v45 = vld [vmem:[#allocation10 + $0x740] sm:$0xf]  ;;  %v9592_v48 = vor.u32 %v13454_v44, %v9591_v42  ;;  %6554 = vmatpush.bf16.msrb.mxu0 %v9336_v47 }
  0x41   :  { %v13518_v46 = vld [vmem:[#allocation10 + $0x75c] sm:$0xf0] }
  0x42   :  { %v9047_v49 = vld [vmem:[#allocation10 + $0x100] sm:$0xf]  ;;  %v9848_v51 = vor.u32 %v13518_v46, %v9847_v45  ;;  %6567 = vmatpush.bf16.msrb.mxu1 %v9592_v48 }
  0x43   :  { %v13318_v50 = vld [vmem:[#allocation10 + $0x11c] sm:$0xf0] }
  0x44   :  { %v9303_v52 = vld [vmem:[#allocation10 + $0x300] sm:$0xf]  ;;  %v9048_v58 = vor.u32 %v13318_v50, %v9047_v49  ;;  %6580 = vmatpush.bf16.msrb.mxu2 %v9848_v51 }
  0x45   :  { %v13382_v53 = vld [vmem:[#allocation10 + $0x31c] sm:$0xf0] }
  0x46   :  { %v9559_v54 = vld [vmem:[#allocation10 + $0x500] sm:$0xf]  ;;  %v9304_v59 = vor.u32 %v13382_v53, %v9303_v52  ;;  %6542 = vmatpush.bf16.msra.mxu3 %v9048_v58 }
  0x47   :  { %v13446_v55 = vld [vmem:[#allocation10 + $0x51c] sm:$0xf0] }
  0x48   :  { %v9815_v56 = vld [vmem:[#allocation10 + $0x700] sm:$0xf]  ;;  %v9560_v63 = vor.u32 %v13446_v55, %v9559_v54  ;;  %6555 = vmatpush.bf16.msrb.mxu0 %v9304_v59 }
  0x49   :  { %v13510_v57 = vld [vmem:[#allocation10 + $0x71c] sm:$0xf0] }
  0x4a   :  { %v9015_v60 = vld [vmem:[#allocation10 + $0xc0] sm:$0xf]  ;;  %v9816_v0 = vor.u32 %v13510_v57, %v9815_v56  ;;  %6568 = vmatpush.bf16.msrb.mxu1 %v9560_v63 }
  0x4b   :  { %v13310_v61 = vld [vmem:[#allocation10 + $0xdc] sm:$0xf0] }
  0x4c   :  { %v9271_v1 = vld [vmem:[#allocation10 + $0x2c0] sm:$0xf]  ;;  %v9016_v8 = vor.u32 %v13310_v61, %v9015_v60  ;;  %6581 = vmatpush.bf16.msrb.mxu2 %v9816_v0 }
  0x4d   :  { %v13374_v2 = vld [vmem:[#allocation10 + $0x2dc] sm:$0xf0] }
  0x4e   :  { %v9527_v3 = vld [vmem:[#allocation10 + $0x4c0] sm:$0xf]  ;;  %v9272_v9 = vor.u32 %v13374_v2, %v9271_v1  ;;  %6543 = vmatpush.bf16.msra.mxu3 %v9016_v8 }
  0x4f   :  { %v13438_v5 = vld [vmem:[#allocation10 + $0x4dc] sm:$0xf0] }
  0x50   :  { %v9783_v6 = vld [vmem:[#allocation10 + $0x6c0] sm:$0xf]  ;;  %v9528_v13 = vor.u32 %v13438_v5, %v9527_v3  ;;  %6556 = vmatpush.bf16.msrb.mxu0 %v9272_v9 }
  0x51   :  { %v13502_v7 = vld [vmem:[#allocation10 + $0x6dc] sm:$0xf0] }
  0x52   :  { %v8983_v10 = vld [vmem:[#allocation10 + $0x80] sm:$0xf]  ;;  %v9784_v14 = vor.u32 %v13502_v7, %v9783_v6  ;;  %6569 = vmatpush.bf16.msrb.mxu1 %v9528_v13 }
  0x53   :  { %v13302_v11 = vld [vmem:[#allocation10 + $0x9c] sm:$0xf0] }
  0x54   :  { %v9239_v15 = vld [vmem:[#allocation10 + $0x280] sm:$0xf]  ;;  %v8984_v21 = vor.u32 %v13302_v11, %v8983_v10  ;;  %6582 = vmatpush.bf16.msrb.mxu2 %v9784_v14 }
  0x55   :  { %v13366_v16 = vld [vmem:[#allocation10 + $0x29c] sm:$0xf0] }
  0x56   :  { %v9495_v17 = vld [vmem:[#allocation10 + $0x480] sm:$0xf]  ;;  %v9240_v22 = vor.u32 %v13366_v16, %v9239_v15  ;;  %6544 = vmatpush.bf16.msra.mxu3 %v8984_v21 }
  0x57   :  { %v13430_v18 = vld [vmem:[#allocation10 + $0x49c] sm:$0xf0] }
  0x58   :  { %v9751_v19 = vld [vmem:[#allocation10 + $0x680] sm:$0xf]  ;;  %v9496_v25 = vor.u32 %v13430_v18, %v9495_v17  ;;  %6557 = vmatpush.bf16.msrb.mxu0 %v9240_v22 }
  0x59   :  { %v13494_v20 = vld [vmem:[#allocation10 + $0x69c] sm:$0xf0] }
  0x5a   :  { %v8951_v23 = vld [vmem:[#allocation10 + $0x40] sm:$0xf]  ;;  %v9752_v26 = vor.u32 %v13494_v20, %v9751_v19  ;;  %6570 = vmatpush.bf16.msrb.mxu1 %v9496_v25 }
  0x5b   :  { %v13294_v24 = vld [vmem:[#allocation10 + $0x5c] sm:$0xf0] }
  0x5c   :  { %v9207_v27 = vld [vmem:[#allocation10 + $0x240] sm:$0xf]  ;;  %v8952_v33 = vor.u32 %v13294_v24, %v8951_v23  ;;  %6583 = vmatpush.bf16.msrb.mxu2 %v9752_v26 }
  0x5d   :  { %v13358_v28 = vld [vmem:[#allocation10 + $0x25c] sm:$0xf0] }
  0x5e   :  { %v9463_v29 = vld [vmem:[#allocation10 + $0x440] sm:$0xf]  ;;  %6545 = vmatpush.bf16.msra.mxu3 %v8952_v33 }
  0x5f   :  { %v13422_v30 = vld [vmem:[#allocation10 + $0x45c] sm:$0xf0] }
  0x60   :  { %v9719_v31 = vld [vmem:[#allocation10 + $0x640] sm:$0xf]  ;;  %v9464_v35 = vor.u32 %v13422_v30, %v9463_v29 }
  0x61   :  { %v13486_v32 = vld [vmem:[#allocation10 + $0x65c] sm:$0xf0] }
  0x62   :  { %v9720_v36 = vor.u32 %v13486_v32, %v9719_v31  ;;  %6571 = vmatpush.bf16.msrb.mxu1 %v9464_v35  ;;  %v8919_v39 = vld [vmem:[#allocation10] sm:$0xf] }
  0x63   :  { %v13286_v40 = vld [vmem:[#allocation10 + $0x1c] sm:$0xf0] }
  0x64   :  { %6584 = vmatpush.bf16.msrb.mxu2 %v9720_v36  ;;  %v9175_v41 = vld [vmem:[#allocation10 + $0x200] sm:$0xf]  ;;  %v8920_v42 = vor.u32 %v13286_v40, %v8919_v39 }
  0x65   :  { %v13350_v43 = vld [vmem:[#allocation10 + $0x21c] sm:$0xf0] }
  0x66   :  { %v9431_v44 = vld [vmem:[#allocation10 + $0x400] sm:$0xf]  ;;  %v9176_v46 = vor.u32 %v13350_v43, %v9175_v41  ;;  %6546 = vmatpush.bf16.msra.mxu3 %v8920_v42 }
  0x67   :  { %v13414_v45 = vld [vmem:[#allocation10 + $0x41c] sm:$0xf0] }
  0x68   :  { %v9432_v47 = vor.u32 %v13414_v45, %v9431_v44  ;;  %v9687_v48 = vld [vmem:[#allocation10 + $0x600] sm:$0xf] }
  0x69   :  { %v13478_v49 = vld [vmem:[#allocation10 + $0x61c] sm:$0xf0] }
  0x6a   :  { %v10167_v50 = vld [vmem:[#allocation10 + $0x9c0] sm:$0xf]  ;;  %v9688_v51 = vor.u32 %v13478_v49, %v9687_v48  ;;  %6572 = vmatpush.bf16.msrb.mxu1 %v9432_v47 }
  0x6b   :  { %v13598_v52 = vld [vmem:[#allocation10 + $0x9dc] sm:$0xf0] }
  0x6c   :  { %v10423_v53 = vld [vmem:[#allocation10 + $0xbc0] sm:$0xf]  ;;  %v10168_v55 = vor.u32 %v13598_v52, %v10167_v50  ;;  %6585 = vmatpush.bf16.msrb.mxu2 %v9688_v51 }
  0x6d   :  { %v13662_v54 = vld [vmem:[#allocation10 + $0xbdc] sm:$0xf0] }
  0x6e   :  { %v10424_v56 = vor.u32 %v13662_v54, %v10423_v53  ;;  %v10679_v57 = vld [vmem:[#allocation10 + $0xdc0] sm:$0xf]  ;;  %6591 = vmatpush.bf16.msrb.mxu3 %v10168_v55 }
  0x6f   :  { %v13726_v58 = vld [vmem:[#allocation10 + $0xddc] sm:$0xf0] }
  0x70   :  { %v10935_v59 = vld [vmem:[#allocation10 + $0xfc0] sm:$0xf]  ;;  %v10680_v60 = vor.u32 %v13726_v58, %v10679_v57 }
  0x71   :  { %v13790_v61 = vld [vmem:[#allocation10 + $0xfdc] sm:$0xf0] }
  0x72   :  { %v13590_v63 = vld [vmem:[#allocation10 + $0x99c] sm:$0xf0]  ;;  %v10936_v0 = vor.u32 %v13790_v61, %v10935_v59  ;;  %6617 = vmatpush.bf16.msra.mxu1 %v10680_v60 }
  0x73   :  { %v10391_v2 = vld [vmem:[#allocation10 + $0xb80] sm:$0xf] }
  0x74   :  { %v13654_v3 = vld [vmem:[#allocation10 + $0xb9c] sm:$0xf0] }
  0x75   :  { %v10392_v5 = vor.u32 %v13654_v3, %v10391_v2  ;;  %v13718_v6 = vld [vmem:[#allocation10 + $0xd9c] sm:$0xf0] }
  0x76   :  { %v10903_v7 = vld [vmem:[#allocation10 + $0xf80] sm:$0xf] }
  0x77   :  { %v13782_v8 = vld [vmem:[#allocation10 + $0xf9c] sm:$0xf0] }
  0x78   :  { %v10904_v10 = vor.u32 %v13782_v8, %v10903_v7  ;;  %v10103_v11 = vld [vmem:[#allocation10 + $0x940] sm:$0xf] }
  0x79   :  { %v10359_v13 = vld [vmem:[#allocation10 + $0xb40] sm:$0xf] }
  0x7a   :  { %v13646_v15 = vld [vmem:[#allocation10 + $0xb5c] sm:$0xf0] }
  0x7b   :  { %v10615_v16 = vld [vmem:[#allocation10 + $0xd40] sm:$0xf]  ;;  %v10360_v18 = vor.u32 %v13646_v15, %v10359_v13 }
  0x7c   :  { %v13710_v17 = vld [vmem:[#allocation10 + $0xd5c] sm:$0xf0] }
  0x7d   :  { %v10616_v19 = vor.u32 %v13710_v17, %v10615_v16  ;;  %v10871_v20 = vld [vmem:[#allocation10 + $0xf40] sm:$0xf] }
  0x7e   :  { %v13774_v21 = vld [vmem:[#allocation10 + $0xf5c] sm:$0xf0] }
  0x7f   :  { %v10872_v22 = vor.u32 %v13774_v21, %v10871_v20  ;;  %v10071_v23 = vld [vmem:[#allocation10 + $0x900] sm:$0xf] }
  0x80   :  { %v13574_v24 = vld [vmem:[#allocation10 + $0x91c] sm:$0xf0] }
  0x81   :  { %v10327_v25 = vld [vmem:[#allocation10 + $0xb00] sm:$0xf]  ;;  %v10072_v26 = vor.u32 %v13574_v24, %v10071_v23 }
  0x82   :  { %v13702_v29 = vld [vmem:[#allocation10 + $0xd1c] sm:$0xf0] }
  0x83   :  { %v10839_v32 = vld [vmem:[#allocation10 + $0xf00] sm:$0xf] }
  0x84   :  { %v13766_v33 = vld [vmem:[#allocation10 + $0xf1c] sm:$0xf0] }
  0x85   :  { %v10039_v35 = vld [vmem:[#allocation10 + $0x8c0] sm:$0xf] }
  0x86   :  { %v13566_v36 = vld [vmem:[#allocation10 + $0x8dc] sm:$0xf0] }
  0x87   :  { %v13630_v39 = vld [vmem:[#allocation10 + $0xadc] sm:$0xf0] }
  0x88   :  { %v10551_v40 = vld [vmem:[#allocation10 + $0xcc0] sm:$0xf] }
  0x89   :  { %v13694_v41 = vld [vmem:[#allocation10 + $0xcdc] sm:$0xf0] }
  0x8a   :  { %v10552_v43 = vor.u32 %v13694_v41, %v10551_v40  ;;  %v10807_v44 = vld [vmem:[#allocation10 + $0xec0] sm:$0xf] }
  0x8b   :  { %v13758_v45 = vld [vmem:[#allocation10 + $0xedc] sm:$0xf0] }
  0x8c   :  { %v10007_v47 = vld [vmem:[#allocation10 + $0x880] sm:$0xf] }
  0x8d   :  { %v13558_v48 = vld [vmem:[#allocation10 + $0x89c] sm:$0xf0] }
  0x8e   :  { %v10263_v49 = vld [vmem:[#allocation10 + $0xa80] sm:$0xf]  ;;  %v10008_v50 = vor.u32 %v13558_v48, %v10007_v47 }
  0x8f   :  { %v13622_v51 = vld [vmem:[#allocation10 + $0xa9c] sm:$0xf0] }
  0x90   :  { %v10519_v52 = vld [vmem:[#allocation10 + $0xc80] sm:$0xf]  ;;  %v10264_v54 = vor.u32 %v13622_v51, %v10263_v49 }
  0x91   :  { %v13686_v53 = vld [vmem:[#allocation10 + $0xc9c] sm:$0xf0] }
  0x92   :  { %v10520_v55 = vor.u32 %v13686_v53, %v10519_v52  ;;  %v13750_v57 = vld [vmem:[#allocation10 + $0xe9c] sm:$0xf0] }
  0x93   :  { %v9975_v59 = vld [vmem:[#allocation10 + $0x840] sm:$0xf] }
  0x94   :  { %v13550_v60 = vld [vmem:[#allocation10 + $0x85c] sm:$0xf0] }
  0x95   :  { %v10231_v61 = vld [vmem:[#allocation10 + $0xa40] sm:$0xf] }
  0x96   :  { %v9943_v7 = vld [vmem:[#allocation10 + $0x800] sm:$0xf] }
  0x97   :  { %v13542_v8 = vld [vmem:[#allocation10 + $0x81c] sm:$0xf0] }
  0x98   :  { %v13670_v13 = vld [vmem:[#allocation10 + $0xc1c] sm:$0xf0] }
  0x99   :  { %v10711_v17 = vld [vmem:[#allocation10 + $0xe00] sm:$0xf] }
  0x9a   :  { %v13910_v47 = vld [vmem:[#allocation10 + $0x139c] sm:$0xf0] }
  0x9b   :  { %v11671_v53 = vld [vmem:[#allocation10 + $0x1580] sm:$0xf] }
  0xb2   :  { %v210_v34 = vpop.f32.mrf.mxu0 }
  0xb3   :  { %v248_v12 = vpop.f32.mrf.mxu1 }
  0xba   :  { %v212_v62 = vpop.f32.mrf.mxu0 }
  0xbb   :  { %v253_v4 = vpack.c.bf16 %v212_v62, %v210_v34  ;;  %v9208_v34 = vor.u32 %v13358_v28, %v9207_v27  ;;  %v250_v37 = vpop.f32.mrf.mxu1  ;;  %v10135_v62 = vld [vmem:[#allocation10 + $0x980] sm:$0xf] }
  0xbc   :  { %v254_v38 = vpack.c.bf16 %v250_v37, %v248_v12  ;;  %v10136_v1 = vor.u32 %v13590_v63, %v10135_v62  ;;  %v13582_v12 = vld [vmem:[#allocation10 + $0x95c] sm:$0xf0]  ;;  %v9976_v62 = vor.u32 %v13550_v60, %v9975_v59 }
  0xbd   :  { %8915 = vmatmul.msk.bf16.vlgmr.msra.gmra.mxu2 %vm197_vm0, %v253_v4  ;;  %6558 = vmatpush.bf16.msrb.mxu0 %v9208_v34  ;;  %v10647_v4 = vld [vmem:[#allocation10 + $0xd80] sm:$0xf]  ;;  %v10104_v14 = vor.u32 %v13582_v12, %v10103_v11  ;;  %v10840_v34 = vor.u32 %v13766_v33, %v10839_v32 }
  0xbe   :  { %6630 = vmatpush.bf16.msra.mxu2 %v10936_v0  ;;  %v10648_v9 = vor.u32 %v13718_v6, %v10647_v4  ;;  %6592 = vmatpush.bf16.msrb.mxu3 %v10136_v1  ;;  %v13638_v27 = vld [vmem:[#allocation10 + $0xb1c] sm:$0xf0] }
  0xbf   :  { %v10583_v28 = vld [vmem:[#allocation10 + $0xd00] sm:$0xf]  ;;  %v10328_v30 = vor.u32 %v13638_v27, %v10327_v25 }
  0xc0   :  { %6618 = vmatpush.bf16.msra.mxu1 %v10648_v9  ;;  %v10584_v31 = vor.u32 %v13702_v29, %v10583_v28  ;;  %v10295_v37 = vld [vmem:[#allocation10 + $0xac0] sm:$0xf] }
  0xc1   :  { %6559 = vmatpush.bf16.msrb.mxu0 %v9176_v46  ;;  %v10296_v42 = vor.u32 %v13630_v39, %v10295_v37  ;;  %v10808_v46 = vor.u32 %v13758_v45, %v10807_v44  ;;  %v13614_v63 = vld [vmem:[#allocation10 + $0xa5c] sm:$0xf0] }
  0xc2   :  { %6631 = vmatpush.bf16.msra.mxu2 %v10904_v10  ;;  %6593 = vmatpush.bf16.msrb.mxu3 %v10104_v14  ;;  %v10487_v0 = vld [vmem:[#allocation10 + $0xc40] sm:$0xf]  ;;  %v10232_v2 = vor.u32 %v13614_v63, %v10231_v61  ;;  %v9944_v10 = vor.u32 %v13542_v8, %v9943_v7  ;;  %v14383_v14 = vld [vmem:[#allocation8] ss:$0 sm:$0xff] }
  0xc3   :  { %v13678_v1 = vld [vmem:[#allocation10 + $0xc5c] sm:$0xf0] }
  0xc4   :  { %6619 = vmatpush.bf16.msra.mxu1 %v10616_v19  ;;  %v10488_v3 = vor.u32 %v13678_v1, %v10487_v0  ;;  %v10743_v4 = vld [vmem:[#allocation10 + $0xe40] sm:$0xf] }
  0xc5   :  { %6604 = vmatpush.bf16.msra.mxu0 %v10424_v56  ;;  %v10775_v56 = vld [vmem:[#allocation10 + $0xe80] sm:$0xf] }
  0xc6   :  { %6632 = vmatpush.bf16.msra.mxu2 %v10872_v22  ;;  %6594 = vmatpush.bf16.msrb.mxu3 %v10072_v26  ;;  %v10776_v58 = vor.u32 %v13750_v57, %v10775_v56  ;;  %v10199_v9 = vld [vmem:[#allocation10 + $0xa00] sm:$0xf] }
  0xc7   :  { %v13606_v11 = vld [vmem:[#allocation10 + $0xa1c] sm:$0xf0] }
  0xc8   :  { %6620 = vmatpush.bf16.msra.mxu1 %v10584_v31  ;;  %v10455_v12 = vld [vmem:[#allocation10 + $0xc00] sm:$0xf]  ;;  %v10200_v15 = vor.u32 %v13606_v11, %v10199_v9 }
  0xc9   :  { %6605 = vmatpush.bf16.msra.mxu0 %v10392_v5  ;;  %v13742_v5 = vld [vmem:[#allocation10 + $0xe5c] sm:$0xf0]  ;;  %v10456_v16 = vor.u32 %v13670_v13, %v10455_v12 }
  0xca   :  { %6633 = vmatpush.bf16.msra.mxu2 %v10840_v34  ;;  %v10744_v6 = vor.u32 %v13742_v5, %v10743_v4  ;;  %v11191_v28 = vld [vmem:[#allocation10 + $0x11c0] sm:$0xf] }
  0xcb   :  { %v13854_v31 = vld [vmem:[#allocation10 + $0x11dc] sm:$0xf0] }
  0xcc   :  { %6621 = vmatpush.bf16.msra.mxu1 %v10552_v43  ;;  %v11447_v32 = vld [vmem:[#allocation10 + $0x13c0] sm:$0xf] }
  0xcd   :  { %8916 = vmatmul.msk.bf16.gmra.mxu2 %vm197_vm0, %v254_v38  ;;  %6606 = vmatpush.bf16.msra.mxu0 %v10360_v18  ;;  %v10040_v38 = vor.u32 %v13566_v36, %v10039_v35  ;;  %v13734_v18 = vld [vmem:[#allocation10 + $0xe1c] sm:$0xf0] }
  0xce   :  { %6634 = vmatpush.bf16.msra.mxu2 %v10808_v46  ;;  %v10712_v19 = vor.u32 %v13734_v18, %v10711_v17  ;;  %v13918_v33 = vld [vmem:[#allocation10 + $0x13dc] sm:$0xf0] }
  0xcf   :  { %6595 = vmatpush.bf16.msrb.mxu3 %v10040_v38  ;;  %v11703_v34 = vld [vmem:[#allocation10 + $0x15c0] sm:$0xf]  ;;  %v11448_v43 = vor.u32 %v13918_v33, %v11447_v32 }
  0xd0   :  { %6622 = vmatpush.bf16.msra.mxu1 %v10520_v55  ;;  %v13982_v35 = vld [vmem:[#allocation10 + $0x15dc] sm:$0xf0] }
  0xd1   :  { %6607 = vmatpush.bf16.msra.mxu0 %v10328_v30  ;;  %v11959_v36 = vld [vmem:[#allocation10 + $0x17c0] sm:$0xf]  ;;  %v11704_v57 = vor.u32 %v13982_v35, %v11703_v34 }
  0xd2   :  { %6635 = vmatpush.bf16.msra.mxu2 %v10776_v58  ;;  %v14046_v37 = vld [vmem:[#allocation10 + $0x17dc] sm:$0xf0] }
  0xd3   :  { %6596 = vmatpush.bf16.msrb.mxu3 %v10008_v50  ;;  %v11159_v44 = vld [vmem:[#allocation10 + $0x1180] sm:$0xf]  ;;  %v11960_v58 = vor.u32 %v14046_v37, %v11959_v36 }
  0xd4   :  { %6623 = vmatpush.bf16.msra.mxu1 %v10488_v3  ;;  %v13846_v45 = vld [vmem:[#allocation10 + $0x119c] sm:$0xf0] }
  0xd5   :  { %6608 = vmatpush.bf16.msra.mxu0 %v10296_v42  ;;  %v11192_v42 = vor.u32 %v13854_v31, %v11191_v28  ;;  %v11415_v46 = vld [vmem:[#allocation10 + $0x1380] sm:$0xf]  ;;  %v11160_v0 = vor.u32 %v13846_v45, %v11159_v44 }
  0xd6   :  { %6636 = vmatpush.bf16.msra.mxu2 %v10744_v6  ;;  %v13974_v59 = vld [vmem:[#allocation10 + $0x159c] sm:$0xf0]  ;;  %v11416_v1 = vor.u32 %v13910_v47, %v11415_v46 }
  0xd7   :  { %6597 = vmatpush.bf16.msrb.mxu3 %v9976_v62  ;;  %v11927_v62 = vld [vmem:[#allocation10 + $0x1780] sm:$0xf]  ;;  %v11672_v4 = vor.u32 %v13974_v59, %v11671_v53 }
  0xd8   :  { %6624 = vmatpush.bf16.msra.mxu1 %v10456_v16  ;;  %v14038_v63 = vld [vmem:[#allocation10 + $0x179c] sm:$0xf0] }
  0xd9   :  { %6609 = vmatpush.bf16.msra.mxu0 %v10264_v54  ;;  %v13838_v3 = vld [vmem:[#allocation10 + $0x115c] sm:$0xf0]  ;;  %v11928_v5 = vor.u32 %v14038_v63, %v11927_v62 }
  0xda   :  { %6637 = vmatpush.bf16.msra.mxu2 %v10712_v19  ;;  %v11383_v6 = vld [vmem:[#allocation10 + $0x1340] sm:$0xf] }
  0xdb   :  { %6598 = vmatpush.bf16.msrb.mxu3 %v9944_v10  ;;  %v13902_v7 = vld [vmem:[#allocation10 + $0x135c] sm:$0xf0] }
  0xdc   :  { %v11639_v8 = vld [vmem:[#allocation10 + $0x1540] sm:$0xf]  ;;  %v11384_v13 = vor.u32 %v13902_v7, %v11383_v6 }
  0xdd   :  { %6610 = vmatpush.bf16.msra.mxu0 %v10232_v2  ;;  %v11127_v2 = vld [vmem:[#allocation10 + $0x1140] sm:$0xf] }
  0xde   :  { %v13966_v9 = vld [vmem:[#allocation10 + $0x155c] sm:$0xf0]  ;;  %v11128_v12 = vor.u32 %v13838_v3, %v11127_v2 }
  0xdf   :  { %v11895_v10 = vld [vmem:[#allocation10 + $0x1740] sm:$0xf]  ;;  %v11640_v16 = vor.u32 %v13966_v9, %v11639_v8 }
  0xe0   :  { %v14030_v11 = vld [vmem:[#allocation10 + $0x175c] sm:$0xf0] }
  0xe1   :  { %6611 = vmatpush.bf16.msra.mxu0 %v10200_v15  ;;  %v13830_v15 = vld [vmem:[#allocation10 + $0x111c] sm:$0xf0]  ;;  %v11896_v17 = vor.u32 %v14030_v11, %v11895_v10 }
  0xe2   :  { %v11351_v18 = vld [vmem:[#allocation10 + $0x1300] sm:$0xf] }
  0xe3   :  { %v13894_v19 = vld [vmem:[#allocation10 + $0x131c] sm:$0xf0] }
  0xe4   :  { %v11319_v28 = vld [vmem:[#allocation10 + $0x12c0] sm:$0xf] }
  0xe5   :  { %v11575_v32 = vld [vmem:[#allocation10 + $0x14c0] sm:$0xf] }
  0xe6   :  { %v13950_v33 = vld [vmem:[#allocation10 + $0x14dc] sm:$0xf0] }
  0xe7   :  { %v11831_v34 = vld [vmem:[#allocation10 + $0x16c0] sm:$0xf] }
  0xe8   :  { %v14014_v35 = vld [vmem:[#allocation10 + $0x16dc] sm:$0xf0] }
  0xe9   :  { %v11832_v45 = vor.u32 %v14014_v35, %v11831_v34  ;;  %v11287_v46 = vld [vmem:[#allocation10 + $0x1280] sm:$0xf] }
  0xea   :  { %v13878_v47 = vld [vmem:[#allocation10 + $0x129c] sm:$0xf0] }
  0xeb   :  { %v11799_v53 = vld [vmem:[#allocation10 + $0x1680] sm:$0xf] }
  0xec   :  { %v13806_v59 = vld [vmem:[#allocation10 + $0x105c] sm:$0xf0] }
  0xed   :  { %v11255_v62 = vld [vmem:[#allocation10 + $0x1240] sm:$0xf] }
  0xee   :  { %v13870_v63 = vld [vmem:[#allocation10 + $0x125c] sm:$0xf0] }
  0xef   :  { %v11767_v2 = vld [vmem:[#allocation10 + $0x1640] sm:$0xf]  ;;  %v11256_v6 = vor.u32 %v13870_v63, %v11255_v62 }
  0xf0   :  { %v13998_v3 = vld [vmem:[#allocation10 + $0x165c] sm:$0xf0] }
  0xf1   :  { %v13798_v7 = vld [vmem:[#allocation10 + $0x101c] sm:$0xf0]  ;;  %v11768_v11 = vor.u32 %v13998_v3, %v11767_v2 }
  0xf2   :  { %v11223_v8 = vld [vmem:[#allocation10 + $0x1200] sm:$0xf] }
  0xf3   :  { %v13862_v9 = vld [vmem:[#allocation10 + $0x121c] sm:$0xf0] }
  0xf4   :  { %v12695_v34 = vld [vmem:[#allocation10 + $0x1d80] sm:$0xf] }
  0xf5   :  { %v14230_v35 = vld [vmem:[#allocation10 + $0x1d9c] sm:$0xf0] }
  0xf6   :  { %v12407_v62 = vld [vmem:[#allocation10 + $0x1b40] sm:$0xf] }
  0xf7   :  { %v14158_v63 = vld [vmem:[#allocation10 + $0x1b5c] sm:$0xf0] }
  0xf8   :  { %v12919_v2 = vld [vmem:[#allocation10 + $0x1f40] sm:$0xf] }
  0xf9   :  { %v14286_v3 = vld [vmem:[#allocation10 + $0x1f5c] sm:$0xf0] }
 0x140   :  { %v306_v20 = vpop.f32.mrf.mxu2 }
 0x141   :  { %v307_v21 = vadd.f32 %v14383_v14, %v306_v20  ;;  %v11607_v20 = vld [vmem:[#allocation10 + $0x1500] sm:$0xf] }
 0x143   :  { %v316_v22 = vmax.f32 %v307_v21, 0.0  ;;  %v13958_v21 = vld [vmem:[#allocation10 + $0x151c] sm:$0xf0] }
 0x145   :  { %324 = vst [vmem:[#allocation1] ss:$9 sm:$0xff] %v316_v22  ;;  %v11863_v22 = vld [vmem:[#allocation10 + $0x1700] sm:$0xf] }
 0x148   :  { %v308_v23 = vpop.f32.mrf.mxu2 }
 0x149   :  { %v309_v29 = vadd.f32 %v14383_v14, %v308_v23  ;;  %v14022_v23 = vld [vmem:[#allocation10 + $0x171c] sm:$0xf0] }
 0x14a   :  { %v11864_v31 = vor.u32 %v14022_v23, %v11863_v22  ;;  %v11224_v22 = vor.u32 %v13862_v9, %v11223_v8  ;;  %v14238_v23 = vld [vmem:[#allocation10 + $0x1ddc] sm:$0xf0]  ;;  %v12920_v9 = vor.u32 %v14286_v3, %v12919_v2 }
 0x14b   :  { %v317_v48 = vmax.f32 %v309_v29, 0.0  ;;  %v13886_v29 = vld [vmem:[#allocation10 + $0x12dc] sm:$0xf0] }
 0x14c   :  { %v11320_v37 = vor.u32 %v13886_v29, %v11319_v28  ;;  %v12183_v28 = vld [vmem:[#allocation10 + $0x1980] sm:$0xf] }
 0x14d   :  { %v14102_v29 = vld [vmem:[#allocation10 + $0x199c] sm:$0xf0] }
 0x14e   :  { %v14054_v3 = vld [vmem:[#allocation10 + $0x181c] sm:$0xf0] }
 0x150   :  { %v311_v24 = vpop.f32.mrf.mxu2 }
 0x151   :  { %v312_v25 = vadd.f32 %v14383_v14, %v311_v24  ;;  %v11063_v24 = vld [vmem:[#allocation10 + $0x10c0] sm:$0xf] }
 0x153   :  { %v318_v26 = vmax.f32 %v312_v25, 0.0 }
 0x155   :  { %326 = vst [vmem:[#allocation1 + $0x1] ss:$9 sm:$0xff] %v318_v26  ;;  %v11352_v26 = vor.u32 %v13894_v19, %v11351_v18  ;;  %v12471_v18 = vld [vmem:[#allocation10 + $0x1bc0] sm:$0xf] }
 0x156   :  { %v14174_v19 = vld [vmem:[#allocation10 + $0x1bdc] sm:$0xf0] }
 0x158   :  { %v313_v27 = vpop.f32.mrf.mxu2 }
 0x159   :  { %v314_v30 = vadd.f32 %v14383_v14, %v313_v27  ;;  %v11095_v14 = vld [vmem:[#allocation10 + $0x1100] sm:$0xf] }
 0x15a   :  { %v11096_v25 = vor.u32 %v13830_v15, %v11095_v14  ;;  %v13822_v27 = vld [vmem:[#allocation10 + $0x10dc] sm:$0xf0] }
 0x15b   :  { %v319_v38 = vmax.f32 %v314_v30, 0.0  ;;  %v11608_v30 = vor.u32 %v13958_v21, %v11607_v20  ;;  %v11064_v36 = vor.u32 %v13822_v27, %v11063_v24  ;;  %v11735_v14 = vld [vmem:[#allocation10 + $0x1600] sm:$0xf] }
 0x15c   :  { %v327_v39 = vld [vmem:[#allocation1] sm:$0xff]  ;;  %v328_v40 = vld [vmem:[#allocation1 + $0x9] sm:$0xff]  ;;  %v329_v41 = vld [vmem:[#allocation1 + $0x12] sm:$0xff] }
 0x15d   :  { %v14716_v49 = vpack.c.bf16 %v327_v39, %v327_v39  ;;  %v14718_v50 = vpack.c.bf16 %v328_v40, %v328_v40  ;;  %v14720_v51 = vpack.c.bf16 %v329_v41, %v329_v41  ;;  %v330_v52 = vld [vmem:[#allocation1 + $0x1b] sm:$0xff]  ;;  %v14722_v54 = vld [vmem:[#allocation1 + $0x24] sm:$0xff]  ;;  %v14724_v55 = vld [vmem:[#allocation1 + $0x2d] sm:$0xff]  ;;  %v11576_v40 = vor.u32 %v13950_v33, %v11575_v32 }
 0x15e   :  { %v14726_v56 = vpack.c.bf16 %v330_v52, %v330_v52  ;;  %v14728_v60 = vld [vmem:[#allocation1 + $0x36] sm:$0xff]  ;;  %v14730_v61 = vld [vmem:[#allocation1 + $0x3f] sm:$0xff]  ;;  %v14742_v39 = vpack.c.bf16 %v14724_v55, %v14724_v55  ;;  %v11031_v41 = vld [vmem:[#allocation10 + $0x1080] sm:$0xf]  ;;  %v12472_v32 = vor.u32 %v14174_v19, %v12471_v18 }
 0x15f   :  { %6547 = vmatmul.bf16.vlgmr.msra.gmra.mxu3 %v14716_v49  ;;  %6560 = vmatmul.bf16.vlgmr.msrb.gmra.mxu0 %v14718_v50  ;;  %335 = vst [vmem:[#allocation1] ss:$9 sm:$0xff] %v317_v48  ;;  %v14750_v44 = vpack.c.bf16 %v14730_v61, %v14730_v61  ;;  %v11543_v48 = vld [vmem:[#allocation10 + $0x1480] sm:$0xf] }
 0x160   :  { %6573 = vmatmul.bf16.vlgmr.msrb.gmra.mxu1 %v14720_v51  ;;  %6586 = vmatmul.bf16.vlgmr.msrb.gmra.mxu2 %v14726_v56  ;;  %336 = vst [vmem:[#allocation1 + $0x1] ss:$9 sm:$0xff] %v319_v38  ;;  %v14738_v38 = vpack.c.bf16 %v14722_v54, %v14722_v54  ;;  %v13942_v52 = vld [vmem:[#allocation10 + $0x149c] sm:$0xf0] }
 0x161   :  { %6643 = vmatpush.bf16.msra.mxu3 %v11192_v42  ;;  %6656 = vmatpush.bf16.msrb.mxu0 %v11448_v43  ;;  %v13814_v42 = vld [vmem:[#allocation10 + $0x109c] sm:$0xf0]  ;;  %v14746_v43 = vpack.c.bf16 %v14728_v60, %v14728_v60  ;;  %v11544_v60 = vor.u32 %v13942_v52, %v11543_v48  ;;  %v12184_v48 = vor.u32 %v14102_v29, %v12183_v28 }
 0x162   :  { %6669 = vmatpush.bf16.msrb.mxu1 %v11704_v57  ;;  %6682 = vmatpush.bf16.msrb.mxu2 %v11960_v58  ;;  %v14006_v54 = vld [vmem:[#allocation10 + $0x169c] sm:$0xf0]  ;;  %v11032_v55 = vor.u32 %v13814_v42, %v11031_v41  ;;  %v11288_v57 = vor.u32 %v13878_v47, %v11287_v46 }
 0x163   :  { %v10999_v58 = vld [vmem:[#allocation10 + $0x1040] sm:$0xf]  ;;  %v11800_v61 = vor.u32 %v14006_v54, %v11799_v53 }
 0x164   :  { %v13990_v15 = vld [vmem:[#allocation10 + $0x161c] sm:$0xf0] }
 0x165   :  { %6644 = vmatpush.bf16.msra.mxu3 %v11160_v0  ;;  %6657 = vmatpush.bf16.msrb.mxu0 %v11416_v1  ;;  %v11511_v0 = vld [vmem:[#allocation10 + $0x1440] sm:$0xf]  ;;  %v11736_v27 = vor.u32 %v13990_v15, %v11735_v14 }
 0x166   :  { %6670 = vmatpush.bf16.msrb.mxu1 %v11672_v4  ;;  %6683 = vmatpush.bf16.msrb.mxu2 %v11928_v5  ;;  %v13934_v1 = vld [vmem:[#allocation10 + $0x145c] sm:$0xf0]  ;;  %v11000_v5 = vor.u32 %v13806_v59, %v10999_v58 }
 0x167   :  { %v10967_v4 = vld [vmem:[#allocation10 + $0x1000] sm:$0xf]  ;;  %v11512_v10 = vor.u32 %v13934_v1, %v11511_v0  ;;  %v338_v41 = vld [vmem:[#allocation1 + $0x9] sm:$0xff]  ;;  %v340_v46 = vld [vmem:[#allocation1 + $0x1b] sm:$0xff] }
 0x168   :  { %v12727_v20 = vld [vmem:[#allocation10 + $0x1dc0] sm:$0xf]  ;;  %v10968_v21 = vor.u32 %v13798_v7, %v10967_v4  ;;  %v14758_v54 = vpack.c.bf16 %v338_v41, %v338_v41 }
 0x169   :  { %6645 = vmatpush.bf16.msra.mxu3 %v11128_v12  ;;  %6658 = vmatpush.bf16.msrb.mxu0 %v11384_v13  ;;  %v11479_v12 = vld [vmem:[#allocation10 + $0x1400] sm:$0xf] }
 0x16a   :  { %6671 = vmatpush.bf16.msrb.mxu1 %v11640_v16  ;;  %6684 = vmatpush.bf16.msrb.mxu2 %v11896_v17  ;;  %v13926_v13 = vld [vmem:[#allocation10 + $0x141c] sm:$0xf0] }
 0x16b   :  { %v12215_v16 = vld [vmem:[#allocation10 + $0x19c0] sm:$0xf] }
 0x16c   :  { %v14110_v17 = vld [vmem:[#allocation10 + $0x19dc] sm:$0xf0] }
 0x16d   :  { %6646 = vmatpush.bf16.msra.mxu3 %v11096_v25  ;;  %6659 = vmatpush.bf16.msrb.mxu0 %v11352_v26  ;;  %v12983_v24 = vld [vmem:[#allocation10 + $0x1fc0] sm:$0xf]  ;;  %v11480_v26 = vor.u32 %v13926_v13, %v11479_v12 }
 0x16e   :  { %6672 = vmatpush.bf16.msrb.mxu1 %v11608_v30  ;;  %6685 = vmatpush.bf16.msrb.mxu2 %v11864_v31  ;;  %v14302_v25 = vld [vmem:[#allocation10 + $0x1fdc] sm:$0xf0]  ;;  %v12216_v31 = vor.u32 %v14110_v17, %v12215_v16 }
 0x16f   :  { %6599 = vmatmul.bf16.vlgmr.msrb.gmra.mxu3 %v14738_v38  ;;  %6612 = vmatmul.bf16.vlgmr.msra.gmra.mxu0 %v14742_v39  ;;  %v12439_v30 = vld [vmem:[#allocation10 + $0x1b80] sm:$0xf] }
 0x170   :  { %6625 = vmatmul.bf16.vlgmr.msra.gmra.mxu1 %v14746_v43  ;;  %6638 = vmatmul.bf16.vlgmr.msra.gmra.mxu2 %v14750_v44  ;;  %v14166_v33 = vld [vmem:[#allocation10 + $0x1b9c] sm:$0xf0] }
 0x171   :  { %6647 = vmatpush.bf16.msra.mxu3 %v11064_v36  ;;  %6660 = vmatpush.bf16.msrb.mxu0 %v11320_v37  ;;  %v12728_v36 = vor.u32 %v14238_v23, %v12727_v20  ;;  %v12984_v37 = vor.u32 %v14302_v25, %v12983_v24  ;;  %v12951_v42 = vld [vmem:[#allocation10 + $0x1f80] sm:$0xf]  ;;  %v12440_v52 = vor.u32 %v14166_v33, %v12439_v30 }
 0x172   :  { %6673 = vmatpush.bf16.msrb.mxu1 %v11576_v40  ;;  %6686 = vmatpush.bf16.msrb.mxu2 %v11832_v45  ;;  %v337_v40 = vld [vmem:[#allocation1] sm:$0xff]  ;;  %v339_v45 = vld [vmem:[#allocation1 + $0x12] sm:$0xff] }
 0x173   :  { %v14294_v47 = vld [vmem:[#allocation10 + $0x1f9c] sm:$0xf0]  ;;  %v14756_v53 = vpack.c.bf16 %v337_v40, %v337_v40  ;;  %v14760_v59 = vpack.c.bf16 %v339_v45, %v339_v45 }
 0x174   :  { %v14094_v58 = vld [vmem:[#allocation10 + $0x195c] sm:$0xf0] }
 0x175   :  { %6648 = vmatpush.bf16.msra.mxu3 %v11032_v55  ;;  %6661 = vmatpush.bf16.msrb.mxu0 %v11288_v57  ;;  %v12696_v55 = vor.u32 %v14230_v35, %v12695_v34  ;;  %v12151_v57 = vld [vmem:[#allocation10 + $0x1940] sm:$0xf] }
 0x176   :  { %6674 = vmatpush.bf16.msrb.mxu1 %v11544_v60  ;;  %6687 = vmatpush.bf16.msrb.mxu2 %v11800_v61  ;;  %v14762_v60 = vpack.c.bf16 %v340_v46, %v340_v46  ;;  %v12952_v61 = vor.u32 %v14294_v47, %v12951_v42  ;;  %v12663_v0 = vld [vmem:[#allocation10 + $0x1d40] sm:$0xf]  ;;  %v12152_v4 = vor.u32 %v14094_v58, %v12151_v57 }
 0x177   :  { %v14222_v1 = vld [vmem:[#allocation10 + $0x1d5c] sm:$0xf0] }
 0x178   :  { %v14086_v7 = vld [vmem:[#allocation10 + $0x191c] sm:$0xf0]  ;;  %v12664_v8 = vor.u32 %v14222_v1, %v12663_v0 }
 0x179   :  { %6649 = vmatpush.bf16.msra.mxu3 %v11000_v5  ;;  %6662 = vmatpush.bf16.msrb.mxu0 %v11256_v6  ;;  %v12408_v5 = vor.u32 %v14158_v63, %v12407_v62  ;;  %v12119_v6 = vld [vmem:[#allocation10 + $0x1900] sm:$0xf] }
 0x17a   :  { %6675 = vmatpush.bf16.msrb.mxu1 %v11512_v10  ;;  %6688 = vmatpush.bf16.msrb.mxu2 %v11768_v11  ;;  %v12375_v10 = vld [vmem:[#allocation10 + $0x1b00] sm:$0xf]  ;;  %v12120_v16 = vor.u32 %v14086_v7, %v12119_v6 }
 0x17b   :  { %v14150_v11 = vld [vmem:[#allocation10 + $0x1b1c] sm:$0xf0] }
 0x17c   :  { %v12631_v12 = vld [vmem:[#allocation10 + $0x1d00] sm:$0xf]  ;;  %v12376_v17 = vor.u32 %v14150_v11, %v12375_v10 }
 0x17d   :  { %6650 = vmatpush.bf16.msra.mxu3 %v10968_v21  ;;  %6663 = vmatpush.bf16.msrb.mxu0 %v11224_v22  ;;  %v14214_v13 = vld [vmem:[#allocation10 + $0x1d1c] sm:$0xf0] }
 0x17e   :  { %6676 = vmatpush.bf16.msrb.mxu1 %v11480_v26  ;;  %6689 = vmatpush.bf16.msrb.mxu2 %v11736_v27  ;;  %v12887_v14 = vld [vmem:[#allocation10 + $0x1f00] sm:$0xf]  ;;  %v12632_v20 = vor.u32 %v14214_v13, %v12631_v12  ;;  %v13338_v12 = vld [vmem:[#allocation10 + $0x1c4] sm:$0xf] }
 0x17f   :  { %v14278_v15 = vld [vmem:[#allocation10 + $0x1f1c] sm:$0xf0]  ;;  %v9145_v13 = vld [vmem:[#allocation10 + $0x1e0] sm:$0xf0] }
 0x180   :  { %6651 = vmatmul.bf16.vlgmr.msra.gmra.mxu3 %v14756_v53  ;;  %6664 = vmatmul.bf16.vlgmr.msrb.gmra.mxu0 %v14758_v54  ;;  %v12087_v18 = vld [vmem:[#allocation10 + $0x18c0] sm:$0xf]  ;;  %v12888_v21 = vor.u32 %v14278_v15, %v12887_v14  ;;  %v13402_v14 = vld [vmem:[#allocation10 + $0x3c4] sm:$0xf] }
 0x181   :  { %6695 = vmatpush.bf16.msrb.mxu3 %v12216_v31  ;;  %6708 = vmatpush.bf16.msra.mxu0 %v12472_v32  ;;  %v14078_v19 = vld [vmem:[#allocation10 + $0x18dc] sm:$0xf0]  ;;  %v9401_v15 = vld [vmem:[#allocation10 + $0x3e0] sm:$0xf0] }
 0x182   :  { %6721 = vmatpush.bf16.msra.mxu1 %v12728_v36  ;;  %6734 = vmatpush.bf16.msra.mxu2 %v12984_v37  ;;  %v12343_v22 = vld [vmem:[#allocation10 + $0x1ac0] sm:$0xf]  ;;  %v12088_v28 = vor.u32 %v14078_v19, %v12087_v18  ;;  %v9657_v19 = vld [vmem:[#allocation10 + $0x5e0] sm:$0xf0] }
 0x183   :  { %6677 = vmatmul.bf16.vlgmr.msrb.gmra.mxu1 %v14760_v59  ;;  %6690 = vmatmul.bf16.vlgmr.msrb.gmra.mxu2 %v14762_v60  ;;  %v14142_v23 = vld [vmem:[#allocation10 + $0x1adc] sm:$0xf0] }
 0x184   :  { %v12599_v24 = vld [vmem:[#allocation10 + $0x1cc0] sm:$0xf]  ;;  %v12344_v29 = vor.u32 %v14142_v23, %v12343_v22 }
 0x185   :  { %6696 = vmatpush.bf16.msrb.mxu3 %v12184_v48  ;;  %6709 = vmatpush.bf16.msra.mxu0 %v12440_v52  ;;  %v14206_v25 = vld [vmem:[#allocation10 + $0x1cdc] sm:$0xf0] }
 0x186   :  { %6722 = vmatpush.bf16.msra.mxu1 %v12696_v55  ;;  %6735 = vmatpush.bf16.msra.mxu2 %v12952_v61  ;;  %v12855_v26 = vld [vmem:[#allocation10 + $0x1ec0] sm:$0xf]  ;;  %v12600_v32 = vor.u32 %v14206_v25, %v12599_v24  ;;  %v341_v24 = vld [vmem:[#allocation1 + $0x24] sm:$0xff] }
 0x187   :  { %v14270_v27 = vld [vmem:[#allocation10 + $0x1edc] sm:$0xf0] }
 0x188   :  { %v12055_v30 = vld [vmem:[#allocation10 + $0x1880] sm:$0xf]  ;;  %v12856_v33 = vor.u32 %v14270_v27, %v12855_v26  ;;  %v343_v26 = vld [vmem:[#allocation1 + $0x36] sm:$0xff]  ;;  %v9148_v27 = vor.u32 %v13338_v12, %v9145_v13 }
 0x189   :  { %6697 = vmatpush.bf16.msrb.mxu3 %v12152_v4  ;;  %6710 = vmatpush.bf16.msra.mxu0 %v12408_v5  ;;  %v14070_v31 = vld [vmem:[#allocation10 + $0x189c] sm:$0xf0]  ;;  %v13442_v12 = vld [vmem:[#allocation10 + $0x504] sm:$0xf] }
 0x18a   :  { %6723 = vmatpush.bf16.msra.mxu1 %v12664_v8  ;;  %6736 = vmatpush.bf16.msra.mxu2 %v12920_v9  ;;  %v12311_v34 = vld [vmem:[#allocation10 + $0x1a80] sm:$0xf]  ;;  %v12056_v42 = vor.u32 %v14070_v31, %v12055_v30  ;;  %v13330_v30 = vld [vmem:[#allocation10 + $0x184] sm:$0xf] }
 0x18b   :  { %v14134_v35 = vld [vmem:[#allocation10 + $0x1a9c] sm:$0xf0]  ;;  %v9113_v31 = vld [vmem:[#allocation10 + $0x1a0] sm:$0xf0] }
 0x18c   :  { %v12567_v36 = vld [vmem:[#allocation10 + $0x1c80] sm:$0xf]  ;;  %v12312_v45 = vor.u32 %v14134_v35, %v12311_v34  ;;  %v13394_v34 = vld [vmem:[#allocation10 + $0x384] sm:$0xf] }
 0x18d   :  { %6698 = vmatpush.bf16.msrb.mxu3 %v12120_v16  ;;  %6711 = vmatpush.bf16.msra.mxu0 %v12376_v17  ;;  %v14198_v37 = vld [vmem:[#allocation10 + $0x1c9c] sm:$0xf0]  ;;  %v13466_v16 = vld [vmem:[#allocation10 + $0x5c4] sm:$0xf] }
 0x18e   :  { %6724 = vmatpush.bf16.msra.mxu1 %v12632_v20  ;;  %6737 = vmatpush.bf16.msra.mxu2 %v12888_v21  ;;  %v12823_v40 = vld [vmem:[#allocation10 + $0x1e80] sm:$0xf]  ;;  %v12568_v48 = vor.u32 %v14198_v37, %v12567_v36  ;;  %v13530_v20 = vld [vmem:[#allocation10 + $0x7c4] sm:$0xf] }
 0x18f   :  { %v14262_v41 = vld [vmem:[#allocation10 + $0x1e9c] sm:$0xf0]  ;;  %v9913_v21 = vld [vmem:[#allocation10 + $0x7e0] sm:$0xf0] }
 0x190   :  { %v12023_v46 = vld [vmem:[#allocation10 + $0x1840] sm:$0xf]  ;;  %v12824_v52 = vor.u32 %v14262_v41, %v12823_v40  ;;  %v9369_v35 = vld [vmem:[#allocation10 + $0x3a0] sm:$0xf0] }
 0x191   :  { %6699 = vmatpush.bf16.msrb.mxu3 %v12088_v28  ;;  %6712 = vmatpush.bf16.msra.mxu0 %v12344_v29  ;;  %v14062_v47 = vld [vmem:[#allocation10 + $0x185c] sm:$0xf0]  ;;  %v9404_v28 = vor.u32 %v13402_v14, %v9401_v15  ;;  %v344_v29 = vld [vmem:[#allocation1 + $0x3f] sm:$0xff]  ;;  %v13458_v36 = vld [vmem:[#allocation10 + $0x584] sm:$0xf] }
 0x192   :  { %6725 = vmatpush.bf16.msra.mxu1 %v12600_v32  ;;  %6738 = vmatpush.bf16.msra.mxu2 %v12856_v33  ;;  %v12279_v55 = vld [vmem:[#allocation10 + $0x1a40] sm:$0xf]  ;;  %v12024_v1 = vor.u32 %v14062_v47, %v12023_v46  ;;  %v9660_v32 = vor.u32 %v13466_v16, %v9657_v19  ;;  %v9916_v33 = vor.u32 %v13530_v20, %v9913_v21  ;;  %v9625_v37 = vld [vmem:[#allocation10 + $0x5a0] sm:$0xf0] }
 0x193   :  { %v14126_v57 = vld [vmem:[#allocation10 + $0x1a5c] sm:$0xf0]  ;;  %v13522_v40 = vld [vmem:[#allocation10 + $0x784] sm:$0xf]  ;;  %v14772_v46 = vpack.c.bf16 %v343_v26, %v343_v26  ;;  %v9116_v47 = vor.u32 %v13330_v30, %v9113_v31 }
 0x194   :  { %v12535_v58 = vld [vmem:[#allocation10 + $0x1c40] sm:$0xf]  ;;  %v12280_v2 = vor.u32 %v14126_v57, %v12279_v55  ;;  %v9881_v41 = vld [vmem:[#allocation10 + $0x7a0] sm:$0xf0]  ;;  %v14774_v57 = vpack.c.bf16 %v344_v29, %v344_v29 }
 0x195   :  { %v14190_v61 = vld [vmem:[#allocation10 + $0x1c5c] sm:$0xf0]  ;;  %6700 = vmatpush.bf16.msrb.mxu3 %v12056_v42  ;;  %6713 = vmatpush.bf16.msra.mxu0 %v12312_v45  ;;  %v14768_v42 = vpack.c.bf16 %v341_v24, %v341_v24  ;;  %v9081_v55 = vld [vmem:[#allocation10 + $0x160] sm:$0xf0] }
 0x196   :  { %v12791_v62 = vld [vmem:[#allocation10 + $0x1e40] sm:$0xf]  ;;  %6726 = vmatpush.bf16.msra.mxu1 %v12568_v48  ;;  %6739 = vmatpush.bf16.msra.mxu2 %v12824_v52  ;;  %v12536_v6 = vor.u32 %v14190_v61, %v12535_v58  ;;  %v9372_v48 = vor.u32 %v13394_v34, %v9369_v35  ;;  %v13322_v52 = vld [vmem:[#allocation10 + $0x144] sm:$0xf]  ;;  %v9628_v58 = vor.u32 %v13458_v36, %v9625_v37 }
 0x197   :  { %v14254_v63 = vld [vmem:[#allocation10 + $0x1e5c] sm:$0xf0]  ;;  %v9884_v61 = vor.u32 %v13522_v40, %v9881_v41  ;;  %v9561_v13 = vld [vmem:[#allocation10 + $0x520] sm:$0xf0] }
 0x198   :  { %v11991_v0 = vld [vmem:[#allocation10 + $0x1800] sm:$0xf]  ;;  %v12792_v7 = vor.u32 %v14254_v63, %v12791_v62  ;;  %v13386_v62 = vld [vmem:[#allocation10 + $0x344] sm:$0xf]  ;;  %v9564_v20 = vor.u32 %v13442_v12, %v9561_v13 }
 0x199   :  { %v12247_v4 = vld [vmem:[#allocation10 + $0x1a00] sm:$0xf]  ;;  %6701 = vmatpush.bf16.msrb.mxu3 %v12024_v1  ;;  %6714 = vmatpush.bf16.msra.mxu0 %v12280_v2  ;;  %v11992_v17 = vor.u32 %v14054_v3, %v11991_v0  ;;  %v9337_v63 = vld [vmem:[#allocation10 + $0x360] sm:$0xf0] }
 0x19a   :  { %v14118_v5 = vld [vmem:[#allocation10 + $0x1a1c] sm:$0xf0]  ;;  %6727 = vmatpush.bf16.msra.mxu1 %v12536_v6  ;;  %6740 = vmatpush.bf16.msra.mxu2 %v12792_v7  ;;  %v13450_v0 = vld [vmem:[#allocation10 + $0x544] sm:$0xf] }
 0x19b   :  { %v12503_v8 = vld [vmem:[#allocation10 + $0x1c00] sm:$0xf]  ;;  %v12248_v18 = vor.u32 %v14118_v5, %v12247_v4  ;;  %v9593_v1 = vld [vmem:[#allocation10 + $0x560] sm:$0xf0]  ;;  %v9084_v4 = vor.u32 %v13322_v52, %v9081_v55  ;;  %v9340_v5 = vor.u32 %v13386_v62, %v9337_v63 }
 0x19c   :  { %v14182_v9 = vld [vmem:[#allocation10 + $0x1c1c] sm:$0xf0]  ;;  %v13514_v2 = vld [vmem:[#allocation10 + $0x744] sm:$0xf] }
 0x19d   :  { %v12759_v10 = vld [vmem:[#allocation10 + $0x1e00] sm:$0xf]  ;;  %v12504_v22 = vor.u32 %v14182_v9, %v12503_v8  ;;  %6702 = vmatpush.bf16.msrb.mxu3 %v11992_v17  ;;  %6715 = vmatpush.bf16.msra.mxu0 %v12248_v18  ;;  %v9849_v3 = vld [vmem:[#allocation10 + $0x760] sm:$0xf0]  ;;  %v9596_v8 = vor.u32 %v13450_v0, %v9593_v1 }
 0x19e   :  { %v14246_v11 = vld [vmem:[#allocation10 + $0x1e1c] sm:$0xf0]  ;;  %v13314_v6 = vld [vmem:[#allocation10 + $0x104] sm:$0xf]  ;;  %v9852_v9 = vor.u32 %v13514_v2, %v9849_v3 }
 0x19f   :  { %v12760_v23 = vor.u32 %v14246_v11, %v12759_v10  ;;  %v342_v25 = vld [vmem:[#allocation1 + $0x2d] sm:$0xff]  ;;  %6728 = vmatpush.bf16.msra.mxu1 %v12504_v22  ;;  %v9049_v7 = vld [vmem:[#allocation10 + $0x120] sm:$0xf0] }
 0x1a0   :  { %v14770_v45 = vpack.c.bf16 %v342_v25, %v342_v25  ;;  %6703 = vmatmul.bf16.vlgmr.msrb.gmra.mxu3 %v14768_v42  ;;  %v13378_v10 = vld [vmem:[#allocation10 + $0x304] sm:$0xf]  ;;  %v9052_v16 = vor.u32 %v13314_v6, %v9049_v7 }
 0x1a1   :  { %6741 = vmatpush.bf16.msra.mxu2 %v12760_v23  ;;  %6747 = vmatpush.bf16.msra.mxu3 %v9148_v27  ;;  %v9305_v11 = vld [vmem:[#allocation10 + $0x320] sm:$0xf0] }
 0x1a2   :  { %6760 = vmatpush.bf16.msrb.mxu0 %v9404_v28  ;;  %6729 = vmatmul.bf16.vlgmr.msra.gmra.mxu1 %v14772_v46  ;;  %v13506_v14 = vld [vmem:[#allocation10 + $0x704] sm:$0xf]  ;;  %v9308_v17 = vor.u32 %v13378_v10, %v9305_v11 }
 0x1a3   :  { %6773 = vmatpush.bf16.msrb.mxu1 %v9660_v32  ;;  %6716 = vmatmul.bf16.vlgmr.msra.gmra.mxu0 %v14770_v45  ;;  %v9817_v15 = vld [vmem:[#allocation10 + $0x720] sm:$0xf0] }
 0x1a4   :  { %6742 = vmatmul.bf16.vlgmr.msra.gmra.mxu2 %v14774_v57  ;;  %v13306_v18 = vld [vmem:[#allocation10 + $0xc4] sm:$0xf]  ;;  %v9820_v21 = vor.u32 %v13506_v14, %v9817_v15 }
 0x1a5   :  { %6786 = vmatpush.bf16.msrb.mxu2 %v9916_v33  ;;  %6748 = vmatpush.bf16.msra.mxu3 %v9116_v47  ;;  %v9017_v19 = vld [vmem:[#allocation10 + $0xe0] sm:$0xf0] }
 0x1a6   :  { %6761 = vmatpush.bf16.msrb.mxu0 %v9372_v48  ;;  %v13370_v22 = vld [vmem:[#allocation10 + $0x2c4] sm:$0xf]  ;;  %v9020_v28 = vor.u32 %v13306_v18, %v9017_v19 }
 0x1a7   :  { %6774 = vmatpush.bf16.msrb.mxu1 %v9628_v58  ;;  %v9273_v23 = vld [vmem:[#allocation10 + $0x2e0] sm:$0xf0] }
 0x1a8   :  { %v13434_v24 = vld [vmem:[#allocation10 + $0x4c4] sm:$0xf]  ;;  %v9276_v29 = vor.u32 %v13370_v22, %v9273_v23 }
 0x1a9   :  { %6787 = vmatpush.bf16.msrb.mxu2 %v9884_v61  ;;  %6749 = vmatpush.bf16.msra.mxu3 %v9084_v4  ;;  %v9529_v25 = vld [vmem:[#allocation10 + $0x4e0] sm:$0xf0] }
 0x1aa   :  { %6762 = vmatpush.bf16.msrb.mxu0 %v9340_v5  ;;  %v13498_v26 = vld [vmem:[#allocation10 + $0x6c4] sm:$0xf]  ;;  %v9532_v32 = vor.u32 %v13434_v24, %v9529_v25 }
 0x1ab   :  { %6775 = vmatpush.bf16.msrb.mxu1 %v9596_v8  ;;  %v9785_v27 = vld [vmem:[#allocation10 + $0x6e0] sm:$0xf0] }
 0x1ac   :  { %v13298_v30 = vld [vmem:[#allocation10 + $0x84] sm:$0xf]  ;;  %v9788_v33 = vor.u32 %v13498_v26, %v9785_v27 }
 0x1ad   :  { %6788 = vmatpush.bf16.msrb.mxu2 %v9852_v9  ;;  %6750 = vmatpush.bf16.msra.mxu3 %v9052_v16  ;;  %v8985_v31 = vld [vmem:[#allocation10 + $0xa0] sm:$0xf0] }
 0x1ae   :  { %6763 = vmatpush.bf16.msrb.mxu0 %v9308_v17  ;;  %v13362_v34 = vld [vmem:[#allocation10 + $0x284] sm:$0xf]  ;;  %v8988_v47 = vor.u32 %v13298_v30, %v8985_v31 }
 0x1af   :  { %6776 = vmatpush.bf16.msrb.mxu1 %v9564_v20  ;;  %v9241_v35 = vld [vmem:[#allocation10 + $0x2a0] sm:$0xf0] }
 0x1b0   :  { %v13426_v36 = vld [vmem:[#allocation10 + $0x484] sm:$0xf]  ;;  %v9244_v48 = vor.u32 %v13362_v34, %v9241_v35 }
 0x1b1   :  { %6789 = vmatpush.bf16.msrb.mxu2 %v9820_v21  ;;  %v9497_v37 = vld [vmem:[#allocation10 + $0x4a0] sm:$0xf0]  ;;  %6751 = vmatpush.bf16.msra.mxu3 %v9020_v28 }
 0x1b2   :  { %v13490_v40 = vld [vmem:[#allocation10 + $0x684] sm:$0xf]  ;;  %6764 = vmatpush.bf16.msrb.mxu0 %v9276_v29  ;;  %v9500_v58 = vor.u32 %v13426_v36, %v9497_v37 }
 0x1b3   :  { %v9753_v41 = vld [vmem:[#allocation10 + $0x6a0] sm:$0xf0]  ;;  %6777 = vmatpush.bf16.msrb.mxu1 %v9532_v32 }
 0x1b4   :  { %v13290_v52 = vld [vmem:[#allocation10 + $0x44] sm:$0xf]  ;;  %v9756_v61 = vor.u32 %v13490_v40, %v9753_v41 }
 0x1b5   :  { %v8953_v55 = vld [vmem:[#allocation10 + $0x60] sm:$0xf0]  ;;  %6790 = vmatpush.bf16.msrb.mxu2 %v9788_v33  ;;  %6752 = vmatpush.bf16.msra.mxu3 %v8988_v47 }
 0x1b6   :  { %v13354_v62 = vld [vmem:[#allocation10 + $0x244] sm:$0xf]  ;;  %6765 = vmatpush.bf16.msrb.mxu0 %v9244_v48  ;;  %v8956_v5 = vor.u32 %v13290_v52, %v8953_v55 }
 0x1b7   :  { %v9209_v63 = vld [vmem:[#allocation10 + $0x260] sm:$0xf0]  ;;  %6778 = vmatpush.bf16.msrb.mxu1 %v9500_v58 }
 0x1b8   :  { %v13418_v0 = vld [vmem:[#allocation10 + $0x444] sm:$0xf]  ;;  %v9212_v6 = vor.u32 %v13354_v62, %v9209_v63 }
 0x1b9   :  { %v9465_v1 = vld [vmem:[#allocation10 + $0x460] sm:$0xf0]  ;;  %6791 = vmatpush.bf16.msrb.mxu2 %v9756_v61  ;;  %6753 = vmatpush.bf16.msra.mxu3 %v8956_v5 }
 0x1ba   :  { %v13482_v2 = vld [vmem:[#allocation10 + $0x644] sm:$0xf]  ;;  %v9468_v10 = vor.u32 %v13418_v0, %v9465_v1  ;;  %6766 = vmatpush.bf16.msrb.mxu0 %v9212_v6 }
 0x1bb   :  { %v9721_v3 = vld [vmem:[#allocation10 + $0x660] sm:$0xf0] }
 0x1bc   :  { %v13282_v4 = vld [vmem:[#allocation10 + $0x4] sm:$0xf]  ;;  %v9724_v11 = vor.u32 %v13482_v2, %v9721_v3  ;;  %6779 = vmatpush.bf16.msrb.mxu1 %v9468_v10 }
 0x1bd   :  { %v8921_v7 = vld [vmem:[#allocation10 + $0x20] sm:$0xf0] }
 0x1be   :  { %v13346_v8 = vld [vmem:[#allocation10 + $0x204] sm:$0xf]  ;;  %v8924_v21 = vor.u32 %v13282_v4, %v8921_v7  ;;  %6792 = vmatpush.bf16.msrb.mxu2 %v9724_v11 }
 0x1bf   :  { %v9177_v9 = vld [vmem:[#allocation10 + $0x220] sm:$0xf0] }
 0x1c0   :  { %v13410_v12 = vld [vmem:[#allocation10 + $0x404] sm:$0xf]  ;;  %v9180_v22 = vor.u32 %v13346_v8, %v9177_v9  ;;  %6754 = vmatpush.bf16.msra.mxu3 %v8924_v21 }
 0x1c1   :  { %v9433_v13 = vld [vmem:[#allocation10 + $0x420] sm:$0xf0] }
 0x1c2   :  { %v13474_v14 = vld [vmem:[#allocation10 + $0x604] sm:$0xf]  ;;  %v9436_v26 = vor.u32 %v13410_v12, %v9433_v13  ;;  %6767 = vmatpush.bf16.msrb.mxu0 %v9180_v22 }
 0x1c3   :  { %v9689_v15 = vld [vmem:[#allocation10 + $0x620] sm:$0xf0]  ;;  %6755 = vmatmul.bf16.vlgmr.msra.gmra.mxu3 %v14716_v49 }
 0x1c4   :  { %v13594_v16 = vld [vmem:[#allocation10 + $0x9c4] sm:$0xf]  ;;  %v9692_v27 = vor.u32 %v13474_v14, %v9689_v15  ;;  %6780 = vmatpush.bf16.msrb.mxu1 %v9436_v26 }
 0x1c5   :  { %v10169_v17 = vld [vmem:[#allocation10 + $0x9e0] sm:$0xf0]  ;;  %6768 = vmatmul.bf16.vlgmr.msrb.gmra.mxu0 %v14718_v50 }
 0x1c6   :  { %v13658_v18 = vld [vmem:[#allocation10 + $0xbc4] sm:$0xf]  ;;  %v10172_v28 = vor.u32 %v13594_v16, %v10169_v17  ;;  %6793 = vmatpush.bf16.msrb.mxu2 %v9692_v27 }
 0x1c7   :  { %v10425_v19 = vld [vmem:[#allocation10 + $0xbe0] sm:$0xf0]  ;;  %6781 = vmatmul.bf16.vlgmr.msrb.gmra.mxu1 %v14720_v51 }
 0x1c8   :  { %v13722_v20 = vld [vmem:[#allocation10 + $0xdc4] sm:$0xf]  ;;  %v10428_v29 = vor.u32 %v13658_v18, %v10425_v19  ;;  %6799 = vmatpush.bf16.msrb.mxu3 %v10172_v28 }
 0x1c9   :  { %v10681_v23 = vld [vmem:[#allocation10 + $0xde0] sm:$0xf0]  ;;  %6794 = vmatmul.bf16.vlgmr.msrb.gmra.mxu2 %v14726_v56 }
 0x1ca   :  { %v13786_v24 = vld [vmem:[#allocation10 + $0xfc4] sm:$0xf]  ;;  %v10684_v32 = vor.u32 %v13722_v20, %v10681_v23  ;;  %6812 = vmatpush.bf16.msra.mxu0 %v10428_v29 }
 0x1cb   :  { %v10937_v25 = vld [vmem:[#allocation10 + $0xfe0] sm:$0xf0] }
 0x1cc   :  { %v13586_v30 = vld [vmem:[#allocation10 + $0x984] sm:$0xf]  ;;  %v10940_v33 = vor.u32 %v13786_v24, %v10937_v25  ;;  %6825 = vmatpush.bf16.msra.mxu1 %v10684_v32 }
 0x1cd   :  { %v10137_v31 = vld [vmem:[#allocation10 + $0x9a0] sm:$0xf0] }
 0x1ce   :  { %v13650_v34 = vld [vmem:[#allocation10 + $0xb84] sm:$0xf]  ;;  %v10140_v47 = vor.u32 %v13586_v30, %v10137_v31  ;;  %6838 = vmatpush.bf16.msra.mxu2 %v10940_v33 }
 0x1cf   :  { %v10393_v35 = vld [vmem:[#allocation10 + $0xba0] sm:$0xf0] }
 0x1d0   :  { %v13714_v36 = vld [vmem:[#allocation10 + $0xd84] sm:$0xf]  ;;  %v10396_v48 = vor.u32 %v13650_v34, %v10393_v35  ;;  %6800 = vmatpush.bf16.msrb.mxu3 %v10140_v47 }
 0x1d1   :  { %v10649_v37 = vld [vmem:[#allocation10 + $0xda0] sm:$0xf0] }
 0x1d2   :  { %v13778_v40 = vld [vmem:[#allocation10 + $0xf84] sm:$0xf]  ;;  %v10652_v58 = vor.u32 %v13714_v36, %v10649_v37  ;;  %6813 = vmatpush.bf16.msra.mxu0 %v10396_v48 }
 0x1d3   :  { %v10905_v41 = vld [vmem:[#allocation10 + $0xfa0] sm:$0xf0] }
 0x1d4   :  { %v13578_v52 = vld [vmem:[#allocation10 + $0x944] sm:$0xf]  ;;  %v10908_v61 = vor.u32 %v13778_v40, %v10905_v41  ;;  %6826 = vmatpush.bf16.msra.mxu1 %v10652_v58 }
 0x1d5   :  { %v10105_v55 = vld [vmem:[#allocation10 + $0x960] sm:$0xf0] }
 0x1d6   :  { %v13642_v62 = vld [vmem:[#allocation10 + $0xb44] sm:$0xf]  ;;  %v10108_v4 = vor.u32 %v13578_v52, %v10105_v55  ;;  %6839 = vmatpush.bf16.msra.mxu2 %v10908_v61 }
 0x1d7   :  { %v10361_v63 = vld [vmem:[#allocation10 + $0xb60] sm:$0xf0] }
 0x1d8   :  { %v13706_v0 = vld [vmem:[#allocation10 + $0xd44] sm:$0xf]  ;;  %v10364_v5 = vor.u32 %v13642_v62, %v10361_v63  ;;  %6801 = vmatpush.bf16.msrb.mxu3 %v10108_v4 }
 0x1d9   :  { %v10617_v1 = vld [vmem:[#allocation10 + $0xd60] sm:$0xf0] }
 0x1da   :  { %v13770_v2 = vld [vmem:[#allocation10 + $0xf44] sm:$0xf]  ;;  %v10620_v8 = vor.u32 %v13706_v0, %v10617_v1  ;;  %6814 = vmatpush.bf16.msra.mxu0 %v10364_v5 }
 0x1db   :  { %v10873_v3 = vld [vmem:[#allocation10 + $0xf60] sm:$0xf0] }
 0x1dc   :  { %v13570_v6 = vld [vmem:[#allocation10 + $0x904] sm:$0xf]  ;;  %v10876_v9 = vor.u32 %v13770_v2, %v10873_v3  ;;  %6827 = vmatpush.bf16.msra.mxu1 %v10620_v8 }
 0x1dd   :  { %v10073_v7 = vld [vmem:[#allocation10 + $0x920] sm:$0xf0] }
 0x1de   :  { %v13634_v10 = vld [vmem:[#allocation10 + $0xb04] sm:$0xf]  ;;  %v10076_v16 = vor.u32 %v13570_v6, %v10073_v7  ;;  %6840 = vmatpush.bf16.msra.mxu2 %v10876_v9 }
 0x1df   :  { %v10329_v11 = vld [vmem:[#allocation10 + $0xb20] sm:$0xf0] }
 0x1e0   :  { %v13698_v12 = vld [vmem:[#allocation10 + $0xd04] sm:$0xf]  ;;  %v10332_v17 = vor.u32 %v13634_v10, %v10329_v11  ;;  %6802 = vmatpush.bf16.msrb.mxu3 %v10076_v16 }
 0x1e1   :  { %v10585_v13 = vld [vmem:[#allocation10 + $0xd20] sm:$0xf0] }
 0x1e2   :  { %v13762_v14 = vld [vmem:[#allocation10 + $0xf04] sm:$0xf]  ;;  %v10588_v20 = vor.u32 %v13698_v12, %v10585_v13  ;;  %6815 = vmatpush.bf16.msra.mxu0 %v10332_v17 }
 0x1e3   :  { %v10841_v15 = vld [vmem:[#allocation10 + $0xf20] sm:$0xf0] }
 0x1e4   :  { %v13562_v18 = vld [vmem:[#allocation10 + $0x8c4] sm:$0xf]  ;;  %v10844_v21 = vor.u32 %v13762_v14, %v10841_v15  ;;  %6828 = vmatpush.bf16.msra.mxu1 %v10588_v20 }
 0x1e5   :  { %v10041_v19 = vld [vmem:[#allocation10 + $0x8e0] sm:$0xf0] }
 0x1e6   :  { %v13626_v22 = vld [vmem:[#allocation10 + $0xac4] sm:$0xf]  ;;  %v10044_v28 = vor.u32 %v13562_v18, %v10041_v19  ;;  %6841 = vmatpush.bf16.msra.mxu2 %v10844_v21 }
 0x1e7   :  { %v10297_v23 = vld [vmem:[#allocation10 + $0xae0] sm:$0xf0] }
 0x1e8   :  { %v13690_v24 = vld [vmem:[#allocation10 + $0xcc4] sm:$0xf]  ;;  %v10300_v29 = vor.u32 %v13626_v22, %v10297_v23  ;;  %6803 = vmatpush.bf16.msrb.mxu3 %v10044_v28 }
 0x1e9   :  { %v10553_v25 = vld [vmem:[#allocation10 + $0xce0] sm:$0xf0] }
 0x1ea   :  { %v13754_v26 = vld [vmem:[#allocation10 + $0xec4] sm:$0xf]  ;;  %v10556_v32 = vor.u32 %v13690_v24, %v10553_v25  ;;  %6816 = vmatpush.bf16.msra.mxu0 %v10300_v29 }
 0x1eb   :  { %v10809_v27 = vld [vmem:[#allocation10 + $0xee0] sm:$0xf0] }
 0x1ec   :  { %v13554_v30 = vld [vmem:[#allocation10 + $0x884] sm:$0xf]  ;;  %v10812_v33 = vor.u32 %v13754_v26, %v10809_v27  ;;  %6829 = vmatpush.bf16.msra.mxu1 %v10556_v32 }
 0x1ed   :  { %v10009_v31 = vld [vmem:[#allocation10 + $0x8a0] sm:$0xf0] }
 0x1ee   :  { %v13618_v34 = vld [vmem:[#allocation10 + $0xa84] sm:$0xf]  ;;  %v10012_v47 = vor.u32 %v13554_v30, %v10009_v31  ;;  %6842 = vmatpush.bf16.msra.mxu2 %v10812_v33 }
 0x1ef   :  { %v10265_v35 = vld [vmem:[#allocation10 + $0xaa0] sm:$0xf0] }
 0x1f0   :  { %v13682_v36 = vld [vmem:[#allocation10 + $0xc84] sm:$0xf]  ;;  %v10268_v48 = vor.u32 %v13618_v34, %v10265_v35  ;;  %6804 = vmatpush.bf16.msrb.mxu3 %v10012_v47 }
 0x1f1   :  { %v10521_v37 = vld [vmem:[#allocation10 + $0xca0] sm:$0xf0] }
 0x1f2   :  { %v13746_v40 = vld [vmem:[#allocation10 + $0xe84] sm:$0xf]  ;;  %v10524_v58 = vor.u32 %v13682_v36, %v10521_v37  ;;  %6817 = vmatpush.bf16.msra.mxu0 %v10268_v48 }
 0x1f3   :  { %v10777_v41 = vld [vmem:[#allocation10 + $0xea0] sm:$0xf0] }
 0x1f4   :  { %v13546_v52 = vld [vmem:[#allocation10 + $0x844] sm:$0xf]  ;;  %v10780_v61 = vor.u32 %v13746_v40, %v10777_v41  ;;  %6830 = vmatpush.bf16.msra.mxu1 %v10524_v58 }
 0x1f5   :  { %v9977_v55 = vld [vmem:[#allocation10 + $0x860] sm:$0xf0] }
 0x1f6   :  { %v13610_v62 = vld [vmem:[#allocation10 + $0xa44] sm:$0xf]  ;;  %v9980_v5 = vor.u32 %v13546_v52, %v9977_v55  ;;  %6843 = vmatpush.bf16.msra.mxu2 %v10780_v61 }
 0x1f7   :  { %v10233_v63 = vld [vmem:[#allocation10 + $0xa60] sm:$0xf0] }
 0x1f8   :  { %v13674_v0 = vld [vmem:[#allocation10 + $0xc44] sm:$0xf]  ;;  %v10236_v6 = vor.u32 %v13610_v62, %v10233_v63  ;;  %6805 = vmatpush.bf16.msrb.mxu3 %v9980_v5 }
 0x1f9   :  { %v10489_v1 = vld [vmem:[#allocation10 + $0xc60] sm:$0xf0] }
 0x1fa   :  { %v13738_v2 = vld [vmem:[#allocation10 + $0xe44] sm:$0xf]  ;;  %v10492_v10 = vor.u32 %v13674_v0, %v10489_v1  ;;  %6818 = vmatpush.bf16.msra.mxu0 %v10236_v6 }
 0x1fb   :  { %v10745_v3 = vld [vmem:[#allocation10 + $0xe60] sm:$0xf0] }
 0x1fc   :  { %v13538_v4 = vld [vmem:[#allocation10 + $0x804] sm:$0xf]  ;;  %v10748_v11 = vor.u32 %v13738_v2, %v10745_v3  ;;  %6831 = vmatpush.bf16.msra.mxu1 %v10492_v10 }
 0x1fd   :  { %v9945_v7 = vld [vmem:[#allocation10 + $0x820] sm:$0xf0] }
 0x1fe   :  { %v13602_v8 = vld [vmem:[#allocation10 + $0xa04] sm:$0xf]  ;;  %v9948_v21 = vor.u32 %v13538_v4, %v9945_v7  ;;  %6844 = vmatpush.bf16.msra.mxu2 %v10748_v11  ;;  %v6561_v4 = vpop.f32.mrf.mxu0 }
 0x1ff   :  { %v10201_v9 = vld [vmem:[#allocation10 + $0xa20] sm:$0xf0] }
 0x200   :  { %v13666_v12 = vld [vmem:[#allocation10 + $0xc04] sm:$0xf]  ;;  %v10204_v22 = vor.u32 %v13602_v8, %v10201_v9  ;;  %6806 = vmatpush.bf16.msrb.mxu3 %v9948_v21  ;;  %v6574_v8 = vpop.f32.mrf.mxu1 }
 0x201   :  { %v10457_v13 = vld [vmem:[#allocation10 + $0xc20] sm:$0xf0] }
 0x202   :  { %v13730_v14 = vld [vmem:[#allocation10 + $0xe04] sm:$0xf]  ;;  %v10460_v26 = vor.u32 %v13666_v12, %v10457_v13  ;;  %6819 = vmatpush.bf16.msra.mxu0 %v10204_v22 }
 0x203   :  { %v10713_v15 = vld [vmem:[#allocation10 + $0xe20] sm:$0xf0]  ;;  %6807 = vmatmul.bf16.vlgmr.msrb.gmra.mxu3 %v14738_v38 }
 0x204   :  { %v13850_v16 = vld [vmem:[#allocation10 + $0x11c4] sm:$0xf]  ;;  %v10716_v27 = vor.u32 %v13730_v14, %v10713_v15  ;;  %6832 = vmatpush.bf16.msra.mxu1 %v10460_v26  ;;  %v6548_v26 = vpop.f32.mrf.mxu3 }
 0x205   :  { %v11193_v17 = vld [vmem:[#allocation10 + $0x11e0] sm:$0xf0]  ;;  %6820 = vmatmul.bf16.vlgmr.msra.gmra.mxu0 %v14742_v39 }
 0x206   :  { %v13914_v18 = vld [vmem:[#allocation10 + $0x13c4] sm:$0xf]  ;;  %v11196_v28 = vor.u32 %v13850_v16, %v11193_v17  ;;  %6845 = vmatpush.bf16.msra.mxu2 %v10716_v27 }
 0x207   :  { %v11449_v19 = vld [vmem:[#allocation10 + $0x13e0] sm:$0xf0]  ;;  %6833 = vmatmul.bf16.vlgmr.msra.gmra.mxu1 %v14746_v43 }
 0x208   :  { %v13978_v20 = vld [vmem:[#allocation10 + $0x15c4] sm:$0xf]  ;;  %v11452_v29 = vor.u32 %v13914_v18, %v11449_v19  ;;  %6851 = vmatpush.bf16.msra.mxu3 %v11196_v28 }
 0x209   :  { %v11705_v23 = vld [vmem:[#allocation10 + $0x15e0] sm:$0xf0]  ;;  %6846 = vmatmul.bf16.vlgmr.msra.gmra.mxu2 %v14750_v44 }
 0x20a   :  { %v14042_v24 = vld [vmem:[#allocation10 + $0x17c4] sm:$0xf]  ;;  %v11708_v32 = vor.u32 %v13978_v20, %v11705_v23  ;;  %6864 = vmatpush.bf16.msrb.mxu0 %v11452_v29 }
 0x20b   :  { %v11961_v25 = vld [vmem:[#allocation10 + $0x17e0] sm:$0xf0] }
 0x20c   :  { %v13842_v30 = vld [vmem:[#allocation10 + $0x1184] sm:$0xf]  ;;  %v11964_v33 = vor.u32 %v14042_v24, %v11961_v25  ;;  %6877 = vmatpush.bf16.msrb.mxu1 %v11708_v32 }
 0x20d   :  { %v11161_v31 = vld [vmem:[#allocation10 + $0x11a0] sm:$0xf0] }
 0x20e   :  { %v13906_v34 = vld [vmem:[#allocation10 + $0x1384] sm:$0xf]  ;;  %v11164_v47 = vor.u32 %v13842_v30, %v11161_v31  ;;  %6890 = vmatpush.bf16.msrb.mxu2 %v11964_v33  ;;  %v6587_v31 = vpop.f32.mrf.mxu2 }
 0x20f   :  { %v11417_v35 = vld [vmem:[#allocation10 + $0x13a0] sm:$0xf0] }
 0x210   :  { %v13970_v36 = vld [vmem:[#allocation10 + $0x1584] sm:$0xf]  ;;  %v11420_v48 = vor.u32 %v13906_v34, %v11417_v35  ;;  %6852 = vmatpush.bf16.msra.mxu3 %v11164_v47  ;;  %v6563_v35 = vpop.f32.mrf.mxu0 }
 0x211   :  { %v11673_v37 = vld [vmem:[#allocation10 + $0x15a0] sm:$0xf0] }
 0x212   :  { %v14034_v40 = vld [vmem:[#allocation10 + $0x1784] sm:$0xf]  ;;  %v11676_v58 = vor.u32 %v13970_v36, %v11673_v37  ;;  %6865 = vmatpush.bf16.msrb.mxu0 %v11420_v48 }
 0x213   :  { %v11929_v41 = vld [vmem:[#allocation10 + $0x17a0] sm:$0xf0] }
 0x214   :  { %v13834_v52 = vld [vmem:[#allocation10 + $0x1144] sm:$0xf]  ;;  %v11932_v61 = vor.u32 %v14034_v40, %v11929_v41  ;;  %6878 = vmatpush.bf16.msrb.mxu1 %v11676_v58  ;;  %v6576_v41 = vpop.f32.mrf.mxu1 }
 0x215   :  { %v11129_v55 = vld [vmem:[#allocation10 + $0x1160] sm:$0xf0] }
 0x216   :  { %v13898_v62 = vld [vmem:[#allocation10 + $0x1344] sm:$0xf]  ;;  %v11132_v6 = vor.u32 %v13834_v52, %v11129_v55  ;;  %6891 = vmatpush.bf16.msrb.mxu2 %v11932_v61 }
 0x217   :  { %v11385_v63 = vld [vmem:[#allocation10 + $0x1360] sm:$0xf0] }
 0x218   :  { %v13962_v0 = vld [vmem:[#allocation10 + $0x1544] sm:$0xf]  ;;  %v11388_v7 = vor.u32 %v13898_v62, %v11385_v63  ;;  %6853 = vmatpush.bf16.msra.mxu3 %v11132_v6 }
 0x219   :  { %v11641_v1 = vld [vmem:[#allocation10 + $0x1560] sm:$0xf0] }
 0x21a   :  { %v14026_v2 = vld [vmem:[#allocation10 + $0x1744] sm:$0xf]  ;;  %v11644_v12 = vor.u32 %v13962_v0, %v11641_v1  ;;  %6866 = vmatpush.bf16.msrb.mxu0 %v11388_v7 }
 0x21b   :  { %v11897_v3 = vld [vmem:[#allocation10 + $0x1760] sm:$0xf0] }
 0x21c   :  { %v14788_v5 = vld [vmem:[#allocation11] sm:$0xff]  ;;  %v11900_v13 = vor.u32 %v14026_v2, %v11897_v3  ;;  %6879 = vmatpush.bf16.msrb.mxu1 %v11644_v12  ;;  %v6550_v12 = vpop.f32.mrf.mxu3 }
 0x21d   :  { %v13826_v9 = vld [vmem:[#allocation10 + $0x1104] sm:$0xf]  ;;  %v1403_v19 = vperm.slane %v14788_v5, 0 }
 0x21e   :  { %v11097_v10 = vld [vmem:[#allocation10 + $0x1120] sm:$0xf0]  ;;  %6892 = vmatpush.bf16.msrb.mxu2 %v11900_v13 }
 0x21f   :  { %v13890_v11 = vld [vmem:[#allocation10 + $0x1304] sm:$0xf]  ;;  %v11100_v20 = vor.u32 %v13826_v9, %v11097_v10  ;;  %v6549_v30 = vadd.f32 %v6548_v26, %v1403_v19  ;;  %v6613_v19 = vpop.f32.mrf.mxu0 }
 0x220   :  { %v11353_v14 = vld [vmem:[#allocation10 + $0x1320] sm:$0xf0] }
 0x221   :  { %v13954_v15 = vld [vmem:[#allocation10 + $0x1504] sm:$0xf]  ;;  %v11356_v21 = vor.u32 %v13890_v11, %v11353_v14  ;;  %6854 = vmatpush.bf16.msra.mxu3 %v11100_v20  ;;  %v6562_v36 = vadd.f32 %v6561_v4, %v6549_v30 }
 0x222   :  { %v11609_v16 = vld [vmem:[#allocation10 + $0x1520] sm:$0xf0] }
 0x223   :  { %v14018_v17 = vld [vmem:[#allocation10 + $0x1704] sm:$0xf]  ;;  %v11612_v24 = vor.u32 %v13954_v15, %v11609_v16  ;;  %6867 = vmatpush.bf16.msrb.mxu0 %v11356_v21  ;;  %v6575_v63 = vadd.f32 %v6574_v8, %v6562_v36  ;;  %v6589_v16 = vpop.f32.mrf.mxu2 }
 0x224   :  { %v11865_v18 = vld [vmem:[#allocation10 + $0x1720] sm:$0xf0] }
 0x225   :  { %v13818_v22 = vld [vmem:[#allocation10 + $0x10c4] sm:$0xf]  ;;  %v11868_v25 = vor.u32 %v14018_v17, %v11865_v18  ;;  %6880 = vmatpush.bf16.msrb.mxu1 %v11612_v24  ;;  %v6588_v3 = vadd.f32 %v6587_v31, %v6575_v63 }
 0x226   :  { %v11065_v23 = vld [vmem:[#allocation10 + $0x10e0] sm:$0xf0] }
 0x227   :  { %v13882_v27 = vld [vmem:[#allocation10 + $0x12c4] sm:$0xf]  ;;  %v11068_v37 = vor.u32 %v13818_v22, %v11065_v23  ;;  %6893 = vmatpush.bf16.msrb.mxu2 %v11868_v25  ;;  %v6626_v23 = vpop.f32.mrf.mxu1 }
 0x228   :  { %v11321_v28 = vld [vmem:[#allocation10 + $0x12e0] sm:$0xf0] }
 0x229   :  { %v13946_v29 = vld [vmem:[#allocation10 + $0x14c4] sm:$0xf]  ;;  %v11324_v40 = vor.u32 %v13882_v27, %v11321_v28  ;;  %6855 = vmatpush.bf16.msra.mxu3 %v11068_v37 }
 0x22a   :  { %v11577_v32 = vld [vmem:[#allocation10 + $0x14e0] sm:$0xf0] }
 0x22b   :  { %v14010_v33 = vld [vmem:[#allocation10 + $0x16c4] sm:$0xf]  ;;  %v11580_v52 = vor.u32 %v13946_v29, %v11577_v32  ;;  %6868 = vmatpush.bf16.msrb.mxu0 %v11324_v40 }
 0x22c   :  { %v11833_v34 = vld [vmem:[#allocation10 + $0x16e0] sm:$0xf0] }
 0x22d   :  { %v13810_v47 = vld [vmem:[#allocation10 + $0x1084] sm:$0xf]  ;;  %v11836_v55 = vor.u32 %v14010_v33, %v11833_v34  ;;  %6881 = vmatpush.bf16.msrb.mxu1 %v11580_v52 }
 0x22e   :  { %v11033_v48 = vld [vmem:[#allocation10 + $0x10a0] sm:$0xf0] }
 0x22f   :  { %v13874_v58 = vld [vmem:[#allocation10 + $0x1284] sm:$0xf]  ;;  %v11036_v4 = vor.u32 %v13810_v47, %v11033_v48  ;;  %6894 = vmatpush.bf16.msrb.mxu2 %v11836_v55 }
 0x230   :  { %v11289_v61 = vld [vmem:[#allocation10 + $0x12a0] sm:$0xf0] }
 0x231   :  { %v13938_v62 = vld [vmem:[#allocation10 + $0x1484] sm:$0xf]  ;;  %v11292_v6 = vor.u32 %v13874_v58, %v11289_v61  ;;  %6856 = vmatpush.bf16.msra.mxu3 %v11036_v4  ;;  %v6600_v61 = vpop.f32.mrf.mxu3 }
 0x232   :  { %v11545_v0 = vld [vmem:[#allocation10 + $0x14a0] sm:$0xf0] }
 0x233   :  { %v14002_v1 = vld [vmem:[#allocation10 + $0x1684] sm:$0xf]  ;;  %v11548_v10 = vor.u32 %v13938_v62, %v11545_v0  ;;  %6869 = vmatpush.bf16.msrb.mxu0 %v11292_v6  ;;  %v6601_v0 = vadd.f32 %v6600_v61, %v6588_v3 }
 0x234   :  { %v11801_v2 = vld [vmem:[#allocation10 + $0x16a0] sm:$0xf0] }
 0x235   :  { %v13802_v7 = vld [vmem:[#allocation10 + $0x1044] sm:$0xf]  ;;  %v11804_v11 = vor.u32 %v14002_v1, %v11801_v2  ;;  %6882 = vmatpush.bf16.msrb.mxu1 %v11548_v10  ;;  %v6639_v1 = vpop.f32.mrf.mxu2 }
 0x236   :  { %v11001_v9 = vld [vmem:[#allocation10 + $0x1060] sm:$0xf0] }
 0x237   :  { %v13866_v13 = vld [vmem:[#allocation10 + $0x1244] sm:$0xf]  ;;  %v11004_v21 = vor.u32 %v13802_v7, %v11001_v9  ;;  %6895 = vmatpush.bf16.msrb.mxu2 %v11804_v11  ;;  %v6615_v9 = vpop.f32.mrf.mxu0 }
 0x238   :  { %v11257_v14 = vld [vmem:[#allocation10 + $0x1260] sm:$0xf0] }
 0x239   :  { %v13930_v15 = vld [vmem:[#allocation10 + $0x1444] sm:$0xf]  ;;  %v11260_v22 = vor.u32 %v13866_v13, %v11257_v14  ;;  %6857 = vmatpush.bf16.msra.mxu3 %v11004_v21  ;;  %v6614_v13 = vadd.f32 %v6613_v19, %v6601_v0  ;;  %v6628_v14 = vpop.f32.mrf.mxu1 }
 0x23a   :  { %v11513_v8 = vld [vmem:[#allocation10 + $0x1460] sm:$0xf0] }
 0x23b   :  { %v13994_v17 = vld [vmem:[#allocation10 + $0x1644] sm:$0xf]  ;;  %v11516_v27 = vor.u32 %v13930_v15, %v11513_v8  ;;  %6870 = vmatpush.bf16.msrb.mxu0 %v11260_v22  ;;  %v6627_v3 = vadd.f32 %v6626_v23, %v6614_v13  ;;  %v6602_v23 = vpop.f32.mrf.mxu3 }
 0x23c   :  { %v11769_v18 = vld [vmem:[#allocation10 + $0x1660] sm:$0xf0] }
 0x23d   :  { %v13794_v20 = vld [vmem:[#allocation10 + $0x1004] sm:$0xf]  ;;  %v11772_v28 = vor.u32 %v13994_v17, %v11769_v18  ;;  %6883 = vmatpush.bf16.msrb.mxu1 %v11516_v27  ;;  %v6640_v27 = vadd.f32 %v6639_v1, %v6627_v3 }
 0x23e   :  { %v10969_v24 = vld [vmem:[#allocation10 + $0x1020] sm:$0xf0] }
 0x23f   :  { %v13858_v25 = vld [vmem:[#allocation10 + $0x1204] sm:$0xf]  ;;  %v10972_v40 = vor.u32 %v13794_v20, %v10969_v24  ;;  %6896 = vmatpush.bf16.msrb.mxu2 %v11772_v28 }
 0x240   :  { %v11225_v26 = vld [vmem:[#allocation10 + $0x1220] sm:$0xf0] }
 0x241   :  { %v13922_v29 = vld [vmem:[#allocation10 + $0x1404] sm:$0xf]  ;;  %v11228_v41 = vor.u32 %v13858_v25, %v11225_v26  ;;  %6858 = vmatpush.bf16.msra.mxu3 %v10972_v40  ;;  %v6678_v61 = vpop.f32.mrf.mxu1 }
 0x242   :  { %v11481_v30 = vld [vmem:[#allocation10 + $0x1420] sm:$0xf0] }
 0x243   :  { %v13986_v31 = vld [vmem:[#allocation10 + $0x1604] sm:$0xf]  ;;  %v11484_v55 = vor.u32 %v13922_v29, %v11481_v30  ;;  %6871 = vmatpush.bf16.msrb.mxu0 %v11228_v41 }
 0x244   :  { %v11737_v32 = vld [vmem:[#allocation10 + $0x1620] sm:$0xf0]  ;;  %6859 = vmatmul.bf16.vlgmr.msra.gmra.mxu3 %v14756_v53 }
 0x245   :  { %v14106_v33 = vld [vmem:[#allocation10 + $0x19c4] sm:$0xf]  ;;  %v11740_v58 = vor.u32 %v13986_v31, %v11737_v32  ;;  %6884 = vmatpush.bf16.msrb.mxu1 %v11484_v55 }
 0x246   :  { %v12217_v34 = vld [vmem:[#allocation10 + $0x19e0] sm:$0xf0]  ;;  %6872 = vmatmul.bf16.vlgmr.msrb.gmra.mxu0 %v14758_v54 }
 0x247   :  { %v14170_v35 = vld [vmem:[#allocation10 + $0x1bc4] sm:$0xf]  ;;  %v12220_v62 = vor.u32 %v14106_v33, %v12217_v34  ;;  %6897 = vmatpush.bf16.msrb.mxu2 %v11740_v58  ;;  %v6641_v33 = vpop.f32.mrf.mxu2  ;;  %v6665_v58 = vpop.f32.mrf.mxu0 }
 0x248   :  { %v12473_v36 = vld [vmem:[#allocation10 + $0x1be0] sm:$0xf0]  ;;  %6885 = vmatmul.bf16.vlgmr.msrb.gmra.mxu1 %v14760_v59 }
 0x249   :  { %v14234_v37 = vld [vmem:[#allocation10 + $0x1dc4] sm:$0xf]  ;;  %v12476_v63 = vor.u32 %v14170_v35, %v12473_v36  ;;  %6903 = vmatpush.bf16.msrb.mxu3 %v12220_v62 }
 0x24a   :  { %v12729_v47 = vld [vmem:[#allocation10 + $0x1de0] sm:$0xf0]  ;;  %6898 = vmatmul.bf16.vlgmr.msrb.gmra.mxu2 %v14762_v60 }
 0x24b   :  { %v14298_v48 = vld [vmem:[#allocation10 + $0x1fc4] sm:$0xf]  ;;  %v12732_v6 = vor.u32 %v14234_v37, %v12729_v47  ;;  %6916 = vmatpush.bf16.msra.mxu0 %v12476_v63 }
 0x24c   :  { %v12985_v52 = vld [vmem:[#allocation10 + $0x1fe0] sm:$0xf0] }
 0x24d   :  { %v14098_v2 = vld [vmem:[#allocation10 + $0x1984] sm:$0xf]  ;;  %v12988_v7 = vor.u32 %v14298_v48, %v12985_v52  ;;  %6929 = vmatpush.bf16.msra.mxu1 %v12732_v6 }
 0x24e   :  { %v12185_v4 = vld [vmem:[#allocation10 + $0x19a0] sm:$0xf0] }
 0x24f   :  { %v14162_v10 = vld [vmem:[#allocation10 + $0x1b84] sm:$0xf]  ;;  %v12188_v17 = vor.u32 %v14098_v2, %v12185_v4  ;;  %6942 = vmatpush.bf16.msra.mxu2 %v12988_v7 }
 0x250   :  { %v12441_v11 = vld [vmem:[#allocation10 + $0x1ba0] sm:$0xf0] }
 0x251   :  { %v14226_v12 = vld [vmem:[#allocation10 + $0x1d84] sm:$0xf]  ;;  %v12444_v18 = vor.u32 %v14162_v10, %v12441_v11  ;;  %6904 = vmatpush.bf16.msrb.mxu3 %v12188_v17  ;;  %v6652_v17 = vpop.f32.mrf.mxu3 }
 0x252   :  { %v12697_v15 = vld [vmem:[#allocation10 + $0x1da0] sm:$0xf0] }
 0x253   :  { %v14290_v16 = vld [vmem:[#allocation10 + $0x1f84] sm:$0xf]  ;;  %v12700_v22 = vor.u32 %v14226_v12, %v12697_v15  ;;  %6917 = vmatpush.bf16.msra.mxu0 %v12444_v18 }
 0x254   :  { %v12953_v8 = vld [vmem:[#allocation10 + $0x1fa0] sm:$0xf0] }
 0x255   :  { %v14090_v20 = vld [vmem:[#allocation10 + $0x1944] sm:$0xf]  ;;  %v12956_v24 = vor.u32 %v14290_v16, %v12953_v8  ;;  %6930 = vmatpush.bf16.msra.mxu1 %v12700_v22  ;;  %v6653_v22 = vadd.f32 %v6652_v17, %v6640_v27  ;;  %v13471_v17 = vld [vmem:[#allocation10 + $0x5e4] sm:$0xf0] }
 0x256   :  { %v12153_v21 = vld [vmem:[#allocation10 + $0x1960] sm:$0xf0] }
 0x257   :  { %v14154_v25 = vld [vmem:[#allocation10 + $0x1b44] sm:$0xf]  ;;  %v12156_v31 = vor.u32 %v14090_v20, %v12153_v21  ;;  %6943 = vmatpush.bf16.msra.mxu2 %v12956_v24  ;;  %v6691_v24 = vpop.f32.mrf.mxu2 }
 0x258   :  { %v12409_v26 = vld [vmem:[#allocation10 + $0x1b60] sm:$0xf0] }
 0x259   :  { %v14218_v19 = vld [vmem:[#allocation10 + $0x1d44] sm:$0xf]  ;;  %v12412_v32 = vor.u32 %v14154_v25, %v12409_v26  ;;  %6905 = vmatpush.bf16.msrb.mxu3 %v12156_v31 }
 0x25a   :  { %v12665_v28 = vld [vmem:[#allocation10 + $0x1d60] sm:$0xf0] }
 0x25b   :  { %v14282_v29 = vld [vmem:[#allocation10 + $0x1f44] sm:$0xf]  ;;  %v12668_v36 = vor.u32 %v14218_v19, %v12665_v28  ;;  %6918 = vmatpush.bf16.msra.mxu0 %v12412_v32  ;;  %v6667_v28 = vpop.f32.mrf.mxu0 }
 0x25c   :  { %v12921_v30 = vld [vmem:[#allocation10 + $0x1f60] sm:$0xf0] }
 0x25d   :  { %v14082_v34 = vld [vmem:[#allocation10 + $0x1904] sm:$0xf]  ;;  %v12924_v37 = vor.u32 %v14282_v29, %v12921_v30  ;;  %6931 = vmatpush.bf16.msra.mxu1 %v12668_v36  ;;  %v6666_v29 = vadd.f32 %v6665_v58, %v6653_v22  ;;  %v6680_v30 = vpop.f32.mrf.mxu1 }
 0x25e   :  { %v12121_v35 = vld [vmem:[#allocation10 + $0x1920] sm:$0xf0]  ;;  %v9375_v30 = vld [vmem:[#allocation10 + $0x388] sm:$0xf] }
 0x25f   :  { %v14146_v40 = vld [vmem:[#allocation10 + $0x1b04] sm:$0xf]  ;;  %v12124_v62 = vor.u32 %v14082_v34, %v12121_v35  ;;  %6944 = vmatpush.bf16.msra.mxu2 %v12924_v37 }
 0x260   :  { %v12377_v41 = vld [vmem:[#allocation10 + $0x1b20] sm:$0xf0] }
 0x261   :  { %v14210_v47 = vld [vmem:[#allocation10 + $0x1d04] sm:$0xf]  ;;  %v12380_v63 = vor.u32 %v14146_v40, %v12377_v41  ;;  %6906 = vmatpush.bf16.msrb.mxu3 %v12124_v62  ;;  %v6679_v40 = vadd.f32 %v6678_v61, %v6666_v29 }
 0x262   :  { %v12633_v48 = vld [vmem:[#allocation10 + $0x1d20] sm:$0xf0] }
 0x263   :  { %v14274_v52 = vld [vmem:[#allocation10 + $0x1f04] sm:$0xf]  ;;  %v12636_v2 = vor.u32 %v14210_v47, %v12633_v48  ;;  %6919 = vmatpush.bf16.msra.mxu0 %v12380_v63 }
 0x264   :  { %v12889_v55 = vld [vmem:[#allocation10 + $0x1f20] sm:$0xf0] }
 0x265   :  { %v14074_v0 = vld [vmem:[#allocation10 + $0x18c4] sm:$0xf]  ;;  %v12892_v4 = vor.u32 %v14274_v52, %v12889_v55  ;;  %6932 = vmatpush.bf16.msra.mxu1 %v12636_v2  ;;  %v14795_v55 = vadd.f32 %v6691_v24, %v6679_v40 }
 0x266   :  { %v12089_v1 = vld [vmem:[#allocation10 + $0x18e0] sm:$0xf0] }
 0x267   :  { %v14138_v6 = vld [vmem:[#allocation10 + $0x1ac4] sm:$0xf]  ;;  %v12092_v13 = vor.u32 %v14074_v0, %v12089_v1  ;;  %6945 = vmatpush.bf16.msra.mxu2 %v12892_v4 }
 0x268   :  { %v12345_v7 = vld [vmem:[#allocation10 + $0x1ae0] sm:$0xf0] }
 0x269   :  { %v14202_v9 = vld [vmem:[#allocation10 + $0x1cc4] sm:$0xf]  ;;  %v12348_v14 = vor.u32 %v14138_v6, %v12345_v7  ;;  %6907 = vmatpush.bf16.msrb.mxu3 %v12092_v13  ;;  %v6654_v6 = vpop.f32.mrf.mxu3  ;;  %v13343_v13 = vld [vmem:[#allocation10 + $0x1e4] sm:$0xf0] }
 0x26a   :  { %v12601_v10 = vld [vmem:[#allocation10 + $0x1ce0] sm:$0xf0] }
 0x26b   :  { %v14266_v11 = vld [vmem:[#allocation10 + $0x1ec4] sm:$0xf]  ;;  %v12604_v8 = vor.u32 %v14202_v9, %v12601_v10  ;;  %6920 = vmatpush.bf16.msra.mxu0 %v12348_v14  ;;  %v6693_v10 = vpop.f32.mrf.mxu2  ;;  %v9407_v14 = vld [vmem:[#allocation10 + $0x3c8] sm:$0xf] }
 0x26c   :  { %v12857_v12 = vld [vmem:[#allocation10 + $0x1ee0] sm:$0xf0]  ;;  %v9567_v10 = vld [vmem:[#allocation10 + $0x508] sm:$0xf] }
 0x26d   :  { %v14066_v15 = vld [vmem:[#allocation10 + $0x1884] sm:$0xf]  ;;  %v12860_v3 = vor.u32 %v14266_v11, %v12857_v12  ;;  %6933 = vmatpush.bf16.msra.mxu1 %v12604_v8  ;;  %v9151_v12 = vld [vmem:[#allocation10 + $0x1c8] sm:$0xf] }
 0x26e   :  { %v12057_v16 = vld [vmem:[#allocation10 + $0x18a0] sm:$0xf0]  ;;  %v9152_v24 = vor.u32 %v13343_v13, %v9151_v12  ;;  %v9823_v12 = vld [vmem:[#allocation10 + $0x708] sm:$0xf] }
 0x26f   :  { %v14130_v18 = vld [vmem:[#allocation10 + $0x1a84] sm:$0xf]  ;;  %v12060_v23 = vor.u32 %v14066_v15, %v12057_v16  ;;  %6946 = vmatpush.bf16.msra.mxu2 %v12860_v3  ;;  %v13407_v15 = vld [vmem:[#allocation10 + $0x3e4] sm:$0xf0] }
 0x270   :  { %v12313_v20 = vld [vmem:[#allocation10 + $0x1aa0] sm:$0xf0]  ;;  %v9663_v16 = vld [vmem:[#allocation10 + $0x5c8] sm:$0xf] }
 0x271   :  { %v14194_v21 = vld [vmem:[#allocation10 + $0x1c84] sm:$0xf]  ;;  %v12316_v31 = vor.u32 %v14130_v18, %v12313_v20  ;;  %6908 = vmatpush.bf16.msrb.mxu3 %v12060_v23  ;;  %v9919_v18 = vld [vmem:[#allocation10 + $0x7c8] sm:$0xf]  ;;  %v9664_v28 = vor.u32 %v13471_v17, %v9663_v16 }
 0x272   :  { %v12569_v25 = vld [vmem:[#allocation10 + $0x1ca0] sm:$0xf0]  ;;  %v13535_v20 = vld [vmem:[#allocation10 + $0x7e4] sm:$0xf0] }
 0x273   :  { %v14258_v26 = vld [vmem:[#allocation10 + $0x1e84] sm:$0xf]  ;;  %v12572_v34 = vor.u32 %v14194_v21, %v12569_v25  ;;  %6921 = vmatpush.bf16.msra.mxu0 %v12316_v31  ;;  %v9408_v25 = vor.u32 %v13407_v15, %v9407_v14  ;;  %v9920_v29 = vor.u32 %v13535_v20, %v9919_v18  ;;  %v13399_v23 = vld [vmem:[#allocation10 + $0x3a4] sm:$0xf0]  ;;  %v6717_v14 = vpop.f32.mrf.mxu0  ;;  %v6730_v15 = vpop.f32.mrf.mxu1 }
 0x274   :  { %v12825_v19 = vld [vmem:[#allocation10 + $0x1ea0] sm:$0xf0]  ;;  %v9631_v31 = vld [vmem:[#allocation10 + $0x588] sm:$0xf] }
 0x275   :  { %v14058_v32 = vld [vmem:[#allocation10 + $0x1844] sm:$0xf]  ;;  %v12828_v35 = vor.u32 %v14258_v26, %v12825_v19  ;;  %6934 = vmatpush.bf16.msra.mxu1 %v12572_v34  ;;  %v9119_v26 = vld [vmem:[#allocation10 + $0x188] sm:$0xf] }
 0x276   :  { %v12025_v33 = vld [vmem:[#allocation10 + $0x1860] sm:$0xf0]  ;;  %v13335_v19 = vld [vmem:[#allocation10 + $0x1a4] sm:$0xf0] }
 0x277   :  { %v14122_v36 = vld [vmem:[#allocation10 + $0x1a44] sm:$0xf]  ;;  %v12028_v58 = vor.u32 %v14058_v32, %v12025_v33  ;;  %6947 = vmatpush.bf16.msra.mxu2 %v12828_v35  ;;  %v13463_v32 = vld [vmem:[#allocation10 + $0x5a4] sm:$0xf0]  ;;  %v9120_v35 = vor.u32 %v13335_v19, %v9119_v26 }
 0x278   :  { %v12281_v37 = vld [vmem:[#allocation10 + $0x1a60] sm:$0xf0]  ;;  %v9887_v33 = vld [vmem:[#allocation10 + $0x788] sm:$0xf]  ;;  %v9632_v40 = vor.u32 %v13463_v32, %v9631_v31 }
 0x279   :  { %v14186_v27 = vld [vmem:[#allocation10 + $0x1c44] sm:$0xf]  ;;  %v12284_v62 = vor.u32 %v14122_v36, %v12281_v37  ;;  %6909 = vmatpush.bf16.msrb.mxu3 %v12028_v58  ;;  %v13527_v34 = vld [vmem:[#allocation10 + $0x7a4] sm:$0xf0]  ;;  %v9376_v36 = vor.u32 %v13399_v23, %v9375_v30 }
 0x27a   :  { %v12537_v41 = vld [vmem:[#allocation10 + $0x1c60] sm:$0xf0]  ;;  %v9087_v37 = vld [vmem:[#allocation10 + $0x148] sm:$0xf] }
 0x27b   :  { %v14250_v47 = vld [vmem:[#allocation10 + $0x1e44] sm:$0xf]  ;;  %v12540_v2 = vor.u32 %v14186_v27, %v12537_v41  ;;  %6922 = vmatpush.bf16.msra.mxu0 %v12284_v62  ;;  %v13327_v27 = vld [vmem:[#allocation10 + $0x164] sm:$0xf0]  ;;  %v9888_v41 = vor.u32 %v13527_v34, %v9887_v33  ;;  %v6704_v33 = vpop.f32.mrf.mxu3 }
 0x27c   :  { %v12793_v48 = vld [vmem:[#allocation10 + $0x1e60] sm:$0xf0]  ;;  %v13455_v58 = vld [vmem:[#allocation10 + $0x564] sm:$0xf0] }
 0x27d   :  { %v14050_v52 = vld [vmem:[#allocation10 + $0x1804] sm:$0xf]  ;;  %v12796_v4 = vor.u32 %v14250_v47, %v12793_v48  ;;  %6935 = vmatpush.bf16.msra.mxu1 %v12540_v2  ;;  %v9343_v47 = vld [vmem:[#allocation10 + $0x348] sm:$0xf] }
 0x27e   :  { %v11993_v63 = vld [vmem:[#allocation10 + $0x1820] sm:$0xf0]  ;;  %v13391_v48 = vld [vmem:[#allocation10 + $0x364] sm:$0xf0] }
 0x27f   :  { %v14114_v0 = vld [vmem:[#allocation10 + $0x1a04] sm:$0xf]  ;;  %v11996_v8 = vor.u32 %v14050_v52, %v11993_v63  ;;  %6948 = vmatpush.bf16.msra.mxu2 %v12796_v4  ;;  %v9599_v52 = vld [vmem:[#allocation10 + $0x548] sm:$0xf] }
 0x280   :  { %v12249_v1 = vld [vmem:[#allocation10 + $0x1a20] sm:$0xf0]  ;;  %v9855_v62 = vld [vmem:[#allocation10 + $0x748] sm:$0xf]  ;;  %v9600_v6 = vor.u32 %v13455_v58, %v9599_v52  ;;  %v6732_v58 = vpop.f32.mrf.mxu1 }
 0x281   :  { %v14178_v7 = vld [vmem:[#allocation10 + $0x1c04] sm:$0xf]  ;;  %v12252_v3 = vor.u32 %v14114_v0, %v12249_v1  ;;  %6910 = vmatpush.bf16.msrb.mxu3 %v11996_v8  ;;  %v13519_v63 = vld [vmem:[#allocation10 + $0x764] sm:$0xf0]  ;;  %v9088_v0 = vor.u32 %v13327_v27, %v9087_v37  ;;  %v9344_v1 = vor.u32 %v13391_v48, %v9343_v47  ;;  %v6705_v37 = vadd.f32 %v6704_v33, %v14795_v55  ;;  %v6743_v27 = vpop.f32.mrf.mxu2  ;;  %v6719_v48 = vpop.f32.mrf.mxu0 }
 0x282   :  { %v12505_v61 = vld [vmem:[#allocation10 + $0x1c20] sm:$0xf0]  ;;  %v9055_v2 = vld [vmem:[#allocation10 + $0x108] sm:$0xf] }
 0x283   :  { %v14242_v9 = vld [vmem:[#allocation10 + $0x1e04] sm:$0xf]  ;;  %v12508_v21 = vor.u32 %v14178_v7, %v12505_v61  ;;  %6923 = vmatpush.bf16.msra.mxu0 %v12252_v3  ;;  %v13319_v4 = vld [vmem:[#allocation10 + $0x124] sm:$0xf0]  ;;  %v9856_v7 = vor.u32 %v13519_v63, %v9855_v62  ;;  %v6718_v52 = vadd.f32 %v6717_v14, %v6705_v37 }
 0x284   :  { %v12761_v11 = vld [vmem:[#allocation10 + $0x1e20] sm:$0xf0]  ;;  %6911 = vmatmul.bf16.vlgmr.msrb.gmra.mxu3 %v14768_v42  ;;  %v9311_v61 = vld [vmem:[#allocation10 + $0x308] sm:$0xf]  ;;  %v9056_v16 = vor.u32 %v13319_v4, %v9055_v2 }
 0x285   :  { %v12764_v22 = vor.u32 %v14242_v9, %v12761_v11  ;;  %6936 = vmatpush.bf16.msra.mxu1 %v12508_v21  ;;  %6955 = vmatpush.bf16.msra.mxu3 %v9152_v24  ;;  %v13383_v9 = vld [vmem:[#allocation10 + $0x324] sm:$0xf0] }
 0x286   :  { %6924 = vmatmul.bf16.vlgmr.msra.gmra.mxu0 %v14770_v45  ;;  %v13447_v11 = vld [vmem:[#allocation10 + $0x524] sm:$0xf0]  ;;  %v9312_v8 = vor.u32 %v13383_v9, %v9311_v61  ;;  %v6731_v61 = vadd.f32 %v6730_v15, %v6718_v52 }
 0x287   :  { %6949 = vmatpush.bf16.msra.mxu2 %v12764_v22  ;;  %6968 = vmatpush.bf16.msrb.mxu0 %v9408_v25  ;;  %v13511_v13 = vld [vmem:[#allocation10 + $0x724] sm:$0xf0]  ;;  %v9568_v18 = vor.u32 %v13447_v11, %v9567_v10 }
 0x288   :  { %6937 = vmatmul.bf16.vlgmr.msra.gmra.mxu1 %v14772_v46  ;;  %v9023_v3 = vld [vmem:[#allocation10 + $0xc8] sm:$0xf]  ;;  %v9824_v20 = vor.u32 %v13511_v13, %v9823_v12  ;;  %v14802_v13 = vadd.f32 %v6743_v27, %v6731_v61 }
 0x289   :  { %6981 = vmatpush.bf16.msrb.mxu1 %v9664_v28  ;;  %6956 = vmatpush.bf16.msra.mxu3 %v9120_v35  ;;  %v13311_v17 = vld [vmem:[#allocation10 + $0xe4] sm:$0xf0] }
 0x28a   :  { %6950 = vmatmul.bf16.vlgmr.msra.gmra.mxu2 %v14774_v57  ;;  %v9279_v21 = vld [vmem:[#allocation10 + $0x2c8] sm:$0xf]  ;;  %v9024_v28 = vor.u32 %v13311_v17, %v9023_v3 }
 0x28b   :  { %6994 = vmatpush.bf16.msrb.mxu2 %v9920_v29  ;;  %6969 = vmatpush.bf16.msrb.mxu0 %v9376_v36  ;;  %v13375_v22 = vld [vmem:[#allocation10 + $0x2e4] sm:$0xf0] }
 0x28c   :  { %v9535_v24 = vld [vmem:[#allocation10 + $0x4c8] sm:$0xf]  ;;  %v9280_v29 = vor.u32 %v13375_v22, %v9279_v21  ;;  %v6706_v21 = vpop.f32.mrf.mxu3 }
 0x28d   :  { %6982 = vmatpush.bf16.msrb.mxu1 %v9632_v40  ;;  %6957 = vmatpush.bf16.msra.mxu3 %v9088_v0  ;;  %v13439_v25 = vld [vmem:[#allocation10 + $0x4e4] sm:$0xf0] }
 0x28e   :  { %v9791_v26 = vld [vmem:[#allocation10 + $0x6c8] sm:$0xf]  ;;  %v9536_v31 = vor.u32 %v13439_v25, %v9535_v24  ;;  %v6745_v25 = vpop.f32.mrf.mxu2 }
 0x28f   :  { %6995 = vmatpush.bf16.msrb.mxu2 %v9888_v41  ;;  %6970 = vmatpush.bf16.msrb.mxu0 %v9344_v1  ;;  %v13503_v19 = vld [vmem:[#allocation10 + $0x6e4] sm:$0xf0] }
 0x290   :  { %v8991_v30 = vld [vmem:[#allocation10 + $0x88] sm:$0xf]  ;;  %v9792_v32 = vor.u32 %v13503_v19, %v9791_v26 }
 0x291   :  { %6983 = vmatpush.bf16.msrb.mxu1 %v9600_v6  ;;  %6958 = vmatpush.bf16.msra.mxu3 %v9056_v16  ;;  %v13303_v23 = vld [vmem:[#allocation10 + $0xa4] sm:$0xf0] }
 0x292   :  { %v9247_v34 = vld [vmem:[#allocation10 + $0x288] sm:$0xf]  ;;  %v8992_v62 = vor.u32 %v13303_v23, %v8991_v30 }
 0x293   :  { %6996 = vmatpush.bf16.msrb.mxu2 %v9856_v7  ;;  %6971 = vmatpush.bf16.msrb.mxu0 %v9312_v8  ;;  %v13367_v35 = vld [vmem:[#allocation10 + $0x2a4] sm:$0xf0] }
 0x294   :  { %v9503_v36 = vld [vmem:[#allocation10 + $0x488] sm:$0xf]  ;;  %v9248_v63 = vor.u32 %v13367_v35, %v9247_v34 }
 0x295   :  { %6984 = vmatpush.bf16.msrb.mxu1 %v9568_v18  ;;  %v13431_v40 = vld [vmem:[#allocation10 + $0x4a4] sm:$0xf0]  ;;  %6959 = vmatpush.bf16.msra.mxu3 %v9024_v28 }
 0x296   :  { %v9759_v41 = vld [vmem:[#allocation10 + $0x688] sm:$0xf]  ;;  %v9504_v2 = vor.u32 %v13431_v40, %v9503_v36 }
 0x297   :  { %6997 = vmatpush.bf16.msrb.mxu2 %v9824_v20  ;;  %v13495_v47 = vld [vmem:[#allocation10 + $0x6a4] sm:$0xf0]  ;;  %6972 = vmatpush.bf16.msrb.mxu0 %v9280_v29 }
 0x298   :  { %v8959_v0 = vld [vmem:[#allocation10 + $0x48] sm:$0xf]  ;;  %v9760_v4 = vor.u32 %v13495_v47, %v9759_v41 }
 0x299   :  { %v13295_v1 = vld [vmem:[#allocation10 + $0x64] sm:$0xf0]  ;;  %6985 = vmatpush.bf16.msrb.mxu1 %v9536_v31  ;;  %6960 = vmatpush.bf16.msra.mxu3 %v8992_v62 }
 0x29a   :  { %v9215_v6 = vld [vmem:[#allocation10 + $0x248] sm:$0xf]  ;;  %v8960_v14 = vor.u32 %v13295_v1, %v8959_v0 }
 0x29b   :  { %6998 = vmatpush.bf16.msrb.mxu2 %v9792_v32  ;;  %v13359_v7 = vld [vmem:[#allocation10 + $0x264] sm:$0xf0]  ;;  %6973 = vmatpush.bf16.msrb.mxu0 %v9248_v63 }
 0x29c   :  { %v9471_v55 = vld [vmem:[#allocation10 + $0x448] sm:$0xf]  ;;  %v9216_v16 = vor.u32 %v13359_v7, %v9215_v6 }
 0x29d   :  { %v13423_v9 = vld [vmem:[#allocation10 + $0x464] sm:$0xf0]  ;;  %6986 = vmatpush.bf16.msrb.mxu1 %v9504_v2  ;;  %6961 = vmatpush.bf16.msra.mxu3 %v8960_v14 }
 0x29e   :  { %v9727_v10 = vld [vmem:[#allocation10 + $0x648] sm:$0xf]  ;;  %v9472_v18 = vor.u32 %v13423_v9, %v9471_v55 }
 0x29f   :  { %v13487_v11 = vld [vmem:[#allocation10 + $0x664] sm:$0xf0]  ;;  %6999 = vmatpush.bf16.msrb.mxu2 %v9760_v4  ;;  %6974 = vmatpush.bf16.msrb.mxu0 %v9216_v16 }
 0x2a0   :  { %v8927_v12 = vld [vmem:[#allocation10 + $0x8] sm:$0xf]  ;;  %v9728_v20 = vor.u32 %v13487_v11, %v9727_v10 }
 0x2a1   :  { %v13287_v8 = vld [vmem:[#allocation10 + $0x24] sm:$0xf0]  ;;  %6987 = vmatpush.bf16.msrb.mxu1 %v9472_v18 }
 0x2a2   :  { %v9183_v3 = vld [vmem:[#allocation10 + $0x208] sm:$0xf]  ;;  %v8928_v31 = vor.u32 %v13287_v8, %v8927_v12 }
 0x2a3   :  { %v13351_v17 = vld [vmem:[#allocation10 + $0x224] sm:$0xf0]  ;;  %7000 = vmatpush.bf16.msrb.mxu2 %v9728_v20 }
 0x2a4   :  { %v9439_v22 = vld [vmem:[#allocation10 + $0x408] sm:$0xf]  ;;  %v9184_v32 = vor.u32 %v13351_v17, %v9183_v3  ;;  %6962 = vmatpush.bf16.msra.mxu3 %v8928_v31 }
 0x2a5   :  { %v13415_v15 = vld [vmem:[#allocation10 + $0x424] sm:$0xf0] }
 0x2a6   :  { %v9695_v24 = vld [vmem:[#allocation10 + $0x608] sm:$0xf]  ;;  %v9440_v36 = vor.u32 %v13415_v15, %v9439_v22  ;;  %6975 = vmatpush.bf16.msrb.mxu0 %v9184_v32 }
 0x2a7   :  { %v13479_v26 = vld [vmem:[#allocation10 + $0x624] sm:$0xf0]  ;;  %6963 = vmatmul.bf16.vlgmr.msra.gmra.mxu3 %v14716_v49 }
 0x2a8   :  { %v10175_v19 = vld [vmem:[#allocation10 + $0x9c8] sm:$0xf]  ;;  %v9696_v37 = vor.u32 %v13479_v26, %v9695_v24  ;;  %6988 = vmatpush.bf16.msrb.mxu1 %v9440_v36 }
 0x2a9   :  { %v13599_v28 = vld [vmem:[#allocation10 + $0x9e4] sm:$0xf0]  ;;  %6976 = vmatmul.bf16.vlgmr.msrb.gmra.mxu0 %v14718_v50 }
 0x2aa   :  { %v10431_v29 = vld [vmem:[#allocation10 + $0xbc8] sm:$0xf]  ;;  %v10176_v27 = vor.u32 %v13599_v28, %v10175_v19  ;;  %7001 = vmatpush.bf16.msrb.mxu2 %v9696_v37 }
 0x2ab   :  { %v13663_v30 = vld [vmem:[#allocation10 + $0xbe4] sm:$0xf0]  ;;  %6989 = vmatmul.bf16.vlgmr.msrb.gmra.mxu1 %v14720_v51 }
 0x2ac   :  { %v10687_v23 = vld [vmem:[#allocation10 + $0xdc8] sm:$0xf]  ;;  %v10432_v40 = vor.u32 %v13663_v30, %v10431_v29  ;;  %7007 = vmatpush.bf16.msrb.mxu3 %v10176_v27  ;;  %v6769_v29 = vpop.f32.mrf.mxu0  ;;  %v6782_v30 = vpop.f32.mrf.mxu1 }
 0x2ad   :  { %v13727_v33 = vld [vmem:[#allocation10 + $0xde4] sm:$0xf0]  ;;  %7002 = vmatmul.bf16.vlgmr.msrb.gmra.mxu2 %v14726_v56 }
 0x2ae   :  { %v10943_v34 = vld [vmem:[#allocation10 + $0xfc8] sm:$0xf]  ;;  %v10688_v48 = vor.u32 %v13727_v33, %v10687_v23  ;;  %7020 = vmatpush.bf16.msra.mxu0 %v10432_v40 }
 0x2af   :  { %v13791_v35 = vld [vmem:[#allocation10 + $0xfe4] sm:$0xf0] }
 0x2b0   :  { %v10143_v41 = vld [vmem:[#allocation10 + $0x988] sm:$0xf]  ;;  %v10944_v52 = vor.u32 %v13791_v35, %v10943_v34  ;;  %7033 = vmatpush.bf16.msra.mxu1 %v10688_v48  ;;  %v1404_v48 = vperm.slane %v14788_v5, 1 }
 0x2b1   :  { %v13591_v47 = vld [vmem:[#allocation10 + $0x9a4] sm:$0xf0] }
 0x2b2   :  { %v10399_v58 = vld [vmem:[#allocation10 + $0xb88] sm:$0xf]  ;;  %v10144_v4 = vor.u32 %v13591_v47, %v10143_v41  ;;  %7046 = vmatpush.bf16.msra.mxu2 %v10944_v52 }
 0x2b3   :  { %v13655_v62 = vld [vmem:[#allocation10 + $0xba4] sm:$0xf0] }
 0x2b4   :  { %v10655_v63 = vld [vmem:[#allocation10 + $0xd88] sm:$0xf]  ;;  %v10400_v6 = vor.u32 %v13655_v62, %v10399_v58  ;;  %7008 = vmatpush.bf16.msrb.mxu3 %v10144_v4  ;;  %v6771_v5 = vpop.f32.mrf.mxu0 }
 0x2b5   :  { %v13719_v0 = vld [vmem:[#allocation10 + $0xda4] sm:$0xf0] }
 0x2b6   :  { %v10911_v1 = vld [vmem:[#allocation10 + $0xf88] sm:$0xf]  ;;  %v10656_v61 = vor.u32 %v13719_v0, %v10655_v63  ;;  %7021 = vmatpush.bf16.msra.mxu0 %v10400_v6 }
 0x2b7   :  { %v13783_v2 = vld [vmem:[#allocation10 + $0xfa4] sm:$0xf0] }
 0x2b8   :  { %v10111_v7 = vld [vmem:[#allocation10 + $0x948] sm:$0xf]  ;;  %v10912_v9 = vor.u32 %v13783_v2, %v10911_v1  ;;  %7034 = vmatpush.bf16.msra.mxu1 %v10656_v61  ;;  %v6756_v2 = vpop.f32.mrf.mxu3  ;;  %v6795_v61 = vpop.f32.mrf.mxu2 }
 0x2b9   :  { %v13583_v55 = vld [vmem:[#allocation10 + $0x964] sm:$0xf0] }
 0x2ba   :  { %v10367_v10 = vld [vmem:[#allocation10 + $0xb48] sm:$0xf]  ;;  %v10112_v3 = vor.u32 %v13583_v55, %v10111_v7  ;;  %7047 = vmatpush.bf16.msra.mxu2 %v10912_v9  ;;  %v6757_v55 = vadd.f32 %v6756_v2, %v1404_v48 }
 0x2bb   :  { %v13647_v11 = vld [vmem:[#allocation10 + $0xb64] sm:$0xf0] }
 0x2bc   :  { %v10623_v12 = vld [vmem:[#allocation10 + $0xd48] sm:$0xf]  ;;  %v10368_v17 = vor.u32 %v13647_v11, %v10367_v10  ;;  %7009 = vmatpush.bf16.msrb.mxu3 %v10112_v3 }
 0x2bd   :  { %v13711_v14 = vld [vmem:[#allocation10 + $0xd64] sm:$0xf0] }
 0x2be   :  { %v10879_v16 = vld [vmem:[#allocation10 + $0xf48] sm:$0xf]  ;;  %v10624_v21 = vor.u32 %v13711_v14, %v10623_v12  ;;  %7022 = vmatpush.bf16.msra.mxu0 %v10368_v17  ;;  %v6770_v12 = vadd.f32 %v6769_v29, %v6757_v55  ;;  %v6784_v14 = vpop.f32.mrf.mxu1 }
 0x2bf   :  { %v13775_v8 = vld [vmem:[#allocation10 + $0xf64] sm:$0xf0] }
 0x2c0   :  { %v10079_v18 = vld [vmem:[#allocation10 + $0x908] sm:$0xf]  ;;  %v10880_v22 = vor.u32 %v13775_v8, %v10879_v16  ;;  %7035 = vmatpush.bf16.msra.mxu1 %v10624_v21 }
 0x2c1   :  { %v13575_v20 = vld [vmem:[#allocation10 + $0x924] sm:$0xf0] }
 0x2c2   :  { %v10335_v15 = vld [vmem:[#allocation10 + $0xb08] sm:$0xf]  ;;  %v10080_v23 = vor.u32 %v13575_v20, %v10079_v18  ;;  %7048 = vmatpush.bf16.msra.mxu2 %v10880_v22 }
 0x2c3   :  { %v13639_v24 = vld [vmem:[#allocation10 + $0xb24] sm:$0xf0] }
 0x2c4   :  { %v10591_v25 = vld [vmem:[#allocation10 + $0xd08] sm:$0xf]  ;;  %v10336_v31 = vor.u32 %v13639_v24, %v10335_v15  ;;  %7010 = vmatpush.bf16.msrb.mxu3 %v10080_v23  ;;  %v6783_v24 = vadd.f32 %v6782_v30, %v6770_v12 }
 0x2c5   :  { %v13703_v26 = vld [vmem:[#allocation10 + $0xd24] sm:$0xf0] }
 0x2c6   :  { %v10847_v19 = vld [vmem:[#allocation10 + $0xf08] sm:$0xf]  ;;  %v10592_v35 = vor.u32 %v13703_v26, %v10591_v25  ;;  %7023 = vmatpush.bf16.msra.mxu0 %v10336_v31  ;;  %v14809_v23 = vadd.f32 %v6795_v61, %v6783_v24 }
 0x2c7   :  { %v13767_v28 = vld [vmem:[#allocation10 + $0xf24] sm:$0xf0] }
 0x2c8   :  { %v10047_v32 = vld [vmem:[#allocation10 + $0x8c8] sm:$0xf]  ;;  %v10848_v36 = vor.u32 %v13767_v28, %v10847_v19  ;;  %7036 = vmatpush.bf16.msra.mxu1 %v10592_v35 }
 0x2c9   :  { %v13567_v33 = vld [vmem:[#allocation10 + $0x8e4] sm:$0xf0] }
 0x2ca   :  { %v10303_v34 = vld [vmem:[#allocation10 + $0xac8] sm:$0xf]  ;;  %v10048_v52 = vor.u32 %v13567_v33, %v10047_v32  ;;  %7049 = vmatpush.bf16.msra.mxu2 %v10848_v36 }
 0x2cb   :  { %v13631_v37 = vld [vmem:[#allocation10 + $0xae4] sm:$0xf0] }
 0x2cc   :  { %v10559_v27 = vld [vmem:[#allocation10 + $0xcc8] sm:$0xf]  ;;  %v10304_v58 = vor.u32 %v13631_v37, %v10303_v34  ;;  %7011 = vmatpush.bf16.msrb.mxu3 %v10048_v52  ;;  %v6758_v37 = vpop.f32.mrf.mxu3 }
 0x2cd   :  { %v13695_v40 = vld [vmem:[#allocation10 + $0xce4] sm:$0xf0] }
 0x2ce   :  { %v10815_v41 = vld [vmem:[#allocation10 + $0xec8] sm:$0xf]  ;;  %v10560_v0 = vor.u32 %v13695_v40, %v10559_v27  ;;  %7024 = vmatpush.bf16.msra.mxu0 %v10304_v58 }
 0x2cf   :  { %v13759_v47 = vld [vmem:[#allocation10 + $0xee4] sm:$0xf0] }
 0x2d0   :  { %v10015_v62 = vld [vmem:[#allocation10 + $0x888] sm:$0xf]  ;;  %v10816_v1 = vor.u32 %v13759_v47, %v10815_v41  ;;  %7037 = vmatpush.bf16.msra.mxu1 %v10560_v0  ;;  %v6797_v41 = vpop.f32.mrf.mxu2 }
 0x2d1   :  { %v13559_v63 = vld [vmem:[#allocation10 + $0x8a4] sm:$0xf0] }
 0x2d2   :  { %v10271_v4 = vld [vmem:[#allocation10 + $0xa88] sm:$0xf]  ;;  %v10016_v16 = vor.u32 %v13559_v63, %v10015_v62  ;;  %7050 = vmatpush.bf16.msra.mxu2 %v10816_v1 }
 0x2d3   :  { %v13623_v6 = vld [vmem:[#allocation10 + $0xaa4] sm:$0xf0] }
 0x2d4   :  { %v10527_v7 = vld [vmem:[#allocation10 + $0xc88] sm:$0xf]  ;;  %v10272_v8 = vor.u32 %v13623_v6, %v10271_v4  ;;  %7012 = vmatpush.bf16.msrb.mxu3 %v10016_v16 }
 0x2d5   :  { %v13687_v9 = vld [vmem:[#allocation10 + $0xca4] sm:$0xf0] }
 0x2d6   :  { %v10783_v10 = vld [vmem:[#allocation10 + $0xe88] sm:$0xf]  ;;  %v10528_v18 = vor.u32 %v13687_v9, %v10527_v7  ;;  %7025 = vmatpush.bf16.msra.mxu0 %v10272_v8 }
 0x2d7   :  { %v13751_v11 = vld [vmem:[#allocation10 + $0xea4] sm:$0xf0] }
 0x2d8   :  { %v9983_v3 = vld [vmem:[#allocation10 + $0x848] sm:$0xf]  ;;  %v10784_v20 = vor.u32 %v13751_v11, %v10783_v10  ;;  %7038 = vmatpush.bf16.msra.mxu1 %v10528_v18 }
 0x2d9   :  { %v13551_v17 = vld [vmem:[#allocation10 + $0x864] sm:$0xf0] }
 0x2da   :  { %v10239_v21 = vld [vmem:[#allocation10 + $0xa48] sm:$0xf]  ;;  %v9984_v29 = vor.u32 %v13551_v17, %v9983_v3  ;;  %7051 = vmatpush.bf16.msra.mxu2 %v10784_v20 }
 0x2db   :  { %v13615_v22 = vld [vmem:[#allocation10 + $0xa64] sm:$0xf0] }
 0x2dc   :  { %v10495_v15 = vld [vmem:[#allocation10 + $0xc48] sm:$0xf]  ;;  %v10240_v31 = vor.u32 %v13615_v22, %v10239_v21  ;;  %7013 = vmatpush.bf16.msrb.mxu3 %v9984_v29 }
 0x2dd   :  { %v13679_v25 = vld [vmem:[#allocation10 + $0xc64] sm:$0xf0] }
 0x2de   :  { %v10751_v26 = vld [vmem:[#allocation10 + $0xe48] sm:$0xf]  ;;  %v10496_v35 = vor.u32 %v13679_v25, %v10495_v15  ;;  %7026 = vmatpush.bf16.msra.mxu0 %v10240_v31 }
 0x2df   :  { %v13743_v19 = vld [vmem:[#allocation10 + $0xe64] sm:$0xf0] }
 0x2e0   :  { %v9951_v28 = vld [vmem:[#allocation10 + $0x808] sm:$0xf]  ;;  %v10752_v36 = vor.u32 %v13743_v19, %v10751_v26  ;;  %7039 = vmatpush.bf16.msra.mxu1 %v10496_v35 }
 0x2e1   :  { %v13543_v32 = vld [vmem:[#allocation10 + $0x824] sm:$0xf0] }
 0x2e2   :  { %v10207_v33 = vld [vmem:[#allocation10 + $0xa08] sm:$0xf]  ;;  %v9952_v0 = vor.u32 %v13543_v32, %v9951_v28  ;;  %7052 = vmatpush.bf16.msra.mxu2 %v10752_v36 }
 0x2e3   :  { %v13607_v34 = vld [vmem:[#allocation10 + $0xa24] sm:$0xf0] }
 0x2e4   :  { %v10463_v27 = vld [vmem:[#allocation10 + $0xc08] sm:$0xf]  ;;  %v10208_v1 = vor.u32 %v13607_v34, %v10207_v33  ;;  %7014 = vmatpush.bf16.msrb.mxu3 %v9952_v0 }
 0x2e5   :  { %v13671_v30 = vld [vmem:[#allocation10 + $0xc24] sm:$0xf0] }
 0x2e6   :  { %v10719_v40 = vld [vmem:[#allocation10 + $0xe08] sm:$0xf]  ;;  %v10464_v7 = vor.u32 %v13671_v30, %v10463_v27  ;;  %7027 = vmatpush.bf16.msra.mxu0 %v10208_v1 }
 0x2e7   :  { %v13735_v47 = vld [vmem:[#allocation10 + $0xe24] sm:$0xf0]  ;;  %7015 = vmatmul.bf16.vlgmr.msrb.gmra.mxu3 %v14738_v38 }
 0x2e8   :  { %v11199_v48 = vld [vmem:[#allocation10 + $0x11c8] sm:$0xf]  ;;  %v10720_v55 = vor.u32 %v13735_v47, %v10719_v40  ;;  %7040 = vmatpush.bf16.msra.mxu1 %v10464_v7 }
 0x2e9   :  { %v13855_v52 = vld [vmem:[#allocation10 + $0x11e4] sm:$0xf0]  ;;  %7028 = vmatmul.bf16.vlgmr.msra.gmra.mxu0 %v14742_v39 }
 0x2ea   :  { %v11455_v58 = vld [vmem:[#allocation10 + $0x13c8] sm:$0xf]  ;;  %v11200_v61 = vor.u32 %v13855_v52, %v11199_v48  ;;  %7053 = vmatpush.bf16.msra.mxu2 %v10720_v55 }
 0x2eb   :  { %v13919_v62 = vld [vmem:[#allocation10 + $0x13e4] sm:$0xf0]  ;;  %7041 = vmatmul.bf16.vlgmr.msra.gmra.mxu1 %v14746_v43 }
 0x2ec   :  { %v11711_v63 = vld [vmem:[#allocation10 + $0x15c8] sm:$0xf]  ;;  %v11456_v9 = vor.u32 %v13919_v62, %v11455_v58  ;;  %7059 = vmatpush.bf16.msra.mxu3 %v11200_v61  ;;  %v6821_v58 = vpop.f32.mrf.mxu0  ;;  %v6834_v62 = vpop.f32.mrf.mxu1 }
 0x2ed   :  { %v13983_v2 = vld [vmem:[#allocation10 + $0x15e4] sm:$0xf0]  ;;  %7054 = vmatmul.bf16.vlgmr.msra.gmra.mxu2 %v14750_v44 }
 0x2ee   :  { %v11967_v4 = vld [vmem:[#allocation10 + $0x17c8] sm:$0xf]  ;;  %v11712_v5 = vor.u32 %v13983_v2, %v11711_v63  ;;  %7072 = vmatpush.bf16.msrb.mxu0 %v11456_v9 }
 0x2ef   :  { %v14047_v6 = vld [vmem:[#allocation10 + $0x17e4] sm:$0xf0] }
 0x2f0   :  { %v11167_v10 = vld [vmem:[#allocation10 + $0x1188] sm:$0xf]  ;;  %v11968_v12 = vor.u32 %v14047_v6, %v11967_v4  ;;  %7085 = vmatpush.bf16.msrb.mxu1 %v11712_v5 }
 0x2f1   :  { %v13847_v11 = vld [vmem:[#allocation10 + $0x11a4] sm:$0xf0] }
 0x2f2   :  { %v11423_v14 = vld [vmem:[#allocation10 + $0x1388] sm:$0xf]  ;;  %v11168_v20 = vor.u32 %v13847_v11, %v11167_v10  ;;  %7098 = vmatpush.bf16.msrb.mxu2 %v11968_v12 }
 0x2f3   :  { %v13911_v16 = vld [vmem:[#allocation10 + $0x13a4] sm:$0xf0] }
 0x2f4   :  { %v11679_v8 = vld [vmem:[#allocation10 + $0x1588] sm:$0xf]  ;;  %v11424_v21 = vor.u32 %v13911_v16, %v11423_v14  ;;  %7060 = vmatpush.bf16.msra.mxu3 %v11168_v20 }
 0x2f5   :  { %v13975_v3 = vld [vmem:[#allocation10 + $0x15a4] sm:$0xf0] }
 0x2f6   :  { %v11935_v17 = vld [vmem:[#allocation10 + $0x1788] sm:$0xf]  ;;  %v11680_v24 = vor.u32 %v13975_v3, %v11679_v8  ;;  %7073 = vmatpush.bf16.msrb.mxu0 %v11424_v21 }
 0x2f7   :  { %v14039_v18 = vld [vmem:[#allocation10 + $0x17a4] sm:$0xf0] }
 0x2f8   :  { %v11135_v22 = vld [vmem:[#allocation10 + $0x1148] sm:$0xf]  ;;  %v11936_v25 = vor.u32 %v14039_v18, %v11935_v17  ;;  %7086 = vmatpush.bf16.msrb.mxu1 %v11680_v24  ;;  %v6808_v17 = vpop.f32.mrf.mxu3 }
 0x2f9   :  { %v13839_v15 = vld [vmem:[#allocation10 + $0x1164] sm:$0xf0] }
 0x2fa   :  { %v11391_v26 = vld [vmem:[#allocation10 + $0x1348] sm:$0xf]  ;;  %v11136_v33 = vor.u32 %v13839_v15, %v11135_v22  ;;  %7099 = vmatpush.bf16.msrb.mxu2 %v11936_v25  ;;  %v6809_v22 = vadd.f32 %v6808_v17, %v14809_v23  ;;  %v6847_v15 = vpop.f32.mrf.mxu2 }
 0x2fb   :  { %v13903_v19 = vld [vmem:[#allocation10 + $0x1364] sm:$0xf0] }
 0x2fc   :  { %v11647_v28 = vld [vmem:[#allocation10 + $0x1548] sm:$0xf]  ;;  %v11392_v34 = vor.u32 %v13903_v19, %v11391_v26  ;;  %7061 = vmatpush.bf16.msra.mxu3 %v11136_v33  ;;  %v6823_v19 = vpop.f32.mrf.mxu0 }
 0x2fd   :  { %v13967_v29 = vld [vmem:[#allocation10 + $0x1564] sm:$0xf0] }
 0x2fe   :  { %v11903_v31 = vld [vmem:[#allocation10 + $0x1748] sm:$0xf]  ;;  %v11648_v37 = vor.u32 %v13967_v29, %v11647_v28  ;;  %7074 = vmatpush.bf16.msrb.mxu0 %v11392_v34  ;;  %v6822_v28 = vadd.f32 %v6821_v58, %v6809_v22  ;;  %v6836_v29 = vpop.f32.mrf.mxu1 }
 0x2ff   :  { %v14031_v32 = vld [vmem:[#allocation10 + $0x1764] sm:$0xf0] }
 0x300   :  { %v11103_v35 = vld [vmem:[#allocation10 + $0x1108] sm:$0xf]  ;;  %v11904_v27 = vor.u32 %v14031_v32, %v11903_v31  ;;  %7087 = vmatpush.bf16.msrb.mxu1 %v11648_v37 }
 0x301   :  { %v13831_v36 = vld [vmem:[#allocation10 + $0x1124] sm:$0xf0] }
 0x302   :  { %v11359_v30 = vld [vmem:[#allocation10 + $0x1308] sm:$0xf]  ;;  %v11104_v63 = vor.u32 %v13831_v36, %v11103_v35  ;;  %7100 = vmatpush.bf16.msrb.mxu2 %v11904_v27 }
 0x303   :  { %v13895_v40 = vld [vmem:[#allocation10 + $0x1324] sm:$0xf0] }
 0x304   :  { %v11615_v41 = vld [vmem:[#allocation10 + $0x1508] sm:$0xf]  ;;  %v11360_v0 = vor.u32 %v13895_v40, %v11359_v30  ;;  %7062 = vmatpush.bf16.msra.mxu3 %v11104_v63  ;;  %v6835_v30 = vadd.f32 %v6834_v62, %v6822_v28 }
 0x305   :  { %v13959_v47 = vld [vmem:[#allocation10 + $0x1524] sm:$0xf0] }
 0x306   :  { %v11871_v48 = vld [vmem:[#allocation10 + $0x1708] sm:$0xf]  ;;  %v11616_v4 = vor.u32 %v13959_v47, %v11615_v41  ;;  %7075 = vmatpush.bf16.msrb.mxu0 %v11360_v0 }
 0x307   :  { %v14023_v52 = vld [vmem:[#allocation10 + $0x1724] sm:$0xf0] }
 0x308   :  { %v11071_v1 = vld [vmem:[#allocation10 + $0x10c8] sm:$0xf]  ;;  %v11872_v6 = vor.u32 %v14023_v52, %v11871_v48  ;;  %7088 = vmatpush.bf16.msrb.mxu1 %v11616_v4  ;;  %v14816_v52 = vadd.f32 %v6847_v15, %v6835_v30 }
 0x309   :  { %v13823_v2 = vld [vmem:[#allocation10 + $0x10e4] sm:$0xf0] }
 0x30a   :  { %v11327_v7 = vld [vmem:[#allocation10 + $0x12c8] sm:$0xf]  ;;  %v11072_v5 = vor.u32 %v13823_v2, %v11071_v1  ;;  %7101 = vmatpush.bf16.msrb.mxu2 %v11872_v6 }
 0x30b   :  { %v13887_v55 = vld [vmem:[#allocation10 + $0x12e4] sm:$0xf0] }
 0x30c   :  { %v11583_v61 = vld [vmem:[#allocation10 + $0x14c8] sm:$0xf]  ;;  %v11328_v12 = vor.u32 %v13887_v55, %v11327_v7  ;;  %7063 = vmatpush.bf16.msra.mxu3 %v11072_v5  ;;  %v6810_v7 = vpop.f32.mrf.mxu3 }
 0x30d   :  { %v13951_v9 = vld [vmem:[#allocation10 + $0x14e4] sm:$0xf0] }
 0x30e   :  { %v11839_v10 = vld [vmem:[#allocation10 + $0x16c8] sm:$0xf]  ;;  %v11584_v8 = vor.u32 %v13951_v9, %v11583_v61  ;;  %7076 = vmatpush.bf16.msrb.mxu0 %v11328_v12  ;;  %v6849_v9 = vpop.f32.mrf.mxu2 }
 0x30f   :  { %v14015_v11 = vld [vmem:[#allocation10 + $0x16e4] sm:$0xf0] }
 0x310   :  { %v11039_v14 = vld [vmem:[#allocation10 + $0x1088] sm:$0xf]  ;;  %v11840_v3 = vor.u32 %v14015_v11, %v11839_v10  ;;  %7089 = vmatpush.bf16.msrb.mxu1 %v11584_v8 }
 0x311   :  { %v13815_v16 = vld [vmem:[#allocation10 + $0x10a4] sm:$0xf0] }
 0x312   :  { %v11295_v18 = vld [vmem:[#allocation10 + $0x1288] sm:$0xf]  ;;  %v11040_v31 = vor.u32 %v13815_v16, %v11039_v14  ;;  %7102 = vmatpush.bf16.msrb.mxu2 %v11840_v3 }
 0x313   :  { %v13879_v20 = vld [vmem:[#allocation10 + $0x12a4] sm:$0xf0] }
 0x314   :  { %v11551_v21 = vld [vmem:[#allocation10 + $0x1488] sm:$0xf]  ;;  %v11296_v32 = vor.u32 %v13879_v20, %v11295_v18  ;;  %7064 = vmatpush.bf16.msra.mxu3 %v11040_v31 }
 0x315   :  { %v13943_v24 = vld [vmem:[#allocation10 + $0x14a4] sm:$0xf0] }
 0x316   :  { %v11807_v25 = vld [vmem:[#allocation10 + $0x1688] sm:$0xf]  ;;  %v11552_v35 = vor.u32 %v13943_v24, %v11551_v21  ;;  %7077 = vmatpush.bf16.msrb.mxu0 %v11296_v32 }
 0x317   :  { %v14007_v26 = vld [vmem:[#allocation10 + $0x16a4] sm:$0xf0] }
 0x318   :  { %v11007_v33 = vld [vmem:[#allocation10 + $0x1048] sm:$0xf]  ;;  %v11808_v36 = vor.u32 %v14007_v26, %v11807_v25  ;;  %7090 = vmatpush.bf16.msrb.mxu1 %v11552_v35 }
 0x319   :  { %v13807_v34 = vld [vmem:[#allocation10 + $0x1064] sm:$0xf0] }
 0x31a   :  { %v11263_v37 = vld [vmem:[#allocation10 + $0x1248] sm:$0xf]  ;;  %v11008_v58 = vor.u32 %v13807_v34, %v11007_v33  ;;  %7103 = vmatpush.bf16.msrb.mxu2 %v11808_v36 }
 0x31b   :  { %v13871_v27 = vld [vmem:[#allocation10 + $0x1264] sm:$0xf0] }
 0x31c   :  { %v11519_v23 = vld [vmem:[#allocation10 + $0x1448] sm:$0xf]  ;;  %v11264_v63 = vor.u32 %v13871_v27, %v11263_v37  ;;  %7065 = vmatpush.bf16.msra.mxu3 %v11008_v58 }
 0x31d   :  { %v13935_v40 = vld [vmem:[#allocation10 + $0x1464] sm:$0xf0] }
 0x31e   :  { %v11775_v41 = vld [vmem:[#allocation10 + $0x1648] sm:$0xf]  ;;  %v11520_v4 = vor.u32 %v13935_v40, %v11519_v23  ;;  %7078 = vmatpush.bf16.msrb.mxu0 %v11264_v63 }
 0x31f   :  { %v13999_v47 = vld [vmem:[#allocation10 + $0x1664] sm:$0xf0] }
 0x320   :  { %v10975_v48 = vld [vmem:[#allocation10 + $0x1008] sm:$0xf]  ;;  %v11776_v6 = vor.u32 %v13999_v47, %v11775_v41  ;;  %7091 = vmatpush.bf16.msrb.mxu1 %v11520_v4 }
 0x321   :  { %v13799_v0 = vld [vmem:[#allocation10 + $0x1024] sm:$0xf0] }
 0x322   :  { %v11231_v1 = vld [vmem:[#allocation10 + $0x1208] sm:$0xf]  ;;  %v10976_v8 = vor.u32 %v13799_v0, %v10975_v48  ;;  %7104 = vmatpush.bf16.msrb.mxu2 %v11776_v6 }
 0x323   :  { %v13863_v2 = vld [vmem:[#allocation10 + $0x1224] sm:$0xf0] }
 0x324   :  { %v11487_v55 = vld [vmem:[#allocation10 + $0x1408] sm:$0xf]  ;;  %v11232_v3 = vor.u32 %v13863_v2, %v11231_v1  ;;  %7066 = vmatpush.bf16.msra.mxu3 %v10976_v8 }
 0x325   :  { %v13927_v62 = vld [vmem:[#allocation10 + $0x1424] sm:$0xf0] }
 0x326   :  { %v11743_v61 = vld [vmem:[#allocation10 + $0x1608] sm:$0xf]  ;;  %v11488_v21 = vor.u32 %v13927_v62, %v11487_v55  ;;  %7079 = vmatpush.bf16.msrb.mxu0 %v11232_v3 }
 0x327   :  { %v13991_v10 = vld [vmem:[#allocation10 + $0x1624] sm:$0xf0]  ;;  %7067 = vmatmul.bf16.vlgmr.msra.gmra.mxu3 %v14756_v53 }
 0x328   :  { %v12223_v11 = vld [vmem:[#allocation10 + $0x19c8] sm:$0xf]  ;;  %v11744_v22 = vor.u32 %v13991_v10, %v11743_v61  ;;  %7092 = vmatpush.bf16.msrb.mxu1 %v11488_v21 }
 0x329   :  { %v14111_v5 = vld [vmem:[#allocation10 + $0x19e4] sm:$0xf0]  ;;  %7080 = vmatmul.bf16.vlgmr.msrb.gmra.mxu0 %v14758_v54 }
 0x32a   :  { %v12479_v12 = vld [vmem:[#allocation10 + $0x1bc8] sm:$0xf]  ;;  %v12224_v15 = vor.u32 %v14111_v5, %v12223_v11  ;;  %7105 = vmatpush.bf16.msrb.mxu2 %v11744_v22 }
 0x32b   :  { %v14175_v14 = vld [vmem:[#allocation10 + $0x1be4] sm:$0xf0]  ;;  %7093 = vmatmul.bf16.vlgmr.msrb.gmra.mxu1 %v14760_v59 }
 0x32c   :  { %v12735_v16 = vld [vmem:[#allocation10 + $0x1dc8] sm:$0xf]  ;;  %v12480_v24 = vor.u32 %v14175_v14, %v12479_v12  ;;  %7111 = vmatpush.bf16.msrb.mxu3 %v12224_v15  ;;  %v6873_v12 = vpop.f32.mrf.mxu0  ;;  %v6886_v14 = vpop.f32.mrf.mxu1 }
 0x32d   :  { %v14239_v17 = vld [vmem:[#allocation10 + $0x1de4] sm:$0xf0]  ;;  %7106 = vmatmul.bf16.vlgmr.msrb.gmra.mxu2 %v14762_v60 }
 0x32e   :  { %v12991_v18 = vld [vmem:[#allocation10 + $0x1fc8] sm:$0xf]  ;;  %v12736_v19 = vor.u32 %v14239_v17, %v12735_v16  ;;  %7124 = vmatpush.bf16.msra.mxu0 %v12480_v24 }
 0x32f   :  { %v14303_v20 = vld [vmem:[#allocation10 + $0x1fe4] sm:$0xf0] }
 0x330   :  { %v12191_v25 = vld [vmem:[#allocation10 + $0x1988] sm:$0xf]  ;;  %v12992_v28 = vor.u32 %v14303_v20, %v12991_v18  ;;  %7137 = vmatpush.bf16.msra.mxu1 %v12736_v19 }
 0x331   :  { %v14103_v26 = vld [vmem:[#allocation10 + $0x19a4] sm:$0xf0] }
 0x332   :  { %v12447_v29 = vld [vmem:[#allocation10 + $0x1b88] sm:$0xf]  ;;  %v12192_v36 = vor.u32 %v14103_v26, %v12191_v25  ;;  %7150 = vmatpush.bf16.msra.mxu2 %v12992_v28 }
 0x333   :  { %v14167_v31 = vld [vmem:[#allocation10 + $0x1ba4] sm:$0xf0] }
 0x334   :  { %v12703_v32 = vld [vmem:[#allocation10 + $0x1d88] sm:$0xf]  ;;  %v12448_v37 = vor.u32 %v14167_v31, %v12447_v29  ;;  %7112 = vmatpush.bf16.msrb.mxu3 %v12192_v36 }
 0x335   :  { %v14231_v33 = vld [vmem:[#allocation10 + $0x1da4] sm:$0xf0] }
 0x336   :  { %v12959_v34 = vld [vmem:[#allocation10 + $0x1f88] sm:$0xf]  ;;  %v12704_v30 = vor.u32 %v14231_v33, %v12703_v32  ;;  %7125 = vmatpush.bf16.msra.mxu0 %v12448_v37 }
 0x337   :  { %v14295_v35 = vld [vmem:[#allocation10 + $0x1fa4] sm:$0xf0] }
 0x338   :  { %v12159_v27 = vld [vmem:[#allocation10 + $0x1948] sm:$0xf]  ;;  %v12960_v40 = vor.u32 %v14295_v35, %v12959_v34  ;;  %7138 = vmatpush.bf16.msra.mxu1 %v12704_v30  ;;  %v6860_v34 = vpop.f32.mrf.mxu3 }
 0x339   :  { %v14095_v23 = vld [vmem:[#allocation10 + $0x1964] sm:$0xf0] }
 0x33a   :  { %v12415_v41 = vld [vmem:[#allocation10 + $0x1b48] sm:$0xf]  ;;  %v12160_v1 = vor.u32 %v14095_v23, %v12159_v27  ;;  %7151 = vmatpush.bf16.msra.mxu2 %v12960_v40  ;;  %v6861_v27 = vadd.f32 %v6860_v34, %v14816_v52  ;;  %v6899_v23 = vpop.f32.mrf.mxu2  ;;  %v9665_v34 = vld [vmem:[#allocation10 + $0x5e8] sm:$0xf0] }
 0x33b   :  { %v14159_v47 = vld [vmem:[#allocation10 + $0x1b64] sm:$0xf0] }
 0x33c   :  { %v12671_v48 = vld [vmem:[#allocation10 + $0x1d48] sm:$0xf]  ;;  %v12416_v2 = vor.u32 %v14159_v47, %v12415_v41  ;;  %7113 = vmatpush.bf16.msrb.mxu3 %v12160_v1  ;;  %v6875_v47 = vpop.f32.mrf.mxu0 }
 0x33d   :  { %v14223_v58 = vld [vmem:[#allocation10 + $0x1d64] sm:$0xf0] }
 0x33e   :  { %v12927_v63 = vld [vmem:[#allocation10 + $0x1f48] sm:$0xf]  ;;  %v12672_v7 = vor.u32 %v14223_v58, %v12671_v48  ;;  %7126 = vmatpush.bf16.msra.mxu0 %v12416_v2  ;;  %v6874_v48 = vadd.f32 %v6873_v12, %v6861_v27  ;;  %v6888_v58 = vpop.f32.mrf.mxu1 }
 0x33f   :  { %v14287_v0 = vld [vmem:[#allocation10 + $0x1f64] sm:$0xf0]  ;;  %v13395_v58 = vld [vmem:[#allocation10 + $0x38c] sm:$0xf] }
 0x340   :  { %v12127_v4 = vld [vmem:[#allocation10 + $0x1908] sm:$0xf]  ;;  %v12928_v55 = vor.u32 %v14287_v0, %v12927_v63  ;;  %7139 = vmatpush.bf16.msra.mxu1 %v12672_v7 }
 0x341   :  { %v14087_v6 = vld [vmem:[#allocation10 + $0x1924] sm:$0xf0] }
 0x342   :  { %v12383_v62 = vld [vmem:[#allocation10 + $0x1b08] sm:$0xf]  ;;  %v12128_v16 = vor.u32 %v14087_v6, %v12127_v4  ;;  %7152 = vmatpush.bf16.msra.mxu2 %v12928_v55 }
 0x343   :  { %v14151_v61 = vld [vmem:[#allocation10 + $0x1b24] sm:$0xf0] }
 0x344   :  { %v12639_v9 = vld [vmem:[#allocation10 + $0x1d08] sm:$0xf]  ;;  %v12384_v8 = vor.u32 %v14151_v61, %v12383_v62  ;;  %7114 = vmatpush.bf16.msrb.mxu3 %v12128_v16  ;;  %v6887_v62 = vadd.f32 %v6886_v14, %v6874_v48 }
 0x345   :  { %v14215_v10 = vld [vmem:[#allocation10 + $0x1d24] sm:$0xf0] }
 0x346   :  { %v12895_v11 = vld [vmem:[#allocation10 + $0x1f08] sm:$0xf]  ;;  %v12640_v18 = vor.u32 %v14215_v10, %v12639_v9  ;;  %7127 = vmatpush.bf16.msra.mxu0 %v12384_v8 }
 0x347   :  { %v14279_v5 = vld [vmem:[#allocation10 + $0x1f24] sm:$0xf0] }
 0x348   :  { %v12095_v3 = vld [vmem:[#allocation10 + $0x18c8] sm:$0xf]  ;;  %v12896_v20 = vor.u32 %v14279_v5, %v12895_v11  ;;  %7140 = vmatpush.bf16.msra.mxu1 %v12640_v18  ;;  %v14823_v5 = vadd.f32 %v6899_v23, %v6887_v62 }
 0x349   :  { %v14079_v17 = vld [vmem:[#allocation10 + $0x18e4] sm:$0xf0] }
 0x34a   :  { %v12351_v21 = vld [vmem:[#allocation10 + $0x1ac8] sm:$0xf]  ;;  %v12096_v19 = vor.u32 %v14079_v17, %v12095_v3  ;;  %7153 = vmatpush.bf16.msra.mxu2 %v12896_v20 }
 0x34b   :  { %v14143_v22 = vld [vmem:[#allocation10 + $0x1ae4] sm:$0xf0] }
 0x34c   :  { %v12607_v15 = vld [vmem:[#allocation10 + $0x1cc8] sm:$0xf]  ;;  %v12352_v28 = vor.u32 %v14143_v22, %v12351_v21  ;;  %7115 = vmatpush.bf16.msrb.mxu3 %v12096_v19  ;;  %v6862_v21 = vpop.f32.mrf.mxu3  ;;  %v9153_v19 = vld [vmem:[#allocation10 + $0x1e8] sm:$0xf0] }
 0x34d   :  { %v14207_v24 = vld [vmem:[#allocation10 + $0x1ce4] sm:$0xf0] }
 0x34e   :  { %v12863_v25 = vld [vmem:[#allocation10 + $0x1ec8] sm:$0xf]  ;;  %v12608_v32 = vor.u32 %v14207_v24, %v12607_v15  ;;  %7128 = vmatpush.bf16.msra.mxu0 %v12352_v28  ;;  %v6901_v24 = vpop.f32.mrf.mxu2  ;;  %v13403_v28 = vld [vmem:[#allocation10 + $0x3cc] sm:$0xf] }
 0x34f   :  { %v14271_v26 = vld [vmem:[#allocation10 + $0x1ee4] sm:$0xf0]  ;;  %v13443_v24 = vld [vmem:[#allocation10 + $0x50c] sm:$0xf] }
 0x350   :  { %v12063_v29 = vld [vmem:[#allocation10 + $0x1888] sm:$0xf]  ;;  %v12864_v33 = vor.u32 %v14271_v26, %v12863_v25  ;;  %7141 = vmatpush.bf16.msra.mxu1 %v12608_v32  ;;  %v13339_v26 = vld [vmem:[#allocation10 + $0x1cc] sm:$0xf] }
 0x351   :  { %v14071_v31 = vld [vmem:[#allocation10 + $0x18a4] sm:$0xf0]  ;;  %v9156_v23 = vor.u32 %v13339_v26, %v9153_v19  ;;  %v13507_v26 = vld [vmem:[#allocation10 + $0x70c] sm:$0xf] }
 0x352   :  { %v12319_v35 = vld [vmem:[#allocation10 + $0x1a88] sm:$0xf]  ;;  %v12064_v63 = vor.u32 %v14071_v31, %v12063_v29  ;;  %7154 = vmatpush.bf16.msra.mxu2 %v12864_v33  ;;  %v9409_v29 = vld [vmem:[#allocation10 + $0x3e8] sm:$0xf0] }
 0x353   :  { %v14135_v36 = vld [vmem:[#allocation10 + $0x1aa4] sm:$0xf0]  ;;  %v13467_v31 = vld [vmem:[#allocation10 + $0x5cc] sm:$0xf] }
 0x354   :  { %v12575_v37 = vld [vmem:[#allocation10 + $0x1c88] sm:$0xf]  ;;  %v12320_v0 = vor.u32 %v14135_v36, %v12319_v35  ;;  %7116 = vmatpush.bf16.msrb.mxu3 %v12064_v63  ;;  %v13531_v35 = vld [vmem:[#allocation10 + $0x7cc] sm:$0xf]  ;;  %v9668_v47 = vor.u32 %v13467_v31, %v9665_v34 }
 0x355   :  { %v14199_v30 = vld [vmem:[#allocation10 + $0x1ca4] sm:$0xf0]  ;;  %v9921_v36 = vld [vmem:[#allocation10 + $0x7e8] sm:$0xf0] }
 0x356   :  { %v12831_v40 = vld [vmem:[#allocation10 + $0x1e88] sm:$0xf]  ;;  %v12576_v4 = vor.u32 %v14199_v30, %v12575_v37  ;;  %7129 = vmatpush.bf16.msra.mxu0 %v12320_v0  ;;  %v9412_v30 = vor.u32 %v13403_v28, %v9409_v29  ;;  %v9924_v48 = vor.u32 %v13531_v35, %v9921_v36  ;;  %v9377_v63 = vld [vmem:[#allocation10 + $0x3a8] sm:$0xf0]  ;;  %v6925_v28 = vpop.f32.mrf.mxu0  ;;  %v6938_v29 = vpop.f32.mrf.mxu1 }
 0x357   :  { %v14263_v41 = vld [vmem:[#allocation10 + $0x1ea4] sm:$0xf0]  ;;  %v13459_v0 = vld [vmem:[#allocation10 + $0x58c] sm:$0xf] }
 0x358   :  { %v12031_v1 = vld [vmem:[#allocation10 + $0x1848] sm:$0xf]  ;;  %v12832_v6 = vor.u32 %v14263_v41, %v12831_v40  ;;  %7142 = vmatpush.bf16.msra.mxu1 %v12576_v4  ;;  %v13331_v40 = vld [vmem:[#allocation10 + $0x18c] sm:$0xf] }
 0x359   :  { %v14063_v2 = vld [vmem:[#allocation10 + $0x1864] sm:$0xf0]  ;;  %v9121_v41 = vld [vmem:[#allocation10 + $0x1a8] sm:$0xf0] }
 0x35a   :  { %v12287_v7 = vld [vmem:[#allocation10 + $0x1a48] sm:$0xf]  ;;  %v12032_v12 = vor.u32 %v14063_v2, %v12031_v1  ;;  %7155 = vmatpush.bf16.msra.mxu2 %v12832_v6  ;;  %v9633_v1 = vld [vmem:[#allocation10 + $0x5a8] sm:$0xf0]  ;;  %v9124_v6 = vor.u32 %v13331_v40, %v9121_v41 }
 0x35b   :  { %v14127_v55 = vld [vmem:[#allocation10 + $0x1a64] sm:$0xf0]  ;;  %v13523_v2 = vld [vmem:[#allocation10 + $0x78c] sm:$0xf]  ;;  %v9636_v62 = vor.u32 %v13459_v0, %v9633_v1 }
 0x35c   :  { %v12543_v52 = vld [vmem:[#allocation10 + $0x1c48] sm:$0xf]  ;;  %v12288_v16 = vor.u32 %v14127_v55, %v12287_v7  ;;  %7117 = vmatpush.bf16.msrb.mxu3 %v12032_v12  ;;  %v9889_v4 = vld [vmem:[#allocation10 + $0x7a8] sm:$0xf0]  ;;  %v9380_v7 = vor.u32 %v13395_v58, %v9377_v63 }
 0x35d   :  { %v14191_v61 = vld [vmem:[#allocation10 + $0x1c64] sm:$0xf0]  ;;  %v13323_v55 = vld [vmem:[#allocation10 + $0x14c] sm:$0xf] }
 0x35e   :  { %v12799_v9 = vld [vmem:[#allocation10 + $0x1e48] sm:$0xf]  ;;  %v12544_v18 = vor.u32 %v14191_v61, %v12543_v52  ;;  %7130 = vmatpush.bf16.msra.mxu0 %v12288_v16  ;;  %v9089_v52 = vld [vmem:[#allocation10 + $0x168] sm:$0xf0]  ;;  %v9892_v61 = vor.u32 %v13523_v2, %v9889_v4  ;;  %v6912_v2 = vpop.f32.mrf.mxu3 }
 0x35f   :  { %v14255_v10 = vld [vmem:[#allocation10 + $0x1e64] sm:$0xf0]  ;;  %v9601_v12 = vld [vmem:[#allocation10 + $0x568] sm:$0xf0] }
 0x360   :  { %v11999_v11 = vld [vmem:[#allocation10 + $0x1808] sm:$0xf]  ;;  %v12800_v20 = vor.u32 %v14255_v10, %v12799_v9  ;;  %7143 = vmatpush.bf16.msra.mxu1 %v12544_v18  ;;  %v13387_v9 = vld [vmem:[#allocation10 + $0x34c] sm:$0xf] }
 0x361   :  { %v14055_v8 = vld [vmem:[#allocation10 + $0x1824] sm:$0xf0]  ;;  %v9345_v10 = vld [vmem:[#allocation10 + $0x368] sm:$0xf0] }
 0x362   :  { %v12255_v3 = vld [vmem:[#allocation10 + $0x1a08] sm:$0xf]  ;;  %v12000_v32 = vor.u32 %v14055_v8, %v11999_v11  ;;  %7156 = vmatpush.bf16.msra.mxu2 %v12800_v20  ;;  %v13451_v11 = vld [vmem:[#allocation10 + $0x54c] sm:$0xf] }
 0x363   :  { %v14119_v17 = vld [vmem:[#allocation10 + $0x1a24] sm:$0xf0]  ;;  %v13515_v16 = vld [vmem:[#allocation10 + $0x74c] sm:$0xf]  ;;  %v9604_v21 = vor.u32 %v13451_v11, %v9601_v12  ;;  %v6940_v12 = vpop.f32.mrf.mxu1 }
 0x364   :  { %v12511_v22 = vld [vmem:[#allocation10 + $0x1c08] sm:$0xf]  ;;  %v12256_v33 = vor.u32 %v14119_v17, %v12255_v3  ;;  %7118 = vmatpush.bf16.msrb.mxu3 %v12000_v32  ;;  %v9857_v8 = vld [vmem:[#allocation10 + $0x768] sm:$0xf0]  ;;  %v9092_v3 = vor.u32 %v13323_v55, %v9089_v52  ;;  %v9348_v17 = vor.u32 %v13387_v9, %v9345_v10  ;;  %v6913_v55 = vadd.f32 %v6912_v2, %v14823_v5  ;;  %v6951_v52 = vpop.f32.mrf.mxu2  ;;  %v6927_v10 = vpop.f32.mrf.mxu0 }
 0x365   :  { %v14183_v14 = vld [vmem:[#allocation10 + $0x1c24] sm:$0xf0]  ;;  %v13315_v18 = vld [vmem:[#allocation10 + $0x10c] sm:$0xf] }
 0x366   :  { %v12767_v15 = vld [vmem:[#allocation10 + $0x1e08] sm:$0xf]  ;;  %v12512_v37 = vor.u32 %v14183_v14, %v12511_v22  ;;  %7131 = vmatpush.bf16.msra.mxu0 %v12256_v33  ;;  %v9057_v20 = vld [vmem:[#allocation10 + $0x128] sm:$0xf0]  ;;  %v9860_v22 = vor.u32 %v13515_v16, %v9857_v8  ;;  %v6926_v11 = vadd.f32 %v6925_v28, %v6913_v55 }
 0x367   :  { %v14247_v25 = vld [vmem:[#allocation10 + $0x1e24] sm:$0xf0]  ;;  %7119 = vmatmul.bf16.vlgmr.msrb.gmra.mxu3 %v14768_v42  ;;  %v13379_v14 = vld [vmem:[#allocation10 + $0x30c] sm:$0xf]  ;;  %v9060_v31 = vor.u32 %v13315_v18, %v9057_v20 }
 0x368   :  { %v12768_v27 = vor.u32 %v14247_v25, %v12767_v15  ;;  %7144 = vmatpush.bf16.msra.mxu1 %v12512_v37  ;;  %7163 = vmatpush.bf16.msra.mxu3 %v9156_v23  ;;  %v9313_v15 = vld [vmem:[#allocation10 + $0x328] sm:$0xf0] }
 0x369   :  { %7132 = vmatmul.bf16.vlgmr.msra.gmra.mxu0 %v14770_v45  ;;  %v9569_v25 = vld [vmem:[#allocation10 + $0x528] sm:$0xf0]  ;;  %v9316_v32 = vor.u32 %v13379_v14, %v9313_v15  ;;  %v6939_v14 = vadd.f32 %v6938_v29, %v6926_v11 }
 0x36a   :  { %7157 = vmatpush.bf16.msra.mxu2 %v12768_v27  ;;  %7176 = vmatpush.bf16.msrb.mxu0 %v9412_v30  ;;  %v9825_v19 = vld [vmem:[#allocation10 + $0x728] sm:$0xf0]  ;;  %v9572_v35 = vor.u32 %v13443_v24, %v9569_v25 }
 0x36b   :  { %7145 = vmatmul.bf16.vlgmr.msra.gmra.mxu1 %v14772_v46  ;;  %v13307_v33 = vld [vmem:[#allocation10 + $0xcc] sm:$0xf]  ;;  %v9828_v36 = vor.u32 %v13507_v26, %v9825_v19  ;;  %v14830_v19 = vadd.f32 %v6951_v52, %v6939_v14 }
 0x36c   :  { %7189 = vmatpush.bf16.msrb.mxu1 %v9668_v47  ;;  %7164 = vmatpush.bf16.msra.mxu3 %v9124_v6  ;;  %v9025_v34 = vld [vmem:[#allocation10 + $0xe8] sm:$0xf0] }
 0x36d   :  { %7158 = vmatmul.bf16.vlgmr.msra.gmra.mxu2 %v14774_v57  ;;  %v13371_v37 = vld [vmem:[#allocation10 + $0x2cc] sm:$0xf]  ;;  %v9028_v47 = vor.u32 %v13307_v33, %v9025_v34 }
 0x36e   :  { %7202 = vmatpush.bf16.msrb.mxu2 %v9924_v48  ;;  %7177 = vmatpush.bf16.msrb.mxu0 %v9380_v7  ;;  %v9281_v27 = vld [vmem:[#allocation10 + $0x2e8] sm:$0xf0] }
 0x36f   :  { %v13435_v23 = vld [vmem:[#allocation10 + $0x4cc] sm:$0xf]  ;;  %v9284_v48 = vor.u32 %v13371_v37, %v9281_v27  ;;  %v6914_v37 = vpop.f32.mrf.mxu3 }
 0x370   :  { %7190 = vmatpush.bf16.msrb.mxu1 %v9636_v62  ;;  %7165 = vmatpush.bf16.msra.mxu3 %v9092_v3  ;;  %v9537_v30 = vld [vmem:[#allocation10 + $0x4e8] sm:$0xf0] }
 0x371   :  { %v13499_v40 = vld [vmem:[#allocation10 + $0x6cc] sm:$0xf]  ;;  %v9540_v0 = vor.u32 %v13435_v23, %v9537_v30  ;;  %v6953_v30 = vpop.f32.mrf.mxu2 }
 0x372   :  { %7203 = vmatpush.bf16.msrb.mxu2 %v9892_v61  ;;  %7178 = vmatpush.bf16.msrb.mxu0 %v9348_v17  ;;  %v9793_v41 = vld [vmem:[#allocation10 + $0x6e8] sm:$0xf0] }
 0x373   :  { %v13299_v58 = vld [vmem:[#allocation10 + $0x8c] sm:$0xf]  ;;  %v9796_v1 = vor.u32 %v13499_v40, %v9793_v41 }
 0x374   :  { %7191 = vmatpush.bf16.msrb.mxu1 %v9604_v21  ;;  %7166 = vmatpush.bf16.msra.mxu3 %v9060_v31  ;;  %v8993_v63 = vld [vmem:[#allocation10 + $0xa8] sm:$0xf0] }
 0x375   :  { %v13363_v4 = vld [vmem:[#allocation10 + $0x28c] sm:$0xf]  ;;  %v8996_v16 = vor.u32 %v13299_v58, %v8993_v63 }
 0x376   :  { %7204 = vmatpush.bf16.msrb.mxu2 %v9860_v22  ;;  %7179 = vmatpush.bf16.msrb.mxu0 %v9316_v32  ;;  %v9249_v6 = vld [vmem:[#allocation10 + $0x2a8] sm:$0xf0] }
 0x377   :  { %v13427_v7 = vld [vmem:[#allocation10 + $0x48c] sm:$0xf]  ;;  %v9252_v8 = vor.u32 %v13363_v4, %v9249_v6 }
 0x378   :  { %7192 = vmatpush.bf16.msrb.mxu1 %v9572_v35  ;;  %v9505_v62 = vld [vmem:[#allocation10 + $0x4a8] sm:$0xf0]  ;;  %7167 = vmatpush.bf16.msra.mxu3 %v9028_v47 }
 0x379   :  { %v13491_v61 = vld [vmem:[#allocation10 + $0x68c] sm:$0xf]  ;;  %v9508_v18 = vor.u32 %v13427_v7, %v9505_v62 }
 0x37a   :  { %7205 = vmatpush.bf16.msrb.mxu2 %v9828_v36  ;;  %v9761_v9 = vld [vmem:[#allocation10 + $0x6a8] sm:$0xf0]  ;;  %7180 = vmatpush.bf16.msrb.mxu0 %v9284_v48 }
 0x37b   :  { %v13291_v3 = vld [vmem:[#allocation10 + $0x4c] sm:$0xf]  ;;  %v9764_v20 = vor.u32 %v13491_v61, %v9761_v9 }
 0x37c   :  { %v8961_v17 = vld [vmem:[#allocation10 + $0x68] sm:$0xf0]  ;;  %7193 = vmatpush.bf16.msrb.mxu1 %v9540_v0  ;;  %7168 = vmatpush.bf16.msra.mxu3 %v8996_v16 }
 0x37d   :  { %v13355_v21 = vld [vmem:[#allocation10 + $0x24c] sm:$0xf]  ;;  %v8964_v28 = vor.u32 %v13291_v3, %v8961_v17 }
 0x37e   :  { %7206 = vmatpush.bf16.msrb.mxu2 %v9796_v1  ;;  %v9217_v22 = vld [vmem:[#allocation10 + $0x268] sm:$0xf0]  ;;  %7181 = vmatpush.bf16.msrb.mxu0 %v9252_v8 }
 0x37f   :  { %v13419_v5 = vld [vmem:[#allocation10 + $0x44c] sm:$0xf]  ;;  %v9220_v31 = vor.u32 %v13355_v21, %v9217_v22 }
 0x380   :  { %v9473_v15 = vld [vmem:[#allocation10 + $0x468] sm:$0xf0]  ;;  %7194 = vmatpush.bf16.msrb.mxu1 %v9508_v18  ;;  %7169 = vmatpush.bf16.msra.mxu3 %v8964_v28 }
 0x381   :  { %v13483_v24 = vld [vmem:[#allocation10 + $0x64c] sm:$0xf]  ;;  %v9476_v35 = vor.u32 %v13419_v5, %v9473_v15 }
 0x382   :  { %v9729_v25 = vld [vmem:[#allocation10 + $0x668] sm:$0xf0]  ;;  %7207 = vmatpush.bf16.msrb.mxu2 %v9764_v20  ;;  %7182 = vmatpush.bf16.msrb.mxu0 %v9220_v31 }
 0x383   :  { %v13283_v26 = vld [vmem:[#allocation10 + $0xc] sm:$0xf]  ;;  %v9732_v36 = vor.u32 %v13483_v24, %v9729_v25 }
 0x384   :  { %v8929_v32 = vld [vmem:[#allocation10 + $0x28] sm:$0xf0]  ;;  %7195 = vmatpush.bf16.msrb.mxu1 %v9476_v35 }
 0x385   :  { %v13347_v33 = vld [vmem:[#allocation10 + $0x20c] sm:$0xf]  ;;  %v8932_v0 = vor.u32 %v13283_v26, %v8929_v32 }
 0x386   :  { %v9185_v34 = vld [vmem:[#allocation10 + $0x228] sm:$0xf0]  ;;  %7208 = vmatpush.bf16.msrb.mxu2 %v9732_v36 }
 0x387   :  { %v13411_v27 = vld [vmem:[#allocation10 + $0x40c] sm:$0xf]  ;;  %v9188_v1 = vor.u32 %v13347_v33, %v9185_v34  ;;  %7170 = vmatpush.bf16.msra.mxu3 %v8932_v0 }
 0x388   :  { %v9441_v29 = vld [vmem:[#allocation10 + $0x428] sm:$0xf0] }
 0x389   :  { %v13475_v23 = vld [vmem:[#allocation10 + $0x60c] sm:$0xf]  ;;  %v9444_v7 = vor.u32 %v13411_v27, %v9441_v29  ;;  %7183 = vmatpush.bf16.msrb.mxu0 %v9188_v1 }
 0x38a   :  { %v9697_v40 = vld [vmem:[#allocation10 + $0x628] sm:$0xf0]  ;;  %7171 = vmatmul.bf16.vlgmr.msra.gmra.mxu3 %v14716_v49 }
 0x38b   :  { %v13595_v41 = vld [vmem:[#allocation10 + $0x9cc] sm:$0xf]  ;;  %v9700_v55 = vor.u32 %v13475_v23, %v9697_v40  ;;  %7196 = vmatpush.bf16.msrb.mxu1 %v9444_v7 }
 0x38c   :  { %v10177_v47 = vld [vmem:[#allocation10 + $0x9e8] sm:$0xf0]  ;;  %7184 = vmatmul.bf16.vlgmr.msrb.gmra.mxu0 %v14718_v50 }
 0x38d   :  { %v13659_v48 = vld [vmem:[#allocation10 + $0xbcc] sm:$0xf]  ;;  %v10180_v52 = vor.u32 %v13595_v41, %v10177_v47  ;;  %7209 = vmatpush.bf16.msrb.mxu2 %v9700_v55 }
 0x38e   :  { %v10433_v58 = vld [vmem:[#allocation10 + $0xbe8] sm:$0xf0]  ;;  %7197 = vmatmul.bf16.vlgmr.msrb.gmra.mxu1 %v14720_v51 }
 0x38f   :  { %v13723_v63 = vld [vmem:[#allocation10 + $0xdcc] sm:$0xf]  ;;  %v10436_v62 = vor.u32 %v13659_v48, %v10433_v58  ;;  %7215 = vmatpush.bf16.msrb.mxu3 %v10180_v52  ;;  %v6977_v48 = vpop.f32.mrf.mxu0  ;;  %v6990_v58 = vpop.f32.mrf.mxu1 }
 0x390   :  { %v10689_v2 = vld [vmem:[#allocation10 + $0xde8] sm:$0xf0]  ;;  %7210 = vmatmul.bf16.vlgmr.msrb.gmra.mxu2 %v14726_v56 }
 0x391   :  { %v13787_v4 = vld [vmem:[#allocation10 + $0xfcc] sm:$0xf]  ;;  %v10692_v10 = vor.u32 %v13723_v63, %v10689_v2  ;;  %7228 = vmatpush.bf16.msra.mxu0 %v10436_v62 }
 0x392   :  { %v10945_v6 = vld [vmem:[#allocation10 + $0xfe8] sm:$0xf0] }
 0x393   :  { %v13587_v61 = vld [vmem:[#allocation10 + $0x98c] sm:$0xf]  ;;  %v10948_v11 = vor.u32 %v13787_v4, %v10945_v6  ;;  %7241 = vmatpush.bf16.msra.mxu1 %v10692_v10  ;;  %v14385_v10 = vld [vmem:[#allocation11] sm:$0xff] }
 0x394   :  { %v10145_v9 = vld [vmem:[#allocation10 + $0x9a8] sm:$0xf0] }
 0x395   :  { %v13651_v12 = vld [vmem:[#allocation10 + $0xb8c] sm:$0xf]  ;;  %v10148_v20 = vor.u32 %v13587_v61, %v10145_v9  ;;  %7254 = vmatpush.bf16.msra.mxu2 %v10948_v11  ;;  %v1405_v11 = vperm.slane %v14385_v10, 2 }
 0x396   :  { %v10401_v16 = vld [vmem:[#allocation10 + $0xba8] sm:$0xf0] }
 0x397   :  { %v13715_v8 = vld [vmem:[#allocation10 + $0xd8c] sm:$0xf]  ;;  %v10404_v21 = vor.u32 %v13651_v12, %v10401_v16  ;;  %7216 = vmatpush.bf16.msrb.mxu3 %v10148_v20  ;;  %v6964_v20 = vpop.f32.mrf.mxu3 }
 0x398   :  { %v10657_v3 = vld [vmem:[#allocation10 + $0xda8] sm:$0xf0] }
 0x399   :  { %v13779_v17 = vld [vmem:[#allocation10 + $0xf8c] sm:$0xf]  ;;  %v10660_v14 = vor.u32 %v13715_v8, %v10657_v3  ;;  %7229 = vmatpush.bf16.msra.mxu0 %v10404_v21 }
 0x39a   :  { %v10913_v18 = vld [vmem:[#allocation10 + $0xfa8] sm:$0xf0] }
 0x39b   :  { %v13579_v22 = vld [vmem:[#allocation10 + $0x94c] sm:$0xf]  ;;  %v10916_v15 = vor.u32 %v13779_v17, %v10913_v18  ;;  %7242 = vmatpush.bf16.msra.mxu1 %v10660_v14  ;;  %v6965_v14 = vadd.f32 %v6964_v20, %v1405_v11 }
 0x39c   :  { %v10113_v5 = vld [vmem:[#allocation10 + $0x968] sm:$0xf0] }
 0x39d   :  { %v13643_v24 = vld [vmem:[#allocation10 + $0xb4c] sm:$0xf]  ;;  %v10116_v33 = vor.u32 %v13579_v22, %v10113_v5  ;;  %7255 = vmatpush.bf16.msra.mxu2 %v10916_v15  ;;  %v7003_v15 = vpop.f32.mrf.mxu2 }
 0x39e   :  { %v10369_v25 = vld [vmem:[#allocation10 + $0xb68] sm:$0xf0] }
 0x39f   :  { %v13707_v26 = vld [vmem:[#allocation10 + $0xd4c] sm:$0xf]  ;;  %v10372_v34 = vor.u32 %v13643_v24, %v10369_v25  ;;  %7217 = vmatpush.bf16.msrb.mxu3 %v10116_v33 }
 0x3a0   :  { %v10625_v28 = vld [vmem:[#allocation10 + $0xd68] sm:$0xf0] }
 0x3a1   :  { %v13771_v31 = vld [vmem:[#allocation10 + $0xf4c] sm:$0xf]  ;;  %v10628_v37 = vor.u32 %v13707_v26, %v10625_v28  ;;  %7230 = vmatpush.bf16.msra.mxu0 %v10372_v34  ;;  %v6979_v28 = vpop.f32.mrf.mxu0 }
 0x3a2   :  { %v10881_v32 = vld [vmem:[#allocation10 + $0xf68] sm:$0xf0] }
 0x3a3   :  { %v13571_v35 = vld [vmem:[#allocation10 + $0x90c] sm:$0xf]  ;;  %v10884_v27 = vor.u32 %v13771_v31, %v10881_v32  ;;  %7243 = vmatpush.bf16.msra.mxu1 %v10628_v37  ;;  %v6978_v31 = vadd.f32 %v6977_v48, %v6965_v14  ;;  %v6992_v32 = vpop.f32.mrf.mxu1 }
 0x3a4   :  { %v10081_v36 = vld [vmem:[#allocation10 + $0x928] sm:$0xf0] }
 0x3a5   :  { %v13635_v29 = vld [vmem:[#allocation10 + $0xb0c] sm:$0xf]  ;;  %v10084_v63 = vor.u32 %v13571_v35, %v10081_v36  ;;  %7256 = vmatpush.bf16.msra.mxu2 %v10884_v27  ;;  %v7005_v10 = vpop.f32.mrf.mxu2 }
 0x3a6   :  { %v10337_v23 = vld [vmem:[#allocation10 + $0xb28] sm:$0xf0] }
 0x3a7   :  { %v13699_v30 = vld [vmem:[#allocation10 + $0xd0c] sm:$0xf]  ;;  %v10340_v0 = vor.u32 %v13635_v29, %v10337_v23  ;;  %7218 = vmatpush.bf16.msrb.mxu3 %v10084_v63 }
 0x3a8   :  { %v10593_v40 = vld [vmem:[#allocation10 + $0xd28] sm:$0xf0] }
 0x3a9   :  { %v13763_v41 = vld [vmem:[#allocation10 + $0xf0c] sm:$0xf]  ;;  %v10596_v6 = vor.u32 %v13699_v30, %v10593_v40  ;;  %7231 = vmatpush.bf16.msra.mxu0 %v10340_v0  ;;  %v6991_v40 = vadd.f32 %v6990_v58, %v6978_v31 }
 0x3aa   :  { %v10849_v47 = vld [vmem:[#allocation10 + $0xf28] sm:$0xf0] }
 0x3ab   :  { %v13563_v1 = vld [vmem:[#allocation10 + $0x8cc] sm:$0xf]  ;;  %v10852_v7 = vor.u32 %v13763_v41, %v10849_v47  ;;  %7244 = vmatpush.bf16.msra.mxu1 %v10596_v6 }
 0x3ac   :  { %v10049_v2 = vld [vmem:[#allocation10 + $0x8e8] sm:$0xf0] }
 0x3ad   :  { %v13627_v4 = vld [vmem:[#allocation10 + $0xacc] sm:$0xf]  ;;  %v10052_v12 = vor.u32 %v13563_v1, %v10049_v2  ;;  %7257 = vmatpush.bf16.msra.mxu2 %v10852_v7  ;;  %v14836_v1 = vadd.f32 %v7003_v15, %v6991_v40 }
 0x3ae   :  { %v10305_v55 = vld [vmem:[#allocation10 + $0xae8] sm:$0xf0] }
 0x3af   :  { %v13691_v52 = vld [vmem:[#allocation10 + $0xccc] sm:$0xf]  ;;  %v10308_v16 = vor.u32 %v13627_v4, %v10305_v55  ;;  %7219 = vmatpush.bf16.msrb.mxu3 %v10052_v12 }
 0x3b0   :  { %v10561_v62 = vld [vmem:[#allocation10 + $0xce8] sm:$0xf0] }
 0x3b1   :  { %v13755_v61 = vld [vmem:[#allocation10 + $0xecc] sm:$0xf]  ;;  %v10564_v17 = vor.u32 %v13691_v52, %v10561_v62  ;;  %7232 = vmatpush.bf16.msra.mxu0 %v10308_v16  ;;  %v6966_v62 = vpop.f32.mrf.mxu3 }
 0x3b2   :  { %v10817_v9 = vld [vmem:[#allocation10 + $0xee8] sm:$0xf0] }
 0x3b3   :  { %v13555_v8 = vld [vmem:[#allocation10 + $0x88c] sm:$0xf]  ;;  %v10820_v18 = vor.u32 %v13755_v61, %v10817_v9  ;;  %7245 = vmatpush.bf16.msra.mxu1 %v10564_v17 }
 0x3b4   :  { %v10017_v3 = vld [vmem:[#allocation10 + $0x8a8] sm:$0xf0] }
 0x3b5   :  { %v13619_v21 = vld [vmem:[#allocation10 + $0xa8c] sm:$0xf]  ;;  %v10020_v33 = vor.u32 %v13555_v8, %v10017_v3  ;;  %7258 = vmatpush.bf16.msra.mxu2 %v10820_v18 }
 0x3b6   :  { %v10273_v22 = vld [vmem:[#allocation10 + $0xaa8] sm:$0xf0] }
 0x3b7   :  { %v13683_v5 = vld [vmem:[#allocation10 + $0xc8c] sm:$0xf]  ;;  %v10276_v34 = vor.u32 %v13619_v21, %v10273_v22  ;;  %7220 = vmatpush.bf16.msrb.mxu3 %v10020_v33 }
 0x3b8   :  { %v10529_v24 = vld [vmem:[#allocation10 + $0xca8] sm:$0xf0] }
 0x3b9   :  { %v13747_v25 = vld [vmem:[#allocation10 + $0xe8c] sm:$0xf]  ;;  %v10532_v37 = vor.u32 %v13683_v5, %v10529_v24  ;;  %7233 = vmatpush.bf16.msra.mxu0 %v10276_v34 }
 0x3ba   :  { %v10785_v26 = vld [vmem:[#allocation10 + $0xea8] sm:$0xf0] }
 0x3bb   :  { %v13547_v35 = vld [vmem:[#allocation10 + $0x84c] sm:$0xf]  ;;  %v10788_v27 = vor.u32 %v13747_v25, %v10785_v26  ;;  %7246 = vmatpush.bf16.msra.mxu1 %v10532_v37 }
 0x3bc   :  { %v9985_v36 = vld [vmem:[#allocation10 + $0x868] sm:$0xf0] }
 0x3bd   :  { %v13611_v29 = vld [vmem:[#allocation10 + $0xa4c] sm:$0xf]  ;;  %v9988_v48 = vor.u32 %v13547_v35, %v9985_v36  ;;  %7259 = vmatpush.bf16.msra.mxu2 %v10788_v27 }
 0x3be   :  { %v10241_v23 = vld [vmem:[#allocation10 + $0xa68] sm:$0xf0] }
 0x3bf   :  { %v13675_v30 = vld [vmem:[#allocation10 + $0xc4c] sm:$0xf]  ;;  %v10244_v2 = vor.u32 %v13611_v29, %v10241_v23  ;;  %7221 = vmatpush.bf16.msrb.mxu3 %v9988_v48 }
 0x3c0   :  { %v10497_v41 = vld [vmem:[#allocation10 + $0xc68] sm:$0xf0] }
 0x3c1   :  { %v13739_v47 = vld [vmem:[#allocation10 + $0xe4c] sm:$0xf]  ;;  %v10500_v55 = vor.u32 %v13675_v30, %v10497_v41  ;;  %7234 = vmatpush.bf16.msra.mxu0 %v10244_v2 }
 0x3c2   :  { %v10753_v63 = vld [vmem:[#allocation10 + $0xe68] sm:$0xf0] }
 0x3c3   :  { %v13539_v0 = vld [vmem:[#allocation10 + $0x80c] sm:$0xf]  ;;  %v10756_v52 = vor.u32 %v13739_v47, %v10753_v63  ;;  %7247 = vmatpush.bf16.msra.mxu1 %v10500_v55 }
 0x3c4   :  { %v9953_v4 = vld [vmem:[#allocation10 + $0x828] sm:$0xf0] }
 0x3c5   :  { %v13603_v6 = vld [vmem:[#allocation10 + $0xa0c] sm:$0xf]  ;;  %v9956_v18 = vor.u32 %v13539_v0, %v9953_v4  ;;  %7260 = vmatpush.bf16.msra.mxu2 %v10756_v52 }
 0x3c6   :  { %v10209_v7 = vld [vmem:[#allocation10 + $0xa28] sm:$0xf0] }
 0x3c7   :  { %v13667_v61 = vld [vmem:[#allocation10 + $0xc0c] sm:$0xf]  ;;  %v10212_v20 = vor.u32 %v13603_v6, %v10209_v7  ;;  %7222 = vmatpush.bf16.msrb.mxu3 %v9956_v18 }
 0x3c8   :  { %v10465_v58 = vld [vmem:[#allocation10 + $0xc28] sm:$0xf0] }
 0x3c9   :  { %v13731_v9 = vld [vmem:[#allocation10 + $0xe0c] sm:$0xf]  ;;  %v10468_v14 = vor.u32 %v13667_v61, %v10465_v58  ;;  %7235 = vmatpush.bf16.msra.mxu0 %v10212_v20 }
 0x3ca   :  { %v10721_v11 = vld [vmem:[#allocation10 + $0xe28] sm:$0xf0]  ;;  %7223 = vmatmul.bf16.vlgmr.msrb.gmra.mxu3 %v14738_v38 }
 0x3cb   :  { %v13851_v12 = vld [vmem:[#allocation10 + $0x11cc] sm:$0xf]  ;;  %v10724_v15 = vor.u32 %v13731_v9, %v10721_v11  ;;  %7248 = vmatpush.bf16.msra.mxu1 %v10468_v14 }
 0x3cc   :  { %v11201_v16 = vld [vmem:[#allocation10 + $0x11e8] sm:$0xf0]  ;;  %7236 = vmatmul.bf16.vlgmr.msra.gmra.mxu0 %v14742_v39 }
 0x3cd   :  { %v13915_v8 = vld [vmem:[#allocation10 + $0x13cc] sm:$0xf]  ;;  %v11204_v24 = vor.u32 %v13851_v12, %v11201_v16  ;;  %7261 = vmatpush.bf16.msra.mxu2 %v10724_v15 }
 0x3ce   :  { %v11457_v3 = vld [vmem:[#allocation10 + $0x13e8] sm:$0xf0]  ;;  %7249 = vmatmul.bf16.vlgmr.msra.gmra.mxu1 %v14746_v43 }
 0x3cf   :  { %v13979_v17 = vld [vmem:[#allocation10 + $0x15cc] sm:$0xf]  ;;  %v11460_v25 = vor.u32 %v13915_v8, %v11457_v3  ;;  %7267 = vmatpush.bf16.msra.mxu3 %v11204_v24  ;;  %v7029_v3 = vpop.f32.mrf.mxu0 }
 0x3d0   :  { %v11713_v21 = vld [vmem:[#allocation10 + $0x15e8] sm:$0xf0]  ;;  %7262 = vmatmul.bf16.vlgmr.msra.gmra.mxu2 %v14750_v44 }
 0x3d1   :  { %v14043_v22 = vld [vmem:[#allocation10 + $0x17cc] sm:$0xf]  ;;  %v11716_v31 = vor.u32 %v13979_v17, %v11713_v21  ;;  %7280 = vmatpush.bf16.msrb.mxu0 %v11460_v25  ;;  %v7042_v17 = vpop.f32.mrf.mxu1 }
 0x3d2   :  { %v11969_v5 = vld [vmem:[#allocation10 + $0x17e8] sm:$0xf0] }
 0x3d3   :  { %v13843_v26 = vld [vmem:[#allocation10 + $0x118c] sm:$0xf]  ;;  %v11972_v32 = vor.u32 %v14043_v22, %v11969_v5  ;;  %7293 = vmatpush.bf16.msrb.mxu1 %v11716_v31 }
 0x3d4   :  { %v11169_v28 = vld [vmem:[#allocation10 + $0x11a8] sm:$0xf0] }
 0x3d5   :  { %v13907_v33 = vld [vmem:[#allocation10 + $0x138c] sm:$0xf]  ;;  %v11172_v29 = vor.u32 %v13843_v26, %v11169_v28  ;;  %7306 = vmatpush.bf16.msrb.mxu2 %v11972_v32 }
 0x3d6   :  { %v11425_v34 = vld [vmem:[#allocation10 + $0x13a8] sm:$0xf0] }
 0x3d7   :  { %v13971_v35 = vld [vmem:[#allocation10 + $0x158c] sm:$0xf]  ;;  %v11428_v23 = vor.u32 %v13907_v33, %v11425_v34  ;;  %7268 = vmatpush.bf16.msra.mxu3 %v11172_v29 }
 0x3d8   :  { %v11681_v36 = vld [vmem:[#allocation10 + $0x15a8] sm:$0xf0] }
 0x3d9   :  { %v14035_v37 = vld [vmem:[#allocation10 + $0x178c] sm:$0xf]  ;;  %v11684_v41 = vor.u32 %v13971_v35, %v11681_v36  ;;  %7281 = vmatpush.bf16.msrb.mxu0 %v11428_v23 }
 0x3da   :  { %v11937_v27 = vld [vmem:[#allocation10 + $0x17a8] sm:$0xf0] }
 0x3db   :  { %v13835_v30 = vld [vmem:[#allocation10 + $0x114c] sm:$0xf]  ;;  %v11940_v47 = vor.u32 %v14035_v37, %v11937_v27  ;;  %7294 = vmatpush.bf16.msrb.mxu1 %v11684_v41  ;;  %v7016_v27 = vpop.f32.mrf.mxu3  ;;  %v7055_v41 = vpop.f32.mrf.mxu2 }
 0x3dc   :  { %v11137_v40 = vld [vmem:[#allocation10 + $0x1168] sm:$0xf0] }
 0x3dd   :  { %v13899_v63 = vld [vmem:[#allocation10 + $0x134c] sm:$0xf]  ;;  %v11140_v7 = vor.u32 %v13835_v30, %v11137_v40  ;;  %7307 = vmatpush.bf16.msrb.mxu2 %v11940_v47  ;;  %v7017_v40 = vadd.f32 %v7016_v27, %v14836_v1 }
 0x3de   :  { %v11393_v0 = vld [vmem:[#allocation10 + $0x1368] sm:$0xf0] }
 0x3df   :  { %v13963_v48 = vld [vmem:[#allocation10 + $0x154c] sm:$0xf]  ;;  %v11396_v55 = vor.u32 %v13899_v63, %v11393_v0  ;;  %7269 = vmatpush.bf16.msra.mxu3 %v11140_v7 }
 0x3e0   :  { %v11649_v2 = vld [vmem:[#allocation10 + $0x1568] sm:$0xf0] }
 0x3e1   :  { %v14027_v4 = vld [vmem:[#allocation10 + $0x174c] sm:$0xf]  ;;  %v11652_v61 = vor.u32 %v13963_v48, %v11649_v2  ;;  %7282 = vmatpush.bf16.msrb.mxu0 %v11396_v55  ;;  %v7031_v48 = vpop.f32.mrf.mxu0  ;;  %v7030_v2 = vadd.f32 %v7029_v3, %v7017_v40 }
 0x3e2   :  { %v11905_v6 = vld [vmem:[#allocation10 + $0x1768] sm:$0xf0] }
 0x3e3   :  { %v13827_v52 = vld [vmem:[#allocation10 + $0x110c] sm:$0xf]  ;;  %v11908_v58 = vor.u32 %v14027_v4, %v11905_v6  ;;  %7295 = vmatpush.bf16.msrb.mxu1 %v11652_v61  ;;  %v7044_v4 = vpop.f32.mrf.mxu1 }
 0x3e4   :  { %v11105_v62 = vld [vmem:[#allocation10 + $0x1128] sm:$0xf0] }
 0x3e5   :  { %v13891_v9 = vld [vmem:[#allocation10 + $0x130c] sm:$0xf]  ;;  %v11108_v18 = vor.u32 %v13827_v52, %v11105_v62  ;;  %7308 = vmatpush.bf16.msrb.mxu2 %v11908_v58 }
 0x3e6   :  { %v11361_v10 = vld [vmem:[#allocation10 + $0x1328] sm:$0xf0] }
 0x3e7   :  { %v13955_v11 = vld [vmem:[#allocation10 + $0x150c] sm:$0xf]  ;;  %v11364_v20 = vor.u32 %v13891_v9, %v11361_v10  ;;  %7270 = vmatpush.bf16.msra.mxu3 %v11108_v18  ;;  %v7043_v10 = vadd.f32 %v7042_v17, %v7030_v2 }
 0x3e8   :  { %v11617_v12 = vld [vmem:[#allocation10 + $0x1528] sm:$0xf0] }
 0x3e9   :  { %v14019_v16 = vld [vmem:[#allocation10 + $0x170c] sm:$0xf]  ;;  %v11620_v5 = vor.u32 %v13955_v11, %v11617_v12  ;;  %7283 = vmatpush.bf16.msrb.mxu0 %v11364_v20  ;;  %v14843_v18 = vadd.f32 %v7055_v41, %v7043_v10 }
 0x3ea   :  { %v11873_v8 = vld [vmem:[#allocation10 + $0x1728] sm:$0xf0] }
 0x3eb   :  { %v13819_v21 = vld [vmem:[#allocation10 + $0x10cc] sm:$0xf]  ;;  %v11876_v14 = vor.u32 %v14019_v16, %v11873_v8  ;;  %7296 = vmatpush.bf16.msrb.mxu1 %v11620_v5 }
 0x3ec   :  { %v11073_v22 = vld [vmem:[#allocation10 + $0x10e8] sm:$0xf0] }
 0x3ed   :  { %v13883_v15 = vld [vmem:[#allocation10 + $0x12cc] sm:$0xf]  ;;  %v11076_v32 = vor.u32 %v13819_v21, %v11073_v22  ;;  %7309 = vmatpush.bf16.msrb.mxu2 %v11876_v14 }
 0x3ee   :  { %v11329_v24 = vld [vmem:[#allocation10 + $0x12e8] sm:$0xf0] }
 0x3ef   :  { %v13947_v25 = vld [vmem:[#allocation10 + $0x14cc] sm:$0xf]  ;;  %v11332_v33 = vor.u32 %v13883_v15, %v11329_v24  ;;  %7271 = vmatpush.bf16.msra.mxu3 %v11076_v32  ;;  %v7018_v24 = vpop.f32.mrf.mxu3 }
 0x3f0   :  { %v11585_v26 = vld [vmem:[#allocation10 + $0x14e8] sm:$0xf0] }
 0x3f1   :  { %v14011_v28 = vld [vmem:[#allocation10 + $0x16cc] sm:$0xf]  ;;  %v11588_v36 = vor.u32 %v13947_v25, %v11585_v26  ;;  %7284 = vmatpush.bf16.msrb.mxu0 %v11332_v33 }
 0x3f2   :  { %v11841_v31 = vld [vmem:[#allocation10 + $0x16e8] sm:$0xf0] }
 0x3f3   :  { %v13811_v34 = vld [vmem:[#allocation10 + $0x108c] sm:$0xf]  ;;  %v11844_v37 = vor.u32 %v14011_v28, %v11841_v31  ;;  %7297 = vmatpush.bf16.msrb.mxu1 %v11588_v36  ;;  %v7057_v28 = vpop.f32.mrf.mxu2 }
 0x3f4   :  { %v11041_v35 = vld [vmem:[#allocation10 + $0x10a8] sm:$0xf0] }
 0x3f5   :  { %v13875_v29 = vld [vmem:[#allocation10 + $0x128c] sm:$0xf]  ;;  %v11044_v6 = vor.u32 %v13811_v34, %v11041_v35  ;;  %7310 = vmatpush.bf16.msrb.mxu2 %v11844_v37 }
 0x3f6   :  { %v11297_v23 = vld [vmem:[#allocation10 + $0x12a8] sm:$0xf0] }
 0x3f7   :  { %v13939_v30 = vld [vmem:[#allocation10 + $0x148c] sm:$0xf]  ;;  %v11300_v7 = vor.u32 %v13875_v29, %v11297_v23  ;;  %7272 = vmatpush.bf16.msra.mxu3 %v11044_v6 }
 0x3f8   :  { %v11553_v47 = vld [vmem:[#allocation10 + $0x14a8] sm:$0xf0] }
 0x3f9   :  { %v14003_v63 = vld [vmem:[#allocation10 + $0x168c] sm:$0xf]  ;;  %v11556_v62 = vor.u32 %v13939_v30, %v11553_v47  ;;  %7285 = vmatpush.bf16.msrb.mxu0 %v11300_v7 }
 0x3fa   :  { %v11809_v0 = vld [vmem:[#allocation10 + $0x16a8] sm:$0xf0] }
 0x3fb   :  { %v13803_v55 = vld [vmem:[#allocation10 + $0x104c] sm:$0xf]  ;;  %v11812_v61 = vor.u32 %v14003_v63, %v11809_v0  ;;  %7298 = vmatpush.bf16.msrb.mxu1 %v11556_v62 }
 0x3fc   :  { %v11009_v52 = vld [vmem:[#allocation10 + $0x1068] sm:$0xf0] }
 0x3fd   :  { %v13867_v58 = vld [vmem:[#allocation10 + $0x124c] sm:$0xf]  ;;  %v11012_v3 = vor.u32 %v13803_v55, %v11009_v52  ;;  %7311 = vmatpush.bf16.msrb.mxu2 %v11812_v61 }
 0x3fe   :  { %v11265_v9 = vld [vmem:[#allocation10 + $0x1268] sm:$0xf0] }
 0x3ff   :  { %v13931_v1 = vld [vmem:[#allocation10 + $0x144c] sm:$0xf]  ;;  %v11268_v20 = vor.u32 %v13867_v58, %v11265_v9  ;;  %7273 = vmatpush.bf16.msra.mxu3 %v11012_v3 }
 0x400   :  { %v11521_v11 = vld [vmem:[#allocation10 + $0x1468] sm:$0xf0] }
 0x401   :  { %v13995_v12 = vld [vmem:[#allocation10 + $0x164c] sm:$0xf]  ;;  %v11524_v14 = vor.u32 %v13931_v1, %v11521_v11  ;;  %7286 = vmatpush.bf16.msrb.mxu0 %v11268_v20 }
 0x402   :  { %v11777_v16 = vld [vmem:[#allocation10 + $0x1668] sm:$0xf0] }
 0x403   :  { %v13795_v8 = vld [vmem:[#allocation10 + $0x100c] sm:$0xf]  ;;  %v11780_v15 = vor.u32 %v13995_v12, %v11777_v16  ;;  %7299 = vmatpush.bf16.msrb.mxu1 %v11524_v14 }
 0x404   :  { %v10977_v21 = vld [vmem:[#allocation10 + $0x1028] sm:$0xf0] }
 0x405   :  { %v13859_v22 = vld [vmem:[#allocation10 + $0x120c] sm:$0xf]  ;;  %v10980_v37 = vor.u32 %v13795_v8, %v10977_v21  ;;  %7312 = vmatpush.bf16.msrb.mxu2 %v11780_v15 }
 0x406   :  { %v11233_v5 = vld [vmem:[#allocation10 + $0x1228] sm:$0xf0] }
 0x407   :  { %v13923_v25 = vld [vmem:[#allocation10 + $0x140c] sm:$0xf]  ;;  %v11236_v27 = vor.u32 %v13859_v22, %v11233_v5  ;;  %7274 = vmatpush.bf16.msra.mxu3 %v10980_v37 }
 0x408   :  { %v11489_v17 = vld [vmem:[#allocation10 + $0x1428] sm:$0xf0] }
 0x409   :  { %v13987_v26 = vld [vmem:[#allocation10 + $0x160c] sm:$0xf]  ;;  %v11492_v40 = vor.u32 %v13923_v25, %v11489_v17  ;;  %7287 = vmatpush.bf16.msrb.mxu0 %v11236_v27 }
 0x40a   :  { %v11745_v31 = vld [vmem:[#allocation10 + $0x1628] sm:$0xf0]  ;;  %7275 = vmatmul.bf16.vlgmr.msra.gmra.mxu3 %v14756_v53 }
 0x40b   :  { %v14107_v32 = vld [vmem:[#allocation10 + $0x19cc] sm:$0xf]  ;;  %v11748_v41 = vor.u32 %v13987_v26, %v11745_v31  ;;  %7300 = vmatpush.bf16.msrb.mxu1 %v11492_v40 }
 0x40c   :  { %v12225_v33 = vld [vmem:[#allocation10 + $0x19e8] sm:$0xf0]  ;;  %7288 = vmatmul.bf16.vlgmr.msrb.gmra.mxu0 %v14758_v54 }
 0x40d   :  { %v14171_v34 = vld [vmem:[#allocation10 + $0x1bcc] sm:$0xf]  ;;  %v12228_v47 = vor.u32 %v14107_v32, %v12225_v33  ;;  %7313 = vmatpush.bf16.msrb.mxu2 %v11748_v41 }
 0x40e   :  { %v12481_v35 = vld [vmem:[#allocation10 + $0x1be8] sm:$0xf0]  ;;  %7301 = vmatmul.bf16.vlgmr.msrb.gmra.mxu1 %v14760_v59 }
 0x40f   :  { %v14235_v36 = vld [vmem:[#allocation10 + $0x1dcc] sm:$0xf]  ;;  %v12484_v63 = vor.u32 %v14171_v34, %v12481_v35  ;;  %7319 = vmatpush.bf16.msrb.mxu3 %v12228_v47  ;;  %v7081_v35 = vpop.f32.mrf.mxu0 }
 0x410   :  { %v12737_v29 = vld [vmem:[#allocation10 + $0x1de8] sm:$0xf0]  ;;  %7314 = vmatmul.bf16.vlgmr.msrb.gmra.mxu2 %v14762_v60 }
 0x411   :  { %v14299_v23 = vld [vmem:[#allocation10 + $0x1fcc] sm:$0xf]  ;;  %v12740_v2 = vor.u32 %v14235_v36, %v12737_v29  ;;  %7332 = vmatpush.bf16.msra.mxu0 %v12484_v63  ;;  %v7094_v36 = vpop.f32.mrf.mxu1 }
 0x412   :  { %v12993_v30 = vld [vmem:[#allocation10 + $0x1fe8] sm:$0xf0] }
 0x413   :  { %v14099_v0 = vld [vmem:[#allocation10 + $0x198c] sm:$0xf]  ;;  %v12996_v4 = vor.u32 %v14299_v23, %v12993_v30  ;;  %7345 = vmatpush.bf16.msra.mxu1 %v12740_v2 }
 0x414   :  { %v12193_v48 = vld [vmem:[#allocation10 + $0x19a8] sm:$0xf0] }
 0x415   :  { %v14163_v6 = vld [vmem:[#allocation10 + $0x1b8c] sm:$0xf]  ;;  %v12196_v58 = vor.u32 %v14099_v0, %v12193_v48  ;;  %7358 = vmatpush.bf16.msra.mxu2 %v12996_v4 }
 0x416   :  { %v12449_v7 = vld [vmem:[#allocation10 + $0x1ba8] sm:$0xf0] }
 0x417   :  { %v14227_v55 = vld [vmem:[#allocation10 + $0x1d8c] sm:$0xf]  ;;  %v12452_v9 = vor.u32 %v14163_v6, %v12449_v7  ;;  %7320 = vmatpush.bf16.msrb.mxu3 %v12196_v58 }
 0x418   :  { %v12705_v52 = vld [vmem:[#allocation10 + $0x1da8] sm:$0xf0] }
 0x419   :  { %v14291_v62 = vld [vmem:[#allocation10 + $0x1f8c] sm:$0xf]  ;;  %v12708_v11 = vor.u32 %v14227_v55, %v12705_v52  ;;  %7333 = vmatpush.bf16.msra.mxu0 %v12452_v9 }
 0x41a   :  { %v12961_v61 = vld [vmem:[#allocation10 + $0x1fa8] sm:$0xf0] }
 0x41b   :  { %v14091_v1 = vld [vmem:[#allocation10 + $0x194c] sm:$0xf]  ;;  %v12964_v12 = vor.u32 %v14291_v62, %v12961_v61  ;;  %7346 = vmatpush.bf16.msra.mxu1 %v12708_v11  ;;  %v7068_v61 = vpop.f32.mrf.mxu3  ;;  %v7107_v11 = vpop.f32.mrf.mxu2 }
 0x41c   :  { %v12161_v10 = vld [vmem:[#allocation10 + $0x1968] sm:$0xf0] }
 0x41d   :  { %v14155_v16 = vld [vmem:[#allocation10 + $0x1b4c] sm:$0xf]  ;;  %v12164_v5 = vor.u32 %v14091_v1, %v12161_v10  ;;  %7359 = vmatpush.bf16.msra.mxu2 %v12964_v12  ;;  %v7069_v10 = vadd.f32 %v7068_v61, %v14843_v18 }
 0x41e   :  { %v12417_v8 = vld [vmem:[#allocation10 + $0x1b68] sm:$0xf0] }
 0x41f   :  { %v14219_v3 = vld [vmem:[#allocation10 + $0x1d4c] sm:$0xf]  ;;  %v12420_v14 = vor.u32 %v14155_v16, %v12417_v8  ;;  %7321 = vmatpush.bf16.msrb.mxu3 %v12164_v5 }
 0x420   :  { %v12673_v20 = vld [vmem:[#allocation10 + $0x1d68] sm:$0xf0] }
 0x421   :  { %v14283_v21 = vld [vmem:[#allocation10 + $0x1f4c] sm:$0xf]  ;;  %v12676_v25 = vor.u32 %v14219_v3, %v12673_v20  ;;  %7334 = vmatpush.bf16.msra.mxu0 %v12420_v14  ;;  %v7083_v3 = vpop.f32.mrf.mxu0  ;;  %v7082_v20 = vadd.f32 %v7081_v35, %v7069_v10 }
 0x422   :  { %v12929_v22 = vld [vmem:[#allocation10 + $0x1f68] sm:$0xf0]  ;;  %v13336_v3 = vld [vmem:[#allocation10 + $0x1ac] sm:$0xf0] }
 0x423   :  { %v14083_v15 = vld [vmem:[#allocation10 + $0x190c] sm:$0xf]  ;;  %v12932_v17 = vor.u32 %v14283_v21, %v12929_v22  ;;  %7347 = vmatpush.bf16.msra.mxu1 %v12676_v25  ;;  %v7096_v21 = vpop.f32.mrf.mxu1 }
 0x424   :  { %v12129_v24 = vld [vmem:[#allocation10 + $0x1928] sm:$0xf0] }
 0x425   :  { %v14147_v26 = vld [vmem:[#allocation10 + $0x1b0c] sm:$0xf]  ;;  %v12132_v37 = vor.u32 %v14083_v15, %v12129_v24  ;;  %7360 = vmatpush.bf16.msra.mxu2 %v12932_v17 }
 0x426   :  { %v12385_v28 = vld [vmem:[#allocation10 + $0x1b28] sm:$0xf0] }
 0x427   :  { %v14211_v31 = vld [vmem:[#allocation10 + $0x1d0c] sm:$0xf]  ;;  %v12388_v27 = vor.u32 %v14147_v26, %v12385_v28  ;;  %7322 = vmatpush.bf16.msrb.mxu3 %v12132_v37  ;;  %v7095_v28 = vadd.f32 %v7094_v36, %v7082_v20 }
 0x428   :  { %v12641_v32 = vld [vmem:[#allocation10 + $0x1d28] sm:$0xf0] }
 0x429   :  { %v14275_v33 = vld [vmem:[#allocation10 + $0x1f0c] sm:$0xf]  ;;  %v12644_v30 = vor.u32 %v14211_v31, %v12641_v32  ;;  %7335 = vmatpush.bf16.msra.mxu0 %v12388_v27  ;;  %v14850_v37 = vadd.f32 %v7107_v11, %v7095_v28  ;;  %v13328_v28 = vld [vmem:[#allocation10 + $0x16c] sm:$0xf0] }
 0x42a   :  { %v12897_v34 = vld [vmem:[#allocation10 + $0x1f28] sm:$0xf0] }
 0x42b   :  { %v14075_v29 = vld [vmem:[#allocation10 + $0x18cc] sm:$0xf]  ;;  %v12900_v40 = vor.u32 %v14275_v33, %v12897_v34  ;;  %7348 = vmatpush.bf16.msra.mxu1 %v12644_v30 }
 0x42c   :  { %v12097_v23 = vld [vmem:[#allocation10 + $0x18e8] sm:$0xf0] }
 0x42d   :  { %v14139_v41 = vld [vmem:[#allocation10 + $0x1acc] sm:$0xf]  ;;  %v12100_v4 = vor.u32 %v14075_v29, %v12097_v23  ;;  %7361 = vmatpush.bf16.msra.mxu2 %v12900_v40 }
 0x42e   :  { %v12353_v47 = vld [vmem:[#allocation10 + $0x1ae8] sm:$0xf0] }
 0x42f   :  { %v14203_v63 = vld [vmem:[#allocation10 + $0x1ccc] sm:$0xf]  ;;  %v12356_v6 = vor.u32 %v14139_v41, %v12353_v47  ;;  %7323 = vmatpush.bf16.msrb.mxu3 %v12100_v4  ;;  %v7070_v47 = vpop.f32.mrf.mxu3  ;;  %v9159_v4 = vld [vmem:[#allocation10 + $0x1d0] sm:$0xf] }
 0x430   :  { %v12609_v0 = vld [vmem:[#allocation10 + $0x1ce8] sm:$0xf0]  ;;  %v13320_v47 = vld [vmem:[#allocation10 + $0x12c] sm:$0xf0] }
 0x431   :  { %v14267_v48 = vld [vmem:[#allocation10 + $0x1ecc] sm:$0xf]  ;;  %v12612_v52 = vor.u32 %v14203_v63, %v12609_v0  ;;  %7336 = vmatpush.bf16.msra.mxu0 %v12356_v6  ;;  %v13344_v6 = vld [vmem:[#allocation10 + $0x1ec] sm:$0xf0] }
 0x432   :  { %v12865_v2 = vld [vmem:[#allocation10 + $0x1ee8] sm:$0xf0] }
 0x433   :  { %v14067_v7 = vld [vmem:[#allocation10 + $0x188c] sm:$0xf]  ;;  %v12868_v62 = vor.u32 %v14267_v48, %v12865_v2  ;;  %7349 = vmatpush.bf16.msra.mxu1 %v12612_v52  ;;  %v7109_v48 = vpop.f32.mrf.mxu2  ;;  %v9671_v52 = vld [vmem:[#allocation10 + $0x5d0] sm:$0xf] }
 0x434   :  { %v12065_v55 = vld [vmem:[#allocation10 + $0x18a8] sm:$0xf0]  ;;  %v13384_v48 = vld [vmem:[#allocation10 + $0x32c] sm:$0xf0] }
 0x435   :  { %v14131_v58 = vld [vmem:[#allocation10 + $0x1a8c] sm:$0xf]  ;;  %v12068_v22 = vor.u32 %v14067_v7, %v12065_v55  ;;  %7362 = vmatpush.bf16.msra.mxu2 %v12868_v62  ;;  %v9415_v7 = vld [vmem:[#allocation10 + $0x3d0] sm:$0xf] }
 0x436   :  { %v12321_v9 = vld [vmem:[#allocation10 + $0x1aa8] sm:$0xf0]  ;;  %v13408_v55 = vld [vmem:[#allocation10 + $0x3ec] sm:$0xf0] }
 0x437   :  { %v14195_v1 = vld [vmem:[#allocation10 + $0x1c8c] sm:$0xf]  ;;  %v12324_v5 = vor.u32 %v14131_v58, %v12321_v9  ;;  %7324 = vmatpush.bf16.msrb.mxu3 %v12068_v22  ;;  %v13472_v58 = vld [vmem:[#allocation10 + $0x5ec] sm:$0xf0] }
 0x438   :  { %v12577_v12 = vld [vmem:[#allocation10 + $0x1ca8] sm:$0xf0]  ;;  %v9927_v9 = vld [vmem:[#allocation10 + $0x7d0] sm:$0xf]  ;;  %v9672_v20 = vor.u32 %v13472_v58, %v9671_v52  ;;  %v7146_v52 = vpop.f32.mrf.mxu1 }
 0x439   :  { %v14259_v16 = vld [vmem:[#allocation10 + $0x1e8c] sm:$0xf]  ;;  %v12580_v24 = vor.u32 %v14195_v1, %v12577_v12  ;;  %7337 = vmatpush.bf16.msra.mxu0 %v12324_v5  ;;  %v13536_v1 = vld [vmem:[#allocation10 + $0x7ec] sm:$0xf0]  ;;  %v9160_v12 = vor.u32 %v13344_v6, %v9159_v4 }
 0x43a   :  { %v12833_v8 = vld [vmem:[#allocation10 + $0x1ea8] sm:$0xf0]  ;;  %v9928_v21 = vor.u32 %v13536_v1, %v9927_v9  ;;  %v9383_v22 = vld [vmem:[#allocation10 + $0x390] sm:$0xf] }
 0x43b   :  { %v14059_v14 = vld [vmem:[#allocation10 + $0x184c] sm:$0xf]  ;;  %v12836_v25 = vor.u32 %v14259_v16, %v12833_v8  ;;  %7350 = vmatpush.bf16.msra.mxu1 %v12580_v24  ;;  %v9416_v16 = vor.u32 %v13408_v55, %v9415_v7  ;;  %v9127_v8 = vld [vmem:[#allocation10 + $0x190] sm:$0xf]  ;;  %v7133_v55 = vpop.f32.mrf.mxu0 }
 0x43c   :  { %v12033_v15 = vld [vmem:[#allocation10 + $0x1868] sm:$0xf0]  ;;  %v13400_v5 = vld [vmem:[#allocation10 + $0x3ac] sm:$0xf0] }
 0x43d   :  { %v14123_v17 = vld [vmem:[#allocation10 + $0x1a4c] sm:$0xf]  ;;  %v12036_v35 = vor.u32 %v14059_v14, %v12033_v15  ;;  %7363 = vmatpush.bf16.msra.mxu2 %v12836_v25  ;;  %v9639_v14 = vld [vmem:[#allocation10 + $0x590] sm:$0xf] }
 0x43e   :  { %v12289_v26 = vld [vmem:[#allocation10 + $0x1a68] sm:$0xf0]  ;;  %v13464_v15 = vld [vmem:[#allocation10 + $0x5ac] sm:$0xf0] }
 0x43f   :  { %v14187_v18 = vld [vmem:[#allocation10 + $0x1c4c] sm:$0xf]  ;;  %v12292_v27 = vor.u32 %v14123_v17, %v12289_v26  ;;  %7325 = vmatpush.bf16.msrb.mxu3 %v12036_v35  ;;  %v9895_v24 = vld [vmem:[#allocation10 + $0x790] sm:$0xf]  ;;  %v9128_v17 = vor.u32 %v13336_v3, %v9127_v8  ;;  %v9384_v26 = vor.u32 %v13400_v5, %v9383_v22 }
 0x440   :  { %v12545_v31 = vld [vmem:[#allocation10 + $0x1c68] sm:$0xf0]  ;;  %v13528_v25 = vld [vmem:[#allocation10 + $0x7ac] sm:$0xf0] }
 0x441   :  { %v14251_v32 = vld [vmem:[#allocation10 + $0x1e4c] sm:$0xf]  ;;  %v12548_v40 = vor.u32 %v14187_v18, %v12545_v31  ;;  %7338 = vmatpush.bf16.msra.mxu0 %v12292_v27  ;;  %v9095_v18 = vld [vmem:[#allocation10 + $0x150] sm:$0xf]  ;;  %v9640_v31 = vor.u32 %v13464_v15, %v9639_v14 }
 0x442   :  { %v12801_v33 = vld [vmem:[#allocation10 + $0x1e68] sm:$0xf0]  ;;  %v9607_v35 = vld [vmem:[#allocation10 + $0x550] sm:$0xf] }
 0x443   :  { %v14051_v34 = vld [vmem:[#allocation10 + $0x180c] sm:$0xf]  ;;  %v12804_v41 = vor.u32 %v14251_v32, %v12801_v33  ;;  %7351 = vmatpush.bf16.msra.mxu1 %v12548_v40  ;;  %v9896_v32 = vor.u32 %v13528_v25, %v9895_v24  ;;  %v9351_v33 = vld [vmem:[#allocation10 + $0x350] sm:$0xf]  ;;  %v7120_v25 = vpop.f32.mrf.mxu3 }
 0x444   :  { %v12001_v29 = vld [vmem:[#allocation10 + $0x1828] sm:$0xf0]  ;;  %v13456_v27 = vld [vmem:[#allocation10 + $0x56c] sm:$0xf0] }
 0x445   :  { %v14115_v23 = vld [vmem:[#allocation10 + $0x1a0c] sm:$0xf]  ;;  %v12004_v62 = vor.u32 %v14051_v34, %v12001_v29  ;;  %7364 = vmatpush.bf16.msra.mxu2 %v12804_v41  ;;  %v13392_v34 = vld [vmem:[#allocation10 + $0x36c] sm:$0xf0] }
 0x446   :  { %v12257_v30 = vld [vmem:[#allocation10 + $0x1a28] sm:$0xf0]  ;;  %v9863_v29 = vld [vmem:[#allocation10 + $0x750] sm:$0xf]  ;;  %v9352_v40 = vor.u32 %v13392_v34, %v9351_v33 }
 0x447   :  { %v14179_v63 = vld [vmem:[#allocation10 + $0x1c0c] sm:$0xf]  ;;  %v12260_v61 = vor.u32 %v14115_v23, %v12257_v30  ;;  %7326 = vmatpush.bf16.msrb.mxu3 %v12004_v62  ;;  %v13520_v23 = vld [vmem:[#allocation10 + $0x76c] sm:$0xf0]  ;;  %v9096_v30 = vor.u32 %v13328_v28, %v9095_v18  ;;  %v7121_v28 = vadd.f32 %v7120_v25, %v14850_v37 }
 0x448   :  { %v12513_v36 = vld [vmem:[#allocation10 + $0x1c28] sm:$0xf0]  ;;  %v9063_v41 = vld [vmem:[#allocation10 + $0x110] sm:$0xf] }
 0x449   :  { %v14243_v0 = vld [vmem:[#allocation10 + $0x1e0c] sm:$0xf]  ;;  %v12516_v10 = vor.u32 %v14179_v63, %v12513_v36  ;;  %7339 = vmatpush.bf16.msra.mxu0 %v12260_v61  ;;  %v9608_v63 = vor.u32 %v13456_v27, %v9607_v35  ;;  %v9864_v36 = vor.u32 %v13520_v23, %v9863_v29  ;;  %v13448_v4 = vld [vmem:[#allocation10 + $0x52c] sm:$0xf0]  ;;  %v9064_v62 = vor.u32 %v13320_v47, %v9063_v41  ;;  %v7135_v35 = vpop.f32.mrf.mxu0  ;;  %v7148_v29 = vpop.f32.mrf.mxu1 }
 0x44a   :  { %v12769_v2 = vld [vmem:[#allocation10 + $0x1e28] sm:$0xf0]  ;;  %7327 = vmatmul.bf16.vlgmr.msrb.gmra.mxu3 %v14768_v42  ;;  %v9831_v6 = vld [vmem:[#allocation10 + $0x710] sm:$0xf]  ;;  %v7134_v27 = vadd.f32 %v7133_v55, %v7121_v28 }
 0x44b   :  { %v12772_v11 = vor.u32 %v14243_v0, %v12769_v2  ;;  %7352 = vmatpush.bf16.msra.mxu1 %v12516_v10  ;;  %7371 = vmatpush.bf16.msra.mxu3 %v9160_v12  ;;  %v9319_v0 = vld [vmem:[#allocation10 + $0x310] sm:$0xf] }
 0x44c   :  { %7340 = vmatmul.bf16.vlgmr.msra.gmra.mxu0 %v14770_v45  ;;  %v9575_v2 = vld [vmem:[#allocation10 + $0x510] sm:$0xf]  ;;  %v9320_v61 = vor.u32 %v13384_v48, %v9319_v0  ;;  %v7147_v48 = vadd.f32 %v7146_v52, %v7134_v27 }
 0x44d   :  { %7365 = vmatpush.bf16.msra.mxu2 %v12772_v11  ;;  %7384 = vmatpush.bf16.msrb.mxu0 %v9416_v16  ;;  %v13512_v7 = vld [vmem:[#allocation10 + $0x72c] sm:$0xf0]  ;;  %v9576_v1 = vor.u32 %v13448_v4, %v9575_v2 }
 0x44e   :  { %7353 = vmatmul.bf16.vlgmr.msra.gmra.mxu1 %v14772_v46  ;;  %v9031_v58 = vld [vmem:[#allocation10 + $0xd0] sm:$0xf]  ;;  %v9832_v10 = vor.u32 %v13512_v7, %v9831_v6 }
 0x44f   :  { %7397 = vmatpush.bf16.msrb.mxu1 %v9672_v20  ;;  %7372 = vmatpush.bf16.msra.mxu3 %v9128_v17  ;;  %v13312_v9 = vld [vmem:[#allocation10 + $0xec] sm:$0xf0] }
 0x450   :  { %7366 = vmatmul.bf16.vlgmr.msra.gmra.mxu2 %v14774_v57  ;;  %v9287_v11 = vld [vmem:[#allocation10 + $0x2d0] sm:$0xf] }
 0x451   :  { %7410 = vmatpush.bf16.msrb.mxu2 %v9928_v21  ;;  %7385 = vmatpush.bf16.msrb.mxu0 %v9384_v26  ;;  %v13376_v12 = vld [vmem:[#allocation10 + $0x2ec] sm:$0xf0]  ;;  %v9032_v21 = vor.u32 %v13312_v9, %v9031_v58 }
 0x452   :  { %v9543_v16 = vld [vmem:[#allocation10 + $0x4d0] sm:$0xf]  ;;  %v9288_v22 = vor.u32 %v13376_v12, %v9287_v11  ;;  %v7122_v12 = vpop.f32.mrf.mxu3 }
 0x453   :  { %7398 = vmatpush.bf16.msrb.mxu1 %v9640_v31  ;;  %7373 = vmatpush.bf16.msra.mxu3 %v9096_v30  ;;  %v13440_v8 = vld [vmem:[#allocation10 + $0x4ec] sm:$0xf0]  ;;  %v7159_v31 = vpop.f32.mrf.mxu2 }
 0x454   :  { %v9799_v3 = vld [vmem:[#allocation10 + $0x6d0] sm:$0xf]  ;;  %v9544_v15 = vor.u32 %v13440_v8, %v9543_v16 }
 0x455   :  { %7411 = vmatpush.bf16.msrb.mxu2 %v9896_v32  ;;  %7386 = vmatpush.bf16.msrb.mxu0 %v9352_v40  ;;  %v13504_v20 = vld [vmem:[#allocation10 + $0x6ec] sm:$0xf0] }
 0x456   :  { %v8999_v5 = vld [vmem:[#allocation10 + $0x90] sm:$0xf]  ;;  %v9800_v24 = vor.u32 %v13504_v20, %v9799_v3 }
 0x457   :  { %7399 = vmatpush.bf16.msrb.mxu1 %v9608_v63  ;;  %7374 = vmatpush.bf16.msra.mxu3 %v9064_v62  ;;  %v13304_v14 = vld [vmem:[#allocation10 + $0xac] sm:$0xf0]  ;;  %v14857_v62 = vadd.f32 %v7159_v31, %v7147_v48 }
 0x458   :  { %v9255_v17 = vld [vmem:[#allocation10 + $0x290] sm:$0xf]  ;;  %v9000_v23 = vor.u32 %v13304_v14, %v8999_v5 }
 0x459   :  { %7412 = vmatpush.bf16.msrb.mxu2 %v9864_v36  ;;  %7387 = vmatpush.bf16.msrb.mxu0 %v9320_v61  ;;  %v13368_v26 = vld [vmem:[#allocation10 + $0x2ac] sm:$0xf0] }
 0x45a   :  { %v9511_v18 = vld [vmem:[#allocation10 + $0x490] sm:$0xf]  ;;  %v9256_v30 = vor.u32 %v13368_v26, %v9255_v17 }
 0x45b   :  { %7400 = vmatpush.bf16.msrb.mxu1 %v9576_v1  ;;  %v13432_v32 = vld [vmem:[#allocation10 + $0x4ac] sm:$0xf0]  ;;  %7375 = vmatpush.bf16.msra.mxu3 %v9032_v21  ;;  %v7161_v3 = vpop.f32.mrf.mxu2 }
 0x45c   :  { %v9767_v33 = vld [vmem:[#allocation10 + $0x690] sm:$0xf]  ;;  %v9512_v47 = vor.u32 %v13432_v32, %v9511_v18 }
 0x45d   :  { %7413 = vmatpush.bf16.msrb.mxu2 %v9832_v10  ;;  %v13496_v34 = vld [vmem:[#allocation10 + $0x6ac] sm:$0xf0]  ;;  %7388 = vmatpush.bf16.msrb.mxu0 %v9288_v22 }
 0x45e   :  { %v8967_v40 = vld [vmem:[#allocation10 + $0x50] sm:$0xf]  ;;  %v9768_v63 = vor.u32 %v13496_v34, %v9767_v33 }
 0x45f   :  { %v13296_v41 = vld [vmem:[#allocation10 + $0x6c] sm:$0xf0]  ;;  %7401 = vmatpush.bf16.msrb.mxu1 %v9544_v15  ;;  %7376 = vmatpush.bf16.msra.mxu3 %v9000_v23 }
 0x460   :  { %v9223_v36 = vld [vmem:[#allocation10 + $0x250] sm:$0xf]  ;;  %v8968_v55 = vor.u32 %v13296_v41, %v8967_v40 }
 0x461   :  { %7414 = vmatpush.bf16.msrb.mxu2 %v9800_v24  ;;  %v13360_v0 = vld [vmem:[#allocation10 + $0x26c] sm:$0xf0]  ;;  %7389 = vmatpush.bf16.msrb.mxu0 %v9256_v30 }
 0x462   :  { %v9479_v37 = vld [vmem:[#allocation10 + $0x450] sm:$0xf]  ;;  %v9224_v61 = vor.u32 %v13360_v0, %v9223_v36 }
 0x463   :  { %v13424_v2 = vld [vmem:[#allocation10 + $0x46c] sm:$0xf0]  ;;  %7402 = vmatpush.bf16.msrb.mxu1 %v9512_v47  ;;  %7377 = vmatpush.bf16.msra.mxu3 %v8968_v55 }
 0x464   :  { %v9735_v4 = vld [vmem:[#allocation10 + $0x650] sm:$0xf]  ;;  %v9480_v10 = vor.u32 %v13424_v2, %v9479_v37 }
 0x465   :  { %v13488_v6 = vld [vmem:[#allocation10 + $0x66c] sm:$0xf0]  ;;  %7415 = vmatpush.bf16.msrb.mxu2 %v9768_v63  ;;  %7390 = vmatpush.bf16.msrb.mxu0 %v9224_v61 }
 0x466   :  { %v8935_v7 = vld [vmem:[#allocation10 + $0x10] sm:$0xf]  ;;  %v9736_v11 = vor.u32 %v13488_v6, %v9735_v4 }
 0x467   :  { %v13288_v58 = vld [vmem:[#allocation10 + $0x2c] sm:$0xf0]  ;;  %7403 = vmatpush.bf16.msrb.mxu1 %v9480_v10 }
 0x468   :  { %v9191_v9 = vld [vmem:[#allocation10 + $0x210] sm:$0xf]  ;;  %v8936_v24 = vor.u32 %v13288_v58, %v8935_v7 }
 0x469   :  { %v13352_v1 = vld [vmem:[#allocation10 + $0x22c] sm:$0xf0]  ;;  %7416 = vmatpush.bf16.msrb.mxu2 %v9736_v11 }
 0x46a   :  { %v9447_v16 = vld [vmem:[#allocation10 + $0x410] sm:$0xf]  ;;  %v9192_v25 = vor.u32 %v13352_v1, %v9191_v9  ;;  %7378 = vmatpush.bf16.msra.mxu3 %v8936_v24 }
 0x46b   :  { %v13416_v52 = vld [vmem:[#allocation10 + $0x42c] sm:$0xf0] }
 0x46c   :  { %v9703_v8 = vld [vmem:[#allocation10 + $0x610] sm:$0xf]  ;;  %v9448_v28 = vor.u32 %v13416_v52, %v9447_v16  ;;  %7391 = vmatpush.bf16.msrb.mxu0 %v9192_v25 }
 0x46d   :  { %v13480_v20 = vld [vmem:[#allocation10 + $0x62c] sm:$0xf0]  ;;  %7379 = vmatmul.bf16.vlgmr.msra.gmra.mxu3 %v14716_v49 }
 0x46e   :  { %v10183_v21 = vld [vmem:[#allocation10 + $0x9d0] sm:$0xf]  ;;  %v9704_v31 = vor.u32 %v13480_v20, %v9703_v8  ;;  %7404 = vmatpush.bf16.msrb.mxu1 %v9448_v28 }
 0x46f   :  { %v13600_v22 = vld [vmem:[#allocation10 + $0x9ec] sm:$0xf0]  ;;  %7392 = vmatmul.bf16.vlgmr.msrb.gmra.mxu0 %v14718_v50 }
 0x470   :  { %v10439_v5 = vld [vmem:[#allocation10 + $0xbd0] sm:$0xf]  ;;  %v10184_v32 = vor.u32 %v13600_v22, %v10183_v21  ;;  %7417 = vmatpush.bf16.msrb.mxu2 %v9704_v31 }
 0x471   :  { %v13664_v14 = vld [vmem:[#allocation10 + $0xbec] sm:$0xf0]  ;;  %7405 = vmatmul.bf16.vlgmr.msrb.gmra.mxu1 %v14720_v51 }
 0x472   :  { %v10695_v15 = vld [vmem:[#allocation10 + $0xdd0] sm:$0xf]  ;;  %v10440_v33 = vor.u32 %v13664_v14, %v10439_v5  ;;  %7423 = vmatpush.bf16.msrb.mxu3 %v10184_v32  ;;  %v7185_v14 = vpop.f32.mrf.mxu0 }
 0x473   :  { %v13728_v17 = vld [vmem:[#allocation10 + $0xdec] sm:$0xf0]  ;;  %7418 = vmatmul.bf16.vlgmr.msrb.gmra.mxu2 %v14726_v56 }
 0x474   :  { %v10951_v26 = vld [vmem:[#allocation10 + $0xfd0] sm:$0xf]  ;;  %v10696_v27 = vor.u32 %v13728_v17, %v10695_v15  ;;  %7436 = vmatpush.bf16.msra.mxu0 %v10440_v33  ;;  %v7198_v15 = vpop.f32.mrf.mxu1 }
 0x475   :  { %v13792_v18 = vld [vmem:[#allocation10 + $0xfec] sm:$0xf0] }
 0x476   :  { %v10151_v34 = vld [vmem:[#allocation10 + $0x990] sm:$0xf]  ;;  %v10952_v29 = vor.u32 %v13792_v18, %v10951_v26  ;;  %7449 = vmatpush.bf16.msra.mxu1 %v10696_v27 }
 0x477   :  { %v13592_v35 = vld [vmem:[#allocation10 + $0x9ac] sm:$0xf0] }
 0x478   :  { %v10407_v23 = vld [vmem:[#allocation10 + $0xb90] sm:$0xf]  ;;  %v10152_v36 = vor.u32 %v13592_v35, %v10151_v34  ;;  %7462 = vmatpush.bf16.msra.mxu2 %v10952_v29  ;;  %v14386_v29 = vld [vmem:[#allocation11] sm:$0xff] }
 0x479   :  { %v13656_v30 = vld [vmem:[#allocation10 + $0xbac] sm:$0xf0] }
 0x47a   :  { %v10663_v40 = vld [vmem:[#allocation10 + $0xd90] sm:$0xf]  ;;  %v10408_v0 = vor.u32 %v13656_v30, %v10407_v23  ;;  %7424 = vmatpush.bf16.msrb.mxu3 %v10152_v36  ;;  %v1406_v23 = vperm.slane %v14386_v29, 3 }
 0x47b   :  { %v13720_v41 = vld [vmem:[#allocation10 + $0xdac] sm:$0xf0] }
 0x47c   :  { %v10919_v47 = vld [vmem:[#allocation10 + $0xf90] sm:$0xf]  ;;  %v10664_v2 = vor.u32 %v13720_v41, %v10663_v40  ;;  %7437 = vmatpush.bf16.msra.mxu0 %v10408_v0  ;;  %v7172_v0 = vpop.f32.mrf.mxu3 }
 0x47d   :  { %v13784_v63 = vld [vmem:[#allocation10 + $0xfac] sm:$0xf0] }
 0x47e   :  { %v10119_v37 = vld [vmem:[#allocation10 + $0x950] sm:$0xf]  ;;  %v10920_v4 = vor.u32 %v13784_v63, %v10919_v47  ;;  %7450 = vmatpush.bf16.msra.mxu1 %v10664_v2 }
 0x47f   :  { %v13584_v48 = vld [vmem:[#allocation10 + $0x96c] sm:$0xf0] }
 0x480   :  { %v10375_v6 = vld [vmem:[#allocation10 + $0xb50] sm:$0xf]  ;;  %v10120_v1 = vor.u32 %v13584_v48, %v10119_v37  ;;  %7463 = vmatpush.bf16.msra.mxu2 %v10920_v4  ;;  %v7173_v4 = vadd.f32 %v7172_v0, %v1406_v23 }
 0x481   :  { %v13648_v7 = vld [vmem:[#allocation10 + $0xb6c] sm:$0xf0] }
 0x482   :  { %v10631_v55 = vld [vmem:[#allocation10 + $0xd50] sm:$0xf]  ;;  %v10376_v10 = vor.u32 %v13648_v7, %v10375_v6  ;;  %7425 = vmatpush.bf16.msrb.mxu3 %v10120_v1  ;;  %v7211_v6 = vpop.f32.mrf.mxu2  ;;  %v7200_v1 = vpop.f32.mrf.mxu1 }
 0x483   :  { %v13712_v61 = vld [vmem:[#allocation10 + $0xd6c] sm:$0xf0] }
 0x484   :  { %v10887_v58 = vld [vmem:[#allocation10 + $0xf50] sm:$0xf]  ;;  %v10632_v16 = vor.u32 %v13712_v61, %v10631_v55  ;;  %7438 = vmatpush.bf16.msra.mxu0 %v10376_v10 }
 0x485   :  { %v13776_v9 = vld [vmem:[#allocation10 + $0xf6c] sm:$0xf0] }
 0x486   :  { %v10087_v11 = vld [vmem:[#allocation10 + $0x910] sm:$0xf]  ;;  %v10888_v52 = vor.u32 %v13776_v9, %v10887_v58  ;;  %7451 = vmatpush.bf16.msra.mxu1 %v10632_v16  ;;  %v7187_v58 = vpop.f32.mrf.mxu0  ;;  %v7186_v9 = vadd.f32 %v7185_v14, %v7173_v4 }
 0x487   :  { %v13576_v12 = vld [vmem:[#allocation10 + $0x92c] sm:$0xf0] }
 0x488   :  { %v10343_v8 = vld [vmem:[#allocation10 + $0xb10] sm:$0xf]  ;;  %v10088_v24 = vor.u32 %v13576_v12, %v10087_v11  ;;  %7464 = vmatpush.bf16.msra.mxu2 %v10888_v52 }
 0x489   :  { %v13640_v3 = vld [vmem:[#allocation10 + $0xb2c] sm:$0xf0] }
 0x48a   :  { %v10599_v20 = vld [vmem:[#allocation10 + $0xd10] sm:$0xf]  ;;  %v10344_v25 = vor.u32 %v13640_v3, %v10343_v8  ;;  %7426 = vmatpush.bf16.msrb.mxu3 %v10088_v24  ;;  %v7213_v23 = vpop.f32.mrf.mxu2 }
 0x48b   :  { %v13704_v21 = vld [vmem:[#allocation10 + $0xd2c] sm:$0xf0] }
 0x48c   :  { %v10855_v22 = vld [vmem:[#allocation10 + $0xf10] sm:$0xf]  ;;  %v10600_v28 = vor.u32 %v13704_v21, %v10599_v20  ;;  %7439 = vmatpush.bf16.msra.mxu0 %v10344_v25 }
 0x48d   :  { %v13768_v5 = vld [vmem:[#allocation10 + $0xf2c] sm:$0xf0] }
 0x48e   :  { %v10055_v17 = vld [vmem:[#allocation10 + $0x8d0] sm:$0xf]  ;;  %v10856_v31 = vor.u32 %v13768_v5, %v10855_v22  ;;  %7452 = vmatpush.bf16.msra.mxu1 %v10600_v28  ;;  %v7199_v22 = vadd.f32 %v7198_v15, %v7186_v9 }
 0x48f   :  { %v13568_v26 = vld [vmem:[#allocation10 + $0x8ec] sm:$0xf0] }
 0x490   :  { %v10311_v18 = vld [vmem:[#allocation10 + $0xad0] sm:$0xf]  ;;  %v10056_v30 = vor.u32 %v13568_v26, %v10055_v17  ;;  %7465 = vmatpush.bf16.msra.mxu2 %v10856_v31  ;;  %v14863_v26 = vadd.f32 %v7211_v6, %v7199_v22 }
 0x491   :  { %v13632_v32 = vld [vmem:[#allocation10 + $0xaec] sm:$0xf0] }
 0x492   :  { %v10567_v33 = vld [vmem:[#allocation10 + $0xcd0] sm:$0xf]  ;;  %v10312_v40 = vor.u32 %v13632_v32, %v10311_v18  ;;  %7427 = vmatpush.bf16.msrb.mxu3 %v10056_v30 }
 0x493   :  { %v13696_v34 = vld [vmem:[#allocation10 + $0xcec] sm:$0xf0] }
 0x494   :  { %v10823_v35 = vld [vmem:[#allocation10 + $0xed0] sm:$0xf]  ;;  %v10568_v63 = vor.u32 %v13696_v34, %v10567_v33  ;;  %7440 = vmatpush.bf16.msra.mxu0 %v10312_v40 }
 0x495   :  { %v13760_v27 = vld [vmem:[#allocation10 + $0xeec] sm:$0xf0] }
 0x496   :  { %v10023_v41 = vld [vmem:[#allocation10 + $0x890] sm:$0xf]  ;;  %v10824_v36 = vor.u32 %v13760_v27, %v10823_v35  ;;  %7453 = vmatpush.bf16.msra.mxu1 %v10568_v63  ;;  %v7174_v35 = vpop.f32.mrf.mxu3 }
 0x497   :  { %v13560_v47 = vld [vmem:[#allocation10 + $0x8ac] sm:$0xf0] }
 0x498   :  { %v10279_v37 = vld [vmem:[#allocation10 + $0xa90] sm:$0xf]  ;;  %v10024_v10 = vor.u32 %v13560_v47, %v10023_v41  ;;  %7466 = vmatpush.bf16.msra.mxu2 %v10824_v36 }
 0x499   :  { %v13624_v48 = vld [vmem:[#allocation10 + $0xaac] sm:$0xf0] }
 0x49a   :  { %v10535_v2 = vld [vmem:[#allocation10 + $0xc90] sm:$0xf]  ;;  %v10280_v11 = vor.u32 %v13624_v48, %v10279_v37  ;;  %7428 = vmatpush.bf16.msrb.mxu3 %v10024_v10 }
 0x49b   :  { %v13688_v7 = vld [vmem:[#allocation10 + $0xcac] sm:$0xf0] }
 0x49c   :  { %v10791_v55 = vld [vmem:[#allocation10 + $0xe90] sm:$0xf]  ;;  %v10536_v52 = vor.u32 %v13688_v7, %v10535_v2  ;;  %7441 = vmatpush.bf16.msra.mxu0 %v10280_v11 }
 0x49d   :  { %v13752_v61 = vld [vmem:[#allocation10 + $0xeac] sm:$0xf0] }
 0x49e   :  { %v9991_v12 = vld [vmem:[#allocation10 + $0x850] sm:$0xf]  ;;  %v10792_v8 = vor.u32 %v13752_v61, %v10791_v55  ;;  %7454 = vmatpush.bf16.msra.mxu1 %v10536_v52 }
 0x49f   :  { %v13552_v16 = vld [vmem:[#allocation10 + $0x86c] sm:$0xf0] }
 0x4a0   :  { %v10247_v3 = vld [vmem:[#allocation10 + $0xa50] sm:$0xf]  ;;  %v9992_v14 = vor.u32 %v13552_v16, %v9991_v12  ;;  %7467 = vmatpush.bf16.msra.mxu2 %v10792_v8 }
 0x4a1   :  { %v13616_v20 = vld [vmem:[#allocation10 + $0xa6c] sm:$0xf0] }
 0x4a2   :  { %v10503_v21 = vld [vmem:[#allocation10 + $0xc50] sm:$0xf]  ;;  %v10248_v18 = vor.u32 %v13616_v20, %v10247_v3  ;;  %7429 = vmatpush.bf16.msrb.mxu3 %v9992_v14 }
 0x4a3   :  { %v13680_v5 = vld [vmem:[#allocation10 + $0xc6c] sm:$0xf0] }
 0x4a4   :  { %v10759_v24 = vld [vmem:[#allocation10 + $0xe50] sm:$0xf]  ;;  %v10504_v33 = vor.u32 %v13680_v5, %v10503_v21  ;;  %7442 = vmatpush.bf16.msra.mxu0 %v10248_v18 }
 0x4a5   :  { %v13744_v25 = vld [vmem:[#allocation10 + $0xe6c] sm:$0xf0] }
 0x4a6   :  { %v9959_v17 = vld [vmem:[#allocation10 + $0x810] sm:$0xf]  ;;  %v10760_v34 = vor.u32 %v13744_v25, %v10759_v24  ;;  %7455 = vmatpush.bf16.msra.mxu1 %v10504_v33 }
 0x4a7   :  { %v13544_v28 = vld [vmem:[#allocation10 + $0x82c] sm:$0xf0] }
 0x4a8   :  { %v10215_v31 = vld [vmem:[#allocation10 + $0xa10] sm:$0xf]  ;;  %v9960_v0 = vor.u32 %v13544_v28, %v9959_v17  ;;  %7468 = vmatpush.bf16.msra.mxu2 %v10760_v34 }
 0x4a9   :  { %v13608_v32 = vld [vmem:[#allocation10 + $0xa2c] sm:$0xf0] }
 0x4aa   :  { %v10471_v27 = vld [vmem:[#allocation10 + $0xc10] sm:$0xf]  ;;  %v10216_v37 = vor.u32 %v13608_v32, %v10215_v31  ;;  %7430 = vmatpush.bf16.msrb.mxu3 %v9960_v0  ;;  %v7250_v0 = vpop.f32.mrf.mxu1 }
 0x4ab   :  { %v13672_v15 = vld [vmem:[#allocation10 + $0xc2c] sm:$0xf0] }
 0x4ac   :  { %v10727_v29 = vld [vmem:[#allocation10 + $0xe10] sm:$0xf]  ;;  %v10472_v6 = vor.u32 %v13672_v15, %v10471_v27  ;;  %7443 = vmatpush.bf16.msra.mxu0 %v10216_v37 }
 0x4ad   :  { %v13736_v30 = vld [vmem:[#allocation10 + $0xe2c] sm:$0xf0]  ;;  %7431 = vmatmul.bf16.vlgmr.msrb.gmra.mxu3 %v14738_v38 }
 0x4ae   :  { %v11207_v40 = vld [vmem:[#allocation10 + $0x11d0] sm:$0xf]  ;;  %v10728_v7 = vor.u32 %v13736_v30, %v10727_v29  ;;  %7456 = vmatpush.bf16.msra.mxu1 %v10472_v6 }
 0x4af   :  { %v13856_v41 = vld [vmem:[#allocation10 + $0x11ec] sm:$0xf0]  ;;  %7444 = vmatmul.bf16.vlgmr.msra.gmra.mxu0 %v14742_v39 }
 0x4b0   :  { %v11463_v47 = vld [vmem:[#allocation10 + $0x13d0] sm:$0xf]  ;;  %v11208_v55 = vor.u32 %v13856_v41, %v11207_v40  ;;  %7469 = vmatpush.bf16.msra.mxu2 %v10728_v7 }
 0x4b1   :  { %v13920_v63 = vld [vmem:[#allocation10 + $0x13ec] sm:$0xf0]  ;;  %7457 = vmatmul.bf16.vlgmr.msra.gmra.mxu1 %v14746_v43 }
 0x4b2   :  { %v11719_v36 = vld [vmem:[#allocation10 + $0x15d0] sm:$0xf]  ;;  %v11464_v61 = vor.u32 %v13920_v63, %v11463_v47  ;;  %7475 = vmatpush.bf16.msra.mxu3 %v11208_v55 }
 0x4b3   :  { %v13984_v48 = vld [vmem:[#allocation10 + $0x15ec] sm:$0xf0]  ;;  %7470 = vmatmul.bf16.vlgmr.msra.gmra.mxu2 %v14750_v44 }
 0x4b4   :  { %v11975_v2 = vld [vmem:[#allocation10 + $0x17d0] sm:$0xf]  ;;  %v11720_v1 = vor.u32 %v13984_v48, %v11719_v36  ;;  %7488 = vmatpush.bf16.msrb.mxu0 %v11464_v61  ;;  %v7237_v36 = vpop.f32.mrf.mxu0 }
 0x4b5   :  { %v14048_v4 = vld [vmem:[#allocation10 + $0x17ec] sm:$0xf0] }
 0x4b6   :  { %v11175_v58 = vld [vmem:[#allocation10 + $0x1190] sm:$0xf]  ;;  %v11976_v10 = vor.u32 %v14048_v4, %v11975_v2  ;;  %7501 = vmatpush.bf16.msrb.mxu1 %v11720_v1 }
 0x4b7   :  { %v13848_v9 = vld [vmem:[#allocation10 + $0x11ac] sm:$0xf0] }
 0x4b8   :  { %v11431_v11 = vld [vmem:[#allocation10 + $0x1390] sm:$0xf]  ;;  %v11176_v20 = vor.u32 %v13848_v9, %v11175_v58  ;;  %7514 = vmatpush.bf16.msrb.mxu2 %v11976_v10 }
 0x4b9   :  { %v13912_v12 = vld [vmem:[#allocation10 + $0x13ac] sm:$0xf0] }
 0x4ba   :  { %v11687_v16 = vld [vmem:[#allocation10 + $0x1590] sm:$0xf]  ;;  %v11432_v21 = vor.u32 %v13912_v12, %v11431_v11  ;;  %7476 = vmatpush.bf16.msra.mxu3 %v11176_v20  ;;  %v7224_v20 = vpop.f32.mrf.mxu3 }
 0x4bb   :  { %v13976_v52 = vld [vmem:[#allocation10 + $0x15ac] sm:$0xf0] }
 0x4bc   :  { %v11943_v8 = vld [vmem:[#allocation10 + $0x1790] sm:$0xf]  ;;  %v11688_v24 = vor.u32 %v13976_v52, %v11687_v16  ;;  %7489 = vmatpush.bf16.msrb.mxu0 %v11432_v21 }
 0x4bd   :  { %v14040_v3 = vld [vmem:[#allocation10 + $0x17ac] sm:$0xf0] }
 0x4be   :  { %v11143_v22 = vld [vmem:[#allocation10 + $0x1150] sm:$0xf]  ;;  %v11944_v25 = vor.u32 %v14040_v3, %v11943_v8  ;;  %7502 = vmatpush.bf16.msrb.mxu1 %v11688_v24  ;;  %v7225_v24 = vadd.f32 %v7224_v20, %v14863_v26 }
 0x4bf   :  { %v13840_v5 = vld [vmem:[#allocation10 + $0x116c] sm:$0xf0] }
 0x4c0   :  { %v11399_v17 = vld [vmem:[#allocation10 + $0x1350] sm:$0xf]  ;;  %v11144_v33 = vor.u32 %v13840_v5, %v11143_v22  ;;  %7515 = vmatpush.bf16.msrb.mxu2 %v11944_v25  ;;  %v7263_v25 = vpop.f32.mrf.mxu2 }
 0x4c1   :  { %v13904_v14 = vld [vmem:[#allocation10 + $0x136c] sm:$0xf0] }
 0x4c2   :  { %v11655_v18 = vld [vmem:[#allocation10 + $0x1550] sm:$0xf]  ;;  %v11400_v34 = vor.u32 %v13904_v14, %v11399_v17  ;;  %7477 = vmatpush.bf16.msra.mxu3 %v11144_v33 }
 0x4c3   :  { %v13968_v28 = vld [vmem:[#allocation10 + $0x156c] sm:$0xf0] }
 0x4c4   :  { %v11911_v31 = vld [vmem:[#allocation10 + $0x1750] sm:$0xf]  ;;  %v11656_v15 = vor.u32 %v13968_v28, %v11655_v18  ;;  %7490 = vmatpush.bf16.msrb.mxu0 %v11400_v34  ;;  %v7239_v28 = vpop.f32.mrf.mxu0 }
 0x4c5   :  { %v14032_v32 = vld [vmem:[#allocation10 + $0x176c] sm:$0xf0] }
 0x4c6   :  { %v11111_v35 = vld [vmem:[#allocation10 + $0x1110] sm:$0xf]  ;;  %v11912_v29 = vor.u32 %v14032_v32, %v11911_v31  ;;  %7503 = vmatpush.bf16.msrb.mxu1 %v11656_v15  ;;  %v7238_v31 = vadd.f32 %v7237_v36, %v7225_v24  ;;  %v7252_v32 = vpop.f32.mrf.mxu1 }
 0x4c7   :  { %v13832_v27 = vld [vmem:[#allocation10 + $0x112c] sm:$0xf0] }
 0x4c8   :  { %v11367_v23 = vld [vmem:[#allocation10 + $0x1310] sm:$0xf]  ;;  %v11112_v37 = vor.u32 %v13832_v27, %v11111_v35  ;;  %7516 = vmatpush.bf16.msrb.mxu2 %v11912_v29 }
 0x4c9   :  { %v13896_v30 = vld [vmem:[#allocation10 + $0x132c] sm:$0xf0] }
 0x4ca   :  { %v11623_v40 = vld [vmem:[#allocation10 + $0x1510] sm:$0xf]  ;;  %v11368_v48 = vor.u32 %v13896_v30, %v11367_v23  ;;  %7478 = vmatpush.bf16.msra.mxu3 %v11112_v37 }
 0x4cb   :  { %v13960_v41 = vld [vmem:[#allocation10 + $0x152c] sm:$0xf0] }
 0x4cc   :  { %v11879_v47 = vld [vmem:[#allocation10 + $0x1710] sm:$0xf]  ;;  %v11624_v6 = vor.u32 %v13960_v41, %v11623_v40  ;;  %7491 = vmatpush.bf16.msrb.mxu0 %v11368_v48  ;;  %v7251_v40 = vadd.f32 %v7250_v0, %v7238_v31 }
 0x4cd   :  { %v14024_v63 = vld [vmem:[#allocation10 + $0x172c] sm:$0xf0] }
 0x4ce   :  { %v11079_v2 = vld [vmem:[#allocation10 + $0x10d0] sm:$0xf]  ;;  %v11880_v7 = vor.u32 %v14024_v63, %v11879_v47  ;;  %7504 = vmatpush.bf16.msrb.mxu1 %v11624_v6  ;;  %v14870_v48 = vadd.f32 %v7263_v25, %v7251_v40 }
 0x4cf   :  { %v13824_v4 = vld [vmem:[#allocation10 + $0x10ec] sm:$0xf0] }
 0x4d0   :  { %v11335_v55 = vld [vmem:[#allocation10 + $0x12d0] sm:$0xf]  ;;  %v11080_v11 = vor.u32 %v13824_v4, %v11079_v2  ;;  %7517 = vmatpush.bf16.msrb.mxu2 %v11880_v7 }
 0x4d1   :  { %v13888_v61 = vld [vmem:[#allocation10 + $0x12ec] sm:$0xf0] }
 0x4d2   :  { %v11591_v58 = vld [vmem:[#allocation10 + $0x14d0] sm:$0xf]  ;;  %v11336_v12 = vor.u32 %v13888_v61, %v11335_v55  ;;  %7479 = vmatpush.bf16.msra.mxu3 %v11080_v11 }
 0x4d3   :  { %v13952_v9 = vld [vmem:[#allocation10 + $0x14ec] sm:$0xf0] }
 0x4d4   :  { %v11847_v1 = vld [vmem:[#allocation10 + $0x16d0] sm:$0xf]  ;;  %v11592_v8 = vor.u32 %v13952_v9, %v11591_v58  ;;  %7492 = vmatpush.bf16.msrb.mxu0 %v11336_v12  ;;  %v7226_v58 = vpop.f32.mrf.mxu3 }
 0x4d5   :  { %v14016_v10 = vld [vmem:[#allocation10 + $0x16ec] sm:$0xf0] }
 0x4d6   :  { %v11047_v16 = vld [vmem:[#allocation10 + $0x1090] sm:$0xf]  ;;  %v11848_v3 = vor.u32 %v14016_v10, %v11847_v1  ;;  %7505 = vmatpush.bf16.msrb.mxu1 %v11592_v8  ;;  %v7265_v10 = vpop.f32.mrf.mxu2 }
 0x4d7   :  { %v13816_v52 = vld [vmem:[#allocation10 + $0x10ac] sm:$0xf0] }
 0x4d8   :  { %v11303_v21 = vld [vmem:[#allocation10 + $0x1290] sm:$0xf]  ;;  %v11048_v33 = vor.u32 %v13816_v52, %v11047_v16  ;;  %7518 = vmatpush.bf16.msrb.mxu2 %v11848_v3 }
 0x4d9   :  { %v13880_v22 = vld [vmem:[#allocation10 + $0x12ac] sm:$0xf0] }
 0x4da   :  { %v11559_v5 = vld [vmem:[#allocation10 + $0x1490] sm:$0xf]  ;;  %v11304_v34 = vor.u32 %v13880_v22, %v11303_v21  ;;  %7480 = vmatpush.bf16.msra.mxu3 %v11048_v33 }
 0x4db   :  { %v13944_v17 = vld [vmem:[#allocation10 + $0x14ac] sm:$0xf0] }
 0x4dc   :  { %v11815_v14 = vld [vmem:[#allocation10 + $0x1690] sm:$0xf]  ;;  %v11560_v15 = vor.u32 %v13944_v17, %v11559_v5  ;;  %7493 = vmatpush.bf16.msrb.mxu0 %v11304_v34 }
 0x4dd   :  { %v14008_v18 = vld [vmem:[#allocation10 + $0x16ac] sm:$0xf0] }
 0x4de   :  { %v11015_v35 = vld [vmem:[#allocation10 + $0x1050] sm:$0xf]  ;;  %v11816_v29 = vor.u32 %v14008_v18, %v11815_v14  ;;  %7506 = vmatpush.bf16.msrb.mxu1 %v11560_v15 }
 0x4df   :  { %v13808_v27 = vld [vmem:[#allocation10 + $0x106c] sm:$0xf0] }
 0x4e0   :  { %v11271_v23 = vld [vmem:[#allocation10 + $0x1250] sm:$0xf]  ;;  %v11016_v36 = vor.u32 %v13808_v27, %v11015_v35  ;;  %7519 = vmatpush.bf16.msrb.mxu2 %v11816_v29 }
 0x4e1   :  { %v13872_v30 = vld [vmem:[#allocation10 + $0x126c] sm:$0xf0] }
 0x4e2   :  { %v11527_v26 = vld [vmem:[#allocation10 + $0x1450] sm:$0xf]  ;;  %v11272_v2 = vor.u32 %v13872_v30, %v11271_v23  ;;  %7481 = vmatpush.bf16.msra.mxu3 %v11016_v36 }
 0x4e3   :  { %v13936_v41 = vld [vmem:[#allocation10 + $0x146c] sm:$0xf0] }
 0x4e4   :  { %v11783_v47 = vld [vmem:[#allocation10 + $0x1650] sm:$0xf]  ;;  %v11528_v55 = vor.u32 %v13936_v41, %v11527_v26  ;;  %7494 = vmatpush.bf16.msrb.mxu0 %v11272_v2 }
 0x4e5   :  { %v14000_v63 = vld [vmem:[#allocation10 + $0x166c] sm:$0xf0] }
 0x4e6   :  { %v10983_v37 = vld [vmem:[#allocation10 + $0x1010] sm:$0xf]  ;;  %v11784_v61 = vor.u32 %v14000_v63, %v11783_v47  ;;  %7507 = vmatpush.bf16.msrb.mxu1 %v11528_v55 }
 0x4e7   :  { %v13800_v4 = vld [vmem:[#allocation10 + $0x102c] sm:$0xf0] }
 0x4e8   :  { %v11239_v6 = vld [vmem:[#allocation10 + $0x1210] sm:$0xf]  ;;  %v10984_v20 = vor.u32 %v13800_v4, %v10983_v37  ;;  %7520 = vmatpush.bf16.msrb.mxu2 %v11784_v61 }
 0x4e9   :  { %v13864_v7 = vld [vmem:[#allocation10 + $0x122c] sm:$0xf0] }
 0x4ea   :  { %v11495_v9 = vld [vmem:[#allocation10 + $0x1410] sm:$0xf]  ;;  %v11240_v21 = vor.u32 %v13864_v7, %v11239_v6  ;;  %7482 = vmatpush.bf16.msra.mxu3 %v10984_v20  ;;  %v7302_v20 = vpop.f32.mrf.mxu1 }
 0x4eb   :  { %v13928_v0 = vld [vmem:[#allocation10 + $0x142c] sm:$0xf0] }
 0x4ec   :  { %v11751_v1 = vld [vmem:[#allocation10 + $0x1610] sm:$0xf]  ;;  %v11496_v25 = vor.u32 %v13928_v0, %v11495_v9  ;;  %7495 = vmatpush.bf16.msrb.mxu0 %v11240_v21 }
 0x4ed   :  { %v13992_v11 = vld [vmem:[#allocation10 + $0x162c] sm:$0xf0]  ;;  %7483 = vmatmul.bf16.vlgmr.msra.gmra.mxu3 %v14756_v53 }
 0x4ee   :  { %v12231_v12 = vld [vmem:[#allocation10 + $0x19d0] sm:$0xf]  ;;  %v11752_v17 = vor.u32 %v13992_v11, %v11751_v1  ;;  %7508 = vmatpush.bf16.msrb.mxu1 %v11496_v25 }
 0x4ef   :  { %v14112_v16 = vld [vmem:[#allocation10 + $0x19ec] sm:$0xf0]  ;;  %7496 = vmatmul.bf16.vlgmr.msrb.gmra.mxu0 %v14758_v54 }
 0x4f0   :  { %v12487_v52 = vld [vmem:[#allocation10 + $0x1bd0] sm:$0xf]  ;;  %v12232_v14 = vor.u32 %v14112_v16, %v12231_v12  ;;  %7521 = vmatpush.bf16.msrb.mxu2 %v11752_v17 }
 0x4f1   :  { %v14176_v8 = vld [vmem:[#allocation10 + $0x1bec] sm:$0xf0]  ;;  %7509 = vmatmul.bf16.vlgmr.msrb.gmra.mxu1 %v14760_v59 }
 0x4f2   :  { %v12743_v3 = vld [vmem:[#allocation10 + $0x1dd0] sm:$0xf]  ;;  %v12488_v18 = vor.u32 %v14176_v8, %v12487_v52  ;;  %7527 = vmatpush.bf16.msrb.mxu3 %v12232_v14 }
 0x4f3   :  { %v14240_v22 = vld [vmem:[#allocation10 + $0x1dec] sm:$0xf0]  ;;  %7522 = vmatmul.bf16.vlgmr.msrb.gmra.mxu2 %v14762_v60 }
 0x4f4   :  { %v12999_v5 = vld [vmem:[#allocation10 + $0x1fd0] sm:$0xf]  ;;  %v12744_v32 = vor.u32 %v14240_v22, %v12743_v3  ;;  %7540 = vmatpush.bf16.msra.mxu0 %v12488_v18  ;;  %v7289_v3 = vpop.f32.mrf.mxu0 }
 0x4f5   :  { %v14304_v24 = vld [vmem:[#allocation10 + $0x1fec] sm:$0xf0] }
 0x4f6   :  { %v12199_v28 = vld [vmem:[#allocation10 + $0x1990] sm:$0xf]  ;;  %v13000_v33 = vor.u32 %v14304_v24, %v12999_v5  ;;  %7553 = vmatpush.bf16.msra.mxu1 %v12744_v32 }
 0x4f7   :  { %v14104_v31 = vld [vmem:[#allocation10 + $0x19ac] sm:$0xf0] }
 0x4f8   :  { %v12455_v34 = vld [vmem:[#allocation10 + $0x1b90] sm:$0xf]  ;;  %v12200_v30 = vor.u32 %v14104_v31, %v12199_v28  ;;  %7566 = vmatpush.bf16.msra.mxu2 %v13000_v33 }
 0x4f9   :  { %v14168_v35 = vld [vmem:[#allocation10 + $0x1bac] sm:$0xf0] }
 0x4fa   :  { %v12711_v27 = vld [vmem:[#allocation10 + $0x1d90] sm:$0xf]  ;;  %v12456_v26 = vor.u32 %v14168_v35, %v12455_v34  ;;  %7528 = vmatpush.bf16.msrb.mxu3 %v12200_v30  ;;  %v7276_v30 = vpop.f32.mrf.mxu3 }
 0x4fb   :  { %v14232_v15 = vld [vmem:[#allocation10 + $0x1dac] sm:$0xf0] }
 0x4fc   :  { %v12967_v29 = vld [vmem:[#allocation10 + $0x1f90] sm:$0xf]  ;;  %v12712_v47 = vor.u32 %v14232_v15, %v12711_v27  ;;  %7541 = vmatpush.bf16.msra.mxu0 %v12456_v26 }
 0x4fd   :  { %v14296_v23 = vld [vmem:[#allocation10 + $0x1fac] sm:$0xf0] }
 0x4fe   :  { %v12167_v40 = vld [vmem:[#allocation10 + $0x1950] sm:$0xf]  ;;  %v12968_v63 = vor.u32 %v14296_v23, %v12967_v29  ;;  %7554 = vmatpush.bf16.msra.mxu1 %v12712_v47  ;;  %v7277_v47 = vadd.f32 %v7276_v30, %v14870_v48 }
 0x4ff   :  { %v14096_v41 = vld [vmem:[#allocation10 + $0x196c] sm:$0xf0] }
 0x500   :  { %v12423_v37 = vld [vmem:[#allocation10 + $0x1b50] sm:$0xf]  ;;  %v12168_v55 = vor.u32 %v14096_v41, %v12167_v40  ;;  %7567 = vmatpush.bf16.msra.mxu2 %v12968_v63  ;;  %v7315_v63 = vpop.f32.mrf.mxu2 }
 0x501   :  { %v14160_v36 = vld [vmem:[#allocation10 + $0x1b6c] sm:$0xf0] }
 0x502   :  { %v12679_v2 = vld [vmem:[#allocation10 + $0x1d50] sm:$0xf]  ;;  %v12424_v61 = vor.u32 %v14160_v36, %v12423_v37  ;;  %7529 = vmatpush.bf16.msrb.mxu3 %v12168_v55 }
 0x503   :  { %v14224_v4 = vld [vmem:[#allocation10 + $0x1d6c] sm:$0xf0] }
 0x504   :  { %v12935_v6 = vld [vmem:[#allocation10 + $0x1f50] sm:$0xf]  ;;  %v12680_v0 = vor.u32 %v14224_v4, %v12679_v2  ;;  %7542 = vmatpush.bf16.msra.mxu0 %v12424_v61  ;;  %v7291_v4 = vpop.f32.mrf.mxu0 }
 0x505   :  { %v14288_v7 = vld [vmem:[#allocation10 + $0x1f6c] sm:$0xf0]  ;;  %v13332_v4 = vld [vmem:[#allocation10 + $0x194] sm:$0xf] }
 0x506   :  { %v12135_v58 = vld [vmem:[#allocation10 + $0x1910] sm:$0xf]  ;;  %v12936_v1 = vor.u32 %v14288_v7, %v12935_v6  ;;  %7555 = vmatpush.bf16.msra.mxu1 %v12680_v0  ;;  %v7290_v6 = vadd.f32 %v7289_v3, %v7277_v47  ;;  %v7304_v7 = vpop.f32.mrf.mxu1  ;;  %v9929_v47 = vld [vmem:[#allocation10 + $0x7f0] sm:$0xf0] }
 0x507   :  { %v14088_v9 = vld [vmem:[#allocation10 + $0x192c] sm:$0xf0] }
 0x508   :  { %v12391_v10 = vld [vmem:[#allocation10 + $0x1b10] sm:$0xf]  ;;  %v12136_v21 = vor.u32 %v14088_v9, %v12135_v58  ;;  %7568 = vmatpush.bf16.msra.mxu2 %v12936_v1 }
 0x509   :  { %v14152_v11 = vld [vmem:[#allocation10 + $0x1b2c] sm:$0xf0] }
 0x50a   :  { %v12647_v12 = vld [vmem:[#allocation10 + $0x1d10] sm:$0xf]  ;;  %v12392_v22 = vor.u32 %v14152_v11, %v12391_v10  ;;  %7530 = vmatpush.bf16.msrb.mxu3 %v12136_v21 }
 0x50b   :  { %v14216_v16 = vld [vmem:[#allocation10 + $0x1d2c] sm:$0xf0] }
 0x50c   :  { %v12903_v52 = vld [vmem:[#allocation10 + $0x1f10] sm:$0xf]  ;;  %v12648_v25 = vor.u32 %v14216_v16, %v12647_v12  ;;  %7543 = vmatpush.bf16.msra.mxu0 %v12392_v22  ;;  %v7303_v12 = vadd.f32 %v7302_v20, %v7290_v6  ;;  %v9129_v6 = vld [vmem:[#allocation10 + $0x1b0] sm:$0xf0] }
 0x50d   :  { %v14280_v8 = vld [vmem:[#allocation10 + $0x1f2c] sm:$0xf0] }
 0x50e   :  { %v12103_v5 = vld [vmem:[#allocation10 + $0x18d0] sm:$0xf]  ;;  %v12904_v17 = vor.u32 %v14280_v8, %v12903_v52  ;;  %7556 = vmatpush.bf16.msra.mxu1 %v12648_v25  ;;  %v14877_v22 = vadd.f32 %v7315_v63, %v7303_v12  ;;  %v13324_v12 = vld [vmem:[#allocation10 + $0x154] sm:$0xf] }
 0x50f   :  { %v14080_v24 = vld [vmem:[#allocation10 + $0x18ec] sm:$0xf0] }
 0x510   :  { %v12359_v14 = vld [vmem:[#allocation10 + $0x1ad0] sm:$0xf]  ;;  %v12104_v34 = vor.u32 %v14080_v24, %v12103_v5  ;;  %7569 = vmatpush.bf16.msra.mxu2 %v12904_v17 }
 0x511   :  { %v14144_v18 = vld [vmem:[#allocation10 + $0x1aec] sm:$0xf0] }
 0x512   :  { %v12615_v28 = vld [vmem:[#allocation10 + $0x1cd0] sm:$0xf]  ;;  %v12360_v35 = vor.u32 %v14144_v18, %v12359_v14  ;;  %7531 = vmatpush.bf16.msrb.mxu3 %v12104_v34 }
 0x513   :  { %v14208_v31 = vld [vmem:[#allocation10 + $0x1cec] sm:$0xf0] }
 0x514   :  { %v12871_v32 = vld [vmem:[#allocation10 + $0x1ed0] sm:$0xf]  ;;  %v12616_v29 = vor.u32 %v14208_v31, %v12615_v28  ;;  %7544 = vmatpush.bf16.msra.mxu0 %v12360_v35  ;;  %v7278_v28 = vpop.f32.mrf.mxu3  ;;  %v13340_v35 = vld [vmem:[#allocation10 + $0x1d4] sm:$0xf] }
 0x515   :  { %v14272_v33 = vld [vmem:[#allocation10 + $0x1eec] sm:$0xf0]  ;;  %v13316_v28 = vld [vmem:[#allocation10 + $0x114] sm:$0xf] }
 0x516   :  { %v12071_v27 = vld [vmem:[#allocation10 + $0x1890] sm:$0xf]  ;;  %v12872_v23 = vor.u32 %v14272_v33, %v12871_v32  ;;  %7557 = vmatpush.bf16.msra.mxu1 %v12616_v29  ;;  %v7317_v33 = vpop.f32.mrf.mxu2  ;;  %v9417_v29 = vld [vmem:[#allocation10 + $0x3f0] sm:$0xf0] }
 0x517   :  { %v14072_v15 = vld [vmem:[#allocation10 + $0x18ac] sm:$0xf0]  ;;  %v13380_v33 = vld [vmem:[#allocation10 + $0x314] sm:$0xf] }
 0x518   :  { %v12327_v26 = vld [vmem:[#allocation10 + $0x1a90] sm:$0xf]  ;;  %v12072_v55 = vor.u32 %v14072_v15, %v12071_v27  ;;  %7570 = vmatpush.bf16.msra.mxu2 %v12872_v23  ;;  %v9161_v27 = vld [vmem:[#allocation10 + $0x1f0] sm:$0xf0] }
 0x519   :  { %v14136_v40 = vld [vmem:[#allocation10 + $0x1aac] sm:$0xf0]  ;;  %v13404_v15 = vld [vmem:[#allocation10 + $0x3d4] sm:$0xf] }
 0x51a   :  { %v12583_v41 = vld [vmem:[#allocation10 + $0x1c90] sm:$0xf]  ;;  %v12328_v61 = vor.u32 %v14136_v40, %v12327_v26  ;;  %7532 = vmatpush.bf16.msrb.mxu3 %v12072_v55  ;;  %v13468_v23 = vld [vmem:[#allocation10 + $0x5d4] sm:$0xf] }
 0x51b   :  { %v14200_v37 = vld [vmem:[#allocation10 + $0x1cac] sm:$0xf0]  ;;  %v9673_v40 = vld [vmem:[#allocation10 + $0x5f0] sm:$0xf0] }
 0x51c   :  { %v12839_v36 = vld [vmem:[#allocation10 + $0x1e90] sm:$0xf]  ;;  %v12584_v0 = vor.u32 %v14200_v37, %v12583_v41  ;;  %7545 = vmatpush.bf16.msra.mxu0 %v12328_v61  ;;  %v13532_v41 = vld [vmem:[#allocation10 + $0x7d4] sm:$0xf]  ;;  %v9676_v7 = vor.u32 %v13468_v23, %v9673_v40  ;;  %v7341_v23 = vpop.f32.mrf.mxu0 }
 0x51d   :  { %v14264_v2 = vld [vmem:[#allocation10 + $0x1eac] sm:$0xf0]  ;;  %v9932_v55 = vor.u32 %v13532_v41, %v9929_v47  ;;  %v13396_v61 = vld [vmem:[#allocation10 + $0x394] sm:$0xf] }
 0x51e   :  { %v12039_v58 = vld [vmem:[#allocation10 + $0x1850] sm:$0xf]  ;;  %v12840_v1 = vor.u32 %v14264_v2, %v12839_v36  ;;  %7558 = vmatpush.bf16.msra.mxu1 %v12584_v0  ;;  %v9164_v36 = vor.u32 %v13340_v35, %v9161_v27  ;;  %v9420_v2 = vor.u32 %v13404_v15, %v9417_v29  ;;  %v9641_v0 = vld [vmem:[#allocation10 + $0x5b0] sm:$0xf0] }
 0x51f   :  { %v14064_v9 = vld [vmem:[#allocation10 + $0x186c] sm:$0xf0]  ;;  %v13444_v35 = vld [vmem:[#allocation10 + $0x514] sm:$0xf] }
 0x520   :  { %v12295_v10 = vld [vmem:[#allocation10 + $0x1a50] sm:$0xf]  ;;  %v12040_v3 = vor.u32 %v14064_v9, %v12039_v58  ;;  %7571 = vmatpush.bf16.msra.mxu2 %v12840_v1  ;;  %v9385_v58 = vld [vmem:[#allocation10 + $0x3b0] sm:$0xf0] }
 0x521   :  { %v14128_v11 = vld [vmem:[#allocation10 + $0x1a6c] sm:$0xf0]  ;;  %v13460_v9 = vld [vmem:[#allocation10 + $0x594] sm:$0xf] }
 0x522   :  { %v12551_v48 = vld [vmem:[#allocation10 + $0x1c50] sm:$0xf]  ;;  %v12296_v5 = vor.u32 %v14128_v11, %v12295_v10  ;;  %7533 = vmatpush.bf16.msrb.mxu3 %v12040_v3  ;;  %v13524_v1 = vld [vmem:[#allocation10 + $0x794] sm:$0xf]  ;;  %v9132_v11 = vor.u32 %v13332_v4, %v9129_v6 }
 0x523   :  { %v14192_v16 = vld [vmem:[#allocation10 + $0x1c6c] sm:$0xf0]  ;;  %v9897_v10 = vld [vmem:[#allocation10 + $0x7b0] sm:$0xf0] }
 0x524   :  { %v12807_v52 = vld [vmem:[#allocation10 + $0x1e50] sm:$0xf]  ;;  %v12552_v14 = vor.u32 %v14192_v16, %v12551_v48  ;;  %7546 = vmatpush.bf16.msra.mxu0 %v12296_v5  ;;  %v9388_v48 = vor.u32 %v13396_v61, %v9385_v58  ;;  %v9097_v16 = vld [vmem:[#allocation10 + $0x170] sm:$0xf0] }
 0x525   :  { %v14256_v8 = vld [vmem:[#allocation10 + $0x1e6c] sm:$0xf0]  ;;  %v9353_v3 = vld [vmem:[#allocation10 + $0x370] sm:$0xf0] }
 0x526   :  { %v12007_v21 = vld [vmem:[#allocation10 + $0x1810] sm:$0xf]  ;;  %v12808_v18 = vor.u32 %v14256_v8, %v12807_v52  ;;  %7559 = vmatpush.bf16.msra.mxu1 %v12552_v14  ;;  %v9644_v52 = vor.u32 %v13460_v9, %v9641_v0  ;;  %v9900_v8 = vor.u32 %v13524_v1, %v9897_v10  ;;  %v13452_v5 = vld [vmem:[#allocation10 + $0x554] sm:$0xf]  ;;  %v9100_v14 = vor.u32 %v13324_v12, %v9097_v16 }
 0x527   :  { %v14056_v24 = vld [vmem:[#allocation10 + $0x182c] sm:$0xf0]  ;;  %v9577_v27 = vld [vmem:[#allocation10 + $0x530] sm:$0xf0] }
 0x528   :  { %v12263_v25 = vld [vmem:[#allocation10 + $0x1a10] sm:$0xf]  ;;  %v12008_v30 = vor.u32 %v14056_v24, %v12007_v21  ;;  %7572 = vmatpush.bf16.msra.mxu2 %v12808_v18  ;;  %v13388_v21 = vld [vmem:[#allocation10 + $0x354] sm:$0xf] }
 0x529   :  { %v14120_v17 = vld [vmem:[#allocation10 + $0x1a2c] sm:$0xf0]  ;;  %v9609_v24 = vld [vmem:[#allocation10 + $0x570] sm:$0xf0]  ;;  %v9356_v18 = vor.u32 %v13388_v21, %v9353_v3 }
 0x52a   :  { %v12519_v31 = vld [vmem:[#allocation10 + $0x1c10] sm:$0xf]  ;;  %v12264_v26 = vor.u32 %v14120_v17, %v12263_v25  ;;  %7534 = vmatpush.bf16.msrb.mxu3 %v12008_v30  ;;  %v13516_v25 = vld [vmem:[#allocation10 + $0x754] sm:$0xf]  ;;  %v7354_v30 = vpop.f32.mrf.mxu1 }
 0x52b   :  { %v14184_v20 = vld [vmem:[#allocation10 + $0x1c2c] sm:$0xf0]  ;;  %v9865_v17 = vld [vmem:[#allocation10 + $0x770] sm:$0xf0] }
 0x52c   :  { %v12775_v32 = vld [vmem:[#allocation10 + $0x1e10] sm:$0xf]  ;;  %v12520_v63 = vor.u32 %v14184_v20, %v12519_v31  ;;  %7547 = vmatpush.bf16.msra.mxu0 %v12264_v26  ;;  %v9065_v31 = vld [vmem:[#allocation10 + $0x130] sm:$0xf0]  ;;  %v9612_v20 = vor.u32 %v13452_v5, %v9609_v24  ;;  %v7343_v24 = vpop.f32.mrf.mxu0 }
 0x52d   :  { %v14248_v34 = vld [vmem:[#allocation10 + $0x1e2c] sm:$0xf0]  ;;  %7535 = vmatmul.bf16.vlgmr.msrb.gmra.mxu3 %v14768_v42  ;;  %v13508_v15 = vld [vmem:[#allocation10 + $0x714] sm:$0xf]  ;;  %v9068_v26 = vor.u32 %v13316_v28, %v9065_v31 }
 0x52e   :  { %v12776_v37 = vor.u32 %v14248_v34, %v12775_v32  ;;  %7560 = vmatpush.bf16.msra.mxu1 %v12520_v63  ;;  %7579 = vmatpush.bf16.msra.mxu3 %v9164_v36  ;;  %v9868_v32 = vor.u32 %v13516_v25, %v9865_v17  ;;  %v9321_v34 = vld [vmem:[#allocation10 + $0x330] sm:$0xf0]  ;;  %v9580_v63 = vor.u32 %v13444_v35, %v9577_v27 }
 0x52f   :  { %7548 = vmatmul.bf16.vlgmr.msra.gmra.mxu0 %v14770_v45  ;;  %v9833_v29 = vld [vmem:[#allocation10 + $0x730] sm:$0xf0]  ;;  %v9324_v40 = vor.u32 %v13380_v33, %v9321_v34 }
 0x530   :  { %7573 = vmatpush.bf16.msra.mxu2 %v12776_v37  ;;  %7592 = vmatpush.bf16.msrb.mxu0 %v9420_v2  ;;  %v13308_v41 = vld [vmem:[#allocation10 + $0xd4] sm:$0xf]  ;;  %v9836_v37 = vor.u32 %v13508_v15, %v9833_v29 }
 0x531   :  { %7561 = vmatmul.bf16.vlgmr.msra.gmra.mxu1 %v14772_v46  ;;  %v9033_v47 = vld [vmem:[#allocation10 + $0xf0] sm:$0xf0] }
 0x532   :  { %7605 = vmatpush.bf16.msrb.mxu1 %v9676_v7  ;;  %7580 = vmatpush.bf16.msra.mxu3 %v9132_v11  ;;  %v13372_v36 = vld [vmem:[#allocation10 + $0x2d4] sm:$0xf]  ;;  %v9036_v61 = vor.u32 %v13308_v41, %v9033_v47  ;;  %v7328_v11 = vpop.f32.mrf.mxu3  ;;  %v7356_v17 = vpop.f32.mrf.mxu1 }
 0x533   :  { %7574 = vmatmul.bf16.vlgmr.msra.gmra.mxu2 %v14774_v57  ;;  %v9289_v2 = vld [vmem:[#allocation10 + $0x2f0] sm:$0xf0] }
 0x534   :  { %7618 = vmatpush.bf16.msrb.mxu2 %v9932_v55  ;;  %7593 = vmatpush.bf16.msrb.mxu0 %v9388_v48  ;;  %v13436_v4 = vld [vmem:[#allocation10 + $0x4d4] sm:$0xf]  ;;  %v9292_v58 = vor.u32 %v13372_v36, %v9289_v2 }
 0x535   :  { %v9545_v6 = vld [vmem:[#allocation10 + $0x4f0] sm:$0xf0] }
 0x536   :  { %7606 = vmatpush.bf16.msrb.mxu1 %v9644_v52  ;;  %7581 = vmatpush.bf16.msra.mxu3 %v9100_v14  ;;  %v13500_v7 = vld [vmem:[#allocation10 + $0x6d4] sm:$0xf]  ;;  %v9548_v1 = vor.u32 %v13436_v4, %v9545_v6  ;;  %v7329_v52 = vadd.f32 %v7328_v11, %v14877_v22 }
 0x537   :  { %v9801_v55 = vld [vmem:[#allocation10 + $0x6f0] sm:$0xf0] }
 0x538   :  { %7619 = vmatpush.bf16.msrb.mxu2 %v9900_v8  ;;  %7594 = vmatpush.bf16.msrb.mxu0 %v9356_v18  ;;  %v13300_v9 = vld [vmem:[#allocation10 + $0x94] sm:$0xf]  ;;  %v9804_v10 = vor.u32 %v13500_v7, %v9801_v55  ;;  %v7367_v8 = vpop.f32.mrf.mxu2  ;;  %v7342_v25 = vadd.f32 %v7341_v23, %v7329_v52 }
 0x539   :  { %v9001_v0 = vld [vmem:[#allocation10 + $0xb0] sm:$0xf0] }
 0x53a   :  { %7607 = vmatpush.bf16.msrb.mxu1 %v9612_v20  ;;  %7582 = vmatpush.bf16.msra.mxu3 %v9068_v26  ;;  %v13364_v48 = vld [vmem:[#allocation10 + $0x294] sm:$0xf]  ;;  %v9004_v14 = vor.u32 %v13300_v9, %v9001_v0  ;;  %v7355_v35 = vadd.f32 %v7354_v30, %v7342_v25  ;;  %v7330_v4 = vpop.f32.mrf.mxu3 }
 0x53b   :  { %v9257_v12 = vld [vmem:[#allocation10 + $0x2b0] sm:$0xf0] }
 0x53c   :  { %7620 = vmatpush.bf16.msrb.mxu2 %v9868_v32  ;;  %7595 = vmatpush.bf16.msrb.mxu0 %v9324_v40  ;;  %v13428_v16 = vld [vmem:[#allocation10 + $0x494] sm:$0xf]  ;;  %v9260_v18 = vor.u32 %v13364_v48, %v9257_v12  ;;  %v14884_v40 = vadd.f32 %v7367_v8, %v7355_v35 }
 0x53d   :  { %v9513_v21 = vld [vmem:[#allocation10 + $0x4b0] sm:$0xf0] }
 0x53e   :  { %7608 = vmatpush.bf16.msrb.mxu1 %v9580_v63  ;;  %v13492_v3 = vld [vmem:[#allocation10 + $0x694] sm:$0xf]  ;;  %7583 = vmatpush.bf16.msra.mxu3 %v9036_v61  ;;  %v9516_v20 = vor.u32 %v13428_v16, %v9513_v21 }
 0x53f   :  { %v9769_v5 = vld [vmem:[#allocation10 + $0x6b0] sm:$0xf0] }
 0x540   :  { %7621 = vmatpush.bf16.msrb.mxu2 %v9836_v37  ;;  %7596 = vmatpush.bf16.msrb.mxu0 %v9292_v58  ;;  %v13292_v28 = vld [vmem:[#allocation10 + $0x54] sm:$0xf]  ;;  %v9772_v32 = vor.u32 %v13492_v3, %v9769_v5  ;;  %v7369_v55 = vpop.f32.mrf.mxu2 }
 0x541   :  { %v8969_v31 = vld [vmem:[#allocation10 + $0x70] sm:$0xf0] }
 0x542   :  { %7609 = vmatpush.bf16.msrb.mxu1 %v9548_v1  ;;  %v13356_v33 = vld [vmem:[#allocation10 + $0x254] sm:$0xf]  ;;  %7584 = vmatpush.bf16.msra.mxu3 %v9004_v14  ;;  %v8972_v23 = vor.u32 %v13292_v28, %v8969_v31 }
 0x543   :  { %v9225_v34 = vld [vmem:[#allocation10 + $0x270] sm:$0xf0] }
 0x544   :  { %7622 = vmatpush.bf16.msrb.mxu2 %v9804_v10  ;;  %v13420_v22 = vld [vmem:[#allocation10 + $0x454] sm:$0xf]  ;;  %7597 = vmatpush.bf16.msrb.mxu0 %v9260_v18  ;;  %v9228_v41 = vor.u32 %v13356_v33, %v9225_v34 }
 0x545   :  { %v9481_v27 = vld [vmem:[#allocation10 + $0x470] sm:$0xf0] }
 0x546   :  { %v13484_v15 = vld [vmem:[#allocation10 + $0x654] sm:$0xf]  ;;  %7610 = vmatpush.bf16.msrb.mxu1 %v9516_v20  ;;  %v9484_v36 = vor.u32 %v13420_v22, %v9481_v27  ;;  %7585 = vmatpush.bf16.msra.mxu3 %v8972_v23 }
 0x547   :  { %v9737_v29 = vld [vmem:[#allocation10 + $0x670] sm:$0xf0] }
 0x548   :  { %v13284_v26 = vld [vmem:[#allocation10 + $0x14] sm:$0xf]  ;;  %7623 = vmatpush.bf16.msrb.mxu2 %v9772_v32  ;;  %v9740_v2 = vor.u32 %v13484_v15, %v9737_v29  ;;  %7598 = vmatpush.bf16.msrb.mxu0 %v9228_v41 }
 0x549   :  { %v8937_v47 = vld [vmem:[#allocation10 + $0x30] sm:$0xf0] }
 0x54a   :  { %v13348_v63 = vld [vmem:[#allocation10 + $0x214] sm:$0xf]  ;;  %v8940_v11 = vor.u32 %v13284_v26, %v8937_v47  ;;  %7611 = vmatpush.bf16.msrb.mxu1 %v9484_v36 }
 0x54b   :  { %v9193_v37 = vld [vmem:[#allocation10 + $0x230] sm:$0xf0] }
 0x54c   :  { %v13412_v6 = vld [vmem:[#allocation10 + $0x414] sm:$0xf]  ;;  %v9196_v48 = vor.u32 %v13348_v63, %v9193_v37  ;;  %7624 = vmatpush.bf16.msrb.mxu2 %v9740_v2  ;;  %7586 = vmatpush.bf16.msra.mxu3 %v8940_v11  ;;  %v7406_v11 = vpop.f32.mrf.mxu1 }
 0x54d   :  { %v9449_v30 = vld [vmem:[#allocation10 + $0x430] sm:$0xf0] }
 0x54e   :  { %v13476_v7 = vld [vmem:[#allocation10 + $0x614] sm:$0xf]  ;;  %v9452_v8 = vor.u32 %v13412_v6, %v9449_v30  ;;  %7599 = vmatpush.bf16.msrb.mxu0 %v9196_v48 }
 0x54f   :  { %v9705_v61 = vld [vmem:[#allocation10 + $0x630] sm:$0xf0]  ;;  %7587 = vmatmul.bf16.vlgmr.msra.gmra.mxu3 %v14716_v49 }
 0x550   :  { %v13596_v58 = vld [vmem:[#allocation10 + $0x9d4] sm:$0xf]  ;;  %v9708_v21 = vor.u32 %v13476_v7, %v9705_v61  ;;  %7612 = vmatpush.bf16.msrb.mxu1 %v9452_v8 }
 0x551   :  { %v10185_v9 = vld [vmem:[#allocation10 + $0x9f0] sm:$0xf0]  ;;  %7600 = vmatmul.bf16.vlgmr.msrb.gmra.mxu0 %v14718_v50 }
 0x552   :  { %v13660_v0 = vld [vmem:[#allocation10 + $0xbd4] sm:$0xf]  ;;  %v10188_v3 = vor.u32 %v13596_v58, %v10185_v9  ;;  %7625 = vmatpush.bf16.msrb.mxu2 %v9708_v21 }
 0x553   :  { %v10441_v1 = vld [vmem:[#allocation10 + $0xbf0] sm:$0xf0]  ;;  %7613 = vmatmul.bf16.vlgmr.msrb.gmra.mxu1 %v14720_v51 }
 0x554   :  { %v13724_v10 = vld [vmem:[#allocation10 + $0xdd4] sm:$0xf]  ;;  %v10444_v5 = vor.u32 %v13660_v0, %v10441_v1  ;;  %7631 = vmatpush.bf16.msrb.mxu3 %v10188_v3 }
 0x555   :  { %v10697_v12 = vld [vmem:[#allocation10 + $0xdf0] sm:$0xf0]  ;;  %7626 = vmatmul.bf16.vlgmr.msrb.gmra.mxu2 %v14726_v56 }
 0x556   :  { %v13788_v16 = vld [vmem:[#allocation10 + $0xfd4] sm:$0xf]  ;;  %v10700_v17 = vor.u32 %v13724_v10, %v10697_v12  ;;  %7644 = vmatpush.bf16.msra.mxu0 %v10444_v5  ;;  %v7393_v10 = vpop.f32.mrf.mxu0 }
 0x557   :  { %v10953_v52 = vld [vmem:[#allocation10 + $0xff0] sm:$0xf0] }
 0x558   :  { %v13588_v24 = vld [vmem:[#allocation10 + $0x994] sm:$0xf]  ;;  %v10956_v14 = vor.u32 %v13788_v16, %v10953_v52  ;;  %7657 = vmatpush.bf16.msra.mxu1 %v10700_v17 }
 0x559   :  { %v10153_v25 = vld [vmem:[#allocation10 + $0x9b0] sm:$0xf0] }
 0x55a   :  { %v13652_v18 = vld [vmem:[#allocation10 + $0xb94] sm:$0xf]  ;;  %v10156_v34 = vor.u32 %v13588_v24, %v10153_v25  ;;  %7670 = vmatpush.bf16.msra.mxu2 %v10956_v14 }
 0x55b   :  { %v10409_v28 = vld [vmem:[#allocation10 + $0xbb0] sm:$0xf0] }
 0x55c   :  { %v13716_v31 = vld [vmem:[#allocation10 + $0xd94] sm:$0xf]  ;;  %v10412_v22 = vor.u32 %v13652_v18, %v10409_v28  ;;  %7632 = vmatpush.bf16.msrb.mxu3 %v10156_v34  ;;  %v14387_v18 = vld [vmem:[#allocation11] sm:$0xff] }
 0x55d   :  { %v10665_v20 = vld [vmem:[#allocation10 + $0xdb0] sm:$0xf0]  ;;  %v1407_v28 = vperm.slane %v14387_v18, 4 }
 0x55e   :  { %v13780_v32 = vld [vmem:[#allocation10 + $0xf94] sm:$0xf]  ;;  %v10668_v15 = vor.u32 %v13716_v31, %v10665_v20  ;;  %7645 = vmatpush.bf16.msra.mxu0 %v10412_v22 }
 0x55f   :  { %v10921_v33 = vld [vmem:[#allocation10 + $0xfb0] sm:$0xf0] }
 0x560   :  { %v13580_v35 = vld [vmem:[#allocation10 + $0x954] sm:$0xf]  ;;  %v10924_v29 = vor.u32 %v13780_v32, %v10921_v33  ;;  %7658 = vmatpush.bf16.msra.mxu1 %v10668_v15 }
 0x561   :  { %v10121_v27 = vld [vmem:[#allocation10 + $0x970] sm:$0xf0] }
 0x562   :  { %v13644_v26 = vld [vmem:[#allocation10 + $0xb54] sm:$0xf]  ;;  %v10124_v36 = vor.u32 %v13580_v35, %v10121_v27  ;;  %7671 = vmatpush.bf16.msra.mxu2 %v10924_v29  ;;  %v7380_v35 = vpop.f32.mrf.mxu3 }
 0x563   :  { %v10377_v23 = vld [vmem:[#allocation10 + $0xb70] sm:$0xf0] }
 0x564   :  { %v13708_v41 = vld [vmem:[#allocation10 + $0xd54] sm:$0xf]  ;;  %v10380_v2 = vor.u32 %v13644_v26, %v10377_v23  ;;  %7633 = vmatpush.bf16.msrb.mxu3 %v10124_v36  ;;  %v7381_v26 = vadd.f32 %v7380_v35, %v1407_v28  ;;  %v7419_v23 = vpop.f32.mrf.mxu2 }
 0x565   :  { %v10633_v47 = vld [vmem:[#allocation10 + $0xd70] sm:$0xf0] }
 0x566   :  { %v13772_v63 = vld [vmem:[#allocation10 + $0xf54] sm:$0xf]  ;;  %v10636_v30 = vor.u32 %v13708_v41, %v10633_v47  ;;  %7646 = vmatpush.bf16.msra.mxu0 %v10380_v2  ;;  %v7394_v36 = vadd.f32 %v7393_v10, %v7381_v26  ;;  %v7408_v2 = vpop.f32.mrf.mxu1 }
 0x567   :  { %v10889_v37 = vld [vmem:[#allocation10 + $0xf70] sm:$0xf0] }
 0x568   :  { %v13572_v4 = vld [vmem:[#allocation10 + $0x914] sm:$0xf]  ;;  %v10892_v7 = vor.u32 %v13772_v63, %v10889_v37  ;;  %7659 = vmatpush.bf16.msra.mxu1 %v10636_v30  ;;  %v7395_v37 = vpop.f32.mrf.mxu0 }
 0x569   :  { %v10089_v6 = vld [vmem:[#allocation10 + $0x930] sm:$0xf0] }
 0x56a   :  { %v13636_v55 = vld [vmem:[#allocation10 + $0xb14] sm:$0xf]  ;;  %v10092_v48 = vor.u32 %v13572_v4, %v10089_v6  ;;  %7672 = vmatpush.bf16.msra.mxu2 %v10892_v7 }
 0x56b   :  { %v10345_v61 = vld [vmem:[#allocation10 + $0xb30] sm:$0xf0] }
 0x56c   :  { %v13700_v58 = vld [vmem:[#allocation10 + $0xd14] sm:$0xf]  ;;  %v10348_v12 = vor.u32 %v13636_v55, %v10345_v61  ;;  %7634 = vmatpush.bf16.msrb.mxu3 %v10092_v48 }
 0x56d   :  { %v10601_v9 = vld [vmem:[#allocation10 + $0xd30] sm:$0xf0] }
 0x56e   :  { %v13764_v0 = vld [vmem:[#allocation10 + $0xf14] sm:$0xf]  ;;  %v10604_v21 = vor.u32 %v13700_v58, %v10601_v9  ;;  %7647 = vmatpush.bf16.msra.mxu0 %v10348_v12 }
 0x56f   :  { %v10857_v1 = vld [vmem:[#allocation10 + $0xf30] sm:$0xf0] }
 0x570   :  { %v13564_v16 = vld [vmem:[#allocation10 + $0x8d4] sm:$0xf]  ;;  %v10860_v3 = vor.u32 %v13764_v0, %v10857_v1  ;;  %7660 = vmatpush.bf16.msra.mxu1 %v10604_v21  ;;  %v7407_v1 = vadd.f32 %v7406_v11, %v7394_v36 }
 0x571   :  { %v10057_v52 = vld [vmem:[#allocation10 + $0x8f0] sm:$0xf0] }
 0x572   :  { %v13628_v8 = vld [vmem:[#allocation10 + $0xad4] sm:$0xf]  ;;  %v10060_v31 = vor.u32 %v13564_v16, %v10057_v52  ;;  %7673 = vmatpush.bf16.msra.mxu2 %v10860_v3 }
 0x573   :  { %v10313_v5 = vld [vmem:[#allocation10 + $0xaf0] sm:$0xf0] }
 0x574   :  { %v13692_v24 = vld [vmem:[#allocation10 + $0xcd4] sm:$0xf]  ;;  %v10316_v20 = vor.u32 %v13628_v8, %v10313_v5  ;;  %7635 = vmatpush.bf16.msrb.mxu3 %v10060_v31  ;;  %v14890_v8 = vadd.f32 %v7419_v23, %v7407_v1  ;;  %v7421_v31 = vpop.f32.mrf.mxu2 }
 0x575   :  { %v10569_v25 = vld [vmem:[#allocation10 + $0xcf0] sm:$0xf0] }
 0x576   :  { %v13756_v17 = vld [vmem:[#allocation10 + $0xed4] sm:$0xf]  ;;  %v10572_v34 = vor.u32 %v13692_v24, %v10569_v25  ;;  %7648 = vmatpush.bf16.msra.mxu0 %v10316_v20 }
 0x577   :  { %v10825_v14 = vld [vmem:[#allocation10 + $0xef0] sm:$0xf0] }
 0x578   :  { %v13556_v32 = vld [vmem:[#allocation10 + $0x894] sm:$0xf]  ;;  %v10828_v22 = vor.u32 %v13756_v17, %v10825_v14  ;;  %7661 = vmatpush.bf16.msra.mxu1 %v10572_v34  ;;  %v7382_v14 = vpop.f32.mrf.mxu3 }
 0x579   :  { %v10025_v33 = vld [vmem:[#allocation10 + $0x8b0] sm:$0xf0] }
 0x57a   :  { %v13620_v27 = vld [vmem:[#allocation10 + $0xa94] sm:$0xf]  ;;  %v10028_v4 = vor.u32 %v13556_v32, %v10025_v33  ;;  %7674 = vmatpush.bf16.msra.mxu2 %v10828_v22 }
 0x57b   :  { %v10281_v15 = vld [vmem:[#allocation10 + $0xab0] sm:$0xf0] }
 0x57c   :  { %v13684_v29 = vld [vmem:[#allocation10 + $0xc94] sm:$0xf]  ;;  %v10284_v6 = vor.u32 %v13620_v27, %v10281_v15  ;;  %7636 = vmatpush.bf16.msrb.mxu3 %v10028_v4 }
 0x57d   :  { %v10537_v41 = vld [vmem:[#allocation10 + $0xcb0] sm:$0xf0] }
 0x57e   :  { %v13748_v47 = vld [vmem:[#allocation10 + $0xe94] sm:$0xf]  ;;  %v10540_v55 = vor.u32 %v13684_v29, %v10537_v41  ;;  %7649 = vmatpush.bf16.msra.mxu0 %v10284_v6 }
 0x57f   :  { %v10793_v63 = vld [vmem:[#allocation10 + $0xeb0] sm:$0xf0] }
 0x580   :  { %v13548_v30 = vld [vmem:[#allocation10 + $0x854] sm:$0xf]  ;;  %v10796_v61 = vor.u32 %v13748_v47, %v10793_v63  ;;  %7662 = vmatpush.bf16.msra.mxu1 %v10540_v55 }
 0x581   :  { %v9993_v7 = vld [vmem:[#allocation10 + $0x870] sm:$0xf0] }
 0x582   :  { %v13612_v58 = vld [vmem:[#allocation10 + $0xa54] sm:$0xf]  ;;  %v9996_v10 = vor.u32 %v13548_v30, %v9993_v7  ;;  %7675 = vmatpush.bf16.msra.mxu2 %v10796_v61 }
 0x583   :  { %v10249_v9 = vld [vmem:[#allocation10 + $0xa70] sm:$0xf0] }
 0x584   :  { %v13676_v0 = vld [vmem:[#allocation10 + $0xc54] sm:$0xf]  ;;  %v10252_v21 = vor.u32 %v13612_v58, %v10249_v9  ;;  %7637 = vmatpush.bf16.msrb.mxu3 %v9996_v10 }
 0x585   :  { %v10505_v48 = vld [vmem:[#allocation10 + $0xc70] sm:$0xf0] }
 0x586   :  { %v13740_v12 = vld [vmem:[#allocation10 + $0xe54] sm:$0xf]  ;;  %v10508_v25 = vor.u32 %v13676_v0, %v10505_v48  ;;  %7650 = vmatpush.bf16.msra.mxu0 %v10252_v21 }
 0x587   :  { %v10761_v16 = vld [vmem:[#allocation10 + $0xe70] sm:$0xf0] }
 0x588   :  { %v13540_v52 = vld [vmem:[#allocation10 + $0x814] sm:$0xf]  ;;  %v10764_v17 = vor.u32 %v13740_v12, %v10761_v16  ;;  %7663 = vmatpush.bf16.msra.mxu1 %v10508_v25 }
 0x589   :  { %v9961_v3 = vld [vmem:[#allocation10 + $0x830] sm:$0xf0] }
 0x58a   :  { %v13604_v5 = vld [vmem:[#allocation10 + $0xa14] sm:$0xf]  ;;  %v9964_v27 = vor.u32 %v13540_v52, %v9961_v3  ;;  %7676 = vmatpush.bf16.msra.mxu2 %v10764_v17 }
 0x58b   :  { %v10217_v24 = vld [vmem:[#allocation10 + $0xa30] sm:$0xf0] }
 0x58c   :  { %v13668_v18 = vld [vmem:[#allocation10 + $0xc14] sm:$0xf]  ;;  %v10220_v15 = vor.u32 %v13604_v5, %v10217_v24  ;;  %7638 = vmatpush.bf16.msrb.mxu3 %v9964_v27  ;;  %v7445_v27 = vpop.f32.mrf.mxu0 }
 0x58d   :  { %v10473_v11 = vld [vmem:[#allocation10 + $0xc30] sm:$0xf0] }
 0x58e   :  { %v13732_v28 = vld [vmem:[#allocation10 + $0xe14] sm:$0xf]  ;;  %v10476_v41 = vor.u32 %v13668_v18, %v10473_v11  ;;  %7651 = vmatpush.bf16.msra.mxu0 %v10220_v15  ;;  %v7458_v15 = vpop.f32.mrf.mxu1 }
 0x58f   :  { %v10729_v20 = vld [vmem:[#allocation10 + $0xe30] sm:$0xf0]  ;;  %7639 = vmatmul.bf16.vlgmr.msrb.gmra.mxu3 %v14738_v38 }
 0x590   :  { %v13852_v32 = vld [vmem:[#allocation10 + $0x11d4] sm:$0xf]  ;;  %v10732_v47 = vor.u32 %v13732_v28, %v10729_v20  ;;  %7664 = vmatpush.bf16.msra.mxu1 %v10476_v41 }
 0x591   :  { %v11209_v33 = vld [vmem:[#allocation10 + $0x11f0] sm:$0xf0]  ;;  %7652 = vmatmul.bf16.vlgmr.msra.gmra.mxu0 %v14742_v39 }
 0x592   :  { %v13916_v34 = vld [vmem:[#allocation10 + $0x13d4] sm:$0xf]  ;;  %v11212_v63 = vor.u32 %v13852_v32, %v11209_v33  ;;  %7677 = vmatpush.bf16.msra.mxu2 %v10732_v47 }
 0x593   :  { %v11465_v22 = vld [vmem:[#allocation10 + $0x13f0] sm:$0xf0]  ;;  %7665 = vmatmul.bf16.vlgmr.msra.gmra.mxu1 %v14746_v43 }
 0x594   :  { %v13980_v35 = vld [vmem:[#allocation10 + $0x15d4] sm:$0xf]  ;;  %v11468_v37 = vor.u32 %v13916_v34, %v11465_v22  ;;  %7683 = vmatpush.bf16.msra.mxu3 %v11212_v63 }
 0x595   :  { %v11721_v29 = vld [vmem:[#allocation10 + $0x15f0] sm:$0xf0]  ;;  %7678 = vmatmul.bf16.vlgmr.msra.gmra.mxu2 %v14750_v44 }
 0x596   :  { %v14044_v26 = vld [vmem:[#allocation10 + $0x17d4] sm:$0xf]  ;;  %v11724_v4 = vor.u32 %v13980_v35, %v11721_v29  ;;  %7696 = vmatpush.bf16.msrb.mxu0 %v11468_v37 }
 0x597   :  { %v11977_v23 = vld [vmem:[#allocation10 + $0x17f0] sm:$0xf0] }
 0x598   :  { %v13844_v36 = vld [vmem:[#allocation10 + $0x1194] sm:$0xf]  ;;  %v11980_v6 = vor.u32 %v14044_v26, %v11977_v23  ;;  %7709 = vmatpush.bf16.msrb.mxu1 %v11724_v4 }
 0x599   :  { %v11177_v2 = vld [vmem:[#allocation10 + $0x11b0] sm:$0xf0] }
 0x59a   :  { %v13908_v30 = vld [vmem:[#allocation10 + $0x1394] sm:$0xf]  ;;  %v11180_v0 = vor.u32 %v13844_v36, %v11177_v2  ;;  %7722 = vmatpush.bf16.msrb.mxu2 %v11980_v6 }
 0x59b   :  { %v11433_v7 = vld [vmem:[#allocation10 + $0x13b0] sm:$0xf0] }
 0x59c   :  { %v13972_v55 = vld [vmem:[#allocation10 + $0x1594] sm:$0xf]  ;;  %v11436_v1 = vor.u32 %v13908_v30, %v11433_v7  ;;  %7684 = vmatpush.bf16.msra.mxu3 %v11180_v0 }
 0x59d   :  { %v11689_v61 = vld [vmem:[#allocation10 + $0x15b0] sm:$0xf0] }
 0x59e   :  { %v14036_v58 = vld [vmem:[#allocation10 + $0x1794] sm:$0xf]  ;;  %v11692_v16 = vor.u32 %v13972_v55, %v11689_v61  ;;  %7697 = vmatpush.bf16.msrb.mxu0 %v11436_v1  ;;  %v7432_v1 = vpop.f32.mrf.mxu3 }
 0x59f   :  { %v11945_v9 = vld [vmem:[#allocation10 + $0x17b0] sm:$0xf0] }
 0x5a0   :  { %v13836_v48 = vld [vmem:[#allocation10 + $0x1154] sm:$0xf]  ;;  %v11948_v52 = vor.u32 %v14036_v58, %v11945_v9  ;;  %7710 = vmatpush.bf16.msrb.mxu1 %v11692_v16 }
 0x5a1   :  { %v11145_v12 = vld [vmem:[#allocation10 + $0x1170] sm:$0xf0] }
 0x5a2   :  { %v13900_v10 = vld [vmem:[#allocation10 + $0x1354] sm:$0xf]  ;;  %v11148_v17 = vor.u32 %v13836_v48, %v11145_v12  ;;  %7723 = vmatpush.bf16.msrb.mxu2 %v11948_v52  ;;  %v7433_v52 = vadd.f32 %v7432_v1, %v14890_v8 }
 0x5a3   :  { %v11401_v21 = vld [vmem:[#allocation10 + $0x1370] sm:$0xf0] }
 0x5a4   :  { %v13964_v3 = vld [vmem:[#allocation10 + $0x1554] sm:$0xf]  ;;  %v11404_v14 = vor.u32 %v13900_v10, %v11401_v21  ;;  %7685 = vmatpush.bf16.msra.mxu3 %v11148_v17  ;;  %v7471_v10 = vpop.f32.mrf.mxu2  ;;  %v7460_v17 = vpop.f32.mrf.mxu1 }
 0x5a5   :  { %v11657_v5 = vld [vmem:[#allocation10 + $0x1570] sm:$0xf0] }
 0x5a6   :  { %v14028_v24 = vld [vmem:[#allocation10 + $0x1754] sm:$0xf]  ;;  %v11660_v28 = vor.u32 %v13964_v3, %v11657_v5  ;;  %7698 = vmatpush.bf16.msrb.mxu0 %v11404_v14 }
 0x5a7   :  { %v11913_v25 = vld [vmem:[#allocation10 + $0x1770] sm:$0xf0] }
 0x5a8   :  { %v13828_v18 = vld [vmem:[#allocation10 + $0x1114] sm:$0xf]  ;;  %v11916_v31 = vor.u32 %v14028_v24, %v11913_v25  ;;  %7711 = vmatpush.bf16.msrb.mxu1 %v11660_v28  ;;  %v7447_v24 = vpop.f32.mrf.mxu0  ;;  %v7446_v25 = vadd.f32 %v7445_v27, %v7433_v52 }
 0x5a9   :  { %v11113_v11 = vld [vmem:[#allocation10 + $0x1130] sm:$0xf0] }
 0x5aa   :  { %v13892_v20 = vld [vmem:[#allocation10 + $0x1314] sm:$0xf]  ;;  %v11116_v29 = vor.u32 %v13828_v18, %v11113_v11  ;;  %7724 = vmatpush.bf16.msrb.mxu2 %v11916_v31 }
 0x5ab   :  { %v11369_v32 = vld [vmem:[#allocation10 + $0x1330] sm:$0xf0] }
 0x5ac   :  { %v13956_v33 = vld [vmem:[#allocation10 + $0x1514] sm:$0xf]  ;;  %v11372_v26 = vor.u32 %v13892_v20, %v11369_v32  ;;  %7686 = vmatpush.bf16.msra.mxu3 %v11116_v29 }
 0x5ad   :  { %v11625_v34 = vld [vmem:[#allocation10 + $0x1530] sm:$0xf0] }
 0x5ae   :  { %v14020_v22 = vld [vmem:[#allocation10 + $0x1714] sm:$0xf]  ;;  %v11628_v47 = vor.u32 %v13956_v33, %v11625_v34  ;;  %7699 = vmatpush.bf16.msrb.mxu0 %v11372_v26  ;;  %v7459_v34 = vadd.f32 %v7458_v15, %v7446_v25 }
 0x5af   :  { %v11881_v35 = vld [vmem:[#allocation10 + $0x1730] sm:$0xf0] }
 0x5b0   :  { %v13820_v23 = vld [vmem:[#allocation10 + $0x10d4] sm:$0xf]  ;;  %v11884_v63 = vor.u32 %v14020_v22, %v11881_v35  ;;  %7712 = vmatpush.bf16.msrb.mxu1 %v11628_v47 }
 0x5b1   :  { %v11081_v41 = vld [vmem:[#allocation10 + $0x10f0] sm:$0xf0] }
 0x5b2   :  { %v13884_v37 = vld [vmem:[#allocation10 + $0x12d4] sm:$0xf]  ;;  %v11084_v7 = vor.u32 %v13820_v23, %v11081_v41  ;;  %7725 = vmatpush.bf16.msrb.mxu2 %v11884_v63  ;;  %v14897_v23 = vadd.f32 %v7471_v10, %v7459_v34 }
 0x5b3   :  { %v11337_v36 = vld [vmem:[#allocation10 + $0x12f0] sm:$0xf0] }
 0x5b4   :  { %v13948_v2 = vld [vmem:[#allocation10 + $0x14d4] sm:$0xf]  ;;  %v11340_v55 = vor.u32 %v13884_v37, %v11337_v36  ;;  %7687 = vmatpush.bf16.msra.mxu3 %v11084_v7  ;;  %v7473_v7 = vpop.f32.mrf.mxu2 }
 0x5b5   :  { %v11593_v4 = vld [vmem:[#allocation10 + $0x14f0] sm:$0xf0] }
 0x5b6   :  { %v14012_v6 = vld [vmem:[#allocation10 + $0x16d4] sm:$0xf]  ;;  %v11596_v9 = vor.u32 %v13948_v2, %v11593_v4  ;;  %7700 = vmatpush.bf16.msrb.mxu0 %v11340_v55  ;;  %v7434_v4 = vpop.f32.mrf.mxu3 }
 0x5b7   :  { %v11849_v30 = vld [vmem:[#allocation10 + $0x16f0] sm:$0xf0] }
 0x5b8   :  { %v13812_v61 = vld [vmem:[#allocation10 + $0x1094] sm:$0xf]  ;;  %v11852_v0 = vor.u32 %v14012_v6, %v11849_v30  ;;  %7713 = vmatpush.bf16.msrb.mxu1 %v11596_v9 }
 0x5b9   :  { %v11049_v58 = vld [vmem:[#allocation10 + $0x10b0] sm:$0xf0] }
 0x5ba   :  { %v13876_v48 = vld [vmem:[#allocation10 + $0x1294] sm:$0xf]  ;;  %v11052_v14 = vor.u32 %v13812_v61, %v11049_v58  ;;  %7726 = vmatpush.bf16.msrb.mxu2 %v11852_v0 }
 0x5bb   :  { %v11305_v12 = vld [vmem:[#allocation10 + $0x12b0] sm:$0xf0] }
 0x5bc   :  { %v13940_v16 = vld [vmem:[#allocation10 + $0x1494] sm:$0xf]  ;;  %v11308_v18 = vor.u32 %v13876_v48, %v11305_v12  ;;  %7688 = vmatpush.bf16.msra.mxu3 %v11052_v14 }
 0x5bd   :  { %v11561_v21 = vld [vmem:[#allocation10 + $0x14b0] sm:$0xf0] }
 0x5be   :  { %v14004_v3 = vld [vmem:[#allocation10 + $0x1694] sm:$0xf]  ;;  %v11564_v31 = vor.u32 %v13940_v16, %v11561_v21  ;;  %7701 = vmatpush.bf16.msrb.mxu0 %v11308_v18 }
 0x5bf   :  { %v11817_v5 = vld [vmem:[#allocation10 + $0x16b0] sm:$0xf0] }
 0x5c0   :  { %v13804_v11 = vld [vmem:[#allocation10 + $0x1054] sm:$0xf]  ;;  %v11820_v20 = vor.u32 %v14004_v3, %v11817_v5  ;;  %7714 = vmatpush.bf16.msrb.mxu1 %v11564_v31 }
 0x5c1   :  { %v11017_v28 = vld [vmem:[#allocation10 + $0x1070] sm:$0xf0] }
 0x5c2   :  { %v13868_v32 = vld [vmem:[#allocation10 + $0x1254] sm:$0xf]  ;;  %v11020_v27 = vor.u32 %v13804_v11, %v11017_v28  ;;  %7727 = vmatpush.bf16.msrb.mxu2 %v11820_v20 }
 0x5c3   :  { %v11273_v33 = vld [vmem:[#allocation10 + $0x1270] sm:$0xf0] }
 0x5c4   :  { %v13932_v8 = vld [vmem:[#allocation10 + $0x1454] sm:$0xf]  ;;  %v11276_v41 = vor.u32 %v13868_v32, %v11273_v33  ;;  %7689 = vmatpush.bf16.msra.mxu3 %v11020_v27 }
 0x5c5   :  { %v11529_v22 = vld [vmem:[#allocation10 + $0x1470] sm:$0xf0] }
 0x5c6   :  { %v13996_v35 = vld [vmem:[#allocation10 + $0x1654] sm:$0xf]  ;;  %v11532_v36 = vor.u32 %v13932_v8, %v11529_v22  ;;  %7702 = vmatpush.bf16.msrb.mxu0 %v11276_v41 }
 0x5c7   :  { %v11785_v29 = vld [vmem:[#allocation10 + $0x1670] sm:$0xf0] }
 0x5c8   :  { %v13796_v26 = vld [vmem:[#allocation10 + $0x1014] sm:$0xf]  ;;  %v11788_v2 = vor.u32 %v13996_v35, %v11785_v29  ;;  %7715 = vmatpush.bf16.msrb.mxu1 %v11532_v36 }
 0x5c9   :  { %v10985_v47 = vld [vmem:[#allocation10 + $0x1030] sm:$0xf0] }
 0x5ca   :  { %v13860_v63 = vld [vmem:[#allocation10 + $0x1214] sm:$0xf]  ;;  %v10988_v48 = vor.u32 %v13796_v26, %v10985_v47  ;;  %7728 = vmatpush.bf16.msrb.mxu2 %v11788_v2 }
 0x5cb   :  { %v11241_v37 = vld [vmem:[#allocation10 + $0x1230] sm:$0xf0] }
 0x5cc   :  { %v13924_v6 = vld [vmem:[#allocation10 + $0x1414] sm:$0xf]  ;;  %v11244_v12 = vor.u32 %v13860_v63, %v11241_v37  ;;  %7690 = vmatpush.bf16.msra.mxu3 %v10988_v48  ;;  %v7497_v48 = vpop.f32.mrf.mxu0 }
 0x5cd   :  { %v11497_v15 = vld [vmem:[#allocation10 + $0x1430] sm:$0xf0] }
 0x5ce   :  { %v13988_v30 = vld [vmem:[#allocation10 + $0x1614] sm:$0xf]  ;;  %v11500_v21 = vor.u32 %v13924_v6, %v11497_v15  ;;  %7703 = vmatpush.bf16.msrb.mxu0 %v11244_v12  ;;  %v7510_v12 = vpop.f32.mrf.mxu1 }
 0x5cf   :  { %v11753_v55 = vld [vmem:[#allocation10 + $0x1630] sm:$0xf0]  ;;  %7691 = vmatmul.bf16.vlgmr.msra.gmra.mxu3 %v14756_v53 }
 0x5d0   :  { %v14108_v61 = vld [vmem:[#allocation10 + $0x19d4] sm:$0xf]  ;;  %v11756_v3 = vor.u32 %v13988_v30, %v11753_v55  ;;  %7716 = vmatpush.bf16.msrb.mxu1 %v11500_v21 }
 0x5d1   :  { %v12233_v58 = vld [vmem:[#allocation10 + $0x19f0] sm:$0xf0]  ;;  %7704 = vmatmul.bf16.vlgmr.msrb.gmra.mxu0 %v14758_v54 }
 0x5d2   :  { %v14172_v9 = vld [vmem:[#allocation10 + $0x1bd4] sm:$0xf]  ;;  %v12236_v5 = vor.u32 %v14108_v61, %v12233_v58  ;;  %7729 = vmatpush.bf16.msrb.mxu2 %v11756_v3 }
 0x5d3   :  { %v12489_v0 = vld [vmem:[#allocation10 + $0x1bf0] sm:$0xf0]  ;;  %7717 = vmatmul.bf16.vlgmr.msrb.gmra.mxu1 %v14760_v59 }
 0x5d4   :  { %v14236_v1 = vld [vmem:[#allocation10 + $0x1dd4] sm:$0xf]  ;;  %v12492_v24 = vor.u32 %v14172_v9, %v12489_v0  ;;  %7735 = vmatpush.bf16.msrb.mxu3 %v12236_v5 }
 0x5d5   :  { %v12745_v16 = vld [vmem:[#allocation10 + $0x1df0] sm:$0xf0]  ;;  %7730 = vmatmul.bf16.vlgmr.msrb.gmra.mxu2 %v14762_v60 }
 0x5d6   :  { %v14300_v52 = vld [vmem:[#allocation10 + $0x1fd4] sm:$0xf]  ;;  %v12748_v14 = vor.u32 %v14236_v1, %v12745_v16  ;;  %7748 = vmatpush.bf16.msra.mxu0 %v12492_v24 }
 0x5d7   :  { %v13001_v10 = vld [vmem:[#allocation10 + $0x1ff0] sm:$0xf0] }
 0x5d8   :  { %v14100_v25 = vld [vmem:[#allocation10 + $0x1994] sm:$0xf]  ;;  %v13004_v18 = vor.u32 %v14300_v52, %v13001_v10  ;;  %7761 = vmatpush.bf16.msra.mxu1 %v12748_v14 }
 0x5d9   :  { %v12201_v17 = vld [vmem:[#allocation10 + $0x19b0] sm:$0xf0] }
 0x5da   :  { %v14164_v11 = vld [vmem:[#allocation10 + $0x1b94] sm:$0xf]  ;;  %v12204_v8 = vor.u32 %v14100_v25, %v12201_v17  ;;  %7774 = vmatpush.bf16.msra.mxu2 %v13004_v18 }
 0x5db   :  { %v12457_v28 = vld [vmem:[#allocation10 + $0x1bb0] sm:$0xf0] }
 0x5dc   :  { %v14228_v31 = vld [vmem:[#allocation10 + $0x1d94] sm:$0xf]  ;;  %v12460_v34 = vor.u32 %v14164_v11, %v12457_v28  ;;  %7736 = vmatpush.bf16.msrb.mxu3 %v12204_v8 }
 0x5dd   :  { %v12713_v20 = vld [vmem:[#allocation10 + $0x1db0] sm:$0xf0] }
 0x5de   :  { %v14292_v32 = vld [vmem:[#allocation10 + $0x1f94] sm:$0xf]  ;;  %v12716_v29 = vor.u32 %v14228_v31, %v12713_v20  ;;  %7749 = vmatpush.bf16.msra.mxu0 %v12460_v34  ;;  %v7484_v34 = vpop.f32.mrf.mxu3 }
 0x5df   :  { %v12969_v33 = vld [vmem:[#allocation10 + $0x1fb0] sm:$0xf0] }
 0x5e0   :  { %v14092_v22 = vld [vmem:[#allocation10 + $0x1954] sm:$0xf]  ;;  %v12972_v26 = vor.u32 %v14292_v32, %v12969_v33  ;;  %7762 = vmatpush.bf16.msra.mxu1 %v12716_v29 }
 0x5e1   :  { %v12169_v35 = vld [vmem:[#allocation10 + $0x1970] sm:$0xf0] }
 0x5e2   :  { %v14156_v27 = vld [vmem:[#allocation10 + $0x1b54] sm:$0xf]  ;;  %v12172_v2 = vor.u32 %v14092_v22, %v12169_v35  ;;  %7775 = vmatpush.bf16.msra.mxu2 %v12972_v26  ;;  %v7485_v26 = vadd.f32 %v7484_v34, %v14897_v23  ;;  %v9679_v34 = vld [vmem:[#allocation10 + $0x5d8] sm:$0xf] }
 0x5e3   :  { %v12425_v41 = vld [vmem:[#allocation10 + $0x1b70] sm:$0xf0] }
 0x5e4   :  { %v14220_v47 = vld [vmem:[#allocation10 + $0x1d54] sm:$0xf]  ;;  %v12428_v4 = vor.u32 %v14156_v27, %v12425_v41  ;;  %7737 = vmatpush.bf16.msrb.mxu3 %v12172_v2  ;;  %v7523_v27 = vpop.f32.mrf.mxu2  ;;  %v7512_v2 = vpop.f32.mrf.mxu1 }
 0x5e5   :  { %v12681_v63 = vld [vmem:[#allocation10 + $0x1d70] sm:$0xf0]  ;;  %v13337_v2 = vld [vmem:[#allocation10 + $0x1b4] sm:$0xf0] }
 0x5e6   :  { %v14284_v37 = vld [vmem:[#allocation10 + $0x1f54] sm:$0xf]  ;;  %v12684_v30 = vor.u32 %v14220_v47, %v12681_v63  ;;  %7750 = vmatpush.bf16.msra.mxu0 %v12428_v4 }
 0x5e7   :  { %v12937_v36 = vld [vmem:[#allocation10 + $0x1f70] sm:$0xf0] }
 0x5e8   :  { %v14084_v6 = vld [vmem:[#allocation10 + $0x1914] sm:$0xf]  ;;  %v12940_v7 = vor.u32 %v14284_v37, %v12937_v36  ;;  %7763 = vmatpush.bf16.msra.mxu1 %v12684_v30  ;;  %v7499_v37 = vpop.f32.mrf.mxu0  ;;  %v7498_v36 = vadd.f32 %v7497_v48, %v7485_v26  ;;  %v9935_v26 = vld [vmem:[#allocation10 + $0x7d8] sm:$0xf] }
 0x5e9   :  { %v12137_v15 = vld [vmem:[#allocation10 + $0x1930] sm:$0xf0] }
 0x5ea   :  { %v14148_v55 = vld [vmem:[#allocation10 + $0x1b14] sm:$0xf]  ;;  %v12140_v16 = vor.u32 %v14084_v6, %v12137_v15  ;;  %7776 = vmatpush.bf16.msra.mxu2 %v12940_v7 }
 0x5eb   :  { %v12393_v61 = vld [vmem:[#allocation10 + $0x1b30] sm:$0xf0] }
 0x5ec   :  { %v14212_v58 = vld [vmem:[#allocation10 + $0x1d14] sm:$0xf]  ;;  %v12396_v52 = vor.u32 %v14148_v55, %v12393_v61  ;;  %7738 = vmatpush.bf16.msrb.mxu3 %v12140_v16 }
 0x5ed   :  { %v12649_v9 = vld [vmem:[#allocation10 + $0x1d30] sm:$0xf0] }
 0x5ee   :  { %v14276_v0 = vld [vmem:[#allocation10 + $0x1f14] sm:$0xf]  ;;  %v12652_v3 = vor.u32 %v14212_v58, %v12649_v9  ;;  %7751 = vmatpush.bf16.msra.mxu0 %v12396_v52  ;;  %v7511_v9 = vadd.f32 %v7510_v12, %v7498_v36  ;;  %v9135_v36 = vld [vmem:[#allocation10 + $0x198] sm:$0xf] }
 0x5ef   :  { %v12905_v1 = vld [vmem:[#allocation10 + $0x1f30] sm:$0xf0] }
 0x5f0   :  { %v14076_v10 = vld [vmem:[#allocation10 + $0x18d4] sm:$0xf]  ;;  %v12908_v5 = vor.u32 %v14276_v0, %v12905_v1  ;;  %7764 = vmatpush.bf16.msra.mxu1 %v12652_v3 }
 0x5f1   :  { %v12105_v21 = vld [vmem:[#allocation10 + $0x18f0] sm:$0xf0] }
 0x5f2   :  { %v14140_v24 = vld [vmem:[#allocation10 + $0x1ad4] sm:$0xf]  ;;  %v12108_v28 = vor.u32 %v14076_v10, %v12105_v21  ;;  %7777 = vmatpush.bf16.msra.mxu2 %v12908_v5  ;;  %v14904_v10 = vadd.f32 %v7523_v27, %v7511_v9  ;;  %v13537_v27 = vld [vmem:[#allocation10 + $0x7f4] sm:$0xf0] }
 0x5f3   :  { %v12361_v25 = vld [vmem:[#allocation10 + $0x1af0] sm:$0xf0] }
 0x5f4   :  { %v14204_v17 = vld [vmem:[#allocation10 + $0x1cd4] sm:$0xf]  ;;  %v12364_v31 = vor.u32 %v14140_v24, %v12361_v25  ;;  %7739 = vmatpush.bf16.msrb.mxu3 %v12108_v28  ;;  %v7525_v28 = vpop.f32.mrf.mxu2 }
 0x5f5   :  { %v12617_v14 = vld [vmem:[#allocation10 + $0x1cf0] sm:$0xf0] }
 0x5f6   :  { %v14268_v18 = vld [vmem:[#allocation10 + $0x1ed4] sm:$0xf]  ;;  %v12620_v33 = vor.u32 %v14204_v17, %v12617_v14  ;;  %7752 = vmatpush.bf16.msra.mxu0 %v12364_v31  ;;  %v7486_v14 = vpop.f32.mrf.mxu3 }
 0x5f7   :  { %v12873_v11 = vld [vmem:[#allocation10 + $0x1ef0] sm:$0xf0] }
 0x5f8   :  { %v14068_v20 = vld [vmem:[#allocation10 + $0x1894] sm:$0xf]  ;;  %v12876_v8 = vor.u32 %v14268_v18, %v12873_v11  ;;  %7765 = vmatpush.bf16.msra.mxu1 %v12620_v33  ;;  %v9423_v33 = vld [vmem:[#allocation10 + $0x3d8] sm:$0xf] }
 0x5f9   :  { %v12073_v32 = vld [vmem:[#allocation10 + $0x18b0] sm:$0xf0] }
 0x5fa   :  { %v14132_v22 = vld [vmem:[#allocation10 + $0x1a94] sm:$0xf]  ;;  %v12076_v4 = vor.u32 %v14068_v20, %v12073_v32  ;;  %7778 = vmatpush.bf16.msra.mxu2 %v12876_v8  ;;  %v9167_v20 = vld [vmem:[#allocation10 + $0x1d8] sm:$0xf] }
 0x5fb   :  { %v12329_v35 = vld [vmem:[#allocation10 + $0x1ab0] sm:$0xf0]  ;;  %v13345_v32 = vld [vmem:[#allocation10 + $0x1f4] sm:$0xf0] }
 0x5fc   :  { %v14196_v29 = vld [vmem:[#allocation10 + $0x1c94] sm:$0xf]  ;;  %v12332_v6 = vor.u32 %v14132_v22, %v12329_v35  ;;  %7740 = vmatpush.bf16.msrb.mxu3 %v12076_v4  ;;  %v13409_v8 = vld [vmem:[#allocation10 + $0x3f4] sm:$0xf0] }
 0x5fd   :  { %v12585_v41 = vld [vmem:[#allocation10 + $0x1cb0] sm:$0xf0]  ;;  %v9424_v37 = vor.u32 %v13409_v8, %v9423_v33  ;;  %v13449_v33 = vld [vmem:[#allocation10 + $0x534] sm:$0xf0] }
 0x5fe   :  { %v14260_v47 = vld [vmem:[#allocation10 + $0x1e94] sm:$0xf]  ;;  %v12588_v7 = vor.u32 %v14196_v29, %v12585_v41  ;;  %7753 = vmatpush.bf16.msra.mxu0 %v12332_v6  ;;  %v13473_v29 = vld [vmem:[#allocation10 + $0x5f4] sm:$0xf0]  ;;  %v9936_v6 = vor.u32 %v13537_v27, %v9935_v26 }
 0x5ff   :  { %v12841_v63 = vld [vmem:[#allocation10 + $0x1eb0] sm:$0xf0]  ;;  %v9680_v4 = vor.u32 %v13473_v29, %v9679_v34  ;;  %v9839_v8 = vld [vmem:[#allocation10 + $0x718] sm:$0xf] }
 0x600   :  { %v14060_v15 = vld [vmem:[#allocation10 + $0x1854] sm:$0xf]  ;;  %v12844_v55 = vor.u32 %v14260_v47, %v12841_v63  ;;  %7766 = vmatpush.bf16.msra.mxu1 %v12588_v7  ;;  %v9168_v63 = vor.u32 %v13345_v32, %v9167_v20  ;;  %v9647_v7 = vld [vmem:[#allocation10 + $0x598] sm:$0xf] }
 0x601   :  { %v12041_v30 = vld [vmem:[#allocation10 + $0x1870] sm:$0xf0]  ;;  %v13385_v20 = vld [vmem:[#allocation10 + $0x334] sm:$0xf0] }
 0x602   :  { %v14124_v61 = vld [vmem:[#allocation10 + $0x1a54] sm:$0xf]  ;;  %v12044_v48 = vor.u32 %v14060_v15, %v12041_v30  ;;  %7779 = vmatpush.bf16.msra.mxu2 %v12844_v55  ;;  %v9391_v15 = vld [vmem:[#allocation10 + $0x398] sm:$0xf] }
 0x603   :  { %v12297_v58 = vld [vmem:[#allocation10 + $0x1a70] sm:$0xf0]  ;;  %v13401_v30 = vld [vmem:[#allocation10 + $0x3b4] sm:$0xf0] }
 0x604   :  { %v14188_v23 = vld [vmem:[#allocation10 + $0x1c54] sm:$0xf]  ;;  %v12300_v21 = vor.u32 %v14124_v61, %v12297_v58  ;;  %7741 = vmatpush.bf16.msrb.mxu3 %v12044_v48  ;;  %v13465_v55 = vld [vmem:[#allocation10 + $0x5b4] sm:$0xf0]  ;;  %v9392_v9 = vor.u32 %v13401_v30, %v9391_v15 }
 0x605   :  { %v12553_v0 = vld [vmem:[#allocation10 + $0x1c70] sm:$0xf0]  ;;  %v9903_v61 = vld [vmem:[#allocation10 + $0x798] sm:$0xf] }
 0x606   :  { %v14252_v1 = vld [vmem:[#allocation10 + $0x1e54] sm:$0xf]  ;;  %v12556_v25 = vor.u32 %v14188_v23, %v12553_v0  ;;  %7754 = vmatpush.bf16.msra.mxu0 %v12300_v21  ;;  %v13529_v58 = vld [vmem:[#allocation10 + $0x7b4] sm:$0xf0]  ;;  %v9136_v23 = vor.u32 %v13337_v2, %v9135_v36 }
 0x607   :  { %v12809_v16 = vld [vmem:[#allocation10 + $0x1e70] sm:$0xf0]  ;;  %v9103_v0 = vld [vmem:[#allocation10 + $0x158] sm:$0xf] }
 0x608   :  { %v14052_v52 = vld [vmem:[#allocation10 + $0x1814] sm:$0xf]  ;;  %v12812_v17 = vor.u32 %v14252_v1, %v12809_v16  ;;  %7767 = vmatpush.bf16.msra.mxu1 %v12556_v25  ;;  %v13329_v1 = vld [vmem:[#allocation10 + $0x174] sm:$0xf0]  ;;  %v9648_v16 = vor.u32 %v13465_v55, %v9647_v7 }
 0x609   :  { %v12009_v3 = vld [vmem:[#allocation10 + $0x1830] sm:$0xf0]  ;;  %v9359_v48 = vld [vmem:[#allocation10 + $0x358] sm:$0xf] }
 0x60a   :  { %v14116_v5 = vld [vmem:[#allocation10 + $0x1a14] sm:$0xf]  ;;  %v12012_v22 = vor.u32 %v14052_v52, %v12009_v3  ;;  %7780 = vmatpush.bf16.msra.mxu2 %v12812_v17  ;;  %v9904_v52 = vor.u32 %v13529_v58, %v9903_v61  ;;  %v13393_v21 = vld [vmem:[#allocation10 + $0x374] sm:$0xf0]  ;;  %v9104_v17 = vor.u32 %v13329_v1, %v9103_v0 }
 0x60b   :  { %v12265_v24 = vld [vmem:[#allocation10 + $0x1a30] sm:$0xf0]  ;;  %v9615_v3 = vld [vmem:[#allocation10 + $0x558] sm:$0xf]  ;;  %v9360_v14 = vor.u32 %v13393_v21, %v9359_v48  ;;  %v7575_v48 = vpop.f32.mrf.mxu2 }
 0x60c   :  { %v14180_v18 = vld [vmem:[#allocation10 + $0x1c14] sm:$0xf]  ;;  %v12268_v35 = vor.u32 %v14116_v5, %v12265_v24  ;;  %7742 = vmatpush.bf16.msrb.mxu3 %v12012_v22  ;;  %v13457_v5 = vld [vmem:[#allocation10 + $0x574] sm:$0xf0]  ;;  %v7549_v22 = vpop.f32.mrf.mxu0 }
 0x60d   :  { %v12521_v12 = vld [vmem:[#allocation10 + $0x1c30] sm:$0xf0]  ;;  %v9871_v24 = vld [vmem:[#allocation10 + $0x758] sm:$0xf] }
 0x60e   :  { %v14244_v11 = vld [vmem:[#allocation10 + $0x1e14] sm:$0xf]  ;;  %v12524_v41 = vor.u32 %v14180_v18, %v12521_v12  ;;  %7755 = vmatpush.bf16.msra.mxu0 %v12268_v35  ;;  %v13521_v25 = vld [vmem:[#allocation10 + $0x774] sm:$0xf0]  ;;  %v7562_v35 = vpop.f32.mrf.mxu1 }
 0x60f   :  { %v12777_v31 = vld [vmem:[#allocation10 + $0x1e30] sm:$0xf0]  ;;  %7743 = vmatmul.bf16.vlgmr.msrb.gmra.mxu3 %v14768_v42  ;;  %v9071_v18 = vld [vmem:[#allocation10 + $0x118] sm:$0xf]  ;;  %v9872_v28 = vor.u32 %v13521_v25, %v9871_v24 }
 0x610   :  { %v12780_v47 = vor.u32 %v14244_v11, %v12777_v31  ;;  %7768 = vmatpush.bf16.msra.mxu1 %v12524_v41  ;;  %7787 = vmatpush.bf16.msra.mxu3 %v9168_v63  ;;  %v13321_v12 = vld [vmem:[#allocation10 + $0x134] sm:$0xf0]  ;;  %v9616_v11 = vor.u32 %v13457_v5, %v9615_v3 }
 0x611   :  { %7756 = vmatmul.bf16.vlgmr.msra.gmra.mxu0 %v14770_v45  ;;  %v9327_v31 = vld [vmem:[#allocation10 + $0x318] sm:$0xf]  ;;  %v9072_v29 = vor.u32 %v13321_v12, %v9071_v18 }
 0x612   :  { %7781 = vmatpush.bf16.msra.mxu2 %v12780_v47  ;;  %7800 = vmatpush.bf16.msrb.mxu0 %v9424_v37  ;;  %v9583_v32 = vld [vmem:[#allocation10 + $0x518] sm:$0xf]  ;;  %v9328_v26 = vor.u32 %v13385_v20, %v9327_v31 }
 0x613   :  { %7769 = vmatmul.bf16.vlgmr.msra.gmra.mxu1 %v14772_v46  ;;  %v13513_v34 = vld [vmem:[#allocation10 + $0x734] sm:$0xf0]  ;;  %v9584_v47 = vor.u32 %v13449_v33, %v9583_v32 }
 0x614   :  { %7813 = vmatpush.bf16.msrb.mxu1 %v9680_v4  ;;  %7788 = vmatpush.bf16.msra.mxu3 %v9136_v23  ;;  %v9039_v27 = vld [vmem:[#allocation10 + $0xd8] sm:$0xf]  ;;  %v9840_v63 = vor.u32 %v13513_v34, %v9839_v8  ;;  %v7551_v24 = vpop.f32.mrf.mxu0 }
 0x615   :  { %7782 = vmatmul.bf16.vlgmr.msra.gmra.mxu2 %v14774_v57  ;;  %v13313_v41 = vld [vmem:[#allocation10 + $0xf4] sm:$0xf0] }
 0x616   :  { %7826 = vmatpush.bf16.msrb.mxu2 %v9936_v6  ;;  %7801 = vmatpush.bf16.msrb.mxu0 %v9392_v9  ;;  %v9295_v37 = vld [vmem:[#allocation10 + $0x2d8] sm:$0xf]  ;;  %v9040_v30 = vor.u32 %v13313_v41, %v9039_v27  ;;  %v7536_v9 = vpop.f32.mrf.mxu3 }
 0x617   :  { %v13377_v36 = vld [vmem:[#allocation10 + $0x2f4] sm:$0xf0] }
 0x618   :  { %7814 = vmatpush.bf16.msrb.mxu1 %v9648_v16  ;;  %7789 = vmatpush.bf16.msra.mxu3 %v9104_v17  ;;  %v9551_v2 = vld [vmem:[#allocation10 + $0x4d8] sm:$0xf]  ;;  %v9296_v7 = vor.u32 %v13377_v36, %v9295_v37  ;;  %v7564_v17 = vpop.f32.mrf.mxu1 }
 0x619   :  { %v13441_v4 = vld [vmem:[#allocation10 + $0x4f4] sm:$0xf0] }
 0x61a   :  { %7827 = vmatpush.bf16.msrb.mxu2 %v9904_v52  ;;  %7802 = vmatpush.bf16.msrb.mxu0 %v9360_v14  ;;  %v9807_v6 = vld [vmem:[#allocation10 + $0x6d8] sm:$0xf]  ;;  %v9552_v58 = vor.u32 %v13441_v4, %v9551_v2  ;;  %v7537_v52 = vadd.f32 %v7536_v9, %v14904_v10 }
 0x61b   :  { %v13505_v15 = vld [vmem:[#allocation10 + $0x6f4] sm:$0xf0] }
 0x61c   :  { %7815 = vmatpush.bf16.msrb.mxu1 %v9616_v11  ;;  %7790 = vmatpush.bf16.msra.mxu3 %v9072_v29  ;;  %v9007_v55 = vld [vmem:[#allocation10 + $0x98] sm:$0xf]  ;;  %v9808_v23 = vor.u32 %v13505_v15, %v9807_v6  ;;  %v7550_v25 = vadd.f32 %v7549_v22, %v7537_v52 }
 0x61d   :  { %v13305_v61 = vld [vmem:[#allocation10 + $0xb4] sm:$0xf0] }
 0x61e   :  { %7828 = vmatpush.bf16.msrb.mxu2 %v9872_v28  ;;  %7803 = vmatpush.bf16.msrb.mxu0 %v9328_v26  ;;  %v9263_v0 = vld [vmem:[#allocation10 + $0x298] sm:$0xf]  ;;  %v9008_v14 = vor.u32 %v13305_v61, %v9007_v55  ;;  %v7563_v33 = vadd.f32 %v7562_v35, %v7550_v25  ;;  %v7538_v4 = vpop.f32.mrf.mxu3 }
 0x61f   :  { %v13369_v1 = vld [vmem:[#allocation10 + $0x2b4] sm:$0xf0] }
 0x620   :  { %7816 = vmatpush.bf16.msrb.mxu1 %v9584_v47  ;;  %v9519_v16 = vld [vmem:[#allocation10 + $0x498] sm:$0xf]  ;;  %7791 = vmatpush.bf16.msra.mxu3 %v9040_v30  ;;  %v9264_v18 = vor.u32 %v13369_v1, %v9263_v0  ;;  %v14911_v27 = vadd.f32 %v7575_v48, %v7563_v33  ;;  %v7577_v30 = vpop.f32.mrf.mxu2 }
 0x621   :  { %v13433_v21 = vld [vmem:[#allocation10 + $0x4b4] sm:$0xf0] }
 0x622   :  { %7829 = vmatpush.bf16.msrb.mxu2 %v9840_v63  ;;  %v9775_v3 = vld [vmem:[#allocation10 + $0x698] sm:$0xf]  ;;  %7804 = vmatpush.bf16.msrb.mxu0 %v9296_v7  ;;  %v9520_v28 = vor.u32 %v13433_v21, %v9519_v16 }
 0x623   :  { %v13497_v5 = vld [vmem:[#allocation10 + $0x6b4] sm:$0xf0] }
 0x624   :  { %v8975_v12 = vld [vmem:[#allocation10 + $0x58] sm:$0xf]  ;;  %7817 = vmatpush.bf16.msrb.mxu1 %v9552_v58  ;;  %v9776_v31 = vor.u32 %v13497_v5, %v9775_v3  ;;  %7792 = vmatpush.bf16.msra.mxu3 %v9008_v14 }
 0x625   :  { %v13297_v11 = vld [vmem:[#allocation10 + $0x74] sm:$0xf0] }
 0x626   :  { %7830 = vmatpush.bf16.msrb.mxu2 %v9808_v23  ;;  %v9231_v20 = vld [vmem:[#allocation10 + $0x258] sm:$0xf]  ;;  %7805 = vmatpush.bf16.msrb.mxu0 %v9264_v18  ;;  %v8976_v22 = vor.u32 %v13297_v11, %v8975_v12 }
 0x627   :  { %v13361_v32 = vld [vmem:[#allocation10 + $0x274] sm:$0xf0] }
 0x628   :  { %v9487_v10 = vld [vmem:[#allocation10 + $0x458] sm:$0xf]  ;;  %v9232_v41 = vor.u32 %v13361_v32, %v9231_v20  ;;  %7818 = vmatpush.bf16.msrb.mxu1 %v9520_v28  ;;  %7793 = vmatpush.bf16.msra.mxu3 %v8976_v22 }
 0x629   :  { %v13425_v8 = vld [vmem:[#allocation10 + $0x474] sm:$0xf0] }
 0x62a   :  { %v9743_v34 = vld [vmem:[#allocation10 + $0x658] sm:$0xf]  ;;  %7831 = vmatpush.bf16.msrb.mxu2 %v9776_v31  ;;  %v9488_v36 = vor.u32 %v13425_v8, %v9487_v10  ;;  %7806 = vmatpush.bf16.msrb.mxu0 %v9232_v41 }
 0x62b   :  { %v13489_v29 = vld [vmem:[#allocation10 + $0x674] sm:$0xf0] }
 0x62c   :  { %v8943_v26 = vld [vmem:[#allocation10 + $0x18] sm:$0xf]  ;;  %v9744_v2 = vor.u32 %v13489_v29, %v9743_v34  ;;  %7819 = vmatpush.bf16.msrb.mxu1 %v9488_v36 }
 0x62d   :  { %v13289_v47 = vld [vmem:[#allocation10 + $0x34] sm:$0xf0] }
 0x62e   :  { %v9199_v63 = vld [vmem:[#allocation10 + $0x218] sm:$0xf]  ;;  %v8944_v0 = vor.u32 %v13289_v47, %v8943_v26  ;;  %7832 = vmatpush.bf16.msrb.mxu2 %v9744_v2 }
 0x62f   :  { %v13353_v37 = vld [vmem:[#allocation10 + $0x234] sm:$0xf0] }
 0x630   :  { %v9455_v6 = vld [vmem:[#allocation10 + $0x418] sm:$0xf]  ;;  %v9200_v1 = vor.u32 %v13353_v37, %v9199_v63  ;;  %7794 = vmatpush.bf16.msra.mxu3 %v8944_v0  ;;  %v7601_v0 = vpop.f32.mrf.mxu0 }
 0x631   :  { %v13417_v35 = vld [vmem:[#allocation10 + $0x434] sm:$0xf0] }
 0x632   :  { %v9711_v15 = vld [vmem:[#allocation10 + $0x618] sm:$0xf]  ;;  %v9456_v21 = vor.u32 %v13417_v35, %v9455_v6  ;;  %7807 = vmatpush.bf16.msrb.mxu0 %v9200_v1  ;;  %v7614_v1 = vpop.f32.mrf.mxu1 }
 0x633   :  { %v13481_v7 = vld [vmem:[#allocation10 + $0x634] sm:$0xf0]  ;;  %7795 = vmatmul.bf16.vlgmr.msra.gmra.mxu3 %v14716_v49 }
 0x634   :  { %v10191_v55 = vld [vmem:[#allocation10 + $0x9d8] sm:$0xf]  ;;  %v9712_v3 = vor.u32 %v13481_v7, %v9711_v15  ;;  %7820 = vmatpush.bf16.msrb.mxu1 %v9456_v21 }
 0x635   :  { %v13601_v61 = vld [vmem:[#allocation10 + $0x9f4] sm:$0xf0]  ;;  %7808 = vmatmul.bf16.vlgmr.msrb.gmra.mxu0 %v14718_v50 }
 0x636   :  { %v10447_v58 = vld [vmem:[#allocation10 + $0xbd8] sm:$0xf]  ;;  %v10192_v5 = vor.u32 %v13601_v61, %v10191_v55  ;;  %7833 = vmatpush.bf16.msrb.mxu2 %v9712_v3 }
 0x637   :  { %v13665_v23 = vld [vmem:[#allocation10 + $0xbf4] sm:$0xf0]  ;;  %7821 = vmatmul.bf16.vlgmr.msrb.gmra.mxu1 %v14720_v51 }
 0x638   :  { %v10703_v9 = vld [vmem:[#allocation10 + $0xdd8] sm:$0xf]  ;;  %v10448_v24 = vor.u32 %v13665_v23, %v10447_v58  ;;  %7839 = vmatpush.bf16.msrb.mxu3 %v10192_v5 }
 0x639   :  { %v13729_v16 = vld [vmem:[#allocation10 + $0xdf4] sm:$0xf0]  ;;  %7834 = vmatmul.bf16.vlgmr.msrb.gmra.mxu2 %v14726_v56 }
 0x63a   :  { %v10959_v52 = vld [vmem:[#allocation10 + $0xfd8] sm:$0xf]  ;;  %v10704_v14 = vor.u32 %v13729_v16, %v10703_v9  ;;  %7852 = vmatpush.bf16.msra.mxu0 %v10448_v24 }
 0x63b   :  { %v13793_v48 = vld [vmem:[#allocation10 + $0xff4] sm:$0xf0] }
 0x63c   :  { %v10159_v25 = vld [vmem:[#allocation10 + $0x998] sm:$0xf]  ;;  %v10960_v18 = vor.u32 %v13793_v48, %v10959_v52  ;;  %7865 = vmatpush.bf16.msra.mxu1 %v10704_v14 }
 0x63d   :  { %v13593_v17 = vld [vmem:[#allocation10 + $0x9b4] sm:$0xf0] }
 0x63e   :  { %v10415_v12 = vld [vmem:[#allocation10 + $0xb98] sm:$0xf]  ;;  %v10160_v10 = vor.u32 %v13593_v17, %v10159_v25  ;;  %7878 = vmatpush.bf16.msra.mxu2 %v10960_v18 }
 0x63f   :  { %v13657_v11 = vld [vmem:[#allocation10 + $0xbb4] sm:$0xf0] }
 0x640   :  { %v10671_v28 = vld [vmem:[#allocation10 + $0xd98] sm:$0xf]  ;;  %v10416_v33 = vor.u32 %v13657_v11, %v10415_v12  ;;  %7840 = vmatpush.bf16.msrb.mxu3 %v10160_v10  ;;  %v14388_v11 = vld [vmem:[#allocation11] sm:$0xff] }
 0x641   :  { %v13721_v31 = vld [vmem:[#allocation10 + $0xdb4] sm:$0xf0] }
 0x642   :  { %v10927_v20 = vld [vmem:[#allocation10 + $0xf98] sm:$0xf]  ;;  %v10672_v29 = vor.u32 %v13721_v31, %v10671_v28  ;;  %7853 = vmatpush.bf16.msra.mxu0 %v10416_v33  ;;  %v1408_v28 = vperm.slane %v14388_v11, 5 }
 0x643   :  { %v13785_v32 = vld [vmem:[#allocation10 + $0xfb4] sm:$0xf0] }
 0x644   :  { %v10127_v8 = vld [vmem:[#allocation10 + $0x958] sm:$0xf]  ;;  %v10928_v26 = vor.u32 %v13785_v32, %v10927_v20  ;;  %7866 = vmatpush.bf16.msra.mxu1 %v10672_v29 }
 0x645   :  { %v13585_v34 = vld [vmem:[#allocation10 + $0x974] sm:$0xf0] }
 0x646   :  { %v10383_v22 = vld [vmem:[#allocation10 + $0xb58] sm:$0xf]  ;;  %v10128_v2 = vor.u32 %v13585_v34, %v10127_v8  ;;  %7879 = vmatpush.bf16.msra.mxu2 %v10928_v26  ;;  %v7588_v34 = vpop.f32.mrf.mxu3 }
 0x647   :  { %v13649_v41 = vld [vmem:[#allocation10 + $0xb74] sm:$0xf0] }
 0x648   :  { %v10639_v47 = vld [vmem:[#allocation10 + $0xd58] sm:$0xf]  ;;  %v10384_v4 = vor.u32 %v13649_v41, %v10383_v22  ;;  %7841 = vmatpush.bf16.msrb.mxu3 %v10128_v2  ;;  %v7589_v41 = vadd.f32 %v7588_v34, %v1408_v28  ;;  %v7603_v2 = vpop.f32.mrf.mxu0 }
 0x649   :  { %v13713_v63 = vld [vmem:[#allocation10 + $0xd74] sm:$0xf0] }
 0x64a   :  { %v10895_v37 = vld [vmem:[#allocation10 + $0xf58] sm:$0xf]  ;;  %v10640_v15 = vor.u32 %v13713_v63, %v10639_v47  ;;  %7854 = vmatpush.bf16.msra.mxu0 %v10384_v4  ;;  %v7627_v47 = vpop.f32.mrf.mxu2  ;;  %v7602_v4 = vadd.f32 %v7601_v0, %v7589_v41 }
 0x64b   :  { %v13777_v36 = vld [vmem:[#allocation10 + $0xf74] sm:$0xf0] }
 0x64c   :  { %v10095_v6 = vld [vmem:[#allocation10 + $0x918] sm:$0xf]  ;;  %v10896_v30 = vor.u32 %v13777_v36, %v10895_v37  ;;  %7867 = vmatpush.bf16.msra.mxu1 %v10640_v15 }
 0x64d   :  { %v13577_v35 = vld [vmem:[#allocation10 + $0x934] sm:$0xf0] }
 0x64e   :  { %v10351_v7 = vld [vmem:[#allocation10 + $0xb18] sm:$0xf]  ;;  %v10096_v16 = vor.u32 %v13577_v35, %v10095_v6  ;;  %7880 = vmatpush.bf16.msra.mxu2 %v10896_v30  ;;  %v7616_v6 = vpop.f32.mrf.mxu1  ;;  %v7590_v11 = vpop.f32.mrf.mxu3 }
 0x64f   :  { %v13641_v55 = vld [vmem:[#allocation10 + $0xb34] sm:$0xf0] }
 0x650   :  { %v10607_v61 = vld [vmem:[#allocation10 + $0xd18] sm:$0xf]  ;;  %v10352_v52 = vor.u32 %v13641_v55, %v10351_v7  ;;  %7842 = vmatpush.bf16.msrb.mxu3 %v10096_v16  ;;  %v7615_v16 = vadd.f32 %v7614_v1, %v7602_v4 }
 0x651   :  { %v13705_v58 = vld [vmem:[#allocation10 + $0xd34] sm:$0xf0] }
 0x652   :  { %v10863_v23 = vld [vmem:[#allocation10 + $0xf18] sm:$0xf]  ;;  %v10608_v5 = vor.u32 %v13705_v58, %v10607_v61  ;;  %7855 = vmatpush.bf16.msra.mxu0 %v10352_v52 }
 0x653   :  { %v13769_v9 = vld [vmem:[#allocation10 + $0xf34] sm:$0xf0] }
 0x654   :  { %v10063_v48 = vld [vmem:[#allocation10 + $0x8d8] sm:$0xf]  ;;  %v10864_v24 = vor.u32 %v13769_v9, %v10863_v23  ;;  %7868 = vmatpush.bf16.msra.mxu1 %v10608_v5  ;;  %v14917_v5 = vadd.f32 %v7627_v47, %v7615_v16 }
 0x655   :  { %v13569_v21 = vld [vmem:[#allocation10 + $0x8f4] sm:$0xf0] }
 0x656   :  { %v10319_v3 = vld [vmem:[#allocation10 + $0xad8] sm:$0xf]  ;;  %v10064_v31 = vor.u32 %v13569_v21, %v10063_v48  ;;  %7881 = vmatpush.bf16.msra.mxu2 %v10864_v24 }
 0x657   :  { %v13633_v25 = vld [vmem:[#allocation10 + $0xaf4] sm:$0xf0] }
 0x658   :  { %v10575_v17 = vld [vmem:[#allocation10 + $0xcd8] sm:$0xf]  ;;  %v10320_v20 = vor.u32 %v13633_v25, %v10319_v3  ;;  %7843 = vmatpush.bf16.msrb.mxu3 %v10064_v31 }
 0x659   :  { %v13697_v14 = vld [vmem:[#allocation10 + $0xcf4] sm:$0xf0] }
 0x65a   :  { %v10831_v18 = vld [vmem:[#allocation10 + $0xed8] sm:$0xf]  ;;  %v10576_v33 = vor.u32 %v13697_v14, %v10575_v17  ;;  %7856 = vmatpush.bf16.msra.mxu0 %v10320_v20  ;;  %v7629_v20 = vpop.f32.mrf.mxu2 }
 0x65b   :  { %v13761_v12 = vld [vmem:[#allocation10 + $0xef4] sm:$0xf0] }
 0x65c   :  { %v10031_v32 = vld [vmem:[#allocation10 + $0x898] sm:$0xf]  ;;  %v10832_v8 = vor.u32 %v13761_v12, %v10831_v18  ;;  %7869 = vmatpush.bf16.msra.mxu1 %v10576_v33 }
 0x65d   :  { %v13561_v10 = vld [vmem:[#allocation10 + $0x8b4] sm:$0xf0] }
 0x65e   :  { %v10287_v29 = vld [vmem:[#allocation10 + $0xa98] sm:$0xf]  ;;  %v10032_v35 = vor.u32 %v13561_v10, %v10031_v32  ;;  %7882 = vmatpush.bf16.msra.mxu2 %v10832_v8 }
 0x65f   :  { %v13625_v26 = vld [vmem:[#allocation10 + $0xab4] sm:$0xf0] }
 0x660   :  { %v10543_v22 = vld [vmem:[#allocation10 + $0xc98] sm:$0xf]  ;;  %v10288_v15 = vor.u32 %v13625_v26, %v10287_v29  ;;  %7844 = vmatpush.bf16.msrb.mxu3 %v10032_v35 }
 0x661   :  { %v13689_v63 = vld [vmem:[#allocation10 + $0xcb4] sm:$0xf0] }
 0x662   :  { %v10799_v37 = vld [vmem:[#allocation10 + $0xe98] sm:$0xf]  ;;  %v10544_v55 = vor.u32 %v13689_v63, %v10543_v22  ;;  %7857 = vmatpush.bf16.msra.mxu0 %v10288_v15 }
 0x663   :  { %v13753_v36 = vld [vmem:[#allocation10 + $0xeb4] sm:$0xf0] }
 0x664   :  { %v9999_v30 = vld [vmem:[#allocation10 + $0x858] sm:$0xf]  ;;  %v10800_v61 = vor.u32 %v13753_v36, %v10799_v37  ;;  %7870 = vmatpush.bf16.msra.mxu1 %v10544_v55 }
 0x665   :  { %v13553_v7 = vld [vmem:[#allocation10 + $0x874] sm:$0xf0] }
 0x666   :  { %v10255_v58 = vld [vmem:[#allocation10 + $0xa58] sm:$0xf]  ;;  %v10000_v0 = vor.u32 %v13553_v7, %v9999_v30  ;;  %7883 = vmatpush.bf16.msra.mxu2 %v10800_v61 }
 0x667   :  { %v13617_v23 = vld [vmem:[#allocation10 + $0xa74] sm:$0xf0] }
 0x668   :  { %v10511_v9 = vld [vmem:[#allocation10 + $0xc58] sm:$0xf]  ;;  %v10256_v24 = vor.u32 %v13617_v23, %v10255_v58  ;;  %7845 = vmatpush.bf16.msrb.mxu3 %v10000_v0 }
 0x669   :  { %v13681_v52 = vld [vmem:[#allocation10 + $0xc74] sm:$0xf0] }
 0x66a   :  { %v10767_v48 = vld [vmem:[#allocation10 + $0xe58] sm:$0xf]  ;;  %v10512_v18 = vor.u32 %v13681_v52, %v10511_v9  ;;  %7858 = vmatpush.bf16.msra.mxu0 %v10256_v24 }
 0x66b   :  { %v13745_v21 = vld [vmem:[#allocation10 + $0xe74] sm:$0xf0] }
 0x66c   :  { %v9967_v3 = vld [vmem:[#allocation10 + $0x818] sm:$0xf]  ;;  %v10768_v12 = vor.u32 %v13745_v21, %v10767_v48  ;;  %7871 = vmatpush.bf16.msra.mxu1 %v10512_v18 }
 0x66d   :  { %v13545_v25 = vld [vmem:[#allocation10 + $0x834] sm:$0xf0] }
 0x66e   :  { %v10223_v17 = vld [vmem:[#allocation10 + $0xa18] sm:$0xf]  ;;  %v9968_v26 = vor.u32 %v13545_v25, %v9967_v3  ;;  %7884 = vmatpush.bf16.msra.mxu2 %v10768_v12 }
 0x66f   :  { %v13609_v14 = vld [vmem:[#allocation10 + $0xa34] sm:$0xf0] }
 0x670   :  { %v10479_v28 = vld [vmem:[#allocation10 + $0xc18] sm:$0xf]  ;;  %v10224_v22 = vor.u32 %v13609_v14, %v10223_v17  ;;  %7846 = vmatpush.bf16.msrb.mxu3 %v9968_v26 }
 0x671   :  { %v13673_v1 = vld [vmem:[#allocation10 + $0xc34] sm:$0xf0] }
 0x672   :  { %v10735_v31 = vld [vmem:[#allocation10 + $0xe18] sm:$0xf]  ;;  %v10480_v37 = vor.u32 %v13673_v1, %v10479_v28  ;;  %7859 = vmatpush.bf16.msra.mxu0 %v10224_v22  ;;  %v7653_v22 = vpop.f32.mrf.mxu0 }
 0x673   :  { %v13737_v32 = vld [vmem:[#allocation10 + $0xe34] sm:$0xf0]  ;;  %7847 = vmatmul.bf16.vlgmr.msrb.gmra.mxu3 %v14738_v38 }
 0x674   :  { %v11215_v10 = vld [vmem:[#allocation10 + $0x11d8] sm:$0xf]  ;;  %v10736_v36 = vor.u32 %v13737_v32, %v10735_v31  ;;  %7872 = vmatpush.bf16.msra.mxu1 %v10480_v37 }
 0x675   :  { %v13857_v33 = vld [vmem:[#allocation10 + $0x11f4] sm:$0xf0]  ;;  %7860 = vmatmul.bf16.vlgmr.msra.gmra.mxu0 %v14742_v39 }
 0x676   :  { %v11471_v8 = vld [vmem:[#allocation10 + $0x13d8] sm:$0xf]  ;;  %v11216_v2 = vor.u32 %v13857_v33, %v11215_v10  ;;  %7885 = vmatpush.bf16.msra.mxu2 %v10736_v36 }
 0x677   :  { %v13921_v34 = vld [vmem:[#allocation10 + $0x13f4] sm:$0xf0]  ;;  %7873 = vmatmul.bf16.vlgmr.msra.gmra.mxu1 %v14746_v43 }
 0x678   :  { %v11727_v29 = vld [vmem:[#allocation10 + $0x15d8] sm:$0xf]  ;;  %v11472_v4 = vor.u32 %v13921_v34, %v11471_v8  ;;  %7891 = vmatpush.bf16.msra.mxu3 %v11216_v2 }
 0x679   :  { %v13985_v41 = vld [vmem:[#allocation10 + $0x15f4] sm:$0xf0]  ;;  %7886 = vmatmul.bf16.vlgmr.msra.gmra.mxu2 %v14750_v44 }
 0x67a   :  { %v11983_v47 = vld [vmem:[#allocation10 + $0x17d8] sm:$0xf]  ;;  %v11728_v15 = vor.u32 %v13985_v41, %v11727_v29  ;;  %7904 = vmatpush.bf16.msrb.mxu0 %v11472_v4  ;;  %v7666_v41 = vpop.f32.mrf.mxu1 }
 0x67b   :  { %v14049_v63 = vld [vmem:[#allocation10 + $0x17f4] sm:$0xf0] }
 0x67c   :  { %v11183_v6 = vld [vmem:[#allocation10 + $0x1198] sm:$0xf]  ;;  %v11984_v30 = vor.u32 %v14049_v63, %v11983_v47  ;;  %7917 = vmatpush.bf16.msrb.mxu1 %v11728_v15 }
 0x67d   :  { %v13849_v35 = vld [vmem:[#allocation10 + $0x11b4] sm:$0xf0] }
 0x67e   :  { %v11439_v7 = vld [vmem:[#allocation10 + $0x1398] sm:$0xf]  ;;  %v11184_v16 = vor.u32 %v13849_v35, %v11183_v6  ;;  %7930 = vmatpush.bf16.msrb.mxu2 %v11984_v30 }
 0x67f   :  { %v13913_v55 = vld [vmem:[#allocation10 + $0x13b4] sm:$0xf0] }
 0x680   :  { %v11695_v61 = vld [vmem:[#allocation10 + $0x1598] sm:$0xf]  ;;  %v11440_v52 = vor.u32 %v13913_v55, %v11439_v7  ;;  %7892 = vmatpush.bf16.msra.mxu3 %v11184_v16 }
 0x681   :  { %v13977_v58 = vld [vmem:[#allocation10 + $0x15b4] sm:$0xf0] }
 0x682   :  { %v11951_v23 = vld [vmem:[#allocation10 + $0x1798] sm:$0xf]  ;;  %v11696_v3 = vor.u32 %v13977_v58, %v11695_v61  ;;  %7905 = vmatpush.bf16.msrb.mxu0 %v11440_v52 }
 0x683   :  { %v14041_v9 = vld [vmem:[#allocation10 + $0x17b4] sm:$0xf0] }
 0x684   :  { %v11151_v48 = vld [vmem:[#allocation10 + $0x1158] sm:$0xf]  ;;  %v11952_v0 = vor.u32 %v14041_v9, %v11951_v23  ;;  %7918 = vmatpush.bf16.msrb.mxu1 %v11696_v3 }
 0x685   :  { %v13841_v21 = vld [vmem:[#allocation10 + $0x1174] sm:$0xf0] }
 0x686   :  { %v11407_v24 = vld [vmem:[#allocation10 + $0x1358] sm:$0xf]  ;;  %v11152_v11 = vor.u32 %v13841_v21, %v11151_v48  ;;  %7931 = vmatpush.bf16.msrb.mxu2 %v11952_v0  ;;  %v7640_v48 = vpop.f32.mrf.mxu3 }
 0x687   :  { %v13905_v25 = vld [vmem:[#allocation10 + $0x1374] sm:$0xf0] }
 0x688   :  { %v11663_v17 = vld [vmem:[#allocation10 + $0x1558] sm:$0xf]  ;;  %v11408_v28 = vor.u32 %v13905_v25, %v11407_v24  ;;  %7893 = vmatpush.bf16.msra.mxu3 %v11152_v11  ;;  %v7641_v24 = vadd.f32 %v7640_v48, %v14917_v5  ;;  %v7679_v25 = vpop.f32.mrf.mxu2 }
 0x689   :  { %v13969_v14 = vld [vmem:[#allocation10 + $0x1574] sm:$0xf0] }
 0x68a   :  { %v11919_v18 = vld [vmem:[#allocation10 + $0x1758] sm:$0xf]  ;;  %v11664_v20 = vor.u32 %v13969_v14, %v11663_v17  ;;  %7906 = vmatpush.bf16.msrb.mxu0 %v11408_v28  ;;  %v7654_v11 = vadd.f32 %v7653_v22, %v7641_v24  ;;  %v7668_v28 = vpop.f32.mrf.mxu1 }
 0x68b   :  { %v14033_v12 = vld [vmem:[#allocation10 + $0x1774] sm:$0xf0] }
 0x68c   :  { %v11119_v1 = vld [vmem:[#allocation10 + $0x1118] sm:$0xf]  ;;  %v11920_v32 = vor.u32 %v14033_v12, %v11919_v18  ;;  %7919 = vmatpush.bf16.msrb.mxu1 %v11664_v20  ;;  %v7655_v12 = vpop.f32.mrf.mxu0 }
 0x68d   :  { %v13833_v31 = vld [vmem:[#allocation10 + $0x1134] sm:$0xf0] }
 0x68e   :  { %v11375_v10 = vld [vmem:[#allocation10 + $0x1318] sm:$0xf]  ;;  %v11120_v47 = vor.u32 %v13833_v31, %v11119_v1  ;;  %7932 = vmatpush.bf16.msrb.mxu2 %v11920_v32 }
 0x68f   :  { %v13897_v33 = vld [vmem:[#allocation10 + $0x1334] sm:$0xf0] }
 0x690   :  { %v11631_v8 = vld [vmem:[#allocation10 + $0x1518] sm:$0xf]  ;;  %v11376_v63 = vor.u32 %v13897_v33, %v11375_v10  ;;  %7894 = vmatpush.bf16.msra.mxu3 %v11120_v47 }
 0x691   :  { %v13961_v34 = vld [vmem:[#allocation10 + $0x1534] sm:$0xf0] }
 0x692   :  { %v11887_v29 = vld [vmem:[#allocation10 + $0x1718] sm:$0xf]  ;;  %v11632_v2 = vor.u32 %v13961_v34, %v11631_v8  ;;  %7907 = vmatpush.bf16.msrb.mxu0 %v11376_v63 }
 0x693   :  { %v14025_v26 = vld [vmem:[#allocation10 + $0x1734] sm:$0xf0] }
 0x694   :  { %v11087_v37 = vld [vmem:[#allocation10 + $0x10d8] sm:$0xf]  ;;  %v11888_v4 = vor.u32 %v14025_v26, %v11887_v29  ;;  %7920 = vmatpush.bf16.msrb.mxu1 %v11632_v2  ;;  %v7667_v29 = vadd.f32 %v7666_v41, %v7654_v11 }
 0x695   :  { %v13825_v36 = vld [vmem:[#allocation10 + $0x10f4] sm:$0xf0] }
 0x696   :  { %v11343_v6 = vld [vmem:[#allocation10 + $0x12d8] sm:$0xf]  ;;  %v11088_v61 = vor.u32 %v13825_v36, %v11087_v37  ;;  %7933 = vmatpush.bf16.msrb.mxu2 %v11888_v4  ;;  %v14924_v36 = vadd.f32 %v7679_v25, %v7667_v29 }
 0x697   :  { %v13889_v35 = vld [vmem:[#allocation10 + $0x12f4] sm:$0xf0] }
 0x698   :  { %v11599_v15 = vld [vmem:[#allocation10 + $0x14d8] sm:$0xf]  ;;  %v11344_v58 = vor.u32 %v13889_v35, %v11343_v6  ;;  %7895 = vmatpush.bf16.msra.mxu3 %v11088_v61 }
 0x699   :  { %v13953_v30 = vld [vmem:[#allocation10 + $0x14f4] sm:$0xf0] }
 0x69a   :  { %v11855_v7 = vld [vmem:[#allocation10 + $0x16d8] sm:$0xf]  ;;  %v11600_v16 = vor.u32 %v13953_v30, %v11599_v15  ;;  %7908 = vmatpush.bf16.msrb.mxu0 %v11344_v58  ;;  %v7681_v58 = vpop.f32.mrf.mxu2 }
 0x69b   :  { %v14017_v55 = vld [vmem:[#allocation10 + $0x16f4] sm:$0xf0] }
 0x69c   :  { %v11055_v23 = vld [vmem:[#allocation10 + $0x1098] sm:$0xf]  ;;  %v11856_v52 = vor.u32 %v14017_v55, %v11855_v7  ;;  %7921 = vmatpush.bf16.msrb.mxu1 %v11600_v16  ;;  %v7642_v7 = vpop.f32.mrf.mxu3 }
 0x69d   :  { %v13817_v9 = vld [vmem:[#allocation10 + $0x10b4] sm:$0xf0] }
 0x69e   :  { %v11311_v21 = vld [vmem:[#allocation10 + $0x1298] sm:$0xf]  ;;  %v11056_v1 = vor.u32 %v13817_v9, %v11055_v23  ;;  %7934 = vmatpush.bf16.msrb.mxu2 %v11856_v52 }
 0x69f   :  { %v13881_v3 = vld [vmem:[#allocation10 + $0x12b4] sm:$0xf0] }
 0x6a0   :  { %v11567_v0 = vld [vmem:[#allocation10 + $0x1498] sm:$0xf]  ;;  %v11312_v31 = vor.u32 %v13881_v3, %v11311_v21  ;;  %7896 = vmatpush.bf16.msra.mxu3 %v11056_v1 }
 0x6a1   :  { %v13945_v17 = vld [vmem:[#allocation10 + $0x14b4] sm:$0xf0] }
 0x6a2   :  { %v11823_v14 = vld [vmem:[#allocation10 + $0x1698] sm:$0xf]  ;;  %v11568_v10 = vor.u32 %v13945_v17, %v11567_v0  ;;  %7909 = vmatpush.bf16.msrb.mxu0 %v11312_v31 }
 0x6a3   :  { %v14009_v18 = vld [vmem:[#allocation10 + $0x16b4] sm:$0xf0] }
 0x6a4   :  { %v11023_v20 = vld [vmem:[#allocation10 + $0x1058] sm:$0xf]  ;;  %v11824_v33 = vor.u32 %v14009_v18, %v11823_v14  ;;  %7922 = vmatpush.bf16.msrb.mxu1 %v11568_v10 }
 0x6a5   :  { %v13809_v32 = vld [vmem:[#allocation10 + $0x1074] sm:$0xf0] }
 0x6a6   :  { %v11279_v8 = vld [vmem:[#allocation10 + $0x1258] sm:$0xf]  ;;  %v11024_v22 = vor.u32 %v13809_v32, %v11023_v20  ;;  %7935 = vmatpush.bf16.msrb.mxu2 %v11824_v33 }
 0x6a7   :  { %v13873_v34 = vld [vmem:[#allocation10 + $0x1274] sm:$0xf0] }
 0x6a8   :  { %v11535_v5 = vld [vmem:[#allocation10 + $0x1458] sm:$0xf]  ;;  %v11280_v2 = vor.u32 %v13873_v34, %v11279_v8  ;;  %7897 = vmatpush.bf16.msra.mxu3 %v11024_v22 }
 0x6a9   :  { %v13937_v26 = vld [vmem:[#allocation10 + $0x1474] sm:$0xf0] }
 0x6aa   :  { %v11791_v47 = vld [vmem:[#allocation10 + $0x1658] sm:$0xf]  ;;  %v11536_v15 = vor.u32 %v13937_v26, %v11535_v5  ;;  %7910 = vmatpush.bf16.msrb.mxu0 %v11280_v2 }
 0x6ab   :  { %v14001_v63 = vld [vmem:[#allocation10 + $0x1674] sm:$0xf0] }
 0x6ac   :  { %v10991_v37 = vld [vmem:[#allocation10 + $0x1018] sm:$0xf]  ;;  %v11792_v30 = vor.u32 %v14001_v63, %v11791_v47  ;;  %7923 = vmatpush.bf16.msrb.mxu1 %v11536_v15 }
 0x6ad   :  { %v13801_v4 = vld [vmem:[#allocation10 + $0x1034] sm:$0xf0] }
 0x6ae   :  { %v11247_v6 = vld [vmem:[#allocation10 + $0x1218] sm:$0xf]  ;;  %v10992_v3 = vor.u32 %v13801_v4, %v10991_v37  ;;  %7936 = vmatpush.bf16.msrb.mxu2 %v11792_v30 }
 0x6af   :  { %v13865_v35 = vld [vmem:[#allocation10 + $0x1234] sm:$0xf0] }
 0x6b0   :  { %v11503_v55 = vld [vmem:[#allocation10 + $0x1418] sm:$0xf]  ;;  %v11248_v0 = vor.u32 %v13865_v35, %v11247_v6  ;;  %7898 = vmatpush.bf16.msra.mxu3 %v10992_v3 }
 0x6b1   :  { %v13929_v41 = vld [vmem:[#allocation10 + $0x1434] sm:$0xf0] }
 0x6b2   :  { %v11759_v61 = vld [vmem:[#allocation10 + $0x1618] sm:$0xf]  ;;  %v11504_v14 = vor.u32 %v13929_v41, %v11503_v55  ;;  %7911 = vmatpush.bf16.msrb.mxu0 %v11248_v0  ;;  %v7705_v0 = vpop.f32.mrf.mxu0 }
 0x6b3   :  { %v13993_v23 = vld [vmem:[#allocation10 + $0x1634] sm:$0xf0]  ;;  %7899 = vmatmul.bf16.vlgmr.msra.gmra.mxu3 %v14756_v53 }
 0x6b4   :  { %v12239_v9 = vld [vmem:[#allocation10 + $0x19d8] sm:$0xf]  ;;  %v11760_v18 = vor.u32 %v13993_v23, %v11759_v61  ;;  %7924 = vmatpush.bf16.msrb.mxu1 %v11504_v14 }
 0x6b5   :  { %v14113_v16 = vld [vmem:[#allocation10 + $0x19f4] sm:$0xf0]  ;;  %7912 = vmatmul.bf16.vlgmr.msrb.gmra.mxu0 %v14758_v54 }
 0x6b6   :  { %v12495_v52 = vld [vmem:[#allocation10 + $0x1bd8] sm:$0xf]  ;;  %v12240_v12 = vor.u32 %v14113_v16, %v12239_v9  ;;  %7937 = vmatpush.bf16.msrb.mxu2 %v11760_v18 }
 0x6b7   :  { %v14177_v48 = vld [vmem:[#allocation10 + $0x1bf4] sm:$0xf0]  ;;  %7925 = vmatmul.bf16.vlgmr.msrb.gmra.mxu1 %v14760_v59 }
 0x6b8   :  { %v12751_v21 = vld [vmem:[#allocation10 + $0x1dd8] sm:$0xf]  ;;  %v12496_v11 = vor.u32 %v14177_v48, %v12495_v52  ;;  %7943 = vmatpush.bf16.msrb.mxu3 %v12240_v12 }
 0x6b9   :  { %v14241_v24 = vld [vmem:[#allocation10 + $0x1df4] sm:$0xf0]  ;;  %7938 = vmatmul.bf16.vlgmr.msrb.gmra.mxu2 %v14762_v60 }
 0x6ba   :  { %v13007_v25 = vld [vmem:[#allocation10 + $0x1fd8] sm:$0xf]  ;;  %v12752_v31 = vor.u32 %v14241_v24, %v12751_v21  ;;  %7956 = vmatpush.bf16.msra.mxu0 %v12496_v11  ;;  %v7718_v24 = vpop.f32.mrf.mxu1 }
 0x6bb   :  { %v14305_v17 = vld [vmem:[#allocation10 + $0x1ff4] sm:$0xf0] }
 0x6bc   :  { %v12207_v28 = vld [vmem:[#allocation10 + $0x1998] sm:$0xf]  ;;  %v13008_v20 = vor.u32 %v14305_v17, %v13007_v25  ;;  %7969 = vmatpush.bf16.msra.mxu1 %v12752_v31 }
 0x6bd   :  { %v14105_v1 = vld [vmem:[#allocation10 + $0x19b4] sm:$0xf0] }
 0x6be   :  { %v12463_v32 = vld [vmem:[#allocation10 + $0x1b98] sm:$0xf]  ;;  %v12208_v29 = vor.u32 %v14105_v1, %v12207_v28  ;;  %7982 = vmatpush.bf16.msra.mxu2 %v13008_v20 }
 0x6bf   :  { %v14169_v10 = vld [vmem:[#allocation10 + $0x1bb4] sm:$0xf0] }
 0x6c0   :  { %v12719_v33 = vld [vmem:[#allocation10 + $0x1d98] sm:$0xf]  ;;  %v12464_v26 = vor.u32 %v14169_v10, %v12463_v32  ;;  %7944 = vmatpush.bf16.msrb.mxu3 %v12208_v29 }
 0x6c1   :  { %v14233_v8 = vld [vmem:[#allocation10 + $0x1db4] sm:$0xf0] }
 0x6c2   :  { %v12975_v34 = vld [vmem:[#allocation10 + $0x1f98] sm:$0xf]  ;;  %v12720_v37 = vor.u32 %v14233_v8, %v12719_v33  ;;  %7957 = vmatpush.bf16.msra.mxu0 %v12464_v26 }
 0x6c3   :  { %v14297_v5 = vld [vmem:[#allocation10 + $0x1fb4] sm:$0xf0] }
 0x6c4   :  { %v12175_v47 = vld [vmem:[#allocation10 + $0x1958] sm:$0xf]  ;;  %v12976_v22 = vor.u32 %v14297_v5, %v12975_v34  ;;  %7970 = vmatpush.bf16.msra.mxu1 %v12720_v37 }
 0x6c5   :  { %v14097_v63 = vld [vmem:[#allocation10 + $0x1974] sm:$0xf0] }
 0x6c6   :  { %v12431_v2 = vld [vmem:[#allocation10 + $0x1b58] sm:$0xf]  ;;  %v12176_v7 = vor.u32 %v14097_v63, %v12175_v47  ;;  %7983 = vmatpush.bf16.msra.mxu2 %v12976_v22  ;;  %v7692_v47 = vpop.f32.mrf.mxu3 }
 0x6c7   :  { %v14161_v4 = vld [vmem:[#allocation10 + $0x1b74] sm:$0xf0] }
 0x6c8   :  { %v12687_v6 = vld [vmem:[#allocation10 + $0x1d58] sm:$0xf]  ;;  %v12432_v55 = vor.u32 %v14161_v4, %v12431_v2  ;;  %7945 = vmatpush.bf16.msrb.mxu3 %v12176_v7  ;;  %v7693_v2 = vadd.f32 %v7692_v47, %v14924_v36  ;;  %v7731_v4 = vpop.f32.mrf.mxu2  ;;  %v9425_v47 = vld [vmem:[#allocation10 + $0x3f8] sm:$0xf0] }
 0x6c9   :  { %v14225_v35 = vld [vmem:[#allocation10 + $0x1d74] sm:$0xf0] }
 0x6ca   :  { %v12943_v15 = vld [vmem:[#allocation10 + $0x1f58] sm:$0xf]  ;;  %v12688_v58 = vor.u32 %v14225_v35, %v12687_v6  ;;  %7958 = vmatpush.bf16.msra.mxu0 %v12432_v55  ;;  %v7706_v7 = vadd.f32 %v7705_v0, %v7693_v2  ;;  %v7720_v55 = vpop.f32.mrf.mxu1  ;;  %v9681_v2 = vld [vmem:[#allocation10 + $0x5f8] sm:$0xf0] }
 0x6cb   :  { %v14289_v30 = vld [vmem:[#allocation10 + $0x1f74] sm:$0xf0]  ;;  %v13333_v55 = vld [vmem:[#allocation10 + $0x19c] sm:$0xf] }
 0x6cc   :  { %v12143_v41 = vld [vmem:[#allocation10 + $0x1918] sm:$0xf]  ;;  %v12944_v23 = vor.u32 %v14289_v30, %v12943_v15  ;;  %7971 = vmatpush.bf16.msra.mxu1 %v12688_v58  ;;  %v7707_v30 = vpop.f32.mrf.mxu0 }
 0x6cd   :  { %v14089_v61 = vld [vmem:[#allocation10 + $0x1934] sm:$0xf0] }
 0x6ce   :  { %v12399_v9 = vld [vmem:[#allocation10 + $0x1b18] sm:$0xf]  ;;  %v12144_v25 = vor.u32 %v14089_v61, %v12143_v41  ;;  %7984 = vmatpush.bf16.msra.mxu2 %v12944_v23 }
 0x6cf   :  { %v14153_v16 = vld [vmem:[#allocation10 + $0x1b34] sm:$0xf0] }
 0x6d0   :  { %v12655_v52 = vld [vmem:[#allocation10 + $0x1d18] sm:$0xf]  ;;  %v12400_v17 = vor.u32 %v14153_v16, %v12399_v9  ;;  %7946 = vmatpush.bf16.msrb.mxu3 %v12144_v25 }
 0x6d1   :  { %v14217_v48 = vld [vmem:[#allocation10 + $0x1d34] sm:$0xf0] }
 0x6d2   :  { %v12911_v21 = vld [vmem:[#allocation10 + $0x1f18] sm:$0xf]  ;;  %v12656_v12 = vor.u32 %v14217_v48, %v12655_v52  ;;  %7959 = vmatpush.bf16.msra.mxu0 %v12400_v17 }
 0x6d3   :  { %v14281_v3 = vld [vmem:[#allocation10 + $0x1f34] sm:$0xf0] }
 0x6d4   :  { %v12111_v14 = vld [vmem:[#allocation10 + $0x18d8] sm:$0xf]  ;;  %v12912_v11 = vor.u32 %v14281_v3, %v12911_v21  ;;  %7972 = vmatpush.bf16.msra.mxu1 %v12656_v12  ;;  %v7719_v21 = vadd.f32 %v7718_v24, %v7706_v7 }
 0x6d5   :  { %v14081_v18 = vld [vmem:[#allocation10 + $0x18f4] sm:$0xf0] }
 0x6d6   :  { %v12367_v28 = vld [vmem:[#allocation10 + $0x1ad8] sm:$0xf]  ;;  %v12112_v33 = vor.u32 %v14081_v18, %v12111_v14  ;;  %7985 = vmatpush.bf16.msra.mxu2 %v12912_v11  ;;  %v14931_v18 = vadd.f32 %v7731_v4, %v7719_v21  ;;  %v13533_v4 = vld [vmem:[#allocation10 + $0x7dc] sm:$0xf] }
 0x6d7   :  { %v14145_v1 = vld [vmem:[#allocation10 + $0x1af4] sm:$0xf0] }
 0x6d8   :  { %v12623_v31 = vld [vmem:[#allocation10 + $0x1cd8] sm:$0xf]  ;;  %v12368_v8 = vor.u32 %v14145_v1, %v12367_v28  ;;  %7947 = vmatpush.bf16.msrb.mxu3 %v12112_v33 }
 0x6d9   :  { %v14209_v20 = vld [vmem:[#allocation10 + $0x1cf4] sm:$0xf0] }
 0x6da   :  { %v12879_v32 = vld [vmem:[#allocation10 + $0x1ed8] sm:$0xf]  ;;  %v12624_v29 = vor.u32 %v14209_v20, %v12623_v31  ;;  %7960 = vmatpush.bf16.msra.mxu0 %v12368_v8  ;;  %v7733_v8 = vpop.f32.mrf.mxu2 }
 0x6db   :  { %v14273_v10 = vld [vmem:[#allocation10 + $0x1ef4] sm:$0xf0] }
 0x6dc   :  { %v12079_v34 = vld [vmem:[#allocation10 + $0x1898] sm:$0xf]  ;;  %v12880_v26 = vor.u32 %v14273_v10, %v12879_v32  ;;  %7973 = vmatpush.bf16.msra.mxu1 %v12624_v29  ;;  %v7694_v32 = vpop.f32.mrf.mxu3  ;;  %v9169_v29 = vld [vmem:[#allocation10 + $0x1f8] sm:$0xf0] }
 0x6dd   :  { %v14073_v5 = vld [vmem:[#allocation10 + $0x18b4] sm:$0xf0] }
 0x6de   :  { %v12335_v63 = vld [vmem:[#allocation10 + $0x1a98] sm:$0xf]  ;;  %v12080_v41 = vor.u32 %v14073_v5, %v12079_v34  ;;  %7986 = vmatpush.bf16.msra.mxu2 %v12880_v26  ;;  %v13341_v5 = vld [vmem:[#allocation10 + $0x1dc] sm:$0xf] }
 0x6df   :  { %v14137_v37 = vld [vmem:[#allocation10 + $0x1ab4] sm:$0xf0]  ;;  %v13405_v26 = vld [vmem:[#allocation10 + $0x3dc] sm:$0xf]  ;;  %v9172_v30 = vor.u32 %v13341_v5, %v9169_v29 }
 0x6e0   :  { %v12591_v22 = vld [vmem:[#allocation10 + $0x1c98] sm:$0xf]  ;;  %v12336_v61 = vor.u32 %v14137_v37, %v12335_v63  ;;  %7948 = vmatpush.bf16.msrb.mxu3 %v12080_v41  ;;  %v13469_v63 = vld [vmem:[#allocation10 + $0x5dc] sm:$0xf]  ;;  %v9428_v7 = vor.u32 %v13405_v26, %v9425_v47 }
 0x6e1   :  { %v14201_v6 = vld [vmem:[#allocation10 + $0x1cb4] sm:$0xf0]  ;;  %v9137_v41 = vld [vmem:[#allocation10 + $0x1b8] sm:$0xf0] }
 0x6e2   :  { %v12847_v35 = vld [vmem:[#allocation10 + $0x1e98] sm:$0xf]  ;;  %v12592_v9 = vor.u32 %v14201_v6, %v12591_v22  ;;  %7961 = vmatpush.bf16.msra.mxu0 %v12336_v61  ;;  %v9937_v6 = vld [vmem:[#allocation10 + $0x7f8] sm:$0xf0]  ;;  %v9684_v61 = vor.u32 %v13469_v63, %v9681_v2  ;;  %v9140_v21 = vor.u32 %v13333_v55, %v9137_v41  ;;  %v7770_v2 = vpop.f32.mrf.mxu1 }
 0x6e3   :  { %v14265_v15 = vld [vmem:[#allocation10 + $0x1eb4] sm:$0xf0]  ;;  %v13381_v5 = vld [vmem:[#allocation10 + $0x31c] sm:$0xf] }
 0x6e4   :  { %v12047_v58 = vld [vmem:[#allocation10 + $0x1858] sm:$0xf]  ;;  %v12848_v16 = vor.u32 %v14265_v15, %v12847_v35  ;;  %7974 = vmatpush.bf16.msra.mxu1 %v12592_v9  ;;  %v9393_v9 = vld [vmem:[#allocation10 + $0x3b8] sm:$0xf0] }
 0x6e5   :  { %v14065_v23 = vld [vmem:[#allocation10 + $0x1874] sm:$0xf0]  ;;  %v9329_v29 = vld [vmem:[#allocation10 + $0x338] sm:$0xf0] }
 0x6e6   :  { %v12303_v52 = vld [vmem:[#allocation10 + $0x1a58] sm:$0xf]  ;;  %v12048_v0 = vor.u32 %v14065_v23, %v12047_v58  ;;  %7987 = vmatpush.bf16.msra.mxu2 %v12848_v16  ;;  %v9940_v58 = vor.u32 %v13533_v4, %v9937_v6  ;;  %v13397_v23 = vld [vmem:[#allocation10 + $0x39c] sm:$0xf]  ;;  %v9332_v6 = vor.u32 %v13381_v5, %v9329_v29 }
 0x6e7   :  { %v14129_v48 = vld [vmem:[#allocation10 + $0x1a74] sm:$0xf0]  ;;  %v13461_v16 = vld [vmem:[#allocation10 + $0x59c] sm:$0xf] }
 0x6e8   :  { %v12559_v36 = vld [vmem:[#allocation10 + $0x1c58] sm:$0xf]  ;;  %v12304_v12 = vor.u32 %v14129_v48, %v12303_v52  ;;  %7949 = vmatpush.bf16.msrb.mxu3 %v12048_v0  ;;  %v9649_v52 = vld [vmem:[#allocation10 + $0x5b8] sm:$0xf0] }
 0x6e9   :  { %v14193_v3 = vld [vmem:[#allocation10 + $0x1c74] sm:$0xf0]  ;;  %v13525_v48 = vld [vmem:[#allocation10 + $0x79c] sm:$0xf] }
 0x6ea   :  { %v12815_v25 = vld [vmem:[#allocation10 + $0x1e58] sm:$0xf]  ;;  %v12560_v31 = vor.u32 %v14193_v3, %v12559_v36  ;;  %7962 = vmatpush.bf16.msra.mxu0 %v12304_v12  ;;  %v9905_v36 = vld [vmem:[#allocation10 + $0x7b8] sm:$0xf0]  ;;  %v9396_v3 = vor.u32 %v13397_v23, %v9393_v9 }
 0x6eb   :  { %v14257_v17 = vld [vmem:[#allocation10 + $0x1e74] sm:$0xf0]  ;;  %v9908_v0 = vor.u32 %v13525_v48, %v9905_v36  ;;  %v13389_v12 = vld [vmem:[#allocation10 + $0x35c] sm:$0xf] }
 0x6ec   :  { %v12015_v14 = vld [vmem:[#allocation10 + $0x1818] sm:$0xf]  ;;  %v12816_v20 = vor.u32 %v14257_v17, %v12815_v25  ;;  %7975 = vmatpush.bf16.msra.mxu1 %v12560_v31  ;;  %v13325_v25 = vld [vmem:[#allocation10 + $0x15c] sm:$0xf] }
 0x6ed   :  { %v14057_v11 = vld [vmem:[#allocation10 + $0x1834] sm:$0xf0]  ;;  %v9105_v17 = vld [vmem:[#allocation10 + $0x178] sm:$0xf0] }
 0x6ee   :  { %v12271_v28 = vld [vmem:[#allocation10 + $0x1a18] sm:$0xf]  ;;  %v12016_v37 = vor.u32 %v14057_v11, %v12015_v14  ;;  %7988 = vmatpush.bf16.msra.mxu2 %v12816_v20  ;;  %v9652_v14 = vor.u32 %v13461_v16, %v9649_v52  ;;  %v9361_v11 = vld [vmem:[#allocation10 + $0x378] sm:$0xf0]  ;;  %v9108_v32 = vor.u32 %v13325_v25, %v9105_v17  ;;  %v7744_v25 = vpop.f32.mrf.mxu3 }
 0x6ef   :  { %v14121_v1 = vld [vmem:[#allocation10 + $0x1a34] sm:$0xf0]  ;;  %v13517_v31 = vld [vmem:[#allocation10 + $0x75c] sm:$0xf] }
 0x6f0   :  { %v12527_v10 = vld [vmem:[#allocation10 + $0x1c18] sm:$0xf]  ;;  %v12272_v22 = vor.u32 %v14121_v1, %v12271_v28  ;;  %7950 = vmatpush.bf16.msrb.mxu3 %v12016_v37  ;;  %v13453_v28 = vld [vmem:[#allocation10 + $0x55c] sm:$0xf] }
 0x6f1   :  { %v14185_v24 = vld [vmem:[#allocation10 + $0x1c34] sm:$0xf0]  ;;  %v9617_v1 = vld [vmem:[#allocation10 + $0x578] sm:$0xf0] }
 0x6f2   :  { %v12783_v33 = vld [vmem:[#allocation10 + $0x1e18] sm:$0xf]  ;;  %v12528_v35 = vor.u32 %v14185_v24, %v12527_v10  ;;  %7963 = vmatpush.bf16.msra.mxu0 %v12272_v22  ;;  %v9873_v20 = vld [vmem:[#allocation10 + $0x778] sm:$0xf0]  ;;  %v9364_v10 = vor.u32 %v13389_v12, %v9361_v11  ;;  %v9620_v8 = vor.u32 %v13453_v28, %v9617_v1  ;;  %v7757_v22 = vpop.f32.mrf.mxu0  ;;  %v7745_v12 = vadd.f32 %v7744_v25, %v14931_v18  ;;  %v7783_v11 = vpop.f32.mrf.mxu2 }
 0x6f3   :  { %v14249_v34 = vld [vmem:[#allocation10 + $0x1e34] sm:$0xf0]  ;;  %7951 = vmatmul.bf16.vlgmr.msrb.gmra.mxu3 %v14768_v42  ;;  %v13317_v24 = vld [vmem:[#allocation10 + $0x11c] sm:$0xf] }
 0x6f4   :  { %v12784_v15 = vor.u32 %v14249_v34, %v12783_v33  ;;  %7976 = vmatpush.bf16.msra.mxu1 %v12528_v35  ;;  %7995 = vmatpush.bf16.msra.mxu3 %v9172_v30  ;;  %v9073_v33 = vld [vmem:[#allocation10 + $0x138] sm:$0xf0]  ;;  %v9876_v34 = vor.u32 %v13517_v31, %v9873_v20 }
 0x6f5   :  { %7964 = vmatmul.bf16.vlgmr.msra.gmra.mxu0 %v14770_v45  ;;  %v13445_v26 = vld [vmem:[#allocation10 + $0x51c] sm:$0xf]  ;;  %v9076_v4 = vor.u32 %v13317_v24, %v9073_v33 }
 0x6f6   :  { %7989 = vmatpush.bf16.msra.mxu2 %v12784_v15  ;;  %8008 = vmatpush.bf16.msrb.mxu0 %v9428_v7  ;;  %v9585_v47 = vld [vmem:[#allocation10 + $0x538] sm:$0xf0] }
 0x6f7   :  { %7977 = vmatmul.bf16.vlgmr.msra.gmra.mxu1 %v14772_v46  ;;  %v13509_v63 = vld [vmem:[#allocation10 + $0x71c] sm:$0xf]  ;;  %v9588_v30 = vor.u32 %v13445_v26, %v9585_v47 }
 0x6f8   :  { %8021 = vmatpush.bf16.msrb.mxu1 %v9684_v61  ;;  %7996 = vmatpush.bf16.msra.mxu3 %v9140_v21  ;;  %v9841_v37 = vld [vmem:[#allocation10 + $0x738] sm:$0xf0] }
 0x6f9   :  { %7990 = vmatmul.bf16.vlgmr.msra.gmra.mxu2 %v14774_v57  ;;  %v13309_v35 = vld [vmem:[#allocation10 + $0xdc] sm:$0xf]  ;;  %v9844_v7 = vor.u32 %v13509_v63, %v9841_v37 }
 0x6fa   :  { %8034 = vmatpush.bf16.msrb.mxu2 %v9940_v58  ;;  %8009 = vmatpush.bf16.msrb.mxu0 %v9396_v3  ;;  %v9041_v15 = vld [vmem:[#allocation10 + $0xf8] sm:$0xf0]  ;;  %v7759_v20 = vpop.f32.mrf.mxu0 }
 0x6fb   :  { %v13373_v55 = vld [vmem:[#allocation10 + $0x2dc] sm:$0xf]  ;;  %v9044_v16 = vor.u32 %v13309_v35, %v9041_v15 }
 0x6fc   :  { %8022 = vmatpush.bf16.msrb.mxu1 %v9652_v14  ;;  %7997 = vmatpush.bf16.msra.mxu3 %v9108_v32  ;;  %v9297_v41 = vld [vmem:[#allocation10 + $0x2f8] sm:$0xf0]  ;;  %v7758_v32 = vadd.f32 %v7757_v22, %v7745_v12 }
 0x6fd   :  { %v13437_v61 = vld [vmem:[#allocation10 + $0x4dc] sm:$0xf]  ;;  %v9300_v52 = vor.u32 %v13373_v55, %v9297_v41 }
 0x6fe   :  { %8035 = vmatpush.bf16.msrb.mxu2 %v9908_v0  ;;  %8010 = vmatpush.bf16.msrb.mxu0 %v9364_v10  ;;  %v9553_v58 = vld [vmem:[#allocation10 + $0x4f8] sm:$0xf0]  ;;  %v7772_v10 = vpop.f32.mrf.mxu1  ;;  %v7771_v63 = vadd.f32 %v7770_v2, %v7758_v32 }
 0x6ff   :  { %v13501_v23 = vld [vmem:[#allocation10 + $0x6dc] sm:$0xf]  ;;  %v9556_v21 = vor.u32 %v13437_v61, %v9553_v58 }
 0x700   :  { %8023 = vmatpush.bf16.msrb.mxu1 %v9620_v8  ;;  %v9809_v9 = vld [vmem:[#allocation10 + $0x6f8] sm:$0xf0]  ;;  %7998 = vmatpush.bf16.msra.mxu3 %v9076_v4  ;;  %v14938_v15 = vadd.f32 %v7783_v11, %v7771_v63 }
 0x701   :  { %v13301_v48 = vld [vmem:[#allocation10 + $0x9c] sm:$0xf]  ;;  %v9812_v3 = vor.u32 %v13501_v23, %v9809_v9  ;;  %v7746_v23 = vpop.f32.mrf.mxu3 }
 0x702   :  { %8036 = vmatpush.bf16.msrb.mxu2 %v9876_v34  ;;  %8011 = vmatpush.bf16.msrb.mxu0 %v9332_v6  ;;  %v9009_v36 = vld [vmem:[#allocation10 + $0xb8] sm:$0xf0] }
 0x703   :  { %v13365_v17 = vld [vmem:[#allocation10 + $0x29c] sm:$0xf]  ;;  %v9012_v24 = vor.u32 %v13301_v48, %v9009_v36 }
 0x704   :  { %8024 = vmatpush.bf16.msrb.mxu1 %v9588_v30  ;;  %v9265_v14 = vld [vmem:[#allocation10 + $0x2b8] sm:$0xf0]  ;;  %7999 = vmatpush.bf16.msra.mxu3 %v9044_v16 }
 0x705   :  { %v13429_v0 = vld [vmem:[#allocation10 + $0x49c] sm:$0xf]  ;;  %v9268_v33 = vor.u32 %v13365_v17, %v9265_v14 }
 0x706   :  { %8037 = vmatpush.bf16.msrb.mxu2 %v9844_v7  ;;  %v9521_v28 = vld [vmem:[#allocation10 + $0x4b8] sm:$0xf0]  ;;  %8012 = vmatpush.bf16.msrb.mxu0 %v9300_v52  ;;  %v7785_v52 = vpop.f32.mrf.mxu2 }
 0x707   :  { %v13493_v1 = vld [vmem:[#allocation10 + $0x69c] sm:$0xf]  ;;  %v9524_v5 = vor.u32 %v13429_v0, %v9521_v28 }
 0x708   :  { %v9777_v31 = vld [vmem:[#allocation10 + $0x6b8] sm:$0xf0]  ;;  %8025 = vmatpush.bf16.msrb.mxu1 %v9556_v21  ;;  %8000 = vmatpush.bf16.msra.mxu3 %v9012_v24 }
 0x709   :  { %v13293_v8 = vld [vmem:[#allocation10 + $0x5c] sm:$0xf]  ;;  %v9780_v29 = vor.u32 %v13493_v1, %v9777_v31 }
 0x70a   :  { %v8977_v34 = vld [vmem:[#allocation10 + $0x78] sm:$0xf0]  ;;  %8038 = vmatpush.bf16.msrb.mxu2 %v9812_v3  ;;  %8013 = vmatpush.bf16.msrb.mxu0 %v9268_v33 }
 0x70b   :  { %v13357_v26 = vld [vmem:[#allocation10 + $0x25c] sm:$0xf]  ;;  %v8980_v22 = vor.u32 %v13293_v8, %v8977_v34 }
 0x70c   :  { %v9233_v47 = vld [vmem:[#allocation10 + $0x278] sm:$0xf0]  ;;  %8026 = vmatpush.bf16.msrb.mxu1 %v9524_v5 }
 0x70d   :  { %v13421_v18 = vld [vmem:[#allocation10 + $0x45c] sm:$0xf]  ;;  %v9236_v30 = vor.u32 %v13357_v26, %v9233_v47  ;;  %8001 = vmatpush.bf16.msra.mxu3 %v8980_v22 }
 0x70e   :  { %v9489_v37 = vld [vmem:[#allocation10 + $0x478] sm:$0xf0]  ;;  %8039 = vmatpush.bf16.msrb.mxu2 %v9780_v29 }
 0x70f   :  { %v13485_v4 = vld [vmem:[#allocation10 + $0x65c] sm:$0xf]  ;;  %v9492_v61 = vor.u32 %v13421_v18, %v9489_v37  ;;  %8014 = vmatpush.bf16.msrb.mxu0 %v9236_v30 }
 0x710   :  { %v9745_v6 = vld [vmem:[#allocation10 + $0x678] sm:$0xf0] }
 0x711   :  { %v13285_v35 = vld [vmem:[#allocation10 + $0x1c] sm:$0xf]  ;;  %v9748_v58 = vor.u32 %v13485_v4, %v9745_v6  ;;  %8027 = vmatpush.bf16.msrb.mxu1 %v9492_v61 }
 0x712   :  { %v8945_v7 = vld [vmem:[#allocation10 + $0x38] sm:$0xf0] }
 0x713   :  { %v13349_v55 = vld [vmem:[#allocation10 + $0x21c] sm:$0xf]  ;;  %v8948_v14 = vor.u32 %v13285_v35, %v8945_v7  ;;  %8040 = vmatpush.bf16.msrb.mxu2 %v9748_v58 }
 0x714   :  { %v9201_v41 = vld [vmem:[#allocation10 + $0x238] sm:$0xf0] }
 0x715   :  { %v13413_v9 = vld [vmem:[#allocation10 + $0x41c] sm:$0xf]  ;;  %v9204_v0 = vor.u32 %v13349_v55, %v9201_v41  ;;  %8002 = vmatpush.bf16.msra.mxu3 %v8948_v14 }
 0x716   :  { %v9457_v2 = vld [vmem:[#allocation10 + $0x438] sm:$0xf0] }
 0x717   :  { %v13477_v16 = vld [vmem:[#allocation10 + $0x61c] sm:$0xf]  ;;  %v9460_v1 = vor.u32 %v13413_v9, %v9457_v2  ;;  %8015 = vmatpush.bf16.msrb.mxu0 %v9204_v0 }
 0x718   :  { %v9713_v48 = vld [vmem:[#allocation10 + $0x638] sm:$0xf0]  ;;  %8003 = vmatmul.bf16.vlgmr.msra.gmra.mxu3 %v14716_v49 }
 0x719   :  { %v13597_v36 = vld [vmem:[#allocation10 + $0x9dc] sm:$0xf]  ;;  %v9716_v31 = vor.u32 %v13477_v16, %v9713_v48  ;;  %8028 = vmatpush.bf16.msrb.mxu1 %v9460_v1 }
 0x71a   :  { %v10193_v21 = vld [vmem:[#allocation10 + $0x9f8] sm:$0xf0]  ;;  %8016 = vmatmul.bf16.vlgmr.msrb.gmra.mxu0 %v14718_v50 }
 0x71b   :  { %v13661_v3 = vld [vmem:[#allocation10 + $0xbdc] sm:$0xf]  ;;  %v10196_v20 = vor.u32 %v13597_v36, %v10193_v21  ;;  %8041 = vmatpush.bf16.msrb.mxu2 %v9716_v31 }
 0x71c   :  { %v10449_v25 = vld [vmem:[#allocation10 + $0xbf8] sm:$0xf0]  ;;  %8029 = vmatmul.bf16.vlgmr.msrb.gmra.mxu1 %v14720_v51  ;;  %v7822_v51 = vpop.f32.mrf.mxu1 }
 0x71d   :  { %v13725_v17 = vld [vmem:[#allocation10 + $0xddc] sm:$0xf]  ;;  %v10452_v32 = vor.u32 %v13661_v3, %v10449_v25  ;;  %8047 = vmatpush.bf16.msrb.mxu3 %v10196_v20 }
 0x71e   :  { %v10705_v12 = vld [vmem:[#allocation10 + $0xdf8] sm:$0xf0]  ;;  %8042 = vmatmul.bf16.vlgmr.msrb.gmra.mxu2 %v14726_v56 }
 0x71f   :  { %v13789_v11 = vld [vmem:[#allocation10 + $0xfdc] sm:$0xf]  ;;  %v10708_v33 = vor.u32 %v13725_v17, %v10705_v12  ;;  %8060 = vmatpush.bf16.msra.mxu0 %v10452_v32  ;;  %v7809_v17 = vpop.f32.mrf.mxu0 }
 0x720   :  { %v10961_v28 = vld [vmem:[#allocation10 + $0xff8] sm:$0xf0] }
 0x721   :  { %v13589_v10 = vld [vmem:[#allocation10 + $0x99c] sm:$0xf]  ;;  %v10964_v8 = vor.u32 %v13789_v11, %v10961_v28  ;;  %8073 = vmatpush.bf16.msra.mxu1 %v10708_v33  ;;  %v14944_v33 = vld [vmem:[#allocation11] sm:$0xff] }
 0x722   :  { %v10161_v24 = vld [vmem:[#allocation10 + $0x9b8] sm:$0xf0] }
 0x723   :  { %v13653_v34 = vld [vmem:[#allocation10 + $0xb9c] sm:$0xf]  ;;  %v10164_v63 = vor.u32 %v13589_v10, %v10161_v24  ;;  %8086 = vmatpush.bf16.msra.mxu2 %v10964_v8  ;;  %v1409_v8 = vperm.slane %v14944_v33, 6 }
 0x724   :  { %v10417_v5 = vld [vmem:[#allocation10 + $0xbb8] sm:$0xf0] }
 0x725   :  { %v13717_v29 = vld [vmem:[#allocation10 + $0xd9c] sm:$0xf]  ;;  %v10420_v37 = vor.u32 %v13653_v34, %v10417_v5  ;;  %8048 = vmatpush.bf16.msrb.mxu3 %v10164_v63  ;;  %v7796_v63 = vpop.f32.mrf.mxu3 }
 0x726   :  { %v10673_v26 = vld [vmem:[#allocation10 + $0xdb8] sm:$0xf0] }
 0x727   :  { %v13781_v47 = vld [vmem:[#allocation10 + $0xf9c] sm:$0xf]  ;;  %v10676_v35 = vor.u32 %v13717_v29, %v10673_v26  ;;  %8061 = vmatpush.bf16.msra.mxu0 %v10420_v37 }
 0x728   :  { %v10929_v18 = vld [vmem:[#allocation10 + $0xfb8] sm:$0xf0] }
 0x729   :  { %v13581_v4 = vld [vmem:[#allocation10 + $0x95c] sm:$0xf]  ;;  %v10932_v22 = vor.u32 %v13781_v47, %v10929_v18  ;;  %8074 = vmatpush.bf16.msra.mxu1 %v10676_v35  ;;  %v7797_v35 = vadd.f32 %v7796_v63, %v1409_v8 }
 0x72a   :  { %v10129_v6 = vld [vmem:[#allocation10 + $0x978] sm:$0xf0] }
 0x72b   :  { %v13645_v30 = vld [vmem:[#allocation10 + $0xb5c] sm:$0xf]  ;;  %v10132_v23 = vor.u32 %v13581_v4, %v10129_v6  ;;  %8087 = vmatpush.bf16.msra.mxu2 %v10932_v22  ;;  %v7835_v22 = vpop.f32.mrf.mxu2 }
 0x72c   :  { %v10385_v7 = vld [vmem:[#allocation10 + $0xb78] sm:$0xf0] }
 0x72d   :  { %v13709_v55 = vld [vmem:[#allocation10 + $0xd5c] sm:$0xf]  ;;  %v10388_v9 = vor.u32 %v13645_v30, %v10385_v7  ;;  %8049 = vmatpush.bf16.msrb.mxu3 %v10132_v23 }
 0x72e   :  { %v10641_v41 = vld [vmem:[#allocation10 + $0xd78] sm:$0xf0] }
 0x72f   :  { %v13773_v61 = vld [vmem:[#allocation10 + $0xf5c] sm:$0xf]  ;;  %v10644_v52 = vor.u32 %v13709_v55, %v10641_v41  ;;  %8062 = vmatpush.bf16.msra.mxu0 %v10388_v9  ;;  %v7811_v41 = vpop.f32.mrf.mxu0 }
 0x730   :  { %v10897_v58 = vld [vmem:[#allocation10 + $0xf78] sm:$0xf0] }
 0x731   :  { %v13573_v2 = vld [vmem:[#allocation10 + $0x91c] sm:$0xf]  ;;  %v10900_v48 = vor.u32 %v13773_v61, %v10897_v58  ;;  %8075 = vmatpush.bf16.msra.mxu1 %v10644_v52  ;;  %v7810_v61 = vadd.f32 %v7809_v17, %v7797_v35  ;;  %v7824_v58 = vpop.f32.mrf.mxu1 }
 0x732   :  { %v10097_v16 = vld [vmem:[#allocation10 + $0x938] sm:$0xf0] }
 0x733   :  { %v13637_v49 = vld [vmem:[#allocation10 + $0xb1c] sm:$0xf]  ;;  %v10100_v56 = vor.u32 %v13573_v2, %v10097_v16  ;;  %8088 = vmatpush.bf16.msra.mxu2 %v10900_v48  ;;  %v7837_v8 = vpop.f32.mrf.mxu2 }
 0x734   :  { %v10353_v36 = vld [vmem:[#allocation10 + $0xb38] sm:$0xf0] }
 0x735   :  { %v13701_v50 = vld [vmem:[#allocation10 + $0xd1c] sm:$0xf]  ;;  %v10356_v14 = vor.u32 %v13637_v49, %v10353_v36  ;;  %8050 = vmatpush.bf16.msrb.mxu3 %v10100_v56 }
 0x736   :  { %v10609_v21 = vld [vmem:[#allocation10 + $0xd38] sm:$0xf0] }
 0x737   :  { %v13765_v3 = vld [vmem:[#allocation10 + $0xf1c] sm:$0xf]  ;;  %v10612_v28 = vor.u32 %v13701_v50, %v10609_v21  ;;  %8063 = vmatpush.bf16.msra.mxu0 %v10356_v14  ;;  %v7823_v21 = vadd.f32 %v7822_v51, %v7810_v61 }
 0x738   :  { %v10865_v25 = vld [vmem:[#allocation10 + $0xf38] sm:$0xf0] }
 0x739   :  { %v13565_v0 = vld [vmem:[#allocation10 + $0x8dc] sm:$0xf]  ;;  %v10868_v1 = vor.u32 %v13765_v3, %v10865_v25  ;;  %8076 = vmatpush.bf16.msra.mxu1 %v10612_v28 }
 0x73a   :  { %v10065_v12 = vld [vmem:[#allocation10 + $0x8f8] sm:$0xf0] }
 0x73b   :  { %v13629_v11 = vld [vmem:[#allocation10 + $0xadc] sm:$0xf]  ;;  %v10068_v34 = vor.u32 %v13565_v0, %v10065_v12  ;;  %8089 = vmatpush.bf16.msra.mxu2 %v10868_v1  ;;  %v14947_v0 = vadd.f32 %v7835_v22, %v7823_v21 }
 0x73c   :  { %v10321_v31 = vld [vmem:[#allocation10 + $0xaf8] sm:$0xf0] }
 0x73d   :  { %v13693_v20 = vld [vmem:[#allocation10 + $0xcdc] sm:$0xf]  ;;  %v10324_v5 = vor.u32 %v13629_v11, %v10321_v31  ;;  %8051 = vmatpush.bf16.msrb.mxu3 %v10068_v34 }
 0x73e   :  { %v10577_v32 = vld [vmem:[#allocation10 + $0xcf8] sm:$0xf0] }
 0x73f   :  { %v13757_v10 = vld [vmem:[#allocation10 + $0xedc] sm:$0xf]  ;;  %v10580_v47 = vor.u32 %v13693_v20, %v10577_v32  ;;  %8064 = vmatpush.bf16.msra.mxu0 %v10324_v5  ;;  %v7798_v32 = vpop.f32.mrf.mxu3 }
 0x740   :  { %v10833_v24 = vld [vmem:[#allocation10 + $0xef8] sm:$0xf0] }
 0x741   :  { %v13557_v29 = vld [vmem:[#allocation10 + $0x89c] sm:$0xf]  ;;  %v10836_v18 = vor.u32 %v13757_v10, %v10833_v24  ;;  %8077 = vmatpush.bf16.msra.mxu1 %v10580_v47 }
 0x742   :  { %v10033_v26 = vld [vmem:[#allocation10 + $0x8b8] sm:$0xf0] }
 0x743   :  { %v13621_v37 = vld [vmem:[#allocation10 + $0xa9c] sm:$0xf]  ;;  %v10036_v23 = vor.u32 %v13557_v29, %v10033_v26  ;;  %8090 = vmatpush.bf16.msra.mxu2 %v10836_v18 }
 0x744   :  { %v10289_v4 = vld [vmem:[#allocation10 + $0xab8] sm:$0xf0] }
 0x745   :  { %v13685_v6 = vld [vmem:[#allocation10 + $0xc9c] sm:$0xf]  ;;  %v10292_v9 = vor.u32 %v13621_v37, %v10289_v4  ;;  %8052 = vmatpush.bf16.msrb.mxu3 %v10036_v23 }
 0x746   :  { %v10545_v30 = vld [vmem:[#allocation10 + $0xcb8] sm:$0xf0] }
 0x747   :  { %v13749_v7 = vld [vmem:[#allocation10 + $0xe9c] sm:$0xf]  ;;  %v10548_v52 = vor.u32 %v13685_v6, %v10545_v30  ;;  %8065 = vmatpush.bf16.msra.mxu0 %v10292_v9 }
 0x748   :  { %v10801_v55 = vld [vmem:[#allocation10 + $0xeb8] sm:$0xf0] }
 0x749   :  { %v13549_v2 = vld [vmem:[#allocation10 + $0x85c] sm:$0xf]  ;;  %v10804_v48 = vor.u32 %v13749_v7, %v10801_v55  ;;  %8078 = vmatpush.bf16.msra.mxu1 %v10548_v52 }
 0x74a   :  { %v10001_v16 = vld [vmem:[#allocation10 + $0x878] sm:$0xf0] }
 0x74b   :  { %v13613_v49 = vld [vmem:[#allocation10 + $0xa5c] sm:$0xf]  ;;  %v10004_v17 = vor.u32 %v13549_v2, %v10001_v16  ;;  %8091 = vmatpush.bf16.msra.mxu2 %v10804_v48 }
 0x74c   :  { %v10257_v36 = vld [vmem:[#allocation10 + $0xa78] sm:$0xf0] }
 0x74d   :  { %v13677_v50 = vld [vmem:[#allocation10 + $0xc5c] sm:$0xf]  ;;  %v10260_v12 = vor.u32 %v13613_v49, %v10257_v36  ;;  %8053 = vmatpush.bf16.msrb.mxu3 %v10004_v17 }
 0x74e   :  { %v10513_v3 = vld [vmem:[#allocation10 + $0xc78] sm:$0xf0] }
 0x74f   :  { %v13741_v25 = vld [vmem:[#allocation10 + $0xe5c] sm:$0xf]  ;;  %v10516_v31 = vor.u32 %v13677_v50, %v10513_v3  ;;  %8066 = vmatpush.bf16.msra.mxu0 %v10260_v12 }
 0x750   :  { %v10769_v56 = vld [vmem:[#allocation10 + $0xe78] sm:$0xf0] }
 0x751   :  { %v13541_v14 = vld [vmem:[#allocation10 + $0x81c] sm:$0xf]  ;;  %v10772_v20 = vor.u32 %v13741_v25, %v10769_v56  ;;  %8079 = vmatpush.bf16.msra.mxu1 %v10516_v31 }
 0x752   :  { %v9969_v11 = vld [vmem:[#allocation10 + $0x838] sm:$0xf0] }
 0x753   :  { %v13605_v28 = vld [vmem:[#allocation10 + $0xa1c] sm:$0xf]  ;;  %v9972_v63 = vor.u32 %v13541_v14, %v9969_v11  ;;  %8092 = vmatpush.bf16.msra.mxu2 %v10772_v20 }
 0x754   :  { %v10225_v1 = vld [vmem:[#allocation10 + $0xa38] sm:$0xf0] }
 0x755   :  { %v13669_v10 = vld [vmem:[#allocation10 + $0xc1c] sm:$0xf]  ;;  %v10228_v37 = vor.u32 %v13605_v28, %v10225_v1  ;;  %8054 = vmatpush.bf16.msrb.mxu3 %v9972_v63 }
 0x756   :  { %v10481_v51 = vld [vmem:[#allocation10 + $0xc38] sm:$0xf0] }
 0x757   :  { %v13733_v24 = vld [vmem:[#allocation10 + $0xe1c] sm:$0xf]  ;;  %v10484_v22 = vor.u32 %v13669_v10, %v10481_v51  ;;  %8067 = vmatpush.bf16.msra.mxu0 %v10228_v37 }
 0x758   :  { %v10737_v34 = vld [vmem:[#allocation10 + $0xe38] sm:$0xf0]  ;;  %8055 = vmatmul.bf16.vlgmr.msrb.gmra.mxu3 %v14738_v38 }
 0x759   :  { %v13853_v5 = vld [vmem:[#allocation10 + $0x11dc] sm:$0xf]  ;;  %v10740_v30 = vor.u32 %v13733_v24, %v10737_v34  ;;  %8080 = vmatpush.bf16.msra.mxu1 %v10484_v22 }
 0x75a   :  { %v11217_v29 = vld [vmem:[#allocation10 + $0x11f8] sm:$0xf0]  ;;  %8068 = vmatmul.bf16.vlgmr.msra.gmra.mxu0 %v14742_v39 }
 0x75b   :  { %v13917_v26 = vld [vmem:[#allocation10 + $0x13dc] sm:$0xf]  ;;  %v11220_v7 = vor.u32 %v13853_v5, %v11217_v29  ;;  %8093 = vmatpush.bf16.msra.mxu2 %v10740_v30 }
 0x75c   :  { %v11473_v47 = vld [vmem:[#allocation10 + $0x13f8] sm:$0xf0]  ;;  %8081 = vmatmul.bf16.vlgmr.msra.gmra.mxu1 %v14746_v43  ;;  %v7874_v43 = vpop.f32.mrf.mxu1 }
 0x75d   :  { %v13981_v18 = vld [vmem:[#allocation10 + $0x15dc] sm:$0xf]  ;;  %v11476_v55 = vor.u32 %v13917_v26, %v11473_v47  ;;  %8099 = vmatpush.bf16.msra.mxu3 %v11220_v7  ;;  %v7861_v26 = vpop.f32.mrf.mxu0 }
 0x75e   :  { %v11729_v4 = vld [vmem:[#allocation10 + $0x15f8] sm:$0xf0]  ;;  %8094 = vmatmul.bf16.vlgmr.msra.gmra.mxu2 %v14750_v44 }
 0x75f   :  { %v14045_v6 = vld [vmem:[#allocation10 + $0x17dc] sm:$0xf]  ;;  %v11732_v58 = vor.u32 %v13981_v18, %v11729_v4  ;;  %8112 = vmatpush.bf16.msrb.mxu0 %v11476_v55 }
 0x760   :  { %v11985_v35 = vld [vmem:[#allocation10 + $0x17f8] sm:$0xf0] }
 0x761   :  { %v13845_v41 = vld [vmem:[#allocation10 + $0x119c] sm:$0xf]  ;;  %v11988_v23 = vor.u32 %v14045_v6, %v11985_v35  ;;  %8125 = vmatpush.bf16.msrb.mxu1 %v11732_v58 }
 0x762   :  { %v11185_v61 = vld [vmem:[#allocation10 + $0x11b8] sm:$0xf0] }
 0x763   :  { %v13909_v9 = vld [vmem:[#allocation10 + $0x139c] sm:$0xf]  ;;  %v11188_v36 = vor.u32 %v13845_v41, %v11185_v61  ;;  %8138 = vmatpush.bf16.msrb.mxu2 %v11988_v23 }
 0x764   :  { %v11441_v2 = vld [vmem:[#allocation10 + $0x13b8] sm:$0xf0] }
 0x765   :  { %v13973_v16 = vld [vmem:[#allocation10 + $0x159c] sm:$0xf]  ;;  %v11444_v50 = vor.u32 %v13909_v9, %v11441_v2  ;;  %8100 = vmatpush.bf16.msra.mxu3 %v11188_v36 }
 0x766   :  { %v11697_v52 = vld [vmem:[#allocation10 + $0x15b8] sm:$0xf0] }
 0x767   :  { %v14037_v48 = vld [vmem:[#allocation10 + $0x179c] sm:$0xf]  ;;  %v11700_v25 = vor.u32 %v13973_v16, %v11697_v52  ;;  %8113 = vmatpush.bf16.msrb.mxu0 %v11444_v50  ;;  %v7848_v16 = vpop.f32.mrf.mxu3  ;;  %v7887_v50 = vpop.f32.mrf.mxu2 }
 0x768   :  { %v11953_v49 = vld [vmem:[#allocation10 + $0x17b8] sm:$0xf0]  ;;  %v7849_v36 = vadd.f32 %v7848_v16, %v14947_v0 }
 0x769   :  { %v13837_v21 = vld [vmem:[#allocation10 + $0x115c] sm:$0xf]  ;;  %v11956_v56 = vor.u32 %v14037_v48, %v11953_v49  ;;  %8126 = vmatpush.bf16.msrb.mxu1 %v11700_v25 }
 0x76a   :  { %v11153_v3 = vld [vmem:[#allocation10 + $0x1178] sm:$0xf0] }
 0x76b   :  { %v13901_v14 = vld [vmem:[#allocation10 + $0x135c] sm:$0xf]  ;;  %v11156_v31 = vor.u32 %v13837_v21, %v11153_v3  ;;  %8139 = vmatpush.bf16.msrb.mxu2 %v11956_v56  ;;  %v7863_v56 = vpop.f32.mrf.mxu0 }
 0x76c   :  { %v11409_v17 = vld [vmem:[#allocation10 + $0x1378] sm:$0xf0] }
 0x76d   :  { %v13965_v12 = vld [vmem:[#allocation10 + $0x155c] sm:$0xf]  ;;  %v11412_v20 = vor.u32 %v13901_v14, %v11409_v17  ;;  %8101 = vmatpush.bf16.msra.mxu3 %v11156_v31  ;;  %v7862_v14 = vadd.f32 %v7861_v26, %v7849_v36  ;;  %v7876_v17 = vpop.f32.mrf.mxu1 }
 0x76e   :  { %v11665_v11 = vld [vmem:[#allocation10 + $0x1578] sm:$0xf0] }
 0x76f   :  { %v14029_v28 = vld [vmem:[#allocation10 + $0x175c] sm:$0xf]  ;;  %v11668_v51 = vor.u32 %v13965_v12, %v11665_v11  ;;  %8114 = vmatpush.bf16.msrb.mxu0 %v11412_v20 }
 0x770   :  { %v11921_v1 = vld [vmem:[#allocation10 + $0x1778] sm:$0xf0] }
 0x771   :  { %v13829_v32 = vld [vmem:[#allocation10 + $0x111c] sm:$0xf]  ;;  %v11924_v24 = vor.u32 %v14029_v28, %v11921_v1  ;;  %8127 = vmatpush.bf16.msrb.mxu1 %v11668_v51  ;;  %v7875_v51 = vadd.f32 %v7874_v43, %v7862_v14 }
 0x772   :  { %v11121_v10 = vld [vmem:[#allocation10 + $0x1138] sm:$0xf0] }
 0x773   :  { %v13893_v38 = vld [vmem:[#allocation10 + $0x131c] sm:$0xf]  ;;  %v11124_v44 = vor.u32 %v13829_v32, %v11121_v10  ;;  %8140 = vmatpush.bf16.msrb.mxu2 %v11924_v24 }
 0x774   :  { %v11377_v8 = vld [vmem:[#allocation10 + $0x1338] sm:$0xf0] }
 0x775   :  { %v13957_v39 = vld [vmem:[#allocation10 + $0x151c] sm:$0xf]  ;;  %v11380_v47 = vor.u32 %v13893_v38, %v11377_v8  ;;  %8102 = vmatpush.bf16.msra.mxu3 %v11124_v44 }
 0x776   :  { %v11633_v34 = vld [vmem:[#allocation10 + $0x1538] sm:$0xf0] }
 0x777   :  { %v14021_v5 = vld [vmem:[#allocation10 + $0x171c] sm:$0xf]  ;;  %v11636_v37 = vor.u32 %v13957_v39, %v11633_v34  ;;  %8115 = vmatpush.bf16.msrb.mxu0 %v11380_v47  ;;  %v14954_v34 = vadd.f32 %v7887_v50, %v7875_v51 }
 0x778   :  { %v11889_v29 = vld [vmem:[#allocation10 + $0x1738] sm:$0xf0] }
 0x779   :  { %v13821_v18 = vld [vmem:[#allocation10 + $0x10dc] sm:$0xf]  ;;  %v11892_v4 = vor.u32 %v14021_v5, %v11889_v29  ;;  %8128 = vmatpush.bf16.msrb.mxu1 %v11636_v37  ;;  %v7850_v37 = vpop.f32.mrf.mxu3 }
 0x77a   :  { %v11089_v63 = vld [vmem:[#allocation10 + $0x10f8] sm:$0xf0] }
 0x77b   :  { %v13885_v6 = vld [vmem:[#allocation10 + $0x12dc] sm:$0xf]  ;;  %v11092_v41 = vor.u32 %v13821_v18, %v11089_v63  ;;  %8141 = vmatpush.bf16.msrb.mxu2 %v11892_v4 }
 0x77c   :  { %v11345_v35 = vld [vmem:[#allocation10 + $0x12f8] sm:$0xf0] }
 0x77d   :  { %v13949_v22 = vld [vmem:[#allocation10 + $0x14dc] sm:$0xf]  ;;  %v11348_v61 = vor.u32 %v13885_v6, %v11345_v35  ;;  %8103 = vmatpush.bf16.msra.mxu3 %v11092_v41  ;;  %v7889_v35 = vpop.f32.mrf.mxu2 }
 0x77e   :  { %v11601_v30 = vld [vmem:[#allocation10 + $0x14f8] sm:$0xf0]  ;;  %v7913_v35 = vpop.f32.mrf.mxu0 }
 0x77f   :  { %v14013_v7 = vld [vmem:[#allocation10 + $0x16dc] sm:$0xf]  ;;  %v11604_v9 = vor.u32 %v13949_v22, %v11601_v30  ;;  %8116 = vmatpush.bf16.msrb.mxu0 %v11348_v61 }
 0x780   :  { %v11857_v55 = vld [vmem:[#allocation10 + $0x16f8] sm:$0xf0] }
 0x781   :  { %v13813_v58 = vld [vmem:[#allocation10 + $0x109c] sm:$0xf]  ;;  %v11860_v2 = vor.u32 %v14013_v7, %v11857_v55  ;;  %8129 = vmatpush.bf16.msrb.mxu1 %v11604_v9 }
 0x782   :  { %v11057_v23 = vld [vmem:[#allocation10 + $0x10b8] sm:$0xf0] }
 0x783   :  { %v13877_v52 = vld [vmem:[#allocation10 + $0x129c] sm:$0xf]  ;;  %v11060_v12 = vor.u32 %v13813_v58, %v11057_v23  ;;  %8142 = vmatpush.bf16.msrb.mxu2 %v11860_v2 }
 0x784   :  { %v11313_v48 = vld [vmem:[#allocation10 + $0x12b8] sm:$0xf0] }
 0x785   :  { %v13941_v49 = vld [vmem:[#allocation10 + $0x149c] sm:$0xf]  ;;  %v11316_v11 = vor.u32 %v13877_v52, %v11313_v48  ;;  %8104 = vmatpush.bf16.msra.mxu3 %v11060_v12 }
 0x786   :  { %v11569_v21 = vld [vmem:[#allocation10 + $0x14b8] sm:$0xf0] }
 0x787   :  { %v14005_v3 = vld [vmem:[#allocation10 + $0x169c] sm:$0xf]  ;;  %v11572_v31 = vor.u32 %v13941_v49, %v11569_v21  ;;  %8117 = vmatpush.bf16.msrb.mxu0 %v11316_v11 }
 0x788   :  { %v11825_v25 = vld [vmem:[#allocation10 + $0x16b8] sm:$0xf0] }
 0x789   :  { %v13805_v28 = vld [vmem:[#allocation10 + $0x105c] sm:$0xf]  ;;  %v11828_v20 = vor.u32 %v14005_v3, %v11825_v25  ;;  %8130 = vmatpush.bf16.msrb.mxu1 %v11572_v31 }
 0x78a   :  { %v11025_v1 = vld [vmem:[#allocation10 + $0x1078] sm:$0xf0] }
 0x78b   :  { %v13869_v32 = vld [vmem:[#allocation10 + $0x125c] sm:$0xf]  ;;  %v11028_v5 = vor.u32 %v13805_v28, %v11025_v1  ;;  %8143 = vmatpush.bf16.msrb.mxu2 %v11828_v20 }
 0x78c   :  { %v11281_v10 = vld [vmem:[#allocation10 + $0x1278] sm:$0xf0] }
 0x78d   :  { %v13933_v0 = vld [vmem:[#allocation10 + $0x145c] sm:$0xf]  ;;  %v11284_v29 = vor.u32 %v13869_v32, %v11281_v10  ;;  %8105 = vmatpush.bf16.msra.mxu3 %v11028_v5 }
 0x78e   :  { %v11537_v24 = vld [vmem:[#allocation10 + $0x1478] sm:$0xf0] }
 0x78f   :  { %v13997_v38 = vld [vmem:[#allocation10 + $0x165c] sm:$0xf]  ;;  %v11540_v18 = vor.u32 %v13933_v0, %v11537_v24  ;;  %8118 = vmatpush.bf16.msrb.mxu0 %v11284_v29 }
 0x790   :  { %v11793_v8 = vld [vmem:[#allocation10 + $0x1678] sm:$0xf0] }
 0x791   :  { %v13797_v39 = vld [vmem:[#allocation10 + $0x101c] sm:$0xf]  ;;  %v11796_v63 = vor.u32 %v13997_v38, %v11793_v8  ;;  %8131 = vmatpush.bf16.msrb.mxu1 %v11540_v18 }
 0x792   :  { %v10993_v26 = vld [vmem:[#allocation10 + $0x1038] sm:$0xf0] }
 0x793   :  { %v13861_v44 = vld [vmem:[#allocation10 + $0x121c] sm:$0xf]  ;;  %v10996_v58 = vor.u32 %v13797_v39, %v10993_v26  ;;  %8144 = vmatpush.bf16.msrb.mxu2 %v11796_v63 }
 0x794   :  { %v11249_v47 = vld [vmem:[#allocation10 + $0x1238] sm:$0xf0] }
 0x795   :  { %v13925_v4 = vld [vmem:[#allocation10 + $0x141c] sm:$0xf]  ;;  %v11252_v23 = vor.u32 %v13861_v44, %v11249_v47  ;;  %8106 = vmatpush.bf16.msra.mxu3 %v10996_v58 }
 0x796   :  { %v11505_v43 = vld [vmem:[#allocation10 + $0x1438] sm:$0xf0] }
 0x797   :  { %v13989_v6 = vld [vmem:[#allocation10 + $0x161c] sm:$0xf]  ;;  %v11508_v52 = vor.u32 %v13925_v4, %v11505_v43  ;;  %8119 = vmatpush.bf16.msrb.mxu0 %v11252_v23 }
 0x798   :  { %v11761_v22 = vld [vmem:[#allocation10 + $0x1638] sm:$0xf0]  ;;  %8107 = vmatmul.bf16.vlgmr.msra.gmra.mxu3 %v14756_v53 }
 0x799   :  { %v14109_v30 = vld [vmem:[#allocation10 + $0x19dc] sm:$0xf]  ;;  %v11764_v48 = vor.u32 %v13989_v6, %v11761_v22  ;;  %8132 = vmatpush.bf16.msrb.mxu1 %v11508_v52 }
 0x79a   :  { %v12241_v7 = vld [vmem:[#allocation10 + $0x19f8] sm:$0xf0]  ;;  %8120 = vmatmul.bf16.vlgmr.msrb.gmra.mxu0 %v14758_v54 }
 0x79b   :  { %v14173_v55 = vld [vmem:[#allocation10 + $0x1bdc] sm:$0xf]  ;;  %v12244_v49 = vor.u32 %v14109_v30, %v12241_v7  ;;  %8145 = vmatpush.bf16.msrb.mxu2 %v11764_v48 }
 0x79c   :  { %v12497_v41 = vld [vmem:[#allocation10 + $0x1bf8] sm:$0xf0]  ;;  %8133 = vmatmul.bf16.vlgmr.msrb.gmra.mxu1 %v14760_v59  ;;  %v7926_v59 = vpop.f32.mrf.mxu1 }
 0x79d   :  { %v14237_v61 = vld [vmem:[#allocation10 + $0x1ddc] sm:$0xf]  ;;  %v12500_v36 = vor.u32 %v14173_v55, %v12497_v41  ;;  %8151 = vmatpush.bf16.msrb.mxu3 %v12244_v49 }
 0x79e   :  { %v12753_v9 = vld [vmem:[#allocation10 + $0x1df8] sm:$0xf0]  ;;  %8146 = vmatmul.bf16.vlgmr.msrb.gmra.mxu2 %v14762_v60 }
 0x79f   :  { %v14301_v2 = vld [vmem:[#allocation10 + $0x1fdc] sm:$0xf]  ;;  %v12756_v3 = vor.u32 %v14237_v61, %v12753_v9  ;;  %8164 = vmatpush.bf16.msra.mxu0 %v12500_v36 }
 0x7a0   :  { %v13009_v16 = vld [vmem:[#allocation10 + $0x1ff8] sm:$0xf0] }
 0x7a1   :  { %v14101_v50 = vld [vmem:[#allocation10 + $0x199c] sm:$0xf]  ;;  %v13012_v25 = vor.u32 %v14301_v2, %v13009_v16  ;;  %8177 = vmatpush.bf16.msra.mxu1 %v12756_v3  ;;  %v7900_v3 = vpop.f32.mrf.mxu3 }
 0x7a2   :  { %v12209_v21 = vld [vmem:[#allocation10 + $0x19b8] sm:$0xf0] }
 0x7a3   :  { %v14165_v56 = vld [vmem:[#allocation10 + $0x1b9c] sm:$0xf]  ;;  %v12212_v1 = vor.u32 %v14101_v50, %v12209_v21  ;;  %8190 = vmatpush.bf16.msra.mxu2 %v13012_v25 }
 0x7a4   :  { %v12465_v14 = vld [vmem:[#allocation10 + $0x1bb8] sm:$0xf0] }
 0x7a5   :  { %v14229_v17 = vld [vmem:[#allocation10 + $0x1d9c] sm:$0xf]  ;;  %v12468_v31 = vor.u32 %v14165_v56, %v12465_v14  ;;  %8152 = vmatpush.bf16.msrb.mxu3 %v12212_v1 }
 0x7a6   :  { %v12721_v12 = vld [vmem:[#allocation10 + $0x1db8] sm:$0xf0] }
 0x7a7   :  { %v14293_v11 = vld [vmem:[#allocation10 + $0x1f9c] sm:$0xf]  ;;  %v12724_v10 = vor.u32 %v14229_v17, %v12721_v12  ;;  %8165 = vmatpush.bf16.msra.mxu0 %v12468_v31  ;;  %v7901_v17 = vadd.f32 %v7900_v3, %v14954_v34  ;;  %v14961_v12 = vpop.f32.mrf.mxu2  ;;  %v7915_v31 = vpop.f32.mrf.mxu0  ;;  %v14327_v3 = vld [vmem:[#allocation13 + $0xa8] sm:$0xff] }
 0x7a8   :  { %v12977_v28 = vld [vmem:[#allocation10 + $0x1fb8] sm:$0xf0] }
 0x7a9   :  { %v14093_v20 = vld [vmem:[#allocation10 + $0x195c] sm:$0xf]  ;;  %v12980_v0 = vor.u32 %v14293_v11, %v12977_v28  ;;  %8178 = vmatpush.bf16.msra.mxu1 %v12724_v10 }
 0x7aa   :  { %v12177_v32 = vld [vmem:[#allocation10 + $0x1978] sm:$0xf0] }
 0x7ab   :  { %v14157_v51 = vld [vmem:[#allocation10 + $0x1b5c] sm:$0xf]  ;;  %v12180_v29 = vor.u32 %v14093_v20, %v12177_v32  ;;  %8191 = vmatpush.bf16.msra.mxu2 %v12980_v0  ;;  %v7914_v20 = vadd.f32 %v7913_v35, %v7901_v17  ;;  %v7928_v32 = vpop.f32.mrf.mxu1  ;;  %v14309_v17 = vld [vmem:[#allocation13 + $0x18] sm:$0xff] }
 0x7ac   :  { %v12433_v24 = vld [vmem:[#allocation10 + $0x1b78] sm:$0xf0] }
 0x7ad   :  { %v14221_v38 = vld [vmem:[#allocation10 + $0x1d5c] sm:$0xf]  ;;  %v12436_v26 = vor.u32 %v14157_v51, %v12433_v24  ;;  %8153 = vmatpush.bf16.msrb.mxu3 %v12180_v29  ;;  %v14963_v29 = vadd.f32 %v7926_v59, %v7914_v20 }
 0x7ae   :  { %v12689_v8 = vld [vmem:[#allocation10 + $0x1d78] sm:$0xf0] }
 0x7af   :  { %v14285_v39 = vld [vmem:[#allocation10 + $0x1f5c] sm:$0xf]  ;;  %v12692_v18 = vor.u32 %v14221_v38, %v12689_v8  ;;  %8166 = vmatpush.bf16.msra.mxu0 %v12436_v26 }
 0x7b0   :  { %v12945_v5 = vld [vmem:[#allocation10 + $0x1f78] sm:$0xf0] }
 0x7b1   :  { %v14085_v44 = vld [vmem:[#allocation10 + $0x191c] sm:$0xf]  ;;  %v12948_v63 = vor.u32 %v14285_v39, %v12945_v5  ;;  %8179 = vmatpush.bf16.msra.mxu1 %v12692_v18 }
 0x7b2   :  { %v12145_v47 = vld [vmem:[#allocation10 + $0x1938] sm:$0xf0] }
 0x7b3   :  { %v14149_v53 = vld [vmem:[#allocation10 + $0x1b1c] sm:$0xf]  ;;  %v12148_v60 = vor.u32 %v14085_v44, %v12145_v47  ;;  %8192 = vmatpush.bf16.msra.mxu2 %v12948_v63 }
 0x7b4   :  { %v12401_v37 = vld [vmem:[#allocation10 + $0x1b38] sm:$0xf0] }
 0x7b5   :  { %v14213_v54 = vld [vmem:[#allocation10 + $0x1d1c] sm:$0xf]  ;;  %v12404_v22 = vor.u32 %v14149_v53, %v12401_v37  ;;  %8154 = vmatpush.bf16.msrb.mxu3 %v12148_v60 }
 0x7b6   :  { %v12657_v4 = vld [vmem:[#allocation10 + $0x1d38] sm:$0xf0] }
 0x7b7   :  { %v14277_v43 = vld [vmem:[#allocation10 + $0x1f1c] sm:$0xf]  ;;  %v12660_v55 = vor.u32 %v14213_v54, %v12657_v4  ;;  %8167 = vmatpush.bf16.msra.mxu0 %v12404_v22  ;;  %v7941_v22 = vpop.f32.mrf.mxu2 }
 0x7b8   :  { %v12913_v6 = vld [vmem:[#allocation10 + $0x1f38] sm:$0xf0] }
 0x7b9   :  { %v14077_v30 = vld [vmem:[#allocation10 + $0x18dc] sm:$0xf]  ;;  %v12916_v41 = vor.u32 %v14277_v43, %v12913_v6  ;;  %8180 = vmatpush.bf16.msra.mxu1 %v12660_v55  ;;  %v7902_v43 = vpop.f32.mrf.mxu3 }
 0x7ba   :  { %v12113_v7 = vld [vmem:[#allocation10 + $0x18f8] sm:$0xf0]  ;;  %v14345_v43 = vld [vmem:[#allocation13 + $0x138] sm:$0xff] }
 0x7bb   :  { %v14141_v61 = vld [vmem:[#allocation10 + $0x1adc] sm:$0xf]  ;;  %v12116_v52 = vor.u32 %v14077_v30, %v12113_v7  ;;  %8193 = vmatpush.bf16.msra.mxu2 %v12916_v41 }
 0x7bc   :  { %v12369_v58 = vld [vmem:[#allocation10 + $0x1af8] sm:$0xf0] }
 0x7bd   :  { %v14205_v23 = vld [vmem:[#allocation10 + $0x1cdc] sm:$0xf]  ;;  %v12372_v48 = vor.u32 %v14141_v61, %v12369_v58  ;;  %8155 = vmatpush.bf16.msrb.mxu3 %v12116_v52 }
 0x7be   :  { %v12625_v9 = vld [vmem:[#allocation10 + $0x1cf8] sm:$0xf0] }
 0x7bf   :  { %v14269_v2 = vld [vmem:[#allocation10 + $0x1edc] sm:$0xf]  ;;  %v12628_v50 = vor.u32 %v14205_v23, %v12625_v9  ;;  %8168 = vmatpush.bf16.msra.mxu0 %v12372_v48  ;;  %v14313_v23 = vld [vmem:[#allocation13 + $0x38] sm:$0xff]  ;;  %v14975_v20 = vpop.f32.mrf.mxu2 }
 0x7c0   :  { %v12881_v16 = vld [vmem:[#allocation10 + $0x1ef8] sm:$0xf0]  ;;  %v14321_v9 = vld [vmem:[#allocation13 + $0x78] sm:$0xff] }
 0x7c1   :  { %v14069_v49 = vld [vmem:[#allocation10 + $0x189c] sm:$0xf]  ;;  %v12884_v21 = vor.u32 %v14269_v2, %v12881_v16  ;;  %8181 = vmatpush.bf16.msra.mxu1 %v12628_v50  ;;  %v14329_v2 = vld [vmem:[#allocation13 + $0xb8] sm:$0xff]  ;;  %v14311_v50 = vld [vmem:[#allocation13 + $0x28] sm:$0xff]  ;;  %v14973_v31 = vpop.f32.mrf.mxu3 }
 0x7c2   :  { %v12081_v36 = vld [vmem:[#allocation10 + $0x18b8] sm:$0xf0]  ;;  %v14337_v16 = vld [vmem:[#allocation13 + $0xf8] sm:$0xff] }
 0x7c3   :  { %v14133_v25 = vld [vmem:[#allocation10 + $0x1a9c] sm:$0xf]  ;;  %v12084_v10 = vor.u32 %v14069_v49, %v12081_v36  ;;  %8194 = vmatpush.bf16.msra.mxu2 %v12884_v21  ;;  %v14319_v21 = vld [vmem:[#allocation13 + $0x68] sm:$0xff] }
 0x7c4   :  { %v12337_v56 = vld [vmem:[#allocation10 + $0x1ab8] sm:$0xf0] }
 0x7c5   :  { %v14197_v14 = vld [vmem:[#allocation10 + $0x1c9c] sm:$0xf]  ;;  %v12340_v0 = vor.u32 %v14133_v25, %v12337_v56  ;;  %8156 = vmatpush.bf16.msrb.mxu3 %v12084_v10  ;;  %v14335_v25 = vld [vmem:[#allocation13 + $0xe8] sm:$0xff]  ;;  %v14969_v56 = vpop.f32.mrf.mxu0 }
 0x7c6   :  { %v12593_v11 = vld [vmem:[#allocation10 + $0x1cb8] sm:$0xf0] }
 0x7c7   :  { %v14261_v28 = vld [vmem:[#allocation10 + $0x1e9c] sm:$0xf]  ;;  %v12596_v38 = vor.u32 %v14197_v14, %v12593_v11  ;;  %8169 = vmatpush.bf16.msra.mxu0 %v12340_v0  ;;  %v14971_v14 = vpop.f32.mrf.mxu1  ;;  %v14317_v11 = vld [vmem:[#allocation13 + $0x58] sm:$0xff] }
 0x7c8   :  { %v12849_v1 = vld [vmem:[#allocation10 + $0x1eb8] sm:$0xf0] }
 0x7c9   :  { %v14061_v51 = vld [vmem:[#allocation10 + $0x185c] sm:$0xf]  ;;  %v12852_v8 = vor.u32 %v14261_v28, %v12849_v1  ;;  %8182 = vmatpush.bf16.msra.mxu1 %v12596_v38  ;;  %v14325_v28 = vld [vmem:[#allocation13 + $0x98] sm:$0xff] }
 0x7ca   :  { %v12049_v24 = vld [vmem:[#allocation10 + $0x1878] sm:$0xf0]  ;;  %v14333_v1 = vld [vmem:[#allocation13 + $0xd8] sm:$0xff] }
 0x7cb   :  { %v14125_v39 = vld [vmem:[#allocation10 + $0x1a5c] sm:$0xf]  ;;  %v12052_v18 = vor.u32 %v14061_v51, %v12049_v24  ;;  %8195 = vmatpush.bf16.msra.mxu2 %v12852_v8  ;;  %v14307_v8 = vld [vmem:[#allocation13 + $0x8] sm:$0xff] }
 0x7cc   :  { %v12305_v34 = vld [vmem:[#allocation10 + $0x1a78] sm:$0xf0] }
 0x7cd   :  { %v14189_v5 = vld [vmem:[#allocation10 + $0x1c5c] sm:$0xf]  ;;  %v12308_v63 = vor.u32 %v14125_v39, %v12305_v34  ;;  %8157 = vmatpush.bf16.msrb.mxu3 %v12052_v18  ;;  %v7967_v32 = vpop.f32.mrf.mxu0  ;;  %v14315_v39 = vld [vmem:[#allocation13 + $0x48] sm:$0xff]  ;;  %v14314_v18 = vld [vmem:[#allocation13 + $0x40] sm:$0xff] }
 0x7ce   :  { %v12561_v26 = vld [vmem:[#allocation10 + $0x1c78] sm:$0xf0]  ;;  %v14323_v34 = vld [vmem:[#allocation13 + $0x88] sm:$0xff] }
 0x7cf   :  { %v14253_v44 = vld [vmem:[#allocation10 + $0x1e5c] sm:$0xf]  ;;  %v12564_v54 = vor.u32 %v14189_v5, %v12561_v26  ;;  %8170 = vmatpush.bf16.msra.mxu0 %v12308_v63  ;;  %v7980_v10 = vpop.f32.mrf.mxu1  ;;  %v14331_v5 = vld [vmem:[#allocation13 + $0xc8] sm:$0xff]  ;;  %v7954_v26 = vpop.f32.mrf.mxu3  ;;  %v8203_v63 = vmax.f32 %v14802_v13, 0.0 }
 0x7d0   :  { %v12817_v47 = vld [vmem:[#allocation10 + $0x1e78] sm:$0xf0] }
 0x7d1   :  { %v14053_v53 = vld [vmem:[#allocation10 + $0x181c] sm:$0xf]  ;;  %v12820_v4 = vor.u32 %v14253_v44, %v12817_v47  ;;  %8183 = vmatpush.bf16.msra.mxu1 %v12564_v54  ;;  %v7993_v44 = vpop.f32.mrf.mxu2  ;;  %v14306_v47 = vld [vmem:[#allocation13] sm:$0xff]  ;;  %v8204_v54 = vmax.f32 %v14830_v19, 0.0  ;;  %v8211_v22 = vpack.c.bf16 %v8203_v63, %v8203_v63 }
 0x7d2   :  { %v12017_v37 = vld [vmem:[#allocation10 + $0x1838] sm:$0xf0] }
 0x7d3   :  { %v14117_v6 = vld [vmem:[#allocation10 + $0x1a1c] sm:$0xf]  ;;  %v12020_v55 = vor.u32 %v14053_v53, %v12017_v37  ;;  %8196 = vmatpush.bf16.msra.mxu2 %v12820_v4  ;;  %v14322_v53 = vld [vmem:[#allocation13 + $0x80] sm:$0xff]  ;;  %v8205_v4 = vmax.f32 %v14857_v62, 0.0  ;;  %v14343_v62 = vld [vmem:[#allocation13 + $0x128] sm:$0xff] }
 0x7d4   :  { %v12273_v35 = vld [vmem:[#allocation10 + $0x1a38] sm:$0xf0]  ;;  %v14330_v37 = vld [vmem:[#allocation13 + $0xc0] sm:$0xff] }
 0x7d5   :  { %v14181_v60 = vld [vmem:[#allocation10 + $0x1c1c] sm:$0xf]  ;;  %v12276_v41 = vor.u32 %v14117_v6, %v12273_v35  ;;  %8158 = vmatpush.bf16.msrb.mxu3 %v12020_v55  ;;  %v14353_v6 = vld [vmem:[#allocation13 + $0x178] sm:$0xff]  ;;  %v8206_v35 = vmax.f32 %v14884_v40, 0.0  ;;  %v8213_v13 = vpack.c.bf16 %v8205_v4, %v8205_v4  ;;  %v14351_v40 = vld [vmem:[#allocation13 + $0x168] sm:$0xff] }
 0x7d6   :  { %v12529_v59 = vld [vmem:[#allocation10 + $0x1c38] sm:$0xf0]  ;;  %v14367_v4 = vld [vmem:[#allocation13 + $0x1e8] sm:$0xff] }
 0x7d7   :  { %v14245_v30 = vld [vmem:[#allocation10 + $0x1e1c] sm:$0xf]  ;;  %v12532_v61 = vor.u32 %v14181_v60, %v12529_v59  ;;  %8171 = vmatpush.bf16.msra.mxu0 %v12276_v41  ;;  %v14361_v60 = vld [vmem:[#allocation13 + $0x1b8] sm:$0xff]  ;;  %v8212_v59 = vpack.c.bf16 %v8204_v54, %v8204_v54  ;;  %v8214_v55 = vpack.c.bf16 %v8206_v35, %v8206_v35  ;;  %v14359_v41 = vld [vmem:[#allocation13 + $0x1a8] sm:$0xff] }
 0x7d8   :  { %v12785_v7 = vld [vmem:[#allocation10 + $0x1e38] sm:$0xf0]  ;;  %8159 = vmatmul.bf16.vlgmr.msrb.gmra.mxu3 %v14768_v42  ;;  %v14310_v42 = vld [vmem:[#allocation13 + $0x20] sm:$0xff]  ;;  %v14365_v35 = vld [vmem:[#allocation13 + $0x1d8] sm:$0xff] }
 0x7d9   :  { %v12788_v58 = vor.u32 %v14245_v30, %v12785_v7  ;;  %8184 = vmatpush.bf16.msra.mxu1 %v12532_v61  ;;  %8735 = vmatpush.bf16.msra.mxu3 %v14313_v23  ;;  %v14312_v52 = vld [vmem:[#allocation13 + $0x30] sm:$0xff]  ;;  %v8017_v61 = vpop.f32.mrf.mxu0  ;;  %v8030_v23 = vpop.f32.mrf.mxu1 }
 0x7da   :  { %v14320_v48 = vld [vmem:[#allocation13 + $0x70] sm:$0xff]  ;;  %8172 = vmatmul.bf16.vlgmr.msra.gmra.mxu0 %v14770_v45  ;;  %v14318_v45 = vld [vmem:[#allocation13 + $0x60] sm:$0xff] }
 0x7db   :  { %8197 = vmatpush.bf16.msra.mxu2 %v12788_v58  ;;  %8748 = vmatpush.bf16.msrb.mxu0 %v14321_v9  ;;  %v14328_v49 = vld [vmem:[#allocation13 + $0xb0] sm:$0xff]  ;;  %v7940_v58 = vadd.f32 %v14961_v12, %v14963_v29  ;;  %v14342_v9 = vld [vmem:[#allocation13 + $0x120] sm:$0xff] }
 0x7dc   :  { %v14336_v36 = vld [vmem:[#allocation13 + $0xf0] sm:$0xff]  ;;  %8185 = vmatmul.bf16.vlgmr.msra.gmra.mxu1 %v14772_v46  ;;  %v14326_v46 = vld [vmem:[#allocation13 + $0xa0] sm:$0xff] }
 0x7dd   :  { %8761 = vmatpush.bf16.msrb.mxu1 %v14329_v2  ;;  %8736 = vmatpush.bf16.msra.mxu3 %v14312_v52  ;;  %v14308_v0 = vld [vmem:[#allocation13 + $0x10] sm:$0xff]  ;;  %v14350_v2 = vld [vmem:[#allocation13 + $0x160] sm:$0xff]  ;;  %v7953_v52 = vadd.f32 %v14973_v31, %v7940_v58  ;;  %v14347_v31 = vld [vmem:[#allocation13 + $0x148] sm:$0xff] }
 0x7de   :  { %8198 = vmatmul.bf16.vlgmr.msra.gmra.mxu2 %v14774_v57  ;;  %v14334_v57 = vld [vmem:[#allocation13 + $0xe0] sm:$0xff]  ;;  %v14316_v51 = vld [vmem:[#allocation13 + $0x50] sm:$0xff] }
 0x7df   :  { %8774 = vmatpush.bf16.msrb.mxu2 %v14337_v16  ;;  %8749 = vmatpush.bf16.msrb.mxu0 %v14320_v48  ;;  %v14324_v24 = vld [vmem:[#allocation13 + $0x90] sm:$0xff]  ;;  %v14358_v16 = vld [vmem:[#allocation13 + $0x1a0] sm:$0xff]  ;;  %v1410_v48 = vperm.slane %v14944_v33, 7  ;;  %v7966_v12 = vadd.f32 %v14969_v56, %v7953_v52  ;;  %v14355_v56 = vld [vmem:[#allocation13 + $0x188] sm:$0xff] }
 0x7e0   :  { %v14332_v38 = vld [vmem:[#allocation13 + $0xd0] sm:$0xff] }
 0x7e1   :  { %8762 = vmatpush.bf16.msrb.mxu1 %v14328_v49  ;;  %8737 = vmatpush.bf16.msra.mxu3 %v14311_v50  ;;  %v14344_v30 = vld [vmem:[#allocation13 + $0x130] sm:$0xff]  ;;  %v14341_v49 = vld [vmem:[#allocation13 + $0x118] sm:$0xff] }
 0x7e2   :  { %v14352_v7 = vld [vmem:[#allocation13 + $0x170] sm:$0xff]  ;;  %v14357_v50 = vld [vmem:[#allocation13 + $0x198] sm:$0xff] }
 0x7e3   :  { %8775 = vmatpush.bf16.msrb.mxu2 %v14336_v36  ;;  %8750 = vmatpush.bf16.msrb.mxu0 %v14319_v21  ;;  %v14360_v19 = vld [vmem:[#allocation13 + $0x1b0] sm:$0xff]  ;;  %v14349_v36 = vld [vmem:[#allocation13 + $0x158] sm:$0xff]  ;;  %v8004_v21 = vpop.f32.mrf.mxu3 }
 0x7e4   :  { %v8005_v29 = vadd.f32 %v8004_v21, %v1410_v48  ;;  %v14356_v33 = vld [vmem:[#allocation13 + $0x190] sm:$0xff] }
 0x7e5   :  { %8763 = vmatpush.bf16.msrb.mxu1 %v14327_v3  ;;  %8738 = vmatpush.bf16.msra.mxu3 %v14310_v42  ;;  %v8043_v3 = vpop.f32.mrf.mxu2  ;;  %v14368_v54 = vld [vmem:[#allocation13 + $0x1f0] sm:$0xff] }
 0x7e6   :  { %v8018_v42 = vadd.f32 %v8017_v61, %v8005_v29 }
 0x7e7   :  { %8776 = vmatpush.bf16.msrb.mxu2 %v14335_v25  ;;  %8751 = vmatpush.bf16.msrb.mxu0 %v14318_v45  ;;  %v8019_v25 = vpop.f32.mrf.mxu0  ;;  %v8032_v45 = vpop.f32.mrf.mxu1 }
 0x7e9   :  { %8764 = vmatpush.bf16.msrb.mxu1 %v14326_v46  ;;  %8739 = vmatpush.bf16.msra.mxu3 %v14309_v17  ;;  %v14340_v46 = vld [vmem:[#allocation13 + $0x110] sm:$0xff]  ;;  %v7979_v17 = vadd.f32 %v14971_v14, %v7966_v12  ;;  %v8208_v14 = vmax.f32 %v14938_v15, 0.0 }
 0x7eb   :  { %8777 = vmatpush.bf16.msrb.mxu2 %v14334_v57  ;;  %8752 = vmatpush.bf16.msrb.mxu0 %v14317_v11  ;;  %v14348_v57 = vld [vmem:[#allocation13 + $0x150] sm:$0xff]  ;;  %v8031_v11 = vadd.f32 %v8030_v23, %v8018_v42  ;;  %v8006_v32 = vpop.f32.mrf.mxu3  ;;  %v7992_v10 = vadd.f32 %v14975_v20, %v7979_v17 }
 0x7ed   :  { %8765 = vmatpush.bf16.msrb.mxu1 %v14325_v28  ;;  %8740 = vmatpush.bf16.msra.mxu3 %v14308_v0  ;;  %v8044_v28 = vadd.f32 %v8043_v3, %v8031_v11  ;;  %v8045_v0 = vpop.f32.mrf.mxu2 }
 0x7ef   :  { %8778 = vmatpush.bf16.msrb.mxu2 %v14333_v1  ;;  %8753 = vmatpush.bf16.msrb.mxu0 %v14316_v51  ;;  %v14339_v1 = vld [vmem:[#allocation13 + $0x108] sm:$0xff]  ;;  %v14338_v51 = vld [vmem:[#allocation13 + $0x100] sm:$0xff]  ;;  %v8069_v20 = vpop.f32.mrf.mxu0  ;;  %v8082_v44 = vpop.f32.mrf.mxu1 }
 0x7f1   :  { %8766 = vmatpush.bf16.msrb.mxu1 %v14324_v24  ;;  %8741 = vmatpush.bf16.msra.mxu3 %v14307_v8  ;;  %v14346_v24 = vld [vmem:[#allocation13 + $0x140] sm:$0xff] }
 0x7f2   :  { %v14354_v8 = vld [vmem:[#allocation13 + $0x180] sm:$0xff] }
 0x7f3   :  { %8779 = vmatpush.bf16.msrb.mxu2 %v14332_v38  ;;  %8754 = vmatpush.bf16.msrb.mxu0 %v14315_v39  ;;  %v8207_v38 = vmax.f32 %v14911_v27, 0.0  ;;  %v8209_v39 = vmax.f32 %v7992_v10, 0.0 }
 0x7f5   :  { %8767 = vmatpush.bf16.msrb.mxu1 %v14323_v34  ;;  %8742 = vmatpush.bf16.msra.mxu3 %v14306_v47  ;;  %v8215_v34 = vpack.c.bf16 %v8207_v38, %v8207_v38  ;;  %v8217_v26 = vpack.c.bf16 %v8209_v39, %v8209_v39  ;;  %v8056_v47 = vpop.f32.mrf.mxu3 }
 0x7f7   :  { %8780 = vmatpush.bf16.msrb.mxu2 %v14331_v5  ;;  %8755 = vmatpush.bf16.msrb.mxu0 %v14314_v18  ;;  %v8216_v5 = vpack.c.bf16 %v8208_v14, %v8208_v14  ;;  %v8095_v18 = vpop.f32.mrf.mxu2  ;;  %v8071_v63 = vpop.f32.mrf.mxu0 }
 0x7f8   :  { %8743 = vmatmul.bf16.vlgmr.msra.gmra.mxu3 %v8211_v22  ;;  %v8084_v27 = vpop.f32.mrf.mxu1 }
 0x7f9   :  { %8768 = vmatpush.bf16.msrb.mxu1 %v14322_v53  ;;  %8787 = vmatpush.bf16.msrb.mxu3 %v14345_v43  ;;  %v14369_v53 = vld [vmem:[#allocation13 + $0x1f8] sm:$0xff]  ;;  %v14366_v43 = vld [vmem:[#allocation13 + $0x1e0] sm:$0xff] }
 0x7fa   :  { %8756 = vmatmul.bf16.vlgmr.msrb.gmra.mxu0 %v8212_v59  ;;  %v14364_v59 = vld [vmem:[#allocation13 + $0x1d0] sm:$0xff] }
 0x7fb   :  { %8781 = vmatpush.bf16.msrb.mxu2 %v14330_v37  ;;  %8800 = vmatpush.bf16.msra.mxu0 %v14353_v6 }
 0x7fc   :  { %8769 = vmatmul.bf16.vlgmr.msrb.gmra.mxu1 %v8213_v13 }
 0x7fd   :  { %8813 = vmatpush.bf16.msra.mxu1 %v14361_v60  ;;  %8788 = vmatpush.bf16.msrb.mxu3 %v14344_v30  ;;  %v8058_v15 = vpop.f32.mrf.mxu3 }
 0x7fe   :  { %8782 = vmatmul.bf16.vlgmr.msrb.gmra.mxu2 %v8214_v55 }
 0x7ff   :  { %8801 = vmatpush.bf16.msra.mxu0 %v14352_v7  ;;  %v8097_v37 = vpop.f32.mrf.mxu2  ;;  %8826 = vmatpush.bf16.msra.mxu2 %v14369_v53  ;;  %v8057_v7 = vadd.f32 %v8056_v47, %v8044_v28  ;;  %v14384_v28 = vld [vmem:[#allocation14] ss:$0 sm:$0xff] }
 0x801   :  { %8814 = vmatpush.bf16.msra.mxu1 %v14360_v19  ;;  %8789 = vmatpush.bf16.msrb.mxu3 %v14343_v62  ;;  %v14363_v19 = vld [vmem:[#allocation13 + $0x1c8] sm:$0xff]  ;;  %v8070_v62 = vadd.f32 %v8069_v20, %v8057_v7 }
 0x803   :  { %8802 = vmatpush.bf16.msra.mxu0 %v14351_v40  ;;  %8827 = vmatpush.bf16.msra.mxu2 %v14368_v54  ;;  %v8083_v58 = vadd.f32 %v8082_v44, %v8070_v62 }
 0x805   :  { %8815 = vmatpush.bf16.msra.mxu1 %v14359_v41  ;;  %8790 = vmatpush.bf16.msrb.mxu3 %v14342_v9  ;;  %v14362_v41 = vld [vmem:[#allocation13 + $0x1c0] sm:$0xff]  ;;  %v8096_v23 = vadd.f32 %v8095_v18, %v8083_v58 }
 0x807   :  { %8803 = vmatpush.bf16.msra.mxu0 %v14350_v2  ;;  %8828 = vmatpush.bf16.msra.mxu2 %v14367_v4 }
 0x809   :  { %8816 = vmatpush.bf16.msra.mxu1 %v14358_v16  ;;  %8791 = vmatpush.bf16.msrb.mxu3 %v14341_v49 }
 0x80b   :  { %8804 = vmatpush.bf16.msra.mxu0 %v14349_v36  ;;  %8829 = vmatpush.bf16.msra.mxu2 %v14366_v43 }
 0x80d   :  { %8817 = vmatpush.bf16.msra.mxu1 %v14357_v50  ;;  %8792 = vmatpush.bf16.msrb.mxu3 %v14340_v46 }
 0x80f   :  { %8805 = vmatpush.bf16.msra.mxu0 %v14348_v57  ;;  %8830 = vmatpush.bf16.msra.mxu2 %v14365_v35 }
 0x811   :  { %8818 = vmatpush.bf16.msra.mxu1 %v14356_v33  ;;  %8793 = vmatpush.bf16.msrb.mxu3 %v14339_v1 }
 0x813   :  { %8806 = vmatpush.bf16.msra.mxu0 %v14347_v31  ;;  %8831 = vmatpush.bf16.msra.mxu2 %v14364_v59 }
 0x815   :  { %8819 = vmatpush.bf16.msra.mxu1 %v14355_v56  ;;  %8794 = vmatpush.bf16.msrb.mxu3 %v14338_v51 }
 0x817   :  { %8807 = vmatpush.bf16.msra.mxu0 %v14346_v24  ;;  %v8121_v6 = vpop.f32.mrf.mxu0  ;;  %8832 = vmatpush.bf16.msra.mxu2 %v14363_v19 }
 0x818   :  { %8795 = vmatmul.bf16.vlgmr.msrb.gmra.mxu3 %v8215_v34 }
 0x819   :  { %8820 = vmatpush.bf16.msra.mxu1 %v14354_v8  ;;  %v8134_v60 = vpop.f32.mrf.mxu1 }
 0x81a   :  { %8808 = vmatmul.bf16.vlgmr.msra.gmra.mxu0 %v8216_v5 }
 0x81b   :  { %v8108_v22 = vpop.f32.mrf.mxu3  ;;  %8833 = vmatpush.bf16.msra.mxu2 %v14362_v41 }
 0x81c   :  { %8821 = vmatmul.bf16.vlgmr.msra.gmra.mxu1 %v8217_v26  ;;  %v8109_v9 = vadd.f32 %v8108_v22, %v8096_v23 }
 0x81e   :  { %v8122_v2 = vadd.f32 %v8121_v6, %v8109_v9 }
 0x81f   :  { %v8123_v30 = vpop.f32.mrf.mxu0 }
 0x820   :  { %v8135_v52 = vadd.f32 %v8134_v60, %v8122_v2 }
 0x821   :  { %v8147_v13 = vpop.f32.mrf.mxu2  ;;  %v8136_v55 = vpop.f32.mrf.mxu1 }
 0x822   :  { %v8148_v49 = vadd.f32 %v8147_v13, %v8135_v52 }
 0x823   :  { %v8110_v40 = vpop.f32.mrf.mxu3 }
 0x829   :  { %v8149_v61 = vpop.f32.mrf.mxu2 }
 0x857   :  { %v8173_v16 = vpop.f32.mrf.mxu0 }
 0x859   :  { %v8186_v48 = vpop.f32.mrf.mxu1 }
 0x85b   :  { %v8160_v36 = vpop.f32.mrf.mxu3 }
 0x85c   :  { %v8161_v50 = vadd.f32 %v8160_v36, %v8148_v49 }
 0x85e   :  { %v8174_v29 = vadd.f32 %v8173_v16, %v8161_v50 }
 0x85f   :  { %v8175_v12 = vpop.f32.mrf.mxu0 }
 0x860   :  { %v8187_v25 = vadd.f32 %v8186_v48, %v8174_v29 }
 0x861   :  { %v8199_v21 = vpop.f32.mrf.mxu2  ;;  %v8188_v3 = vpop.f32.mrf.mxu1 }
 0x862   :  { %v8200_v42 = vadd.f32 %v8199_v21, %v8187_v25 }
 0x863   :  { %v8162_v45 = vpop.f32.mrf.mxu3 }
 0x864   :  { %v8210_v46 = vmax.f32 %v8200_v42, 0.0 }
 0x866   :  { %v8218_v33 = vpack.c.bf16 %v8210_v46, %v8210_v46 }
 0x868   :  { %8834 = vmatmul.bf16.vlgmr.msra.gmra.mxu2 %v8218_v33 }
 0x869   :  { %v8201_v57 = vpop.f32.mrf.mxu2 }
 0x877   :  { %v8757_v17 = vpop.f32.mrf.mxu0 }
 0x879   :  { %v8770_v11 = vpop.f32.mrf.mxu1 }
 0x87b   :  { %v8744_v1 = vpop.f32.mrf.mxu3 }
 0x87c   :  { %v8745_v31 = vadd.f32 %v14384_v28, %v8744_v1 }
 0x87e   :  { %v8758_v32 = vadd.f32 %v8757_v17, %v8745_v31 }
 0x87f   :  { %v8759_v10 = vpop.f32.mrf.mxu0 }
 0x880   :  { %v8771_v51 = vadd.f32 %v8770_v11, %v8758_v32 }
 0x881   :  { %v8783_v56 = vpop.f32.mrf.mxu2  ;;  %v8772_v0 = vpop.f32.mrf.mxu1 }
 0x882   :  { %v8784_v24 = vadd.f32 %v8783_v56, %v8771_v51 }
 0x883   :  { %v8746_v38 = vpop.f32.mrf.mxu3 }
 0x889   :  { %v8785_v14 = vpop.f32.mrf.mxu2 }
 0x897   :  { %v8809_v8 = vpop.f32.mrf.mxu0 }
 0x899   :  { %v8822_v39 = vpop.f32.mrf.mxu1 }
 0x89b   :  { %v8796_v34 = vpop.f32.mrf.mxu3 }
 0x89c   :  { %v8797_v5 = vadd.f32 %v8796_v34, %v8784_v24 }
 0x89e   :  { %v8810_v20 = vadd.f32 %v8809_v8, %v8797_v5 }
 0x89f   :  { %v8811_v26 = vpop.f32.mrf.mxu0 }
 0x8a0   :  { %v8823_v47 = vadd.f32 %v8822_v39, %v8810_v20 }
 0x8a1   :  { %v8824_v44 = vpop.f32.mrf.mxu1 }
 0x8a3   :  { %v8798_v18 = vpop.f32.mrf.mxu3 }
 0x8eb   :  { %v8835_v63 = vpop.f32.mrf.mxu2 }
 0x8ec   :  { %v8836_v27 = vadd.f32 %v8835_v63, %v8823_v47 }
 0x8ee   :  { %8839 = vst [vmem:[#allocation16] sm:$0x3] %v8836_v27 }
 0x8ef   :  { %8850 = dma.vmem_to_hbm [thread:$0]  %s8846_s7, 32, %s8848_s21, [#allocation4]  }
 0x8f3   :  { %v8837_v53 = vpop.f32.mrf.mxu2 }
 0x8f4   :  { %14616 = dma.done.wait [#allocation4], 32  }
 0x8f5   :  { %14617 = vsyncadd [#allocation4], 4294967264 }
 0x8f6   :  { %8855 = vsyncpa [#allocation3], 1 }
 0x8f7   :  { %8856 = vsyncpa [#allocation6], 1 }
 0x8f8   :  { %8857 = vsyncpa [#allocation9], 1 }
 0x8f9   :  { %8858 = vsyncpa [#allocation12], 1 }
 0x8fa   :  { %8859 = vsyncpa [#allocation15], 1 }
 0x8fb   :  { %8860 = vsyncpa [#allocation4], 1 }

</bundles_post_ra>
